<compile_context>
chip_gen: v6e
topology: v6e:2x2x1
jax: 0.10.0
libtpu: 0.0.40
codegen_flags: <defaults>
</compile_context>

<pallas_src>
import functools

import jax
import jax.numpy as jnp
import numpy as np
from jax.experimental import pallas as pl
from jax.experimental.pallas import tpu as pltpu

# Large-but-finite "minus infinity". Safe in both f32 and bf16 (no overflow to
# -inf when operands are cast for the one-hot gather matmul), and far below any
# post-ReLU activation, so the segment max is unaffected. Empty batches yield
# -1e30 instead of -inf (documented; batch_skip is assumed to reference only
# non-empty batches, as in the reference).
_NEG = -1e30


def _round_up(v, m):
    return ((v + m - 1) // m) * m


def _mlp_pool_kernel(x_ref, pos_ref, batch_ref, w1_ref, b1_ref, w2_ref, b2_ref,
                     pooled_ref, *, num_batches, pad_cols, compute_dtype):
    """Point tile -> (in-kernel cat/pad/cast) -> MLP -> per-batch max accumulate.

    Grid is (num_split, tiles_per_split): axis 0 is "parallel" (one split per
    TensorCore on v7x), axis 1 is the reduction over point tiles. Each split
    accumulates into its own (1, b_p, dout_p) output slice.
    """
    @pl.when(pl.program_id(1) == 0)
    def _():
        pooled_ref[...] = jnp.full(pooled_ref.shape, _NEG, pooled_ref.dtype)

    # cat([x, pos], 1) + channel padding + cast happen here, in vregs, instead
    # of as a separate HBM pass in the wrapper.
    xv = x_ref[...].astype(compute_dtype)
    pv = pos_ref[...].astype(compute_dtype)
    parts = [xv, pv]
    if pad_cols:
        parts.append(jnp.zeros((xv.shape[0], pad_cols), compute_dtype))
    xp = jnp.concatenate(parts, axis=1)                       # [tile_n, d_in_p]

    # self.nn hot path: Linear -> ReLU -> Linear -> ReLU. Operands in
    # compute_dtype (bf16 by default -> MXU native), accumulation f32.
    h = jnp.dot(xp, w1_ref[...], preferred_element_type=jnp.float32)
    h = jnp.maximum(h + b1_ref[...], 0.0)
    y = jnp.dot(h.astype(w2_ref.dtype), w2_ref[...],
                preferred_element_type=jnp.float32)
    y = jnp.maximum(y + b2_ref[...], 0.0)                     # [tile_n, dout_p] f32

    # global_max_pool: per-batch segment max over this tile. One select + one
    # point-axis reduction per batch; padded points carry batch id -1 and match
    # nothing. Padded output rows (b >= num_batches) stay at _NEG.
    bt = batch_ref[...]                                       # [tile_n, 1] int32
    b_pad = pooled_ref.shape[1]
    dout_p = y.shape[1]
    row_ids = jax.lax.broadcasted_iota(jnp.int32, (b_pad, dout_p), 0)
    tile_max = jnp.full((b_pad, dout_p), _NEG, jnp.float32)
    for b in range(num_batches):                              # B is small/static
        mx = jnp.max(jnp.where(bt == b, y, _NEG), axis=0, keepdims=True)
        tile_max = jnp.where(row_ids == b, mx, tile_max)
    pooled_ref[...] = jnp.maximum(pooled_ref[...], tile_max[None])


def _gather_concat_kernel(pooled_ref, bskip_ref, xskip_ref, out_ref, *,
                          d_out, compute_dtype):
    """knn_interpolate(k=1) == pooled[batch_skip], fused with cat([., x_skip]).

    The gather is a one-hot matmul against the 8-row-padded pooled table; the
    output block is exactly d_out + c_skip columns wide in the final dtype, so
    there is no wide intermediate and no wrapper concat afterwards.
    """
    ts = bskip_ref.shape[0]
    b_pad = pooled_ref.shape[0]
    onehot = (bskip_ref[...] ==
              jax.lax.broadcasted_iota(jnp.int32, (ts, b_pad), 1)
              ).astype(compute_dtype)
    gathered = jnp.dot(onehot, pooled_ref[...].astype(compute_dtype),
                       preferred_element_type=jnp.float32)    # [ts, dout_p]
    fused = jnp.concatenate(
        [gathered[:, :d_out], xskip_ref[...].astype(jnp.float32)], axis=1)
    out_ref[...] = fused.astype(out_ref.dtype)


def global_sa_module(x, pos, batch, x_skip, pos_skip, batch_skip, params, *,
                     num_batches, tile_n=1024, tile_s=1024, num_split=1,
                     compute_dtype=jnp.bfloat16, out_dtype=None):
    """num_split=1 for v5e/v6e (single TensorCore); pass num_split=2 on v7x.
    compute_dtype=bf16 (default) for MXU-rate matmuls; pass jnp.float32 for
    bit-tight comparisons. Elementwise math is always f32."""
    w1, b1, w2, b2 = params
    n, c_in = x.shape
    d_pos = pos.shape[1]
    n_skip, c_skip = x_skip.shape
    d_in = c_in + d_pos
    hidden = w1.shape[1]
    d_out = w2.shape[1]
    out_dtype = x_skip.dtype if out_dtype is None else out_dtype

    # MXU / lane-dense padding of channel dims; batch rows padded to 8 so
    # kernel 1 writes full (8,128) tiles.
    d_in_p = _round_up(d_in, 8)
    hid_p = _round_up(hidden, 128)
    dout_p = _round_up(d_out, 128)
    b_p = _round_up(num_batches, 8)

    # Tile sizes: large, clamped for tiny inputs, multiples of 8 sublanes.
    tile_n = max(8, _round_up(min(tile_n, _round_up(n, 8)), 8))
    tile_s = max(8, _round_up(min(tile_s, _round_up(n_skip, 8)), 8))

    n_pad = _round_up(n, tile_n * num_split)
    ns_pad = _round_up(n_skip, tile_s)
    tiles_per_split = n_pad // (tile_n * num_split)

    # Only ragged-row padding remains on the host (no-op / elided when already
    # aligned); padded points get batch id -1 and match no segment.
    x_p = jnp.pad(x, ((0, n_pad - n), (0, 0)))
    pos_p = jnp.pad(pos, ((0, n_pad - n), (0, 0)))
    batch_col = jnp.pad(batch.astype(jnp.int32).reshape(n, 1),
                        ((0, n_pad - n), (0, 0)), constant_values=-1)

    # Weights/biases are tiny: pad + cast once, then they stay VMEM-resident.
    w1p = jnp.pad(jnp.asarray(w1, jnp.float32),
                  ((0, d_in_p - d_in), (0, hid_p - hidden))).astype(compute_dtype)
    b1p = jnp.pad(jnp.asarray(b1, jnp.float32).reshape(1, -1),
                  ((0, 0), (0, hid_p - hidden)))
    w2p = jnp.pad(jnp.asarray(w2, jnp.float32),
                  ((0, hid_p - hidden), (0, dout_p - d_out))).astype(compute_dtype)
    b2p = jnp.pad(jnp.asarray(b2, jnp.float32).reshape(1, -1),
                  ((0, 0), (0, dout_p - d_out)))

    # Kernel 1: MLP + global_max_pool. Leading parallel axis (per-core partial
    # maxima), inner arbitrary axis reduces over point tiles.
    partials = pl.pallas_call(
        functools.partial(_mlp_pool_kernel, num_batches=num_batches,
                          pad_cols=d_in_p - d_in, compute_dtype=compute_dtype),
        out_shape=jax.ShapeDtypeStruct((num_split, b_p, dout_p), jnp.float32),
        grid=(num_split, tiles_per_split),
        in_specs=[
            pl.BlockSpec((tile_n, c_in), lambda c, i: (c * tiles_per_split + i, 0)),
            pl.BlockSpec((tile_n, d_pos), lambda c, i: (c * tiles_per_split + i, 0)),
            pl.BlockSpec((tile_n, 1), lambda c, i: (c * tiles_per_split + i, 0)),
            pl.BlockSpec((d_in_p, hid_p), lambda c, i: (0, 0)),
            pl.BlockSpec((1, hid_p), lambda c, i: (0, 0)),
            pl.BlockSpec((hid_p, dout_p), lambda c, i: (0, 0)),
            pl.BlockSpec((1, dout_p), lambda c, i: (0, 0)),
        ],
        out_specs=pl.BlockSpec((1, b_p, dout_p), lambda c, i: (c, 0, 0)),
        compiler_params=pltpu.CompilerParams(
            dimension_semantics=("parallel", "arbitrary")),
    )(x_p, pos_p, batch_col, w1p, b1p, w2p, b2p)

    # Combine the per-core partial maxima (trivial [num_split, b_p, dout_p]).
    pooled = jnp.max(partials, axis=0)                         # [b_p, dout_p] f32

    bskip_col = jnp.pad(batch_skip.astype(jnp.int32).reshape(n_skip, 1),
                        ((0, ns_pad - n_skip), (0, 0)))
    xskip_p = jnp.pad(x_skip, ((0, ns_pad - n_skip), (0, 0)))

    # Kernel 2: k=1 interpolate (gather by batch id) fused with the skip concat.
    out_full = pl.pallas_call(
        functools.partial(_gather_concat_kernel, d_out=d_out,
                          compute_dtype=compute_dtype),
        out_shape=jax.ShapeDtypeStruct((ns_pad, d_out + c_skip), out_dtype),
        grid=(ns_pad // tile_s,),
        in_specs=[
            pl.BlockSpec((b_p, dout_p), lambda i: (0, 0)),
            pl.BlockSpec((tile_s, 1), lambda i: (i, 0)),
            pl.BlockSpec((tile_s, c_skip), lambda i: (i, 0)),
        ],
        out_specs=pl.BlockSpec((tile_s, d_out + c_skip), lambda i: (i, 0)),
        compiler_params=pltpu.CompilerParams(
            dimension_semantics=("parallel",)),
    )(pooled, bskip_col, xskip_p)

    out = out_full[:n_skip]
    # forward returns (x, pos, batch) with pos, batch = pos_skip, batch_skip
    return out, pos_skip, batch_skip


def _reference(x, pos, batch, x_skip, pos_skip, batch_skip, params, num_batches):
    """Pure-JAX reference of the same forward pass (f32 throughout)."""
    w1, b1, w2, b2 = params
    h = jnp.maximum(jnp.concatenate([x, pos], axis=1) @ w1 + b1, 0.0)
    y = jnp.maximum(h @ w2 + b2, 0.0)
    pooled = jax.ops.segment_max(y, batch, num_segments=num_batches)
    interp = pooled[batch_skip]            # knn_interpolate with k=1, zero pos
    out = jnp.concatenate([interp, x_skip], axis=1)
    return out, pos_skip, batch_skip


if __name__ == "__main__":
    # Small deterministic problem (2 graphs x 1024 points each).
    B = 2            # number of graphs in the batch
    N = 2048         # points going into the global SA
    N_SKIP = 2048    # skip-connection points
    C_IN = 4         # input feature channels
    C_SKIP = 8       # skip feature channels
    HIDDEN = 32      # MLP hidden width
    D_OUT = 32       # MLP output width (pooled global feature size)
    D_POS = 3

    key = jax.random.PRNGKey(0)
    k = jax.random.split(key, 8)

    x = jax.random.normal(k[0], (N, C_IN), dtype=jnp.float32)
    pos = jax.random.normal(k[1], (N, D_POS), dtype=jnp.float32)
    batch = jnp.repeat(jnp.arange(B, dtype=jnp.int32), N // B)

    x_skip = jax.random.normal(k[2], (N_SKIP, C_SKIP), dtype=jnp.float32)
    pos_skip = jax.random.normal(k[3], (N_SKIP, D_POS), dtype=jnp.float32)
    batch_skip = jnp.repeat(jnp.arange(B, dtype=jnp.int32), N_SKIP // B)

    # Deterministic parameters for self.nn = MLP([C_IN+3, HIDDEN, D_OUT]).
    d_in = C_IN + D_POS
    w1 = jax.random.normal(k[4], (d_in, HIDDEN), dtype=jnp.float32) / np.sqrt(d_in)
    b1 = jax.random.normal(k[5], (1, HIDDEN), dtype=jnp.float32) * 0.1
    w2 = jax.random.normal(k[6], (HIDDEN, D_OUT), dtype=jnp.float32) / np.sqrt(HIDDEN)
    b2 = jax.random.normal(k[7], (1, D_OUT), dtype=jnp.float32) * 0.1
    params = (w1, b1, w2, b2)

    ref_out, ref_pos, ref_batch = _reference(
        x, pos, batch, x_skip, pos_skip, batch_skip, params, B)

    # f32 operand path: tight comparison against the pure-JAX reference.
    out_f32, pos_out, batch_out = global_sa_module(
        x, pos, batch, x_skip, pos_skip, batch_skip, params,
        num_batches=B, compute_dtype=jnp.float32)
    out_f32 = jax.block_until_ready(out_f32)
    np.testing.assert_allclose(np.asarray(out_f32), np.asarray(ref_out),
                               rtol=1e-4, atol=1e-4)
    np.testing.assert_allclose(np.asarray(pos_out), np.asarray(ref_pos))
    np.testing.assert_array_equal(np.asarray(batch_out), np.asarray(ref_batch))

    # bf16 matmul-operand path (default, MXU-rate on v5e/v6e/v7x). Looser
    # tolerance accounts for bf16 operand rounding; accumulation stays f32.
    out_bf16, _, _ = global_sa_module(
        x, pos, batch, x_skip, pos_skip, batch_skip, params, num_batches=B)
    out_bf16 = jax.block_until_ready(out_bf16)
    np.testing.assert_allclose(np.asarray(out_bf16), np.asarray(ref_out),
                               rtol=1e-1, atol=1e-1)

    print("KERNEL_OK")
</pallas_src>

<mosaic_0001>
module attributes {stable_mosaic.version = 11 : i64} {
  func.func @_mlp_pool_kernel(%arg0: i32, %arg1: i32, %arg2: memref<1024x4xf32, #tpu.memory_space<vmem>>, %arg3: memref<1024x3xf32, #tpu.memory_space<vmem>>, %arg4: memref<1024x1xi32, #tpu.memory_space<vmem>>, %arg5: memref<8x128xf32, #tpu.memory_space<vmem>>, %arg6: memref<1x128xf32, #tpu.memory_space<vmem>>, %arg7: memref<128x128xf32, #tpu.memory_space<vmem>>, %arg8: memref<1x128xf32, #tpu.memory_space<vmem>>, %arg9: memref<1x8x128xf32, #tpu.memory_space<vmem>>) attributes {dimension_semantics = [#tpu.dimension_semantics<parallel>, #tpu.dimension_semantics<arbitrary>], iteration_bounds = array<i64: 1, 2>, scalar_prefetch = 0 : i64, scratch_operands = 0 : i64, tpu.core_type = #tpu.core_type<tc>, window_params = [{transform_indices = @transform_0, window_bounds = array<i64: 1024, 4>}, {transform_indices = @transform_1, window_bounds = array<i64: 1024, 3>}, {transform_indices = @transform_2, window_bounds = array<i64: 1024, 1>}, {pipeline_mode = #tpu.pipeline_mode<synchronous>, transform_indices = @transform_3, window_bounds = array<i64: 8, 128>}, {pipeline_mode = #tpu.pipeline_mode<synchronous>, transform_indices = @transform_4, window_bounds = array<i64: 1, 128>}, {pipeline_mode = #tpu.pipeline_mode<synchronous>, transform_indices = @transform_5, window_bounds = array<i64: 128, 128>}, {pipeline_mode = #tpu.pipeline_mode<synchronous>, transform_indices = @transform_6, window_bounds = array<i64: 1, 128>}, {transform_indices = @transform_7, window_bounds = array<i64: 1, 8, 128>}]} {
    %c0_i32 = arith.constant 0 : i32
    %0 = arith.cmpi eq, %arg1, %c0_i32 : i32
    %1 = arith.extui %0 : i1 to i32
    %c0_i32_0 = arith.constant 0 : i32
    %2 = arith.cmpi ne, %1, %c0_i32_0 : i32
    scf.if %2 {
      %cst_32 = arith.constant -1.000000e+30 : f32
      %54 = vector.broadcast %cst_32 : f32 to vector<1x8x128xf32>
      %c0_33 = arith.constant 0 : index
      %c0_34 = arith.constant 0 : index
      %c0_35 = arith.constant 0 : index
      %55 = vector.load %arg9[%c0_33, %c0_34, %c0_35] : memref<1x8x128xf32, #tpu.memory_space<vmem>>, vector<1x8x128xf32>
      tpu.vector_store %arg9[%c0_33, %c0_34, %c0_35], %54 {strides = array<i32>} : memref<1x8x128xf32, #tpu.memory_space<vmem>>, vector<1x8x128xf32>,
    } else {
    }
    %c0 = arith.constant 0 : index
    %c0_1 = arith.constant 0 : index
    %3 = vector.load %arg2[%c0, %c0_1] : memref<1024x4xf32, #tpu.memory_space<vmem>>, vector<1024x4xf32>
    %c0_2 = arith.constant 0 : index
    %c0_3 = arith.constant 0 : index
    %4 = vector.load %arg3[%c0_2, %c0_3] : memref<1024x3xf32, #tpu.memory_space<vmem>>, vector<1024x3xf32>
    %cst = arith.constant 0.000000e+00 : f32
    %5 = vector.broadcast %cst : f32 to vector<1024x1xf32>
    %6 = tpu.concatenate %3, %4, %5 in 1 : vector<1024x4xf32>, vector<1024x3xf32>, vector<1024x1xf32> -> vector<1024x8xf32>
    %c0_4 = arith.constant 0 : index
    %c0_5 = arith.constant 0 : index
    %7 = vector.load %arg5[%c0_4, %c0_5] : memref<8x128xf32, #tpu.memory_space<vmem>>, vector<8x128xf32>
    %cst_6 = arith.constant dense<0.000000e+00> : vector<1024x128xf32>
    %8 = tpu.matmul %6, %7, %cst_6 {dimension_numbers = #tpu.dot_dimension_numbers<[1], [0], [0], [1], [0, 0, 1, 1], [], []>} : vector<1024x8xf32>, vector<8x128xf32>, vector<1024x128xf32> -> vector<1024x128xf32>
    %c0_7 = arith.constant 0 : index
    %c0_8 = arith.constant 0 : index
    %9 = vector.load %arg6[%c0_7, %c0_8] : memref<1x128xf32, #tpu.memory_space<vmem>>, vector<1x128xf32>
    %10 = vector.broadcast %9 : vector<1x128xf32> to vector<1024x128xf32>
    %11 = arith.addf %8, %10 : vector<1024x128xf32>
    %cst_9 = arith.constant 0.000000e+00 : f32
    %12 = vector.broadcast %cst_9 : f32 to vector<1024x128xf32>
    %13 = arith.maximumf %11, %12 : vector<1024x128xf32>
    %c0_10 = arith.constant 0 : index
    %c0_11 = arith.constant 0 : index
    %14 = vector.load %arg7[%c0_10, %c0_11] : memref<128x128xf32, #tpu.memory_space<vmem>>, vector<128x128xf32>
    %cst_12 = arith.constant dense<0.000000e+00> : vector<1024x128xf32>
    %15 = tpu.matmul %13, %14, %cst_12 {dimension_numbers = #tpu.dot_dimension_numbers<[1], [0], [0], [1], [0, 0, 1, 1], [], []>} : vector<1024x128xf32>, vector<128x128xf32>, vector<1024x128xf32> -> vector<1024x128xf32>
    %c0_13 = arith.constant 0 : index
    %c0_14 = arith.constant 0 : index
    %16 = vector.load %arg8[%c0_13, %c0_14] : memref<1x128xf32, #tpu.memory_space<vmem>>, vector<1x128xf32>
    %17 = vector.broadcast %16 : vector<1x128xf32> to vector<1024x128xf32>
    %18 = arith.addf %15, %17 : vector<1024x128xf32>
    %cst_15 = arith.constant 0.000000e+00 : f32
    %19 = vector.broadcast %cst_15 : f32 to vector<1024x128xf32>
    %20 = arith.maximumf %18, %19 : vector<1024x128xf32>
    %c0_16 = arith.constant 0 : index
    %c0_17 = arith.constant 0 : index
    %21 = vector.load %arg4[%c0_16, %c0_17] : memref<1024x1xi32, #tpu.memory_space<vmem>>, vector<1024x1xi32>
    %22 = tpu.iota {dimensions = array<i32: 0>} : vector<8x128xi32>
    %cst_18 = arith.constant -1.000000e+30 : f32
    %23 = vector.broadcast %cst_18 : f32 to vector<8x128xf32>
    %c0_i32_19 = arith.constant 0 : i32
    %24 = vector.broadcast %c0_i32_19 : i32 to vector<1024x1xi32>
    %25 = arith.cmpi eq, %21, %24 : vector<1024x1xi32>
    %cst_20 = arith.constant -1.000000e+30 : f32
    %26 = vector.shape_cast %25 : vector<1024x1xi1> to vector<1024x1xi1>
    %27 = vector.broadcast %26 : vector<1024x1xi1> to vector<1024x128xi1>
    %28 = vector.broadcast %cst_20 : f32 to vector<1024x128xf32>
    %29 = arith.select %27, %20, %28 : vector<1024x128xi1>, vector<1024x128xf32>
    %cst_21 = arith.constant dense<0xFF800000> : vector<128xf32>
    %30 = vector.multi_reduction <maximumf>, %29, %cst_21 [0] : vector<1024x128xf32> to vector<128xf32>
    %31 = vector.shape_cast %30 : vector<128xf32> to vector<1x128xf32>
    %c0_i32_22 = arith.constant 0 : i32
    %32 = vector.broadcast %c0_i32_22 : i32 to vector<8x128xi32>
    %33 = arith.cmpi eq, %22, %32 : vector<8x128xi32>
    %34 = vector.shape_cast %31 : vector<1x128xf32> to vector<1x128xf32>
    %35 = vector.broadcast %34 : vector<1x128xf32> to vector<8x128xf32>
    %36 = arith.select %33, %35, %23 : vector<8x128xi1>, vector<8x128xf32>
    %c1_i32 = arith.constant 1 : i32
    %37 = vector.broadcast %c1_i32 : i32 to vector<1024x1xi32>
    %38 = arith.cmpi eq, %21, %37 : vector<1024x1xi32>
    %cst_23 = arith.constant -1.000000e+30 : f32
    %39 = vector.shape_cast %38 : vector<1024x1xi1> to vector<1024x1xi1>
    %40 = vector.broadcast %39 : vector<1024x1xi1> to vector<1024x128xi1>
    %41 = vector.broadcast %cst_23 : f32 to vector<1024x128xf32>
    %42 = arith.select %40, %20, %41 : vector<1024x128xi1>, vector<1024x128xf32>
    %cst_24 = arith.constant dense<0xFF800000> : vector<128xf32>
    %43 = vector.multi_reduction <maximumf>, %42, %cst_24 [0] : vector<1024x128xf32> to vector<128xf32>
    %44 = vector.shape_cast %43 : vector<128xf32> to vector<1x128xf32>
    %c1_i32_25 = arith.constant 1 : i32
    %45 = vector.broadcast %c1_i32_25 : i32 to vector<8x128xi32>
    %46 = arith.cmpi eq, %22, %45 : vector<8x128xi32>
    %47 = vector.shape_cast %44 : vector<1x128xf32> to vector<1x128xf32>
    %48 = vector.broadcast %47 : vector<1x128xf32> to vector<8x128xf32>
    %49 = arith.select %46, %48, %36 : vector<8x128xi1>, vector<8x128xf32>
    %c0_26 = arith.constant 0 : index
    %c0_27 = arith.constant 0 : index
    %c0_28 = arith.constant 0 : index
    %50 = vector.load %arg9[%c0_26, %c0_27, %c0_28] : memref<1x8x128xf32, #tpu.memory_space<vmem>>, vector<1x8x128xf32>
    %51 = vector.shape_cast %49 : vector<8x128xf32> to vector<1x8x128xf32>
    %52 = arith.maximumf %50, %51 : vector<1x8x128xf32>
    %c0_29 = arith.constant 0 : index
    %c0_30 = arith.constant 0 : index
    %c0_31 = arith.constant 0 : index
    %53 = vector.load %arg9[%c0_29, %c0_30, %c0_31] : memref<1x8x128xf32, #tpu.memory_space<vmem>>, vector<1x8x128xf32>
    tpu.vector_store %arg9[%c0_29, %c0_30, %c0_31], %52 {strides = array<i32>} : memref<1x8x128xf32, #tpu.memory_space<vmem>>, vector<1x8x128xf32>,
    return
  }
  func.func @transform_0(%arg0: i32, %arg1: i32) -> (i32, i32) {
    %c2_i32 = arith.constant 2 : i32
    %0 = arith.muli %arg0, %c2_i32 : i32
    %1 = arith.addi %0, %arg1 : i32
    %c0_i32 = arith.constant 0 : i32
    %c0_i32_0 = arith.constant 0 : i32
    return %1, %c0_i32 : i32, i32
  }
  func.func @transform_1(%arg0: i32, %arg1: i32) -> (i32, i32) {
    %c2_i32 = arith.constant 2 : i32
    %0 = arith.muli %arg0, %c2_i32 : i32
    %1 = arith.addi %0, %arg1 : i32
    %c0_i32 = arith.constant 0 : i32
    %c0_i32_0 = arith.constant 0 : i32
    return %1, %c0_i32 : i32, i32
  }
  func.func @transform_2(%arg0: i32, %arg1: i32) -> (i32, i32) {
    %c2_i32 = arith.constant 2 : i32
    %0 = arith.muli %arg0, %c2_i32 : i32
    %1 = arith.addi %0, %arg1 : i32
    %c0_i32 = arith.constant 0 : i32
    %c0_i32_0 = arith.constant 0 : i32
    return %1, %c0_i32 : i32, i32
  }
  func.func @transform_3(%arg0: i32, %arg1: i32) -> (i32, i32) {
    %c0_i32 = arith.constant 0 : i32
    %c0_i32_0 = arith.constant 0 : i32
    %c0_i32_1 = arith.constant 0 : i32
    return %c0_i32, %c0_i32_0 : i32, i32
  }
  func.func @transform_4(%arg0: i32, %arg1: i32) -> (i32, i32) {
    %c0_i32 = arith.constant 0 : i32
    %c0_i32_0 = arith.constant 0 : i32
    %c0_i32_1 = arith.constant 0 : i32
    return %c0_i32, %c0_i32_0 : i32, i32
  }
  func.func @transform_5(%arg0: i32, %arg1: i32) -> (i32, i32) {
    %c0_i32 = arith.constant 0 : i32
    %c0_i32_0 = arith.constant 0 : i32
    %c0_i32_1 = arith.constant 0 : i32
    return %c0_i32, %c0_i32_0 : i32, i32
  }
  func.func @transform_6(%arg0: i32, %arg1: i32) -> (i32, i32) {
    %c0_i32 = arith.constant 0 : i32
    %c0_i32_0 = arith.constant 0 : i32
    %c0_i32_1 = arith.constant 0 : i32
    return %c0_i32, %c0_i32_0 : i32, i32
  }
  func.func @transform_7(%arg0: i32, %arg1: i32) -> (i32, i32, i32) {
    %c0_i32 = arith.constant 0 : i32
    %c0_i32_0 = arith.constant 0 : i32
    %c0_i32_1 = arith.constant 0 : i32
    return %arg0, %c0_i32, %c0_i32_0 : i32, i32, i32
  }
}

</mosaic_0001>

<bundles_post_ra>
// kernel: tpu_custom_call.1
= control target key start
LH: loop header
LB: loop body
LE: loop exit
PB: predicated region body
PF: predicated region fallthrough
CT: control target
= control target key end

     0   :  { %12 = vsyncpa [#allocation3], 0  ;;  %s6894_s24 = smov 0   ;;  %s6896_s25 = smov 0   ;;  %s10812_s0 = inlined_call_operand.vmem [shape: f32[2048,4], index: 0, kind: input, shape index: {}]   ;;  %s10813_s1 = inlined_call_operand.vmem [shape: f32[2048,3], index: 1, kind: input, shape index: {}]   ;;  %s10814_s2 = inlined_call_operand.vmem [shape: s32[2048,1], index: 2, kind: input, shape index: {}]   ;;  %s10815_s3 = inlined_call_operand.vmem [shape: f32[8,128], index: 3, kind: input, shape index: {}]   ;;  %s10816_s4 = inlined_call_operand.vmem [shape: f32[1,128], index: 4, kind: input, shape index: {}]   ;;  %s10817_s5 = inlined_call_operand.vmem [shape: f32[128,128], index: 5, kind: input, shape index: {}]   ;;  %s10818_s6 = inlined_call_operand.vmem [shape: f32[1,128], index: 6, kind: input, shape index: {}]   ;;  %s10819_s7 = inlined_call_operand.hbm [shape: f32[1,8,128], index: 7, kind: output, shape index: {}]  }
   0x1   :  { %s6898_s26 = smov 0  }
   0x2 LB: > { %s5761_s27 = sadd.s32 4294967295, %s6848_s26   ;;  %s27_s28 = sadd.s32 1, %s6844_s25  ;;  %s6848_s26 = sphi %s6898_s26, %s18_s26   ;;  %s6844_s25 = sphi %s6896_s25, %s11553_s25   ;;  %s6840_s24 = sphi %s6894_s24, %s11552_s24  }
   0x3   : > { %p28_p0 = scmp.ge.s32.totalorder %s27_s28, 2  ;;  %p5764_p1 = scmp.ge.s32.totalorder %s6848_s26, 1 }
   0x4   : > { %p297_p2 = scmp.lt.s32.totalorder %s6848_s26, 3 }
   0x5   : > { %s11555_s28 = smov (%p28_p0, %s27_s28), 0 }
   0x6   : > { %p298_p3 = pnand %p5764_p1, %p297_p2 }
   0x8   : > { %301 = sbr.rel (%p298_p3) target bundleno = 966 (0x3c6), region = 48 }
   0xd   : > { %s5765_s29 = sshll.u32 %s6840_s24, 7  ;;  %p5771_p5 = scmp.ne.s32.totalorder %s6840_s24, 0 }
   0xe   : > { %p343_p4 = scmp.lt.s32.totalorder %s5765_s29, 255 }
   0xf   : > { %373 = sbr.rel (%p5771_p5) target bundleno = 22 (0x16), region = 52 }
  0x10   : > { %s11557_s29 = smov (!%p343_p4, %s5765_s29), 255 }
  0x11   : > { %s5766_s30 = sshll.u32 %s11557_s29, 3 }
  0x12   : > { %s6916_s10 = scalar_lea.vmem %s10812_s0, %s5766_s30  ;;  %s6921_s13 = scalar_lea.vmem %s10813_s1, %s5766_s30 }
  0x13   : > { %s6926_s16 = scalar_lea.vmem %s10814_s2, %s5766_s30 }
  0x14   : > { %v6850_v0 = vmov -1e+30  }
  0x15   : > { %374 = vst [vmem:[#allocation2] sm:$0xff] %v6850_v0 }
  0x16 PF: > { %v505_v1 = vld [vmem:[%s6921_s13 + $0x10] sm:$0xff]  ;;  %v503_v2 = vld [vmem:[%s6921_s13] sm:$0xff]  ;;  %s6851_s17 = smov 4   ;;  %v506_v3 = vld [vmem:[%s6921_s13 + $0x18] sm:$0xff]  ;;  %vm1143_vm0 = vcmask 31744   ;;  %vm1272_vm1 = vcmask 56320  }
  0x17   : > { %763 = vrot.lane.b32.xlu1 %v505_v1, %s6851_s17  ;;  %759 = vrot.lane.b32.xlu0 %v503_v2, %s6851_s17  ;;  %v504_v4 = vld [vmem:[%s6921_s13 + $0x8] sm:$0xff]  ;;  %v507_v6 = vld [vmem:[%s6921_s13 + $0x20] sm:$0xff]  ;;  %vm1409_vm2 = vcmask 64512   ;;  %s6853_s15 = smov [#allocation2]   ;;  %p10788_p6 = scmp.eq.s32.totalorder %s5761_s27, 1 }
  0x18   : > { %v508_v5 = vld [vmem:[%s6921_s13 + $0x28] sm:$0xff]  ;;  %v510_v7 = vld [vmem:[%s6921_s13 + $0x38] sm:$0xff]  ;;  %v509_v8 = vld [vmem:[%s6921_s13 + $0x30] sm:$0xff]  ;;  %s5687_s18 = sshll.u32 %s6853_s15, 4  ;;  %s5688_s18 = int_to_ptr.vmem [resolvable:$true] %s5687_s18 }
  0x19   : > { %v512_v9 = vld [vmem:[%s6921_s13 + $0x48] sm:$0xff]  ;;  %v511_v10 = vld [vmem:[%s6921_s13 + $0x40] sm:$0xff]  ;;  %v514_v11 = vld [vmem:[%s6921_s13 + $0x58] sm:$0xff]  ;;  %s6798_s20 = scalar_lea.vmem %s5688_s18, 128  ;;  %p6805_p10 = scmp.lt.s32.totalorder %s5688_s18, %s5688_s18 }
  0x1a   : > { %v513_v12 = vld [vmem:[%s6921_s13 + $0x50] sm:$0xff]  ;;  %v516_v13 = vld [vmem:[%s6921_s13 + $0x68] sm:$0xff]  ;;  %v515_v14 = vld [vmem:[%s6921_s13 + $0x60] sm:$0xff]  ;;  %p6799_p7 = scmp.ne.s32.totalorder %s5688_s18, %s6798_s20  ;;  %p6806_p11 = scmp.lt.s32.totalorder %s6798_s20, %s6798_s20 }
  0x1b   : > { %765 = vrot.lane.b32.xlu1 %v506_v3, %s6851_s17  ;;  %761 = vrot.lane.b32.xlu0 %v504_v4, %s6851_s17  ;;  %v1401_v15 = vld [vmem:[%s10815_s3] sm:$0xff]  ;;  %v518_v16 = vld [vmem:[%s6921_s13 + $0x78] sm:$0xff] }
  0x1c   : > { %6179 = vmatprep.subr.mxu0 %v1401_v15  ;;  %v517_v17 = vld [vmem:[%s6921_s13 + $0x70] sm:$0xff]  ;;  %v520_v18 = vld [vmem:[%s6921_s13 + $0x88] sm:$0xff]  ;;  %v519_v19 = vld [vmem:[%s6921_s13 + $0x80] sm:$0xff]  ;;  %p6800_p8 = pnand %p6799_p7, %p10788_p6  ;;  %p6807_p12 = por %p6806_p11, %p6805_p10 }
  0x1d   : > { %6180 = vmatpush3.msra.mxu0 %v1401_v15  ;;  %v522_v20 = vld [vmem:[%s6921_s13 + $0x98] sm:$0xff]  ;;  %v521_v21 = vld [vmem:[%s6921_s13 + $0x90] sm:$0xff]  ;;  %v524_v22 = vld [vmem:[%s6921_s13 + $0xa8] sm:$0xff] }
  0x1e   : > { %v523_v23 = vld [vmem:[%s6921_s13 + $0xa0] sm:$0xff]  ;;  %v526_v24 = vld [vmem:[%s6921_s13 + $0xb8] sm:$0xff]  ;;  %v525_v25 = vld [vmem:[%s6921_s13 + $0xb0] sm:$0xff]  ;;  %p6801_p9 = pneg %p6800_p8 }
  0x1f   : > { %769 = vrot.lane.b32.xlu1 %v508_v5, %s6851_s17  ;;  %767 = vrot.lane.b32.xlu0 %v507_v6, %s6851_s17  ;;  %v528_v26 = vld [vmem:[%s6921_s13 + $0xc8] sm:$0xff]  ;;  %v527_v27 = vld [vmem:[%s6921_s13 + $0xc0] sm:$0xff] }
  0x20   : > { %v530_v28 = vld [vmem:[%s6921_s13 + $0xd8] sm:$0xff]  ;;  %v529_v29 = vld [vmem:[%s6921_s13 + $0xd0] sm:$0xff]  ;;  %v532_v30 = vld [vmem:[%s6921_s13 + $0xe8] sm:$0xff]  ;;  %p6808_p13 = pnand %p6807_p12, %p6801_p9 }
  0x21   : > { %v531_v31 = vld [vmem:[%s6921_s13 + $0xe0] sm:$0xff]  ;;  %v534_v32 = vld [vmem:[%s6921_s13 + $0xf8] sm:$0xff]  ;;  %v533_v33 = vld [vmem:[%s6921_s13 + $0xf0] sm:$0xff] }
  0x22   : > { %v536_v34 = vld [vmem:[%s6921_s13 + $0x108] sm:$0xff]  ;;  %v535_v35 = vld [vmem:[%s6921_s13 + $0x100] sm:$0xff]  ;;  %v538_v36 = vld [vmem:[%s6921_s13 + $0x118] sm:$0xff] }
  0x23   : > { %773 = vrot.lane.b32.xlu1 %v510_v7, %s6851_s17  ;;  %771 = vrot.lane.b32.xlu0 %v509_v8, %s6851_s17  ;;  %v537_v37 = vld [vmem:[%s6921_s13 + $0x110] sm:$0xff]  ;;  %v540_v38 = vld [vmem:[%s6921_s13 + $0x128] sm:$0xff] }
  0x24   : > { %v539_v39 = vld [vmem:[%s6921_s13 + $0x120] sm:$0xff]  ;;  %v542_v40 = vld [vmem:[%s6921_s13 + $0x138] sm:$0xff]  ;;  %v541_v41 = vld [vmem:[%s6921_s13 + $0x130] sm:$0xff] }
  0x25   : > { %v544_v42 = vld [vmem:[%s6921_s13 + $0x148] sm:$0xff]  ;;  %v543_v43 = vld [vmem:[%s6921_s13 + $0x140] sm:$0xff]  ;;  %v546_v44 = vld [vmem:[%s6921_s13 + $0x158] sm:$0xff] }
  0x26   : > { %v545_v45 = vld [vmem:[%s6921_s13 + $0x150] sm:$0xff]  ;;  %v548_v46 = vld [vmem:[%s6921_s13 + $0x168] sm:$0xff]  ;;  %v547_v47 = vld [vmem:[%s6921_s13 + $0x160] sm:$0xff] }
  0x27   : > { %777 = vrot.lane.b32.xlu1 %v512_v9, %s6851_s17  ;;  %775 = vrot.lane.b32.xlu0 %v511_v10, %s6851_s17  ;;  %v550_v48 = vld [vmem:[%s6921_s13 + $0x178] sm:$0xff]  ;;  %v549_v49 = vld [vmem:[%s6921_s13 + $0x170] sm:$0xff] }
  0x28   : > { %v552_v50 = vld [vmem:[%s6921_s13 + $0x188] sm:$0xff]  ;;  %v551_v51 = vld [vmem:[%s6921_s13 + $0x180] sm:$0xff]  ;;  %v554_v52 = vld [vmem:[%s6921_s13 + $0x198] sm:$0xff] }
  0x29   : > { %v553_v53 = vld [vmem:[%s6921_s13 + $0x190] sm:$0xff]  ;;  %v556_v54 = vld [vmem:[%s6921_s13 + $0x1a8] sm:$0xff]  ;;  %v555_v55 = vld [vmem:[%s6921_s13 + $0x1a0] sm:$0xff] }
  0x2a   : > { %v558_v56 = vld [vmem:[%s6921_s13 + $0x1b8] sm:$0xff]  ;;  %v557_v57 = vld [vmem:[%s6921_s13 + $0x1b0] sm:$0xff]  ;;  %v560_v58 = vld [vmem:[%s6921_s13 + $0x1c8] sm:$0xff] }
  0x2b   : > { %781 = vrot.lane.b32.xlu1 %v514_v11, %s6851_s17  ;;  %779 = vrot.lane.b32.xlu0 %v513_v12, %s6851_s17  ;;  %v559_v59 = vld [vmem:[%s6921_s13 + $0x1c0] sm:$0xff]  ;;  %v562_v61 = vld [vmem:[%s6921_s13 + $0x1d8] sm:$0xff] }
  0x2c   : > { %v375_v60 = vld [vmem:[%s6916_s10] sm:$0xff]  ;;  %v561_v62 = vld [vmem:[%s6921_s13 + $0x1d0] sm:$0xff]  ;;  %v376_v4 = vld [vmem:[%s6916_s10 + $0x8] sm:$0xff] }
  0x2d   : > { %v377_v1 = vld [vmem:[%s6916_s10 + $0x10] sm:$0xff]  ;;  %v564_v5 = vld [vmem:[%s6921_s13 + $0x1e8] sm:$0xff]  ;;  %v563_v6 = vld [vmem:[%s6921_s13 + $0x1e0] sm:$0xff] }
  0x2e   : > { %v378_v9 = vld [vmem:[%s6916_s10 + $0x18] sm:$0xff] }
  0x2f   : > { %785 = vrot.lane.b32.xlu1 %v516_v13, %s6851_s17  ;;  %783 = vrot.lane.b32.xlu0 %v515_v14, %s6851_s17  ;;  %v379_v13 = vld [vmem:[%s6916_s10 + $0x20] sm:$0xff] }
  0x33   : > { %789 = vrot.lane.b32.xlu1 %v518_v16, %s6851_s17  ;;  %787 = vrot.lane.b32.xlu0 %v517_v17, %s6851_s17  ;;  %v566_v16 = vld [vmem:[%s6921_s13 + $0x1f8] sm:$0xff]  ;;  %v565_v17 = vld [vmem:[%s6921_s13 + $0x1f0] sm:$0xff] }
  0x37   : > { %793 = vrot.lane.b32.xlu1 %v520_v18, %s6851_s17  ;;  %791 = vrot.lane.b32.xlu0 %v519_v19, %s6851_s17  ;;  %v380_v19 = vld [vmem:[%s6916_s10 + $0x28] sm:$0xff] }
  0x3b   : > { %797 = vrot.lane.b32.xlu1 %v522_v20, %s6851_s17  ;;  %795 = vrot.lane.b32.xlu0 %v521_v21, %s6851_s17 }
  0x3f   : > { %801 = vrot.lane.b32.xlu1 %v524_v22, %s6851_s17  ;;  %799 = vrot.lane.b32.xlu0 %v523_v23, %s6851_s17 }
  0x43   : > { %805 = vrot.lane.b32.xlu1 %v526_v24, %s6851_s17  ;;  %803 = vrot.lane.b32.xlu0 %v525_v25, %s6851_s17  ;;  %v381_v24 = vld [vmem:[%s6916_s10 + $0x30] sm:$0xff] }
  0x47   : > { %809 = vrot.lane.b32.xlu1 %v528_v26, %s6851_s17  ;;  %807 = vrot.lane.b32.xlu0 %v527_v27, %s6851_s17  ;;  %v568_v26 = vld [vmem:[%s6921_s13 + $0x208] sm:$0xff]  ;;  %v567_v27 = vld [vmem:[%s6921_s13 + $0x200] sm:$0xff] }
  0x4b   : > { %813 = vrot.lane.b32.xlu1 %v530_v28, %s6851_s17  ;;  %811 = vrot.lane.b32.xlu0 %v529_v29, %s6851_s17  ;;  %v382_v29 = vld [vmem:[%s6916_s10 + $0x38] sm:$0xff] }
  0x4f   : > { %817 = vrot.lane.b32.xlu1 %v532_v30, %s6851_s17  ;;  %815 = vrot.lane.b32.xlu0 %v531_v31, %s6851_s17 }
  0x53   : > { %821 = vrot.lane.b32.xlu1 %v534_v32, %s6851_s17  ;;  %819 = vrot.lane.b32.xlu0 %v533_v33, %s6851_s17  ;;  %v10836_v32 = vmov 0  }
  0x54   : > { %6664 = vset.pattern.permute.xlu1 %v10836_v32  ;;  %6663 = vset.pattern.permute.xlu0 %v10836_v32 }
  0x57   : > { %825 = vrot.lane.b32.xlu1 %v536_v34, %s6851_s17  ;;  %823 = vrot.lane.b32.xlu0 %v535_v35, %s6851_s17  ;;  %v383_v35 = vld [vmem:[%s6916_s10 + $0x40] sm:$0xff] }
  0x5b   : > { %829 = vrot.lane.b32.xlu1 %v538_v36, %s6851_s17  ;;  %827 = vrot.lane.b32.xlu0 %v537_v37, %s6851_s17  ;;  %v570_v37 = vld [vmem:[%s6921_s13 + $0x218] sm:$0xff] }
  0x5f   : > { %833 = vrot.lane.b32.xlu1 %v540_v38, %s6851_s17  ;;  %831 = vrot.lane.b32.xlu0 %v539_v39, %s6851_s17  ;;  %v569_v38 = vld [vmem:[%s6921_s13 + $0x210] sm:$0xff] }
  0x63   : > { %837 = vrot.lane.b32.xlu1 %v542_v40, %s6851_s17  ;;  %835 = vrot.lane.b32.xlu0 %v541_v41, %s6851_s17  ;;  %v384_v40 = vld [vmem:[%s6916_s10 + $0x48] sm:$0xff] }
  0x67   : > { %841 = vrot.lane.b32.xlu1 %v544_v42, %s6851_s17  ;;  %839 = vrot.lane.b32.xlu0 %v543_v43, %s6851_s17 }
  0x6b   : > { %845 = vrot.lane.b32.xlu1 %v546_v44, %s6851_s17  ;;  %843 = vrot.lane.b32.xlu0 %v545_v45, %s6851_s17  ;;  %v385_v45 = vld [vmem:[%s6916_s10 + $0x50] sm:$0xff] }
  0x6f   : > { %849 = vrot.lane.b32.xlu1 %v548_v46, %s6851_s17  ;;  %847 = vrot.lane.b32.xlu0 %v547_v47, %s6851_s17  ;;  %v572_v47 = vld [vmem:[%s6921_s13 + $0x228] sm:$0xff] }
  0x73   : > { %853 = vrot.lane.b32.xlu1 %v550_v48, %s6851_s17  ;;  %851 = vrot.lane.b32.xlu0 %v549_v49, %s6851_s17  ;;  %v571_v48 = vld [vmem:[%s6921_s13 + $0x220] sm:$0xff] }
  0x77   : > { %857 = vrot.lane.b32.xlu1 %v552_v50, %s6851_s17  ;;  %855 = vrot.lane.b32.xlu0 %v551_v51, %s6851_s17  ;;  %v386_v50 = vld [vmem:[%s6916_s10 + $0x58] sm:$0xff] }
  0x7b   : > { %861 = vrot.lane.b32.xlu1 %v554_v52, %s6851_s17  ;;  %859 = vrot.lane.b32.xlu0 %v553_v53, %s6851_s17 }
  0x7f   : > { %865 = vrot.lane.b32.xlu1 %v556_v54, %s6851_s17  ;;  %863 = vrot.lane.b32.xlu0 %v555_v55, %s6851_s17  ;;  %v387_v55 = vld [vmem:[%s6916_s10 + $0x60] sm:$0xff] }
  0x83   : > { %869 = vrot.lane.b32.xlu1 %v558_v56, %s6851_s17  ;;  %867 = vrot.lane.b32.xlu0 %v557_v57, %s6851_s17  ;;  %v574_v57 = vld [vmem:[%s6921_s13 + $0x238] sm:$0xff] }
  0x87   : > { %873 = vrot.lane.b32.xlu1 %v560_v58, %s6851_s17  ;;  %871 = vrot.lane.b32.xlu0 %v559_v59, %s6851_s17  ;;  %v573_v58 = vld [vmem:[%s6921_s13 + $0x230] sm:$0xff] }
  0x89   : > { %v764_v63 = vpop.permute.xlu1 %763  ;;  %v760_v0 = vpop.permute.xlu0 %759 }
  0x8a   : > { %v1144_v2 = vsel %vm1143_vm0, %v375_v60, %v760_v0  ;;  %v1146_v7 = vsel %vm1143_vm0, %v377_v1, %v764_v63  ;;  %v388_v60 = vld [vmem:[%s6916_s10 + $0x68] sm:$0xff]  ;;  %v389_v1 = vld [vmem:[%s6916_s10 + $0x70] sm:$0xff] }
  0x8b   : > { %877 = vrot.lane.b32.xlu1 %v562_v61, %s6851_s17  ;;  %875 = vrot.lane.b32.xlu0 %v561_v62, %s6851_s17  ;;  %v1273_v3 = vsel %vm1272_vm1, %v1144_v2, 0.0  ;;  %v1275_v14 = vsel %vm1272_vm1, %v1146_v7, 0.0 }
  0x8c   : > { %6181 = vmatprep.mubr.msk.f32.mxu0 %vm1409_vm2, %v1273_v3  ;;  %v576_v3 = vld [vmem:[%s6921_s13 + $0x248] sm:$0xff] }
  0x8d   : > { %v766_v8 = vpop.permute.xlu1 %765  ;;  %v762_v10 = vpop.permute.xlu0 %761 }
  0x8e   : > { %v1145_v11 = vsel %vm1143_vm0, %v376_v4, %v762_v10  ;;  %v1147_v15 = vsel %vm1143_vm0, %v378_v9, %v766_v8  ;;  %v575_v4 = vld [vmem:[%s6921_s13 + $0x240] sm:$0xff] }
  0x8f   : > { %v1274_v12 = vsel %vm1272_vm1, %v1145_v11, 0.0  ;;  %881 = vrot.lane.b32.xlu1 %v564_v5, %s6851_s17  ;;  %879 = vrot.lane.b32.xlu0 %v563_v6, %s6851_s17  ;;  %v1276_v22 = vsel %vm1272_vm1, %v1147_v15, 0.0  ;;  %v390_v6 = vld [vmem:[%s6916_s10 + $0x78] sm:$0xff]  ;;  %v391_v11 = vld [vmem:[%s6916_s10 + $0x80] sm:$0xff] }
  0x90   : > { %6182 = vmatmul.mubr.msk.f32.vlgmr.msra.gmra.mxu0 %vm1409_vm2, %v1274_v12 }
  0x91   : > { %v770_v18 = vpop.permute.xlu1 %769  ;;  %v768_v20 = vpop.permute.xlu0 %767  ;;  %6184 = vmatprep.mubr.msk.f32.mxu0 %vm1409_vm2, %v1275_v14  ;;  %v577_v14 = vld [vmem:[%s6921_s13 + $0x250] sm:$0xff] }
  0x92   : > { %v1148_v21 = vsel %vm1143_vm0, %v379_v13, %v768_v20  ;;  %v1149_v25 = vsel %vm1143_vm0, %v380_v19, %v770_v18  ;;  %v578_v13 = vld [vmem:[%s6921_s13 + $0x258] sm:$0xff] }
  0x93   : > { %v1277_v23 = vsel %vm1272_vm1, %v1148_v21, 0.0  ;;  %885 = vrot.lane.b32.xlu1 %v566_v16, %s6851_s17  ;;  %883 = vrot.lane.b32.xlu0 %v565_v17, %s6851_s17  ;;  %v1278_v33 = vsel %vm1272_vm1, %v1149_v25, 0.0  ;;  %v392_v16 = vld [vmem:[%s6916_s10 + $0x88] sm:$0xff]  ;;  %v393_v21 = vld [vmem:[%s6916_s10 + $0x90] sm:$0xff] }
  0x94   : > { %6185 = vmatmul.mubr.msk.f32.gmra.mxu0 %vm1409_vm2, %v1276_v22 }
  0x95   : > { %v774_v28 = vpop.permute.xlu1 %773  ;;  %v772_v30 = vpop.permute.xlu0 %771  ;;  %6187 = vmatprep.mubr.msk.f32.mxu0 %vm1409_vm2, %v1277_v23  ;;  %v580_v23 = vld [vmem:[%s6921_s13 + $0x268] sm:$0xff] }
  0x96   : > { %v1150_v31 = vsel %vm1143_vm0, %v381_v24, %v772_v30  ;;  %v1151_v36 = vsel %vm1143_vm0, %v382_v29, %v774_v28  ;;  %v579_v24 = vld [vmem:[%s6921_s13 + $0x260] sm:$0xff] }
  0x97   : > { %v1279_v34 = vsel %vm1272_vm1, %v1150_v31, 0.0  ;;  %889 = vrot.lane.b32.xlu1 %v568_v26, %s6851_s17  ;;  %887 = vrot.lane.b32.xlu0 %v567_v27, %s6851_s17  ;;  %v1280_v43 = vsel %vm1272_vm1, %v1151_v36, 0.0  ;;  %v394_v26 = vld [vmem:[%s6916_s10 + $0x98] sm:$0xff]  ;;  %v395_v31 = vld [vmem:[%s6916_s10 + $0xa0] sm:$0xff] }
  0x98   : > { %6188 = vmatmul.mubr.msk.f32.gmra.mxu0 %vm1409_vm2, %v1278_v33 }
  0x99   : > { %v778_v39 = vpop.permute.xlu1 %777  ;;  %v776_v41 = vpop.permute.xlu0 %775  ;;  %6190 = vmatprep.mubr.msk.f32.mxu0 %vm1409_vm2, %v1279_v34  ;;  %v582_v34 = vld [vmem:[%s6921_s13 + $0x278] sm:$0xff] }
  0x9a   : > { %v1152_v42 = vsel %vm1143_vm0, %v383_v35, %v776_v41  ;;  %v1153_v46 = vsel %vm1143_vm0, %v384_v40, %v778_v39  ;;  %v581_v35 = vld [vmem:[%s6921_s13 + $0x270] sm:$0xff] }
  0x9b   : > { %v1281_v44 = vsel %vm1272_vm1, %v1152_v42, 0.0  ;;  %893 = vrot.lane.b32.xlu1 %v570_v37, %s6851_s17  ;;  %891 = vrot.lane.b32.xlu0 %v569_v38, %s6851_s17  ;;  %v1282_v53 = vsel %vm1272_vm1, %v1153_v46, 0.0  ;;  %v396_v37 = vld [vmem:[%s6916_s10 + $0xa8] sm:$0xff]  ;;  %v397_v42 = vld [vmem:[%s6916_s10 + $0xb0] sm:$0xff] }
  0x9c   : > { %6191 = vmatmul.mubr.msk.f32.gmra.mxu0 %vm1409_vm2, %v1280_v43 }
  0x9d   : > { %v782_v49 = vpop.permute.xlu1 %781  ;;  %v780_v51 = vpop.permute.xlu0 %779  ;;  %6193 = vmatprep.mubr.msk.f32.mxu0 %vm1409_vm2, %v1281_v44  ;;  %v584_v44 = vld [vmem:[%s6921_s13 + $0x288] sm:$0xff] }
  0x9e   : > { %v1154_v52 = vsel %vm1143_vm0, %v385_v45, %v780_v51  ;;  %v1155_v56 = vsel %vm1143_vm0, %v386_v50, %v782_v49  ;;  %v583_v45 = vld [vmem:[%s6921_s13 + $0x280] sm:$0xff] }
  0x9f   : > { %v1283_v54 = vsel %vm1272_vm1, %v1154_v52, 0.0  ;;  %897 = vrot.lane.b32.xlu1 %v572_v47, %s6851_s17  ;;  %895 = vrot.lane.b32.xlu0 %v571_v48, %s6851_s17  ;;  %v1284_v63 = vsel %vm1272_vm1, %v1155_v56, 0.0  ;;  %v398_v47 = vld [vmem:[%s6916_s10 + $0xb8] sm:$0xff]  ;;  %v399_v52 = vld [vmem:[%s6916_s10 + $0xc0] sm:$0xff] }
  0xa0   : > { %6194 = vmatmul.mubr.msk.f32.gmra.mxu0 %vm1409_vm2, %v1282_v53 }
  0xa1   : > { %v786_v59 = vpop.permute.xlu1 %785  ;;  %v784_v61 = vpop.permute.xlu0 %783  ;;  %6196 = vmatprep.mubr.msk.f32.mxu0 %vm1409_vm2, %v1283_v54  ;;  %v586_v54 = vld [vmem:[%s6921_s13 + $0x298] sm:$0xff] }
  0xa2   : > { %v1156_v62 = vsel %vm1143_vm0, %v387_v55, %v784_v61  ;;  %v1157_v2 = vsel %vm1143_vm0, %v388_v60, %v786_v59  ;;  %v585_v55 = vld [vmem:[%s6921_s13 + $0x290] sm:$0xff] }
  0xa3   : > { %v1285_v0 = vsel %vm1272_vm1, %v1156_v62, 0.0  ;;  %901 = vrot.lane.b32.xlu1 %v574_v57, %s6851_s17  ;;  %899 = vrot.lane.b32.xlu0 %v573_v58, %s6851_s17  ;;  %v1286_v9 = vsel %vm1272_vm1, %v1157_v2, 0.0  ;;  %v400_v57 = vld [vmem:[%s6916_s10 + $0xc8] sm:$0xff]  ;;  %v401_v62 = vld [vmem:[%s6916_s10 + $0xd0] sm:$0xff] }
  0xa4   : > { %6197 = vmatmul.mubr.msk.f32.gmra.mxu0 %vm1409_vm2, %v1284_v63 }
  0xa5   : > { %v790_v5 = vpop.permute.xlu1 %789  ;;  %v788_v7 = vpop.permute.xlu0 %787  ;;  %6199 = vmatprep.mubr.msk.f32.mxu0 %vm1409_vm2, %v1285_v0  ;;  %v588_v0 = vld [vmem:[%s6921_s13 + $0x2a8] sm:$0xff] }
  0xa6   : > { %v1158_v8 = vsel %vm1143_vm0, %v389_v1, %v788_v7  ;;  %v1159_v12 = vsel %vm1143_vm0, %v390_v6, %v790_v5  ;;  %v587_v1 = vld [vmem:[%s6921_s13 + $0x2a0] sm:$0xff] }
  0xa7   : > { %v1287_v10 = vsel %vm1272_vm1, %v1158_v8, 0.0  ;;  %905 = vrot.lane.b32.xlu1 %v576_v3, %s6851_s17  ;;  %903 = vrot.lane.b32.xlu0 %v575_v4, %s6851_s17  ;;  %v1288_v19 = vsel %vm1272_vm1, %v1159_v12, 0.0  ;;  %v402_v3 = vld [vmem:[%s6916_s10 + $0xd8] sm:$0xff]  ;;  %v403_v8 = vld [vmem:[%s6916_s10 + $0xe0] sm:$0xff] }
  0xa8   : > { %6200 = vmatmul.mubr.msk.f32.gmra.mxu0 %vm1409_vm2, %v1286_v9 }
  0xa9   : > { %v794_v15 = vpop.permute.xlu1 %793  ;;  %v792_v17 = vpop.permute.xlu0 %791  ;;  %6202 = vmatprep.mubr.msk.f32.mxu0 %vm1409_vm2, %v1287_v10  ;;  %v590_v10 = vld [vmem:[%s6921_s13 + $0x2b8] sm:$0xff] }
  0xaa   : > { %v1160_v18 = vsel %vm1143_vm0, %v391_v11, %v792_v17  ;;  %v1161_v22 = vsel %vm1143_vm0, %v392_v16, %v794_v15  ;;  %v589_v11 = vld [vmem:[%s6921_s13 + $0x2b0] sm:$0xff] }
  0xab   : > { %v1289_v20 = vsel %vm1272_vm1, %v1160_v18, 0.0  ;;  %909 = vrot.lane.b32.xlu1 %v578_v13, %s6851_s17  ;;  %907 = vrot.lane.b32.xlu0 %v577_v14, %s6851_s17  ;;  %v1290_v29 = vsel %vm1272_vm1, %v1161_v22, 0.0  ;;  %v404_v13 = vld [vmem:[%s6916_s10 + $0xe8] sm:$0xff]  ;;  %v405_v18 = vld [vmem:[%s6916_s10 + $0xf0] sm:$0xff] }
  0xac   : > { %6203 = vmatmul.mubr.msk.f32.gmra.mxu0 %vm1409_vm2, %v1288_v19  ;;  %v2642_v19 = vld [vmem:[%s10817_s5 + $0x78] sm:$0xff]  ;;  %v591_v22 = vld [vmem:[%s6921_s13 + $0x2c0] sm:$0xff] }
  0xad   : > { %v798_v25 = vpop.permute.xlu1 %797  ;;  %v796_v27 = vpop.permute.xlu0 %795  ;;  %6205 = vmatprep.mubr.msk.f32.mxu0 %vm1409_vm2, %v1289_v20  ;;  %6597 = vmatprep.subr.mxu1 %v2642_v19 }
  0xae   : > { %v1162_v28 = vsel %vm1143_vm0, %v393_v21, %v796_v27  ;;  %v1163_v33 = vsel %vm1143_vm0, %v394_v26, %v798_v25  ;;  %v592_v21 = vld [vmem:[%s6921_s13 + $0x2c8] sm:$0xff]  ;;  %6613 = vmatpush3.msra.mxu1 %v2642_v19  ;;  %v2641_v26 = vld [vmem:[%s10817_s5 + $0x70] sm:$0xff]  ;;  %6373 = vmatprep.subr.mxu0 %v2642_v19 }
  0xaf   : > { %v1291_v30 = vsel %vm1272_vm1, %v1162_v28, 0.0  ;;  %913 = vrot.lane.b32.xlu1 %v580_v23, %s6851_s17  ;;  %911 = vrot.lane.b32.xlu0 %v579_v24, %s6851_s17  ;;  %v1292_v40 = vsel %vm1272_vm1, %v1163_v33, 0.0  ;;  %v406_v24 = vld [vmem:[%s6916_s10 + $0xf8] sm:$0xff] }
  0xb0   : > { %6206 = vmatmul.mubr.msk.f32.gmra.mxu0 %vm1409_vm2, %v1290_v29  ;;  %6598 = vmatprep.subr.mxu1 %v2641_v26 }
  0xb1   : > { %v802_v36 = vpop.permute.xlu1 %801  ;;  %v800_v38 = vpop.permute.xlu0 %799  ;;  %6208 = vmatprep.mubr.msk.f32.mxu0 %vm1409_vm2, %v1291_v30  ;;  %v407_v30 = vld [vmem:[%s6916_s10 + $0x100] sm:$0xff]  ;;  %6614 = vmatpush3.msra.mxu1 %v2641_v26 }
  0xb2   : > { %v1164_v39 = vsel %vm1143_vm0, %v395_v31, %v800_v38  ;;  %v1165_v43 = vsel %vm1143_vm0, %v396_v37, %v802_v36  ;;  %v7246_v31 = vld [vmem:[%s10817_s5 + $0x68] sm:$0xff]  ;;  %6374 = vmatpush3.msra.mxu0 %v2642_v19 }
  0xb3   : > { %v1293_v41 = vsel %vm1272_vm1, %v1164_v39, 0.0  ;;  %917 = vrot.lane.b32.xlu1 %v582_v34, %s6851_s17  ;;  %915 = vrot.lane.b32.xlu0 %v581_v35, %s6851_s17  ;;  %v1294_v50 = vsel %vm1272_vm1, %v1165_v43, 0.0  ;;  %v594_v34 = vld [vmem:[%s6921_s13 + $0x2d8] sm:$0xff]  ;;  %v593_v35 = vld [vmem:[%s6921_s13 + $0x2d0] sm:$0xff] }
  0xb4   : > { %6209 = vmatmul.mubr.msk.f32.gmra.mxu0 %vm1409_vm2, %v1292_v40  ;;  %v408_v37 = vld [vmem:[%s6916_s10 + $0x108] sm:$0xff]  ;;  %6599 = vmatprep.subr.mxu1 %v7246_v31  ;;  %v7258_v39 = vld [vmem:[%s10817_s5 + $0x60] sm:$0xff]  ;;  %v409_v43 = vld [vmem:[%s6916_s10 + $0x110] sm:$0xff] }
  0xb5   : > { %v806_v46 = vpop.permute.xlu1 %805  ;;  %v804_v48 = vpop.permute.xlu0 %803  ;;  %6211 = vmatprep.mubr.msk.f32.mxu0 %vm1409_vm2, %v1293_v41  ;;  %6615 = vmatpush3.msra.mxu1 %v7246_v31  ;;  %v416_v19 = vld [vmem:[%s6916_s10 + $0x148] sm:$0xff] }
  0xb6   : > { %v1166_v49 = vsel %vm1143_vm0, %v397_v42, %v804_v48  ;;  %v1167_v53 = vsel %vm1143_vm0, %v398_v47, %v806_v46  ;;  %v596_v46 = vld [vmem:[%s6921_s13 + $0x2e8] sm:$0xff]  ;;  %v595_v47 = vld [vmem:[%s6921_s13 + $0x2e0] sm:$0xff]  ;;  %6600 = vmatprep.subr.mxu1 %v7258_v39  ;;  %6375 = vmatprep.subr.mxu0 %v2641_v26 }
  0xb7   : > { %v1295_v51 = vsel %vm1272_vm1, %v1166_v49, 0.0  ;;  %921 = vrot.lane.b32.xlu1 %v584_v44, %s6851_s17  ;;  %919 = vrot.lane.b32.xlu0 %v583_v45, %s6851_s17  ;;  %v1296_v60 = vsel %vm1272_vm1, %v1167_v53, 0.0  ;;  %v7270_v44 = vld [vmem:[%s10817_s5 + $0x58] sm:$0xff] }
  0xb8   : > { %6212 = vmatmul.mubr.msk.f32.gmra.mxu0 %vm1409_vm2, %v1294_v50  ;;  %v410_v49 = vld [vmem:[%s6916_s10 + $0x118] sm:$0xff]  ;;  %6616 = vmatpush3.msra.mxu1 %v7258_v39 }
  0xb9   : > { %v810_v56 = vpop.permute.xlu1 %809  ;;  %v808_v58 = vpop.permute.xlu0 %807  ;;  %6214 = vmatprep.mubr.msk.f32.mxu0 %vm1409_vm2, %v1295_v51  ;;  %6601 = vmatprep.subr.mxu1 %v7270_v44 }
  0xba   : > { %v1168_v59 = vsel %vm1143_vm0, %v399_v52, %v808_v58  ;;  %v1169_v63 = vsel %vm1143_vm0, %v400_v57, %v810_v56  ;;  %v7285_v52 = vld [vmem:[%s10817_s5 + $0x50] sm:$0xff]  ;;  %v598_v57 = vld [vmem:[%s6921_s13 + $0x2f8] sm:$0xff]  ;;  %6617 = vmatpush3.msra.mxu1 %v7270_v44  ;;  %6376 = vmatpush3.msra.mxu0 %v2641_v26  ;;  %v7362_v26 = vld [vmem:[%s10817_s5 + $0x28] sm:$0xff] }
  0xbb   : > { %v1297_v61 = vsel %vm1272_vm1, %v1168_v59, 0.0  ;;  %925 = vrot.lane.b32.xlu1 %v586_v54, %s6851_s17  ;;  %923 = vrot.lane.b32.xlu0 %v585_v55, %s6851_s17  ;;  %v1298_v6 = vsel %vm1272_vm1, %v1169_v63, 0.0  ;;  %v411_v55 = vld [vmem:[%s6916_s10 + $0x120] sm:$0xff]  ;;  %v597_v58 = vld [vmem:[%s6921_s13 + $0x2f0] sm:$0xff] }
  0xbc   : > { %6215 = vmatmul.mubr.msk.f32.gmra.mxu0 %vm1409_vm2, %v1296_v60  ;;  %v412_v60 = vld [vmem:[%s6916_s10 + $0x128] sm:$0xff]  ;;  %6602 = vmatprep.subr.mxu1 %v7285_v52 }
  0xbd   : > { %v814_v2 = vpop.permute.xlu1 %813  ;;  %v812_v4 = vpop.permute.xlu0 %811  ;;  %6217 = vmatprep.mubr.msk.f32.mxu0 %vm1409_vm2, %v1297_v61  ;;  %6618 = vmatpush3.msra.mxu1 %v7285_v52 }
  0xbe   : > { %v1170_v5 = vsel %vm1143_vm0, %v401_v62, %v812_v4  ;;  %v1171_v9 = vsel %vm1143_vm0, %v402_v3, %v814_v2  ;;  %v7303_v62 = vld [vmem:[%s10817_s5 + $0x48] sm:$0xff]  ;;  %v413_v2 = vld [vmem:[%s6916_s10 + $0x130] sm:$0xff]  ;;  %v7315_v3 = vld [vmem:[%s10817_s5 + $0x40] sm:$0xff]  ;;  %6377 = vmatprep.subr.mxu0 %v7246_v31 }
  0xbf   : > { %v1299_v7 = vsel %vm1272_vm1, %v1170_v5, 0.0  ;;  %929 = vrot.lane.b32.xlu1 %v588_v0, %s6851_s17  ;;  %927 = vrot.lane.b32.xlu0 %v587_v1, %s6851_s17  ;;  %v1300_v16 = vsel %vm1272_vm1, %v1171_v9, 0.0  ;;  %v600_v5 = vld [vmem:[%s6921_s13 + $0x308] sm:$0xff] }
  0xc0   : > { %6218 = vmatmul.mubr.msk.f32.gmra.mxu0 %vm1409_vm2, %v1298_v6  ;;  %v599_v6 = vld [vmem:[%s6921_s13 + $0x300] sm:$0xff]  ;;  %6603 = vmatprep.subr.mxu1 %v7303_v62 }
  0xc1   : > { %v818_v12 = vpop.permute.xlu1 %817  ;;  %v816_v14 = vpop.permute.xlu0 %815  ;;  %6220 = vmatprep.mubr.msk.f32.mxu0 %vm1409_vm2, %v1299_v7  ;;  %6619 = vmatpush3.msra.mxu1 %v7303_v62 }
  0xc2   : > { %v1172_v15 = vsel %vm1143_vm0, %v403_v8, %v816_v14  ;;  %v1173_v20 = vsel %vm1143_vm0, %v404_v13, %v818_v12  ;;  %v414_v8 = vld [vmem:[%s6916_s10 + $0x138] sm:$0xff]  ;;  %6604 = vmatprep.subr.mxu1 %v7315_v3  ;;  %v415_v14 = vld [vmem:[%s6916_s10 + $0x140] sm:$0xff]  ;;  %6378 = vmatpush3.msra.mxu0 %v7246_v31 }
  0xc3   : > { %v1301_v17 = vsel %vm1272_vm1, %v1172_v15, 0.0  ;;  %933 = vrot.lane.b32.xlu1 %v590_v10, %s6851_s17  ;;  %931 = vrot.lane.b32.xlu0 %v589_v11, %s6851_s17  ;;  %v1302_v28 = vsel %vm1272_vm1, %v1173_v20, 0.0  ;;  %v7330_v11 = vld [vmem:[%s10817_s5 + $0x38] sm:$0xff] }
  0xc4   : > { %6221 = vmatmul.mubr.msk.f32.gmra.mxu0 %vm1409_vm2, %v1300_v16  ;;  %v602_v16 = vld [vmem:[%s6921_s13 + $0x318] sm:$0xff]  ;;  %6620 = vmatpush3.msra.mxu1 %v7315_v3 }
  0xc5   : > { %v822_v23 = vpop.permute.xlu1 %821  ;;  %v820_v25 = vpop.permute.xlu0 %819  ;;  %6223 = vmatprep.mubr.msk.f32.mxu0 %vm1409_vm2, %v1301_v17  ;;  %v601_v17 = vld [vmem:[%s6921_s13 + $0x310] sm:$0xff]  ;;  %6605 = vmatprep.subr.mxu1 %v7330_v11  ;;  %v418_v31 = vld [vmem:[%s6916_s10 + $0x158] sm:$0xff] }
  0xc6   : > { %v1174_v27 = vsel %vm1143_vm0, %v405_v18, %v820_v25  ;;  %v1175_v33 = vsel %vm1143_vm0, %v406_v24, %v822_v23  ;;  %6621 = vmatpush3.msra.mxu1 %v7330_v11  ;;  %v417_v25 = vld [vmem:[%s6916_s10 + $0x150] sm:$0xff]  ;;  %6379 = vmatprep.subr.mxu0 %v7258_v39 }
  0xc7   : > { %v1303_v29 = vsel %vm1272_vm1, %v1174_v27, 0.0  ;;  %937 = vrot.lane.b32.xlu1 %v592_v21, %s6851_s17  ;;  %935 = vrot.lane.b32.xlu0 %v591_v22, %s6851_s17  ;;  %v1304_v41 = vsel %vm1272_vm1, %v1175_v33, 0.0  ;;  %v7349_v21 = vld [vmem:[%s10817_s5 + $0x30] sm:$0xff] }
  0xc8   : > { %6224 = vmatmul.mubr.msk.f32.gmra.mxu0 %vm1409_vm2, %v1302_v28  ;;  %v604_v28 = vld [vmem:[%s6921_s13 + $0x328] sm:$0xff]  ;;  %6606 = vmatprep.subr.mxu1 %v7349_v21 }
  0xc9   : > { %v826_v36 = vpop.permute.xlu1 %825  ;;  %v824_v38 = vpop.permute.xlu0 %823  ;;  %6226 = vmatprep.mubr.msk.f32.mxu0 %vm1409_vm2, %v1303_v29  ;;  %v603_v29 = vld [vmem:[%s6921_s13 + $0x320] sm:$0xff]  ;;  %6622 = vmatpush3.msra.mxu1 %v7349_v21 }
  0xca   : > { %v1176_v40 = vsel %vm1143_vm0, %v407_v30, %v824_v38  ;;  %v1177_v45 = vsel %vm1143_vm0, %v408_v37, %v826_v36  ;;  %6607 = vmatprep.subr.mxu1 %v7362_v26  ;;  %v419_v38 = vld [vmem:[%s6916_s10 + $0x160] sm:$0xff]  ;;  %6380 = vmatpush3.msra.mxu0 %v7258_v39 }
  0xcb   : > { %v1305_v42 = vsel %vm1272_vm1, %v1176_v40, 0.0  ;;  %941 = vrot.lane.b32.xlu1 %v594_v34, %s6851_s17  ;;  %939 = vrot.lane.b32.xlu0 %v593_v35, %s6851_s17  ;;  %v1306_v53 = vsel %vm1272_vm1, %v1177_v45, 0.0  ;;  %v7377_v35 = vld [vmem:[%s10817_s5 + $0x20] sm:$0xff]  ;;  %v420_v45 = vld [vmem:[%s6916_s10 + $0x168] sm:$0xff] }
  0xcc   : > { %6227 = vmatmul.mubr.msk.f32.gmra.mxu0 %vm1409_vm2, %v1304_v41  ;;  %v606_v41 = vld [vmem:[%s6921_s13 + $0x338] sm:$0xff]  ;;  %6623 = vmatpush3.msra.mxu1 %v7362_v26  ;;  %v607_v39 = vld [vmem:[%s6921_s13 + $0x340] sm:$0xff] }
  0xcd   : > { %v830_v48 = vpop.permute.xlu1 %829  ;;  %v828_v50 = vpop.permute.xlu0 %827  ;;  %6229 = vmatprep.mubr.msk.f32.mxu0 %vm1409_vm2, %v1305_v42  ;;  %v605_v42 = vld [vmem:[%s6921_s13 + $0x330] sm:$0xff]  ;;  %6608 = vmatprep.subr.mxu1 %v7377_v35 }
  0xce   : > { %v1178_v51 = vsel %vm1143_vm0, %v409_v43, %v828_v50  ;;  %v1179_v56 = vsel %vm1143_vm0, %v410_v49, %v830_v48  ;;  %6624 = vmatpush3.msra.mxu1 %v7377_v35  ;;  %6381 = vmatprep.subr.mxu0 %v7270_v44 }
  0xcf   : > { %v1307_v54 = vsel %vm1272_vm1, %v1178_v51, 0.0  ;;  %945 = vrot.lane.b32.xlu1 %v596_v46, %s6851_s17  ;;  %943 = vrot.lane.b32.xlu0 %v595_v47, %s6851_s17  ;;  %v1308_v0 = vsel %vm1272_vm1, %v1179_v56, 0.0  ;;  %v7396_v47 = vld [vmem:[%s10817_s5 + $0x18] sm:$0xff]  ;;  %v421_v51 = vld [vmem:[%s6916_s10 + $0x170] sm:$0xff] }
  0xd0   : > { %6230 = vmatmul.mubr.msk.f32.gmra.mxu0 %vm1409_vm2, %v1306_v53  ;;  %v7409_v53 = vld [vmem:[%s10817_s5 + $0x10] sm:$0xff]  ;;  %6609 = vmatprep.subr.mxu1 %v7396_v47 }
  0xd1   : > { %v834_v59 = vpop.permute.xlu1 %833  ;;  %v832_v61 = vpop.permute.xlu0 %831  ;;  %6232 = vmatprep.mubr.msk.f32.mxu0 %vm1409_vm2, %v1307_v54  ;;  %6625 = vmatpush3.msra.mxu1 %v7396_v47 }
  0xd2   : > { %v1180_v63 = vsel %vm1143_vm0, %v411_v55, %v832_v61  ;;  %v1181_v4 = vsel %vm1143_vm0, %v412_v60, %v834_v59  ;;  %v608_v55 = vld [vmem:[%s6921_s13 + $0x348] sm:$0xff]  ;;  %6610 = vmatprep.subr.mxu1 %v7409_v53  ;;  %6382 = vmatpush3.msra.mxu0 %v7270_v44 }
  0xd3   : > { %v1309_v1 = vsel %vm1272_vm1, %v1180_v63, 0.0  ;;  %949 = vrot.lane.b32.xlu1 %v598_v57, %s6851_s17  ;;  %947 = vrot.lane.b32.xlu0 %v597_v58, %s6851_s17  ;;  %v1310_v12 = vsel %vm1272_vm1, %v1181_v4, 0.0  ;;  %v422_v57 = vld [vmem:[%s6916_s10 + $0x178] sm:$0xff]  ;;  %v7424_v60 = vld [vmem:[%s10817_s5 + $0x8] sm:$0xff] }
  0xd4   : > { %6233 = vmatmul.mubr.msk.f32.gmra.mxu0 %vm1409_vm2, %v1308_v0  ;;  %v423_v0 = vld [vmem:[%s6916_s10 + $0x180] sm:$0xff]  ;;  %v609_v4 = vld [vmem:[%s6921_s13 + $0x350] sm:$0xff]  ;;  %6626 = vmatpush3.msra.mxu1 %v7409_v53 }
  0xd5   : > { %v838_v7 = vpop.permute.xlu1 %837  ;;  %v836_v9 = vpop.permute.xlu0 %835  ;;  %6235 = vmatprep.mubr.msk.f32.mxu0 %vm1409_vm2, %v1309_v1  ;;  %6611 = vmatprep.subr.mxu1 %v7424_v60 }
  0xd6   : > { %v1182_v10 = vsel %vm1143_vm0, %v413_v2, %v836_v9  ;;  %v1183_v15 = vsel %vm1143_vm0, %v414_v8, %v838_v7  ;;  %v610_v2 = vld [vmem:[%s6921_s13 + $0x358] sm:$0xff]  ;;  %v7443_v8 = vld [vmem:[%s10817_s5] sm:$0xff]  ;;  %6627 = vmatpush3.msra.mxu1 %v7424_v60  ;;  %6383 = vmatprep.subr.mxu0 %v7285_v52 }
  0xd7   : > { %v1311_v13 = vsel %vm1272_vm1, %v1182_v10, 0.0  ;;  %953 = vrot.lane.b32.xlu1 %v600_v5, %s6851_s17  ;;  %951 = vrot.lane.b32.xlu0 %v599_v6, %s6851_s17  ;;  %v1312_v23 = vsel %vm1272_vm1, %v1183_v15, 0.0  ;;  %v424_v6 = vld [vmem:[%s6916_s10 + $0x188] sm:$0xff] }
  0xd8   : > { %6236 = vmatmul.mubr.msk.f32.gmra.mxu0 %vm1409_vm2, %v1310_v12  ;;  %v612_v15 = vld [vmem:[%s6921_s13 + $0x368] sm:$0xff]  ;;  %6612 = vmatprep.subr.mxu1 %v7443_v8 }
  0xd9   : > { %v842_v18 = vpop.permute.xlu1 %841  ;;  %v840_v20 = vpop.permute.xlu0 %839  ;;  %6238 = vmatprep.mubr.msk.f32.mxu0 %vm1409_vm2, %v1311_v13  ;;  %v425_v13 = vld [vmem:[%s6916_s10 + $0x190] sm:$0xff]  ;;  %6628 = vmatpush3.msra.mxu1 %v7443_v8 }
  0xda   : > { %v1184_v22 = vsel %vm1143_vm0, %v415_v14, %v840_v20  ;;  %v1185_v27 = vsel %vm1143_vm0, %v416_v19, %v842_v18  ;;  %6384 = vmatpush3.msra.mxu0 %v7285_v52  ;;  %v615_v52 = vld [vmem:[%s6921_s13 + $0x380] sm:$0xff] }
  0xdb   : > { %v1313_v24 = vsel %vm1272_vm1, %v1184_v22, 0.0  ;;  %957 = vrot.lane.b32.xlu1 %v602_v16, %s6851_s17  ;;  %955 = vrot.lane.b32.xlu0 %v601_v17, %s6851_s17  ;;  %v1314_v36 = vsel %vm1272_vm1, %v1185_v27, 0.0  ;;  %v611_v16 = vld [vmem:[%s6921_s13 + $0x360] sm:$0xff]  ;;  %v426_v17 = vld [vmem:[%s6916_s10 + $0x198] sm:$0xff] }
  0xdc   : > { %6239 = vmatmul.mubr.msk.f32.gmra.mxu0 %vm1409_vm2, %v1312_v23  ;;  %v427_v23 = vld [vmem:[%s6916_s10 + $0x1a0] sm:$0xff]  ;;  %v613_v27 = vld [vmem:[%s6921_s13 + $0x370] sm:$0xff]  ;;  %6385 = vmatprep.subr.mxu0 %v7303_v62 }
  0xdd   : > { %v846_v30 = vpop.permute.xlu1 %845  ;;  %v844_v33 = vpop.permute.xlu0 %843  ;;  %6241 = vmatprep.mubr.msk.f32.mxu0 %vm1409_vm2, %v1313_v24  ;;  %6386 = vmatpush3.msra.mxu0 %v7303_v62  ;;  %v617_v62 = vld [vmem:[%s6921_s13 + $0x390] sm:$0xff] }
  0xde   : > { %v1186_v34 = vsel %vm1143_vm0, %v417_v25, %v844_v33  ;;  %v1187_v40 = vsel %vm1143_vm0, %v418_v31, %v846_v30  ;;  %v614_v25 = vld [vmem:[%s6921_s13 + $0x378] sm:$0xff]  ;;  %6387 = vmatprep.subr.mxu0 %v7315_v3 }
  0xdf   : > { %v1315_v37 = vsel %vm1272_vm1, %v1186_v34, 0.0  ;;  %961 = vrot.lane.b32.xlu1 %v604_v28, %s6851_s17  ;;  %959 = vrot.lane.b32.xlu0 %v603_v29, %s6851_s17  ;;  %v1316_v49 = vsel %vm1272_vm1, %v1187_v40, 0.0  ;;  %v428_v29 = vld [vmem:[%s6916_s10 + $0x1a8] sm:$0xff] }
  0xe0   : > { %6242 = vmatmul.mubr.msk.f32.gmra.mxu0 %vm1409_vm2, %v1314_v36  ;;  %v429_v36 = vld [vmem:[%s6916_s10 + $0x1b0] sm:$0xff] }
  0xe1   : > { %v850_v43 = vpop.permute.xlu1 %849  ;;  %v848_v46 = vpop.permute.xlu0 %847  ;;  %6244 = vmatprep.mubr.msk.f32.mxu0 %vm1409_vm2, %v1315_v37  ;;  %6388 = vmatpush3.msra.mxu0 %v7315_v3  ;;  %v619_v3 = vld [vmem:[%s6921_s13 + $0x3a0] sm:$0xff] }
  0xe2   : > { %v1188_v48 = vsel %vm1143_vm0, %v419_v38, %v848_v46  ;;  %v1189_v54 = vsel %vm1143_vm0, %v420_v45, %v850_v43  ;;  %v616_v38 = vld [vmem:[%s6921_s13 + $0x388] sm:$0xff]  ;;  %6389 = vmatprep.subr.mxu0 %v7330_v11 }
  0xe3   : > { %v1317_v50 = vsel %vm1272_vm1, %v1188_v48, 0.0  ;;  %965 = vrot.lane.b32.xlu1 %v606_v41, %s6851_s17  ;;  %963 = vrot.lane.b32.xlu0 %v605_v42, %s6851_s17  ;;  %v1318_v61 = vsel %vm1272_vm1, %v1189_v54, 0.0  ;;  %v430_v41 = vld [vmem:[%s6916_s10 + $0x1b8] sm:$0xff]  ;;  %v431_v48 = vld [vmem:[%s6916_s10 + $0x1c0] sm:$0xff] }
  0xe4   : > { %6245 = vmatmul.mubr.msk.f32.gmra.mxu0 %vm1409_vm2, %v1316_v49  ;;  %v432_v54 = vld [vmem:[%s6916_s10 + $0x1c8] sm:$0xff] }
  0xe5   : > { %v854_v56 = vpop.permute.xlu1 %853  ;;  %v852_v58 = vpop.permute.xlu0 %851  ;;  %6247 = vmatprep.mubr.msk.f32.mxu0 %vm1409_vm2, %v1317_v50  ;;  %v618_v50 = vld [vmem:[%s6921_s13 + $0x398] sm:$0xff]  ;;  %6390 = vmatpush3.msra.mxu0 %v7330_v11  ;;  %v621_v11 = vld [vmem:[%s6921_s13 + $0x3b0] sm:$0xff] }
  0xe6   : > { %v1190_v59 = vsel %vm1143_vm0, %v421_v51, %v852_v58  ;;  %v1191_v1 = vsel %vm1143_vm0, %v422_v57, %v854_v56  ;;  %v433_v58 = vld [vmem:[%s6916_s10 + $0x1d0] sm:$0xff]  ;;  %6391 = vmatprep.subr.mxu0 %v7349_v21 }
  0xe7   : > { %v1319_v63 = vsel %vm1272_vm1, %v1190_v59, 0.0  ;;  %969 = vrot.lane.b32.xlu1 %v608_v55, %s6851_s17  ;;  %967 = vrot.lane.b32.xlu0 %v607_v39, %s6851_s17  ;;  %v1320_v10 = vsel %vm1272_vm1, %v1191_v1, 0.0 }
  0xe8   : > { %6248 = vmatmul.mubr.msk.f32.gmra.mxu0 %vm1409_vm2, %v1318_v61  ;;  %v620_v61 = vld [vmem:[%s6921_s13 + $0x3a8] sm:$0xff] }
  0xe9   : > { %v858_v5 = vpop.permute.xlu1 %857  ;;  %v856_v7 = vpop.permute.xlu0 %855  ;;  %6250 = vmatprep.mubr.msk.f32.mxu0 %vm1409_vm2, %v1319_v63  ;;  %6392 = vmatpush3.msra.mxu0 %v7349_v21  ;;  %v623_v21 = vld [vmem:[%s6921_s13 + $0x3c0] sm:$0xff] }
  0xea   : > { %v1192_v9 = vsel %vm1143_vm0, %v423_v0, %v856_v7  ;;  %v1193_v14 = vsel %vm1143_vm0, %v424_v6, %v858_v5  ;;  %v434_v0 = vld [vmem:[%s6916_s10 + $0x1d8] sm:$0xff]  ;;  %v435_v6 = vld [vmem:[%s6916_s10 + $0x1e0] sm:$0xff]  ;;  %6393 = vmatprep.subr.mxu0 %v7362_v26 }
  0xeb   : > { %v1321_v12 = vsel %vm1272_vm1, %v1192_v9, 0.0  ;;  %973 = vrot.lane.b32.xlu1 %v610_v2, %s6851_s17  ;;  %971 = vrot.lane.b32.xlu0 %v609_v4, %s6851_s17  ;;  %v1322_v20 = vsel %vm1272_vm1, %v1193_v14, 0.0  ;;  %v622_v9 = vld [vmem:[%s6921_s13 + $0x3b8] sm:$0xff] }
  0xec   : > { %6251 = vmatmul.mubr.msk.f32.gmra.mxu0 %vm1409_vm2, %v1320_v10 }
  0xed   : > { %v862_v44 = vpop.permute.xlu1 %861  ;;  %v860_v18 = vpop.permute.xlu0 %859  ;;  %6253 = vmatprep.mubr.msk.f32.mxu0 %vm1409_vm2, %v1321_v12  ;;  %v436_v12 = vld [vmem:[%s6916_s10 + $0x1e8] sm:$0xff]  ;;  %6394 = vmatpush3.msra.mxu0 %v7362_v26  ;;  %v625_v26 = vld [vmem:[%s6921_s13 + $0x3d0] sm:$0xff] }
  0xee   : > { %v1194_v19 = vsel %vm1143_vm0, %v425_v13, %v860_v18  ;;  %v1195_v24 = vsel %vm1143_vm0, %v426_v17, %v862_v44  ;;  %v437_v44 = vld [vmem:[%s6916_s10 + $0x1f0] sm:$0xff]  ;;  %v624_v18 = vld [vmem:[%s6921_s13 + $0x3c8] sm:$0xff]  ;;  %6395 = vmatprep.subr.mxu0 %v7377_v35 }
  0xef   : > { %v1323_v22 = vsel %vm1272_vm1, %v1194_v19, 0.0  ;;  %977 = vrot.lane.b32.xlu1 %v612_v15, %s6851_s17  ;;  %975 = vrot.lane.b32.xlu0 %v611_v16, %s6851_s17  ;;  %v1324_v33 = vsel %vm1272_vm1, %v1195_v24, 0.0 }
  0xf0   : > { %6254 = vmatmul.mubr.msk.f32.gmra.mxu0 %vm1409_vm2, %v1322_v20  ;;  %v438_v20 = vld [vmem:[%s6916_s10 + $0x1f8] sm:$0xff] }
  0xf1   : > { %v866_v28 = vpop.permute.xlu1 %865  ;;  %v864_v30 = vpop.permute.xlu0 %863  ;;  %6256 = vmatprep.mubr.msk.f32.mxu0 %vm1409_vm2, %v1323_v22  ;;  %6396 = vmatpush3.msra.mxu0 %v7377_v35  ;;  %v628_v35 = vld [vmem:[%s6921_s13 + $0x3e8] sm:$0xff] }
  0xf2   : > { %v1196_v31 = vsel %vm1143_vm0, %v427_v23, %v864_v30  ;;  %v1197_v37 = vsel %vm1143_vm0, %v428_v29, %v866_v28  ;;  %v626_v29 = vld [vmem:[%s6921_s13 + $0x3d8] sm:$0xff]  ;;  %6397 = vmatprep.subr.mxu0 %v7396_v47 }
  0xf3   : > { %v1325_v34 = vsel %vm1272_vm1, %v1196_v31, 0.0  ;;  %981 = vrot.lane.b32.xlu1 %v614_v25, %s6851_s17  ;;  %979 = vrot.lane.b32.xlu0 %v613_v27, %s6851_s17  ;;  %v1326_v45 = vsel %vm1272_vm1, %v1197_v37, 0.0  ;;  %v439_v27 = vld [vmem:[%s6916_s10 + $0x200] sm:$0xff]  ;;  %v440_v31 = vld [vmem:[%s6916_s10 + $0x208] sm:$0xff] }
  0xf4   : > { %6257 = vmatmul.mubr.msk.f32.gmra.mxu0 %vm1409_vm2, %v1324_v33 }
  0xf5   : > { %v870_v40 = vpop.permute.xlu1 %869  ;;  %v868_v42 = vpop.permute.xlu0 %867  ;;  %6259 = vmatprep.mubr.msk.f32.mxu0 %vm1409_vm2, %v1325_v34  ;;  %6398 = vmatpush3.msra.mxu0 %v7396_v47  ;;  %v630_v47 = vld [vmem:[%s6921_s13 + $0x3f8] sm:$0xff] }
  0xf6   : > { %v1198_v43 = vsel %vm1143_vm0, %v429_v36, %v868_v42  ;;  %v1199_v49 = vsel %vm1143_vm0, %v430_v41, %v870_v40  ;;  %v627_v40 = vld [vmem:[%s6921_s13 + $0x3e0] sm:$0xff]  ;;  %v442_v42 = vld [vmem:[%s6916_s10 + $0x218] sm:$0xff]  ;;  %6399 = vmatprep.subr.mxu0 %v7409_v53 }
  0xf7   : > { %v1327_v46 = vsel %vm1272_vm1, %v1198_v43, 0.0  ;;  %985 = vrot.lane.b32.xlu1 %v616_v38, %s6851_s17  ;;  %983 = vrot.lane.b32.xlu0 %v615_v52, %s6851_s17  ;;  %v1328_v56 = vsel %vm1272_vm1, %v1199_v49, 0.0  ;;  %v441_v38 = vld [vmem:[%s6916_s10 + $0x210] sm:$0xff] }
  0xf8   : > { %6260 = vmatmul.mubr.msk.f32.gmra.mxu0 %vm1409_vm2, %v1326_v45 }
  0xf9   : > { %v874_v51 = vpop.permute.xlu1 %873  ;;  %v872_v55 = vpop.permute.xlu0 %871  ;;  %6262 = vmatprep.mubr.msk.f32.mxu0 %vm1409_vm2, %v1327_v46  ;;  %v3484_v46 = vld [vmem:[%s6926_s16 + $0x8] sm:$0xff]  ;;  %6400 = vmatpush3.msra.mxu0 %v7409_v53 }
  0xfa   : > { %v1200_v39 = vsel %vm1143_vm0, %v431_v48, %v872_v55  ;;  %v1201_v59 = vsel %vm1143_vm0, %v432_v54, %v874_v51  ;;  %v3483_v48 = vld [vmem:[%s6926_s16] sm:$0xff]  ;;  %v629_v54 = vld [vmem:[%s6921_s13 + $0x3f0] sm:$0xff]  ;;  %vm3614_vm3 = vcmp.eq.s32.totalorder %v3484_v46, 0  ;;  %6401 = vmatprep.subr.mxu0 %v7424_v60 }
  0xfb   : > { %v1329_v57 = vsel %vm1272_vm1, %v1200_v39, 0.0  ;;  %989 = vrot.lane.b32.xlu1 %v618_v50, %s6851_s17  ;;  %987 = vrot.lane.b32.xlu0 %v617_v62, %s6851_s17  ;;  %v1330_v4 = vsel %vm1272_vm1, %v1201_v59, 0.0  ;;  %v443_v62 = vld [vmem:[%s6916_s10 + $0x220] sm:$0xff]  ;;  %v444_v39 = vld [vmem:[%s6916_s10 + $0x228] sm:$0xff]  ;;  %vm3613_vm4 = vcmp.eq.s32.totalorder %v3483_v48, 0  ;;  %v3742_v53 = vsel %vm3614_vm3, 1, %v10836_v32 }
  0xfc   : > { %6263 = vmatmul.mubr.msk.f32.gmra.mxu0 %vm1409_vm2, %v1328_v56  ;;  %v3486_v59 = vld [vmem:[%s6926_s16 + $0x18] sm:$0xff]  ;;  %v453_v48 = vld [vmem:[%s6916_s10 + $0x270] sm:$0xff] }
  0xfd   : > { %v878_v63 = vpop.permute.xlu1 %877  ;;  %v876_v1 = vpop.permute.xlu0 %875  ;;  %6265 = vmatprep.mubr.msk.f32.mxu0 %vm1409_vm2, %v1329_v57  ;;  %vm3616_vm6 = vcmp.eq.s32.totalorder %v3486_v59, 0  ;;  %6402 = vmatpush3.msra.mxu0 %v7424_v60  ;;  %v455_v59 = vld [vmem:[%s6916_s10 + $0x280] sm:$0xff] }
  0xfe   : > { %v1202_v2 = vsel %vm1143_vm0, %v433_v58, %v876_v1  ;;  %v1203_v7 = vsel %vm1143_vm0, %v434_v0, %v878_v63  ;;  %v3485_v58 = vld [vmem:[%s6926_s16 + $0x10] sm:$0xff]  ;;  %v3741_v1 = vsel %vm3613_vm4, 1, %v10836_v32  ;;  %6403 = vmatprep.subr.mxu0 %v7443_v8 }
  0xff   : > { %v1331_v5 = vsel %vm1272_vm1, %v1202_v2, 0.0  ;;  %993 = vrot.lane.b32.xlu1 %v620_v61, %s6851_s17  ;;  %991 = vrot.lane.b32.xlu0 %v619_v3, %s6851_s17  ;;  %v1332_v15 = vsel %vm1272_vm1, %v1203_v7, 0.0  ;;  %v445_v63 = vld [vmem:[%s6916_s10 + $0x230] sm:$0xff]  ;;  %vm3615_vm5 = vcmp.eq.s32.totalorder %v3485_v58, 0  ;;  %v3487_v7 = vld [vmem:[%s6926_s16 + $0x20] sm:$0xff] }
 0x100   : > { %6266 = vmatmul.mubr.msk.f32.gmra.mxu0 %vm1409_vm2, %v1330_v4  ;;  %v446_v4 = vld [vmem:[%s6916_s10 + $0x238] sm:$0xff]  ;;  %v3743_v60 = vsel %vm3615_vm5, 1, %v10836_v32  ;;  %vm3617_vm7 = vcmp.eq.s32.totalorder %v3487_v7, 0 }
 0x101   : > { %v882_v10 = vpop.permute.xlu1 %881  ;;  %v880_v13 = vpop.permute.xlu0 %879  ;;  %6268 = vmatprep.mubr.msk.f32.mxu0 %vm1409_vm2, %v1331_v5  ;;  %6404 = vmatpush3.msra.mxu0 %v7443_v8  ;;  %v3745_v8 = vsel %vm3617_vm7, 1, %v10836_v32 }
 0x102   : > { %v1204_v14 = vsel %vm1143_vm0, %v435_v6, %v880_v13  ;;  %v1205_v17 = vsel %vm1143_vm0, %v436_v12, %v882_v10  ;;  %v447_v12 = vld [vmem:[%s6916_s10 + $0x240] sm:$0xff] }
 0x103   : > { %v1333_v16 = vsel %vm1272_vm1, %v1204_v14, 0.0  ;;  %997 = vrot.lane.b32.xlu1 %v622_v9, %s6851_s17  ;;  %995 = vrot.lane.b32.xlu0 %v621_v11, %s6851_s17  ;;  %v1334_v24 = vsel %vm1272_vm1, %v1205_v17, 0.0  ;;  %v3488_v9 = vld [vmem:[%s6926_s16 + $0x28] sm:$0xff]  ;;  %v3744_v14 = vsel %vm3616_vm6, 1, %v10836_v32 }
 0x104   : > { %6269 = vmatmul.mubr.msk.f32.gmra.mxu0 %vm1409_vm2, %v1332_v15  ;;  %vm3618_vm8 = vcmp.eq.s32.totalorder %v3488_v9, 0  ;;  %v457_v9 = vld [vmem:[%s6916_s10 + $0x290] sm:$0xff] }
 0x105   : > { %v886_v19 = vpop.permute.xlu1 %885  ;;  %v884_v22 = vpop.permute.xlu0 %883  ;;  %6271 = vmatprep.mubr.msk.f32.mxu0 %vm1409_vm2, %v1333_v16  ;;  %v448_v16 = vld [vmem:[%s6916_s10 + $0x248] sm:$0xff] }
 0x106   : > { %v1206_v23 = vsel %vm1143_vm0, %v437_v44, %v884_v22  ;;  %v1207_v28 = vsel %vm1143_vm0, %v438_v20, %v886_v19  ;;  %v449_v22 = vld [vmem:[%s6916_s10 + $0x250] sm:$0xff] }
 0x107   : > { %v1335_v25 = vsel %vm1272_vm1, %v1206_v23, 0.0  ;;  %1001 = vrot.lane.b32.xlu1 %v624_v18, %s6851_s17  ;;  %999 = vrot.lane.b32.xlu0 %v623_v21, %s6851_s17  ;;  %v1336_v36 = vsel %vm1272_vm1, %v1207_v28, 0.0  ;;  %v3489_v18 = vld [vmem:[%s6926_s16 + $0x30] sm:$0xff]  ;;  %v3490_v21 = vld [vmem:[%s6926_s16 + $0x38] sm:$0xff] }
 0x108   : > { %6272 = vmatmul.mubr.msk.f32.gmra.mxu0 %vm1409_vm2, %v1334_v24  ;;  %v3746_v24 = vsel %vm3618_vm8, 1, %v10836_v32  ;;  %vm3619_vm9 = vcmp.eq.s32.totalorder %v3489_v18, 0  ;;  %vm3620_vm10 = vcmp.eq.s32.totalorder %v3490_v21, 0  ;;  %v459_v21 = vld [vmem:[%s6916_s10 + $0x2a0] sm:$0xff] }
 0x109   : > { %v890_v30 = vpop.permute.xlu1 %889  ;;  %v888_v33 = vpop.permute.xlu0 %887  ;;  %6274 = vmatprep.mubr.msk.f32.mxu0 %vm1409_vm2, %v1335_v25 }
 0x10a   : > { %v1208_v34 = vsel %vm1143_vm0, %v439_v27, %v888_v33  ;;  %v1209_v52 = vsel %vm1143_vm0, %v440_v31, %v890_v30  ;;  %v450_v27 = vld [vmem:[%s6916_s10 + $0x258] sm:$0xff]  ;;  %v3492_v30 = vld [vmem:[%s6926_s16 + $0x48] sm:$0xff] }
 0x10b   : > { %v1337_v37 = vsel %vm1272_vm1, %v1208_v34, 0.0  ;;  %1005 = vrot.lane.b32.xlu1 %v626_v29, %s6851_s17  ;;  %1003 = vrot.lane.b32.xlu0 %v625_v26, %s6851_s17  ;;  %v1338_v49 = vsel %vm1272_vm1, %v1209_v52, 0.0  ;;  %v3491_v26 = vld [vmem:[%s6926_s16 + $0x40] sm:$0xff]  ;;  %vm3622_vm12 = vcmp.eq.s32.totalorder %v3492_v30, 0  ;;  %v461_v30 = vld [vmem:[%s6916_s10 + $0x2b0] sm:$0xff] }
 0x10c   : > { %6275 = vmatmul.mubr.msk.f32.gmra.mxu0 %vm1409_vm2, %v1336_v36  ;;  %v451_v34 = vld [vmem:[%s6916_s10 + $0x260] sm:$0xff]  ;;  %vm3621_vm11 = vcmp.eq.s32.totalorder %v3491_v26, 0 }
 0x10d   : > { %v894_v41 = vpop.permute.xlu1 %893  ;;  %v892_v43 = vpop.permute.xlu0 %891  ;;  %6277 = vmatprep.mubr.msk.f32.mxu0 %vm1409_vm2, %v1337_v37  ;;  %v3747_v37 = vsel %vm3619_vm9, 1, %v10836_v32 }
 0x10e   : > { %v1210_v45 = vsel %vm1143_vm0, %v441_v38, %v892_v43  ;;  %v1211_v51 = vsel %vm1143_vm0, %v442_v42, %v894_v41  ;;  %v3748_v38 = vsel %vm3620_vm10, 1, %v10836_v32  ;;  %v3493_v42 = vld [vmem:[%s6926_s16 + $0x50] sm:$0xff]  ;;  %v3494_v43 = vld [vmem:[%s6926_s16 + $0x58] sm:$0xff] }
 0x10f   : > { %v1339_v50 = vsel %vm1272_vm1, %v1210_v45, 0.0  ;;  %1009 = vrot.lane.b32.xlu1 %v628_v35, %s6851_s17  ;;  %1007 = vrot.lane.b32.xlu0 %v627_v40, %s6851_s17  ;;  %v1340_v61 = vsel %vm1272_vm1, %v1211_v51, 0.0  ;;  %v452_v35 = vld [vmem:[%s6916_s10 + $0x268] sm:$0xff]  ;;  %vm3623_vm13 = vcmp.eq.s32.totalorder %v3493_v42, 0  ;;  %vm3624_vm14 = vcmp.eq.s32.totalorder %v3494_v43, 0  ;;  %v463_v43 = vld [vmem:[%s6916_s10 + $0x2c0] sm:$0xff] }
 0x110   : > { %6278 = vmatmul.mubr.msk.f32.gmra.mxu0 %vm1409_vm2, %v1338_v49 }
 0x111   : > { %v898_v55 = vpop.permute.xlu1 %897  ;;  %v896_v56 = vpop.permute.xlu0 %895  ;;  %6280 = vmatprep.mubr.msk.f32.mxu0 %vm1409_vm2, %v1339_v50  ;;  %v3749_v50 = vsel %vm3621_vm11, 1, %v10836_v32 }
 0x112   : > { %v1212_v57 = vsel %vm1143_vm0, %v443_v62, %v896_v56  ;;  %v1213_v0 = vsel %vm1143_vm0, %v444_v39, %v898_v55  ;;  %v3750_v62 = vsel %vm3622_vm12, 1, %v10836_v32  ;;  %v3495_v39 = vld [vmem:[%s6926_s16 + $0x60] sm:$0xff]  ;;  %v3496_v56 = vld [vmem:[%s6926_s16 + $0x68] sm:$0xff] }
 0x113   : > { %v1341_v3 = vsel %vm1272_vm1, %v1212_v57, 0.0  ;;  %1013 = vrot.lane.b32.xlu1 %v630_v47, %s6851_s17  ;;  %1011 = vrot.lane.b32.xlu0 %v629_v54, %s6851_s17  ;;  %v1342_v11 = vsel %vm1272_vm1, %v1213_v0, 0.0  ;;  %v454_v47 = vld [vmem:[%s6916_s10 + $0x278] sm:$0xff]  ;;  %vm3625_vm15 = vcmp.eq.s32.totalorder %v3495_v39, 0  ;;  %vm3626_vm3 = vcmp.eq.s32.totalorder %v3496_v56, 0  ;;  %v465_v56 = vld [vmem:[%s6916_s10 + $0x2d0] sm:$0xff] }
 0x114   : > { %6281 = vmatmul.mubr.msk.f32.gmra.mxu0 %vm1409_vm2, %v1340_v61 }
 0x115   : > { %v902_v2 = vpop.permute.xlu1 %901  ;;  %v900_v5 = vpop.permute.xlu0 %899  ;;  %6283 = vmatprep.mubr.msk.f32.mxu0 %vm1409_vm2, %v1341_v3  ;;  %v3751_v3 = vsel %vm3623_vm13, 1, %v10836_v32 }
 0x116   : > { %v1214_v6 = vsel %vm1143_vm0, %v445_v63, %v900_v5  ;;  %v1215_v13 = vsel %vm1143_vm0, %v446_v4, %v902_v2  ;;  %v3752_v63 = vsel %vm3624_vm14, 1, %v10836_v32  ;;  %v3497_v4 = vld [vmem:[%s6926_s16 + $0x70] sm:$0xff]  ;;  %v3498_v5 = vld [vmem:[%s6926_s16 + $0x78] sm:$0xff] }
 0x117   : > { %v1343_v10 = vsel %vm1272_vm1, %v1214_v6, 0.0  ;;  %3873 = vperm.xlu1 %6664, %v3742_v53   ;;  %3870 = vperm.xlu0 %6663, %v3741_v1   ;;  %v1344_v19 = vsel %vm1272_vm1, %v1215_v13, 0.0  ;;  %v456_v53 = vld [vmem:[%s6916_s10 + $0x288] sm:$0xff]  ;;  %vm3627_vm4 = vcmp.eq.s32.totalorder %v3497_v4, 0  ;;  %vm3628_vm5 = vcmp.eq.s32.totalorder %v3498_v5, 0  ;;  %v467_v5 = vld [vmem:[%s6916_s10 + $0x2e0] sm:$0xff] }
 0x118   : > { %6284 = vmatmul.mubr.msk.f32.gmra.mxu0 %vm1409_vm2, %v1342_v11 }
 0x119   : > { %v906_v15 = vpop.permute.xlu1 %905  ;;  %v904_v44 = vpop.permute.xlu0 %903  ;;  %6286 = vmatprep.mubr.msk.f32.mxu0 %vm1409_vm2, %v1343_v10  ;;  %v3753_v10 = vsel %vm3625_vm15, 1, %v10836_v32 }
 0x11a   : > { %v1216_v17 = vsel %vm1143_vm0, %v447_v12, %v904_v44  ;;  %v1217_v23 = vsel %vm1143_vm0, %v448_v16, %v906_v15  ;;  %v3754_v12 = vsel %vm3626_vm3, 1, %v10836_v32  ;;  %v3499_v16 = vld [vmem:[%s6926_s16 + $0x80] sm:$0xff]  ;;  %v3500_v44 = vld [vmem:[%s6926_s16 + $0x88] sm:$0xff] }
 0x11b   : > { %v1345_v20 = vsel %vm1272_vm1, %v1216_v17, 0.0  ;;  %3876 = vperm.xlu1 %6664, %v3743_v60   ;;  %3879 = vperm.xlu0 %6663, %v3744_v14   ;;  %v1346_v31 = vsel %vm1272_vm1, %v1217_v23, 0.0  ;;  %v458_v60 = vld [vmem:[%s6916_s10 + $0x298] sm:$0xff]  ;;  %vm3629_vm6 = vcmp.eq.s32.totalorder %v3499_v16, 0  ;;  %vm3630_vm7 = vcmp.eq.s32.totalorder %v3500_v44, 0  ;;  %v469_v44 = vld [vmem:[%s6916_s10 + $0x2f0] sm:$0xff] }
 0x11c   : > { %6287 = vmatmul.mubr.msk.f32.gmra.mxu0 %vm1409_vm2, %v1344_v19 }
 0x11d   : > { %v910_v25 = vpop.permute.xlu1 %909  ;;  %v908_v28 = vpop.permute.xlu0 %907  ;;  %6289 = vmatprep.mubr.msk.f32.mxu0 %vm1409_vm2, %v1345_v20  ;;  %v3755_v20 = vsel %vm3627_vm4, 1, %v10836_v32 }
 0x11e   : > { %v1218_v29 = vsel %vm1143_vm0, %v449_v22, %v908_v28  ;;  %v1219_v36 = vsel %vm1143_vm0, %v450_v27, %v910_v25  ;;  %v3756_v22 = vsel %vm3628_vm5, 1, %v10836_v32  ;;  %v3501_v27 = vld [vmem:[%s6926_s16 + $0x90] sm:$0xff]  ;;  %v3502_v28 = vld [vmem:[%s6926_s16 + $0x98] sm:$0xff] }
 0x11f   : > { %v1347_v33 = vsel %vm1272_vm1, %v1218_v29, 0.0  ;;  %3882 = vperm.xlu1 %6664, %v3745_v8   ;;  %3885 = vperm.xlu0 %6663, %v3746_v24   ;;  %v1348_v45 = vsel %vm1272_vm1, %v1219_v36, 0.0  ;;  %v460_v8 = vld [vmem:[%s6916_s10 + $0x2a8] sm:$0xff]  ;;  %vm3631_vm8 = vcmp.eq.s32.totalorder %v3501_v27, 0  ;;  %vm3632_vm9 = vcmp.eq.s32.totalorder %v3502_v28, 0  ;;  %v471_v28 = vld [vmem:[%s6916_s10 + $0x300] sm:$0xff] }
 0x120   : > { %6290 = vmatmul.mubr.msk.f32.gmra.mxu0 %vm1409_vm2, %v1346_v31 }
 0x121   : > { %v914_v52 = vpop.permute.xlu1 %913  ;;  %v912_v40 = vpop.permute.xlu0 %911  ;;  %6292 = vmatprep.mubr.msk.f32.mxu0 %vm1409_vm2, %v1347_v33  ;;  %v3757_v33 = vsel %vm3629_vm6, 1, %v10836_v32 }
 0x122   : > { %v1220_v41 = vsel %vm1143_vm0, %v451_v34, %v912_v40  ;;  %v1221_v49 = vsel %vm1143_vm0, %v452_v35, %v914_v52  ;;  %v3758_v34 = vsel %vm3630_vm7, 1, %v10836_v32  ;;  %v3503_v35 = vld [vmem:[%s6926_s16 + $0xa0] sm:$0xff]  ;;  %v3504_v40 = vld [vmem:[%s6926_s16 + $0xa8] sm:$0xff] }
 0x123   : > { %v1349_v46 = vsel %vm1272_vm1, %v1220_v41, 0.0  ;;  %3888 = vperm.xlu1 %6664, %v3747_v37   ;;  %3891 = vperm.xlu0 %6663, %v3748_v38   ;;  %v1350_v57 = vsel %vm1272_vm1, %v1221_v49, 0.0  ;;  %v462_v37 = vld [vmem:[%s6916_s10 + $0x2b8] sm:$0xff]  ;;  %vm3633_vm10 = vcmp.eq.s32.totalorder %v3503_v35, 0  ;;  %vm3634_vm11 = vcmp.eq.s32.totalorder %v3504_v40, 0  ;;  %v473_v40 = vld [vmem:[%s6916_s10 + $0x310] sm:$0xff] }
 0x124   : > { %6293 = vmatmul.mubr.msk.f32.gmra.mxu0 %vm1409_vm2, %v1348_v45 }
 0x125   : > { %v918_v51 = vpop.permute.xlu1 %917  ;;  %v916_v54 = vpop.permute.xlu0 %915  ;;  %6295 = vmatprep.mubr.msk.f32.mxu0 %vm1409_vm2, %v1349_v46  ;;  %v3759_v46 = vsel %vm3631_vm8, 1, %v10836_v32 }
 0x126   : > { %v1222_v55 = vsel %vm1143_vm0, %v453_v48, %v916_v54  ;;  %v1223_v61 = vsel %vm1143_vm0, %v454_v47, %v918_v51  ;;  %v3760_v48 = vsel %vm3632_vm9, 1, %v10836_v32  ;;  %v3505_v47 = vld [vmem:[%s6926_s16 + $0xb0] sm:$0xff]  ;;  %v3506_v54 = vld [vmem:[%s6926_s16 + $0xb8] sm:$0xff] }
 0x127   : > { %v1351_v58 = vsel %vm1272_vm1, %v1222_v55, 0.0  ;;  %3894 = vperm.xlu1 %6664, %v3749_v50   ;;  %3897 = vperm.xlu0 %6663, %v3750_v62   ;;  %v1352_v6 = vsel %vm1272_vm1, %v1223_v61, 0.0  ;;  %v464_v50 = vld [vmem:[%s6916_s10 + $0x2c8] sm:$0xff]  ;;  %vm3635_vm12 = vcmp.eq.s32.totalorder %v3505_v47, 0  ;;  %vm3636_vm13 = vcmp.eq.s32.totalorder %v3506_v54, 0  ;;  %v475_v54 = vld [vmem:[%s6916_s10 + $0x320] sm:$0xff] }
 0x128   : > { %6296 = vmatmul.mubr.msk.f32.gmra.mxu0 %vm1409_vm2, %v1350_v57 }
 0x129   : > { %v922_v0 = vpop.permute.xlu1 %921  ;;  %v920_v1 = vpop.permute.xlu0 %919  ;;  %6298 = vmatprep.mubr.msk.f32.mxu0 %vm1409_vm2, %v1351_v58  ;;  %v3761_v58 = vsel %vm3633_vm10, 1, %v10836_v32 }
 0x12a   : > { %v1224_v2 = vsel %vm1143_vm0, %v455_v59, %v920_v1  ;;  %v1225_v11 = vsel %vm1143_vm0, %v456_v53, %v922_v0  ;;  %v3762_v59 = vsel %vm3634_vm11, 1, %v10836_v32  ;;  %v3507_v53 = vld [vmem:[%s6926_s16 + $0xc0] sm:$0xff]  ;;  %v3508_v1 = vld [vmem:[%s6926_s16 + $0xc8] sm:$0xff] }
 0x12b   : > { %v1353_v7 = vsel %vm1272_vm1, %v1224_v2, 0.0  ;;  %3900 = vperm.xlu1 %6664, %v3751_v3   ;;  %3903 = vperm.xlu0 %6663, %v3752_v63   ;;  %v1354_v17 = vsel %vm1272_vm1, %v1225_v11, 0.0  ;;  %v466_v3 = vld [vmem:[%s6916_s10 + $0x2d8] sm:$0xff]  ;;  %vm3637_vm14 = vcmp.eq.s32.totalorder %v3507_v53, 0  ;;  %vm3638_vm15 = vcmp.eq.s32.totalorder %v3508_v1, 0 }
 0x12c   : > { %6299 = vmatmul.mubr.msk.f32.gmra.mxu0 %vm1409_vm2, %v1352_v6  ;;  %v3518_v53 = vld [vmem:[%s6926_s16 + $0x118] sm:$0xff] }
 0x12d   : > { %v926_v13 = vpop.permute.xlu1 %925  ;;  %v924_v14 = vpop.permute.xlu0 %923  ;;  %6301 = vmatprep.mubr.msk.f32.mxu0 %vm1409_vm2, %v1353_v7  ;;  %v3763_v7 = vsel %vm3635_vm12, 1, %v10836_v32  ;;  %vm3648_vm12 = vcmp.eq.s32.totalorder %v3518_v53, 0  ;;  %v3526_v53 = vld [vmem:[%s6926_s16 + $0x158] sm:$0xff] }
 0x12e   : > { %v1226_v15 = vsel %vm1143_vm0, %v457_v9, %v924_v14  ;;  %v1227_v19 = vsel %vm1143_vm0, %v458_v60, %v926_v13  ;;  %v3764_v9 = vsel %vm3636_vm13, 1, %v10836_v32  ;;  %v3509_v60 = vld [vmem:[%s6926_s16 + $0xd0] sm:$0xff]  ;;  %v3510_v14 = vld [vmem:[%s6926_s16 + $0xd8] sm:$0xff] }
 0x12f   : > { %v1355_v18 = vsel %vm1272_vm1, %v1226_v15, 0.0  ;;  %3906 = vperm.xlu1 %6664, %v3753_v10   ;;  %3909 = vperm.xlu0 %6663, %v3754_v12   ;;  %v1356_v29 = vsel %vm1272_vm1, %v1227_v19, 0.0  ;;  %v468_v10 = vld [vmem:[%s6916_s10 + $0x2e8] sm:$0xff]  ;;  %vm3639_vm3 = vcmp.eq.s32.totalorder %v3509_v60, 0  ;;  %vm3640_vm4 = vcmp.eq.s32.totalorder %v3510_v14, 0  ;;  %v3519_v14 = vld [vmem:[%s6926_s16 + $0x120] sm:$0xff] }
 0x130   : > { %6302 = vmatmul.mubr.msk.f32.gmra.mxu0 %vm1409_vm2, %v1354_v17  ;;  %vm3649_vm13 = vcmp.eq.s32.totalorder %v3519_v14, 0 }
 0x131   : > { %v930_v23 = vpop.permute.xlu1 %929  ;;  %v928_v24 = vpop.permute.xlu0 %927  ;;  %6304 = vmatprep.mubr.msk.f32.mxu0 %vm1409_vm2, %v1355_v18  ;;  %v3765_v18 = vsel %vm3637_vm14, 1, %v10836_v32 }
 0x132   : > { %v1228_v25 = vsel %vm1143_vm0, %v459_v21, %v928_v24  ;;  %v1229_v31 = vsel %vm1143_vm0, %v460_v8, %v930_v23  ;;  %v3766_v21 = vsel %vm3638_vm15, 1, %v10836_v32  ;;  %v3511_v8 = vld [vmem:[%s6926_s16 + $0xe0] sm:$0xff]  ;;  %v3512_v24 = vld [vmem:[%s6926_s16 + $0xe8] sm:$0xff] }
 0x133   : > { %v1357_v26 = vsel %vm1272_vm1, %v1228_v25, 0.0  ;;  %3912 = vperm.xlu1 %6664, %v3755_v20   ;;  %3915 = vperm.xlu0 %6663, %v3756_v22   ;;  %v1358_v41 = vsel %vm1272_vm1, %v1229_v31, 0.0  ;;  %v470_v20 = vld [vmem:[%s6916_s10 + $0x2f8] sm:$0xff]  ;;  %vm3641_vm5 = vcmp.eq.s32.totalorder %v3511_v8, 0  ;;  %vm3642_vm6 = vcmp.eq.s32.totalorder %v3512_v24, 0 }
 0x134   : > { %6305 = vmatmul.mubr.msk.f32.gmra.mxu0 %vm1409_vm2, %v1356_v29 }
 0x135   : > { %v934_v36 = vpop.permute.xlu1 %933  ;;  %v932_v38 = vpop.permute.xlu0 %931  ;;  %6307 = vmatprep.mubr.msk.f32.mxu0 %vm1409_vm2, %v1357_v26  ;;  %v3767_v26 = vsel %vm3639_vm3, 1, %v10836_v32 }
 0x136   : > { %v1230_v52 = vsel %vm1143_vm0, %v461_v30, %v932_v38  ;;  %v1231_v45 = vsel %vm1143_vm0, %v462_v37, %v934_v36  ;;  %v3768_v30 = vsel %vm3640_vm4, 1, %v10836_v32  ;;  %v3513_v37 = vld [vmem:[%s6926_s16 + $0xf0] sm:$0xff]  ;;  %v3514_v38 = vld [vmem:[%s6926_s16 + $0xf8] sm:$0xff] }
 0x137   : > { %v1359_v42 = vsel %vm1272_vm1, %v1230_v52, 0.0  ;;  %3918 = vperm.xlu1 %6664, %v3757_v33   ;;  %3921 = vperm.xlu0 %6663, %v3758_v34   ;;  %v1360_v55 = vsel %vm1272_vm1, %v1231_v45, 0.0  ;;  %v472_v33 = vld [vmem:[%s6916_s10 + $0x308] sm:$0xff]  ;;  %vm3643_vm7 = vcmp.eq.s32.totalorder %v3513_v37, 0  ;;  %vm3644_vm8 = vcmp.eq.s32.totalorder %v3514_v38, 0  ;;  %v482_v38 = vld [vmem:[%s6916_s10 + $0x358] sm:$0xff] }
 0x138   : > { %6308 = vmatmul.mubr.msk.f32.gmra.mxu0 %vm1409_vm2, %v1358_v41 }
 0x139   : > { %v938_v49 = vpop.permute.xlu1 %937  ;;  %v936_v62 = vpop.permute.xlu0 %935  ;;  %6310 = vmatprep.mubr.msk.f32.mxu0 %vm1409_vm2, %v1359_v42  ;;  %v3769_v42 = vsel %vm3641_vm5, 1, %v10836_v32 }
 0x13a   : > { %v1232_v51 = vsel %vm1143_vm0, %v463_v43, %v936_v62  ;;  %v1233_v57 = vsel %vm1143_vm0, %v464_v50, %v938_v49  ;;  %v3770_v43 = vsel %vm3642_vm6, 1, %v10836_v32  ;;  %v3515_v50 = vld [vmem:[%s6926_s16 + $0x100] sm:$0xff]  ;;  %v3516_v62 = vld [vmem:[%s6926_s16 + $0x108] sm:$0xff] }
 0x13b   : > { %v1361_v39 = vsel %vm1272_vm1, %v1232_v51, 0.0  ;;  %3924 = vperm.xlu1 %6664, %v3759_v46   ;;  %3927 = vperm.xlu0 %6663, %v3760_v48   ;;  %v1362_v2 = vsel %vm1272_vm1, %v1233_v57, 0.0  ;;  %v474_v46 = vld [vmem:[%s6916_s10 + $0x318] sm:$0xff]  ;;  %v3772_v57 = vsel %vm3644_vm8, 1, %v10836_v32  ;;  %vm3645_vm9 = vcmp.eq.s32.totalorder %v3515_v50, 0 }
 0x13c   : > { %6311 = vmatmul.mubr.msk.f32.gmra.mxu0 %vm1409_vm2, %v1360_v55  ;;  %vm3646_vm10 = vcmp.eq.s32.totalorder %v3516_v62, 0 }
 0x13d   : > { %v942_v61 = vpop.permute.xlu1 %941  ;;  %v940_v63 = vpop.permute.xlu0 %939  ;;  %6313 = vmatprep.mubr.msk.f32.mxu0 %vm1409_vm2, %v1361_v39 }
 0x13e   : > { %v1234_v0 = vsel %vm1143_vm0, %v465_v56, %v940_v63  ;;  %v1235_v6 = vsel %vm1143_vm0, %v466_v3, %v942_v61  ;;  %v3771_v56 = vsel %vm3643_vm7, 1, %v10836_v32  ;;  %vm3656_vm7 = vcmp.eq.s32.totalorder %v3526_v53, 0 }
 0x13f   : > { %v1363_v4 = vsel %vm1272_vm1, %v1234_v0, 0.0  ;;  %3930 = vperm.xlu1 %6664, %v3761_v58   ;;  %3933 = vperm.xlu0 %6663, %v3762_v59   ;;  %v1364_v15 = vsel %vm1272_vm1, %v1235_v6, 0.0  ;;  %v476_v59 = vld [vmem:[%s6916_s10 + $0x328] sm:$0xff]  ;;  %v3517_v0 = vld [vmem:[%s6926_s16 + $0x110] sm:$0xff] }
 0x140   : > { %6314 = vmatmul.mubr.msk.f32.gmra.mxu0 %vm1409_vm2, %v1362_v2  ;;  %vm3647_vm11 = vcmp.eq.s32.totalorder %v3517_v0, 0  ;;  %v3525_v0 = vld [vmem:[%s6926_s16 + $0x150] sm:$0xff] }
 0x141   : > { %v946_v11 = vpop.permute.xlu1 %945  ;;  %v944_v12 = vpop.permute.xlu0 %943  ;;  %6316 = vmatprep.mubr.msk.f32.mxu0 %vm1409_vm2, %v1363_v4  ;;  %v477_v4 = vld [vmem:[%s6916_s10 + $0x330] sm:$0xff]  ;;  %vm3655_vm6 = vcmp.eq.s32.totalorder %v3525_v0, 0 }
 0x142   : > { %v1236_v13 = vsel %vm1143_vm0, %v467_v5, %v944_v12  ;;  %v1237_v17 = vsel %vm1143_vm0, %v468_v10, %v946_v11  ;;  %v478_v10 = vld [vmem:[%s6916_s10 + $0x338] sm:$0xff] }
 0x143   : > { %v1365_v16 = vsel %vm1272_vm1, %v1236_v13, 0.0  ;;  %3936 = vperm.xlu1 %6664, %v3763_v7   ;;  %3939 = vperm.xlu0 %6663, %v3764_v9   ;;  %v1366_v25 = vsel %vm1272_vm1, %v1237_v17, 0.0  ;;  %v3773_v7 = vsel %vm3645_vm9, 1, %v10836_v32  ;;  %v3774_v9 = vsel %vm3646_vm10, 1, %v10836_v32  ;;  %v479_v17 = vld [vmem:[%s6916_s10 + $0x340] sm:$0xff] }
 0x144   : > { %6317 = vmatmul.mubr.msk.f32.gmra.mxu0 %vm1409_vm2, %v1364_v15  ;;  %v3520_v15 = vld [vmem:[%s6926_s16 + $0x128] sm:$0xff] }
 0x145   : > { %v950_v19 = vpop.permute.xlu1 %949  ;;  %v948_v22 = vpop.permute.xlu0 %947  ;;  %6319 = vmatprep.mubr.msk.f32.mxu0 %vm1409_vm2, %v1365_v16  ;;  %vm3650_vm14 = vcmp.eq.s32.totalorder %v3520_v15, 0  ;;  %v486_v15 = vld [vmem:[%s6916_s10 + $0x378] sm:$0xff] }
 0x146   : > { %v1238_v23 = vsel %vm1143_vm0, %v469_v44, %v948_v22  ;;  %v1239_v29 = vsel %vm1143_vm0, %v470_v20, %v950_v19  ;;  %v3775_v19 = vsel %vm3647_vm11, 1, %v10836_v32  ;;  %v3776_v20 = vsel %vm3648_vm12, 1, %v10836_v32 }
 0x147   : > { %v1367_v27 = vsel %vm1272_vm1, %v1238_v23, 0.0  ;;  %3942 = vperm.xlu1 %6664, %v3765_v18   ;;  %3945 = vperm.xlu0 %6663, %v3766_v21   ;;  %v1368_v52 = vsel %vm1272_vm1, %v1239_v29, 0.0  ;;  %v480_v23 = vld [vmem:[%s6916_s10 + $0x348] sm:$0xff] }
 0x148   : > { %6320 = vmatmul.mubr.msk.f32.gmra.mxu0 %vm1409_vm2, %v1366_v25 }
 0x149   : > { %v954_v31 = vpop.permute.xlu1 %953  ;;  %v952_v34 = vpop.permute.xlu0 %951  ;;  %6322 = vmatprep.mubr.msk.f32.mxu0 %vm1409_vm2, %v1367_v27  ;;  %v3521_v27 = vld [vmem:[%s6926_s16 + $0x130] sm:$0xff] }
 0x14a   : > { %v1240_v36 = vsel %vm1143_vm0, %v471_v28, %v952_v34  ;;  %v1241_v41 = vsel %vm1143_vm0, %v472_v33, %v954_v31  ;;  %v3522_v28 = vld [vmem:[%s6926_s16 + $0x138] sm:$0xff]  ;;  %v3777_v34 = vsel %vm3649_vm13, 1, %v10836_v32  ;;  %vm3651_vm15 = vcmp.eq.s32.totalorder %v3521_v27, 0  ;;  %v487_v27 = vld [vmem:[%s6916_s10 + $0x380] sm:$0xff] }
 0x14b   : > { %v1369_v35 = vsel %vm1272_vm1, %v1240_v36, 0.0  ;;  %3948 = vperm.xlu1 %6664, %v3767_v26   ;;  %3951 = vperm.xlu0 %6663, %v3768_v30   ;;  %v1370_v51 = vsel %vm1272_vm1, %v1241_v41, 0.0  ;;  %v481_v30 = vld [vmem:[%s6916_s10 + $0x350] sm:$0xff]  ;;  %v3778_v36 = vsel %vm3650_vm14, 1, %v10836_v32  ;;  %vm3652_vm3 = vcmp.eq.s32.totalorder %v3522_v28, 0 }
 0x14c   : > { %6323 = vmatmul.mubr.msk.f32.gmra.mxu0 %vm1409_vm2, %v1368_v52 }
 0x14d   : > { %v958_v45 = vpop.permute.xlu1 %957  ;;  %v956_v48 = vpop.permute.xlu0 %955  ;;  %6325 = vmatprep.mubr.msk.f32.mxu0 %vm1409_vm2, %v1369_v35  ;;  %v7838_v35 = vld [vmem:[%s10816_s4] ss:$0 sm:$0xff] }
 0x14e   : > { %v1242_v49 = vsel %vm1143_vm0, %v473_v40, %v956_v48  ;;  %v1243_v55 = vsel %vm1143_vm0, %v474_v46, %v958_v45 }
 0x14f   : > { %v1371_v47 = vsel %vm1272_vm1, %v1242_v49, 0.0  ;;  %3954 = vperm.xlu1 %6664, %v3769_v42   ;;  %3957 = vperm.xlu0 %6663, %v3770_v43   ;;  %v1372_v1 = vsel %vm1272_vm1, %v1243_v55, 0.0  ;;  %v3523_v42 = vld [vmem:[%s6926_s16 + $0x140] sm:$0xff]  ;;  %v3524_v43 = vld [vmem:[%s6926_s16 + $0x148] sm:$0xff] }
 0x150   : > { %v7782_v39 = vpop.f32.mrf.mxu0  ;;  %6326 = vmatmul.mubr.msk.f32.gmra.mxu0 %vm1409_vm2, %v1370_v51  ;;  %v483_v49 = vld [vmem:[%s6916_s10 + $0x360] sm:$0xff]  ;;  %vm3653_vm4 = vcmp.eq.s32.totalorder %v3523_v42, 0  ;;  %vm3654_vm5 = vcmp.eq.s32.totalorder %v3524_v43, 0 }
 0x151   : > { %v962_v58 = vpop.permute.xlu1 %961  ;;  %v960_v61 = vpop.permute.xlu0 %959  ;;  %6328 = vmatprep.mubr.msk.f32.mxu0 %vm1409_vm2, %v1371_v47  ;;  %v3779_v47 = vsel %vm3651_vm15, 1, %v10836_v32 }
 0x152   : > { %v1244_v3 = vsel %vm1143_vm0, %v475_v54, %v960_v61  ;;  %v7790_v63 = vpop.f32.mrf.mxu0  ;;  %v1245_v5 = vsel %vm1143_vm0, %v476_v59, %v962_v58  ;;  %v3780_v54 = vsel %vm3652_vm3, 1, %v10836_v32 }
 0x153   : > { %v1373_v2 = vsel %vm1272_vm1, %v1244_v3, 0.0  ;;  %3960 = vperm.xlu1 %6664, %v3771_v56   ;;  %3963 = vperm.xlu0 %6663, %v3772_v57   ;;  %v1374_v16 = vsel %vm1272_vm1, %v1245_v5, 0.0  ;;  %v484_v56 = vld [vmem:[%s6916_s10 + $0x368] sm:$0xff] }
 0x154   : > { %v7798_v6 = vpop.f32.mrf.mxu0  ;;  %6329 = vmatmul.mubr.msk.f32.gmra.mxu0 %vm1409_vm2, %v1372_v1 }
 0x155   : > { %v966_v11 = vpop.permute.xlu1 %965  ;;  %v964_v12 = vpop.permute.xlu0 %963  ;;  %6331 = vmatprep.mubr.msk.f32.mxu0 %vm1409_vm2, %v1373_v2 }
 0x156   : > { %v1246_v13 = vsel %vm1143_vm0, %v477_v4, %v964_v12  ;;  %v7806_v60 = vpop.f32.mrf.mxu0  ;;  %v1247_v18 = vsel %vm1143_vm0, %v478_v10, %v966_v11  ;;  %v3781_v10 = vsel %vm3653_vm4, 1, %v10836_v32  ;;  %v3782_v12 = vsel %vm3654_vm5, 1, %v10836_v32 }
 0x157   : > { %v1375_v44 = vsel %vm1272_vm1, %v1246_v13, 0.0  ;;  %3966 = vperm.xlu1 %6664, %v3773_v7   ;;  %3969 = vperm.xlu0 %6663, %v3774_v9   ;;  %v1376_v29 = vsel %vm1272_vm1, %v1247_v18, 0.0  ;;  %v485_v7 = vld [vmem:[%s6916_s10 + $0x370] sm:$0xff] }
 0x158   : > { %v7814_v21 = vpop.f32.mrf.mxu0  ;;  %6332 = vmatmul.mubr.msk.f32.gmra.mxu0 %vm1409_vm2, %v1374_v16 }
 0x159   : > { %v970_v22 = vpop.permute.xlu1 %969  ;;  %v968_v8 = vpop.permute.xlu0 %967  ;;  %6334 = vmatprep.mubr.msk.f32.mxu0 %vm1409_vm2, %v1375_v44 }
 0x15a   : > { %v1248_v24 = vsel %vm1143_vm0, %v479_v17, %v968_v8  ;;  %v7822_v25 = vpop.f32.mrf.mxu0  ;;  %v1249_v31 = vsel %vm1143_vm0, %v480_v23, %v970_v22 }
 0x15b   : > { %v1377_v26 = vsel %vm1272_vm1, %v1248_v24, 0.0  ;;  %3972 = vperm.xlu1 %6664, %v3775_v19   ;;  %3975 = vperm.xlu0 %6663, %v3776_v20   ;;  %v1378_v45 = vsel %vm1272_vm1, %v1249_v31, 0.0  ;;  %v3527_v19 = vld [vmem:[%s6926_s16 + $0x160] sm:$0xff]  ;;  %v3528_v20 = vld [vmem:[%s6926_s16 + $0x168] sm:$0xff] }
 0x15c   : > { %v6192_v33 = vpop.f32.mrf.mxu0  ;;  %6335 = vmatmul.mubr.msk.f32.gmra.mxu0 %vm1409_vm2, %v1376_v29  ;;  %vm3657_vm8 = vcmp.eq.s32.totalorder %v3527_v19, 0  ;;  %vm3658_vm9 = vcmp.eq.s32.totalorder %v3528_v20, 0 }
 0x15d   : > { %v974_v37 = vpop.permute.xlu1 %973  ;;  %v972_v52 = vpop.permute.xlu0 %971  ;;  %6337 = vmatprep.mubr.msk.f32.mxu0 %vm1409_vm2, %v1377_v26  ;;  %v1896_v46 = vadd.f32 %v6192_v33, %v7838_v35  ;;  %v3783_v26 = vsel %vm3655_vm6, 1, %v10836_v32 }
 0x15e   : > { %v1250_v40 = vsel %vm1143_vm0, %v481_v30, %v972_v52  ;;  %v1890_v41 = vpop.f32.mrf.mxu0  ;;  %v1251_v62 = vsel %vm1143_vm0, %v482_v38, %v974_v37  ;;  %v3784_v30 = vsel %vm3656_vm7, 1, %v10836_v32 }
 0x15f   : > { %v1379_v48 = vsel %vm1272_vm1, %v1250_v40, 0.0  ;;  %3978 = vperm.xlu1 %6664, %v3777_v34   ;;  %3981 = vperm.xlu0 %6663, %v3778_v36   ;;  %v1891_v50 = vadd.f32 %v7838_v35, %v1890_v41  ;;  %v2506_v1 = vmax.f32 %v1896_v46, 0.0  ;;  %v1380_v2 = vsel %vm1272_vm1, %v1251_v62, 0.0  ;;  %v488_v34 = vld [vmem:[%s6916_s10 + $0x388] sm:$0xff]  ;;  %v3529_v40 = vld [vmem:[%s6926_s16 + $0x170] sm:$0xff]  ;;  %v3530_v41 = vld [vmem:[%s6926_s16 + $0x178] sm:$0xff] }
 0x160   : > { %v6195_v51 = vpop.f32.mrf.mxu0  ;;  %6338 = vmatmul.mubr.msk.f32.gmra.mxu0 %vm1409_vm2, %v1378_v45  ;;  %v3785_v62 = vsel %vm3657_vm8, 1, %v10836_v32  ;;  %vm3659_vm10 = vcmp.eq.s32.totalorder %v3529_v40, 0  ;;  %vm3660_vm11 = vcmp.eq.s32.totalorder %v3530_v41, 0 }
 0x161   : > { %v978_v55 = vpop.permute.xlu1 %977  ;;  %v976_v57 = vpop.permute.xlu0 %975  ;;  %6340 = vmatprep.mubr.msk.f32.mxu0 %vm1409_vm2, %v1379_v48  ;;  %v2505_v58 = vmax.f32 %v1891_v50, 0.0  ;;  %v1906_v59 = vadd.f32 %v6195_v51, %v7838_v35  ;;  %v489_v48 = vld [vmem:[%s6916_s10 + $0x390] sm:$0xff]  ;;  %v3786_v51 = vsel %vm3658_vm9, 1, %v10836_v32 }
 0x162   : > { %v1252_v61 = vsel %vm1143_vm0, %v483_v49, %v976_v57  ;;  %v1900_v3 = vpop.f32.mrf.mxu0  ;;  %v1253_v9 = vsel %vm1143_vm0, %v484_v56, %v978_v55  ;;  %v490_v55 = vld [vmem:[%s6916_s10 + $0x398] sm:$0xff] }
 0x163   : > { %v1381_v4 = vsel %vm1272_vm1, %v1252_v61, 0.0  ;;  %v1901_v5 = vadd.f32 %v7838_v35, %v1900_v3  ;;  %3984 = vperm.xlu1 %6664, %v3779_v47   ;;  %3987 = vperm.xlu0 %6663, %v3780_v54   ;;  %v2508_v44 = vmax.f32 %v1906_v59, 0.0  ;;  %v1382_v22 = vsel %vm1272_vm1, %v1253_v9, 0.0  ;;  %v3531_v61 = vld [vmem:[%s6926_s16 + $0x180] sm:$0xff]  ;;  %v3532_v3 = vld [vmem:[%s6926_s16 + $0x188] sm:$0xff] }
 0x164   : > { %6414 = vmatprep.mubr.f32.mxu1 %v2505_v58  ;;  %v6198_v11 = vpop.f32.mrf.mxu0  ;;  %6341 = vmatmul.mubr.msk.f32.gmra.mxu0 %vm1409_vm2, %v1380_v2  ;;  %v3787_v9 = vsel %vm3659_vm10, 1, %v10836_v32  ;;  %vm3661_vm12 = vcmp.eq.s32.totalorder %v3531_v61, 0  ;;  %vm3662_vm13 = vcmp.eq.s32.totalorder %v3532_v3, 0 }
 0x165   : > { %v2507_v13 = vmax.f32 %v1901_v5, 0.0  ;;  %6415 = vmatmul.mubr.f32.vlgmr.msra.gmra.mxu1 %v2506_v1  ;;  %v982_v14 = vpop.permute.xlu1 %981  ;;  %v980_v16 = vpop.permute.xlu0 %979  ;;  %6343 = vmatprep.mubr.msk.f32.mxu0 %vm1409_vm2, %v1381_v4  ;;  %v1916_v23 = vadd.f32 %v6198_v11, %v7838_v35  ;;  %v491_v4 = vld [vmem:[%s6916_s10 + $0x3a0] sm:$0xff]  ;;  %v3788_v11 = vsel %vm3660_vm11, 1, %v10836_v32 }
 0x166   : > { %v1254_v17 = vsel %vm1143_vm0, %v485_v7, %v980_v16  ;;  %v1910_v18 = vpop.f32.mrf.mxu0  ;;  %v1255_v28 = vsel %vm1143_vm0, %v486_v15, %v982_v14 }
 0x167   : > { %v1383_v8 = vsel %vm1272_vm1, %v1254_v17, 0.0  ;;  %v1911_v24 = vadd.f32 %v7838_v35, %v1910_v18  ;;  %3990 = vperm.xlu1 %6664, %v3781_v10   ;;  %3993 = vperm.xlu0 %6663, %v3782_v12   ;;  %v2510_v42 = vmax.f32 %v1916_v23, 0.0  ;;  %v1384_v43 = vsel %vm1272_vm1, %v1255_v28, 0.0  ;;  %v3533_v17 = vld [vmem:[%s6926_s16 + $0x190] sm:$0xff]  ;;  %v3534_v18 = vld [vmem:[%s6926_s16 + $0x198] sm:$0xff] }
 0x168   : > { %6417 = vmatprep.mubr.f32.mxu1 %v2507_v13  ;;  %v6201_v29 = vpop.f32.mrf.mxu0  ;;  %6344 = vmatmul.mubr.msk.f32.gmra.mxu0 %vm1409_vm2, %v1382_v22  ;;  %v492_v13 = vld [vmem:[%s6916_s10 + $0x3a8] sm:$0xff]  ;;  %v3789_v28 = vsel %vm3661_vm12, 1, %v10836_v32  ;;  %vm3663_vm14 = vcmp.eq.s32.totalorder %v3533_v17, 0  ;;  %vm3664_vm15 = vcmp.eq.s32.totalorder %v3534_v18, 0 }
 0x169   : > { %v2509_v31 = vmax.f32 %v1911_v24, 0.0  ;;  %6418 = vmatmul.mubr.f32.gmra.mxu1 %v2508_v44  ;;  %v986_v33 = vpop.permute.xlu1 %985  ;;  %v984_v36 = vpop.permute.xlu0 %983  ;;  %6346 = vmatprep.mubr.msk.f32.mxu0 %vm1409_vm2, %v1383_v8  ;;  %v1926_v37 = vadd.f32 %v6201_v29, %v7838_v35  ;;  %v493_v8 = vld [vmem:[%s6916_s10 + $0x3b0] sm:$0xff]  ;;  %v3790_v29 = vsel %vm3662_vm13, 1, %v10836_v32 }
 0x16a   : > { %v1256_v38 = vsel %vm1143_vm0, %v487_v27, %v984_v36  ;;  %v1920_v52 = vpop.f32.mrf.mxu0  ;;  %v1257_v49 = vsel %vm1143_vm0, %v488_v34, %v986_v33 }
 0x16b   : > { %v1385_v45 = vsel %vm1272_vm1, %v1256_v38, 0.0  ;;  %v1921_v46 = vadd.f32 %v7838_v35, %v1920_v52  ;;  %3996 = vperm.xlu1 %6664, %v3783_v26   ;;  %3999 = vperm.xlu0 %6663, %v3784_v30   ;;  %v2512_v57 = vmax.f32 %v1926_v37, 0.0  ;;  %v1386_v0 = vsel %vm1272_vm1, %v1257_v49, 0.0  ;;  %v3535_v38 = vld [vmem:[%s6926_s16 + $0x1a0] sm:$0xff]  ;;  %v3536_v52 = vld [vmem:[%s6926_s16 + $0x1a8] sm:$0xff] }
 0x16c   : > { %6420 = vmatprep.mubr.f32.mxu1 %v2509_v31  ;;  %v6204_v50 = vpop.f32.mrf.mxu0  ;;  %6347 = vmatmul.mubr.msk.f32.gmra.mxu0 %vm1409_vm2, %v1384_v43  ;;  %v494_v31 = vld [vmem:[%s6916_s10 + $0x3b8] sm:$0xff]  ;;  %v3791_v49 = vsel %vm3663_vm14, 1, %v10836_v32  ;;  %vm3665_vm3 = vcmp.eq.s32.totalorder %v3535_v38, 0  ;;  %vm3666_vm4 = vcmp.eq.s32.totalorder %v3536_v52, 0 }
 0x16d   : > { %v2511_v47 = vmax.f32 %v1921_v46, 0.0  ;;  %6421 = vmatmul.mubr.f32.gmra.mxu1 %v2510_v42  ;;  %v990_v54 = vpop.permute.xlu1 %989  ;;  %v988_v56 = vpop.permute.xlu0 %987  ;;  %6349 = vmatprep.mubr.msk.f32.mxu0 %vm1409_vm2, %v1385_v45  ;;  %v1936_v53 = vadd.f32 %v6204_v50, %v7838_v35  ;;  %v495_v45 = vld [vmem:[%s6916_s10 + $0x3c0] sm:$0xff]  ;;  %v3792_v50 = vsel %vm3664_vm15, 1, %v10836_v32 }
 0x16e   : > { %v1258_v58 = vsel %vm1143_vm0, %v489_v48, %v988_v56  ;;  %v1930_v59 = vpop.f32.mrf.mxu0  ;;  %v1259_v5 = vsel %vm1143_vm0, %v490_v55, %v990_v54 }
 0x16f   : > { %v1387_v1 = vsel %vm1272_vm1, %v1258_v58, 0.0  ;;  %v1931_v2 = vadd.f32 %v7838_v35, %v1930_v59  ;;  %4002 = vperm.xlu1 %6664, %v3785_v62   ;;  %4005 = vperm.xlu0 %6663, %v3786_v51   ;;  %v2514_v19 = vmax.f32 %v1936_v53, 0.0  ;;  %v1388_v20 = vsel %vm1272_vm1, %v1259_v5, 0.0  ;;  %v3537_v58 = vld [vmem:[%s6926_s16 + $0x1b0] sm:$0xff]  ;;  %v3538_v59 = vld [vmem:[%s6926_s16 + $0x1b8] sm:$0xff] }
 0x170   : > { %6423 = vmatprep.mubr.f32.mxu1 %v2511_v47  ;;  %v6207_v7 = vpop.f32.mrf.mxu0  ;;  %6350 = vmatmul.mubr.msk.f32.gmra.mxu0 %vm1409_vm2, %v1386_v0  ;;  %v496_v47 = vld [vmem:[%s6916_s10 + $0x3c8] sm:$0xff]  ;;  %v3793_v5 = vsel %vm3665_vm3, 1, %v10836_v32  ;;  %vm3667_vm5 = vcmp.eq.s32.totalorder %v3537_v58, 0  ;;  %vm3668_vm6 = vcmp.eq.s32.totalorder %v3538_v59, 0 }
 0x171   : > { %v2513_v10 = vmax.f32 %v1931_v2, 0.0  ;;  %6424 = vmatmul.mubr.f32.gmra.mxu1 %v2512_v57  ;;  %v994_v12 = vpop.permute.xlu1 %993  ;;  %v992_v14 = vpop.permute.xlu0 %991  ;;  %6352 = vmatprep.mubr.msk.f32.mxu0 %vm1409_vm2, %v1387_v1  ;;  %v1946_v15 = vadd.f32 %v6207_v7, %v7838_v35  ;;  %v497_v1 = vld [vmem:[%s6916_s10 + $0x3d0] sm:$0xff]  ;;  %v3794_v7 = vsel %vm3666_vm4, 1, %v10836_v32  ;;  %v3544_v58 = vld [vmem:[%s6926_s16 + $0x1e8] sm:$0xff] }
 0x172   : > { %v1260_v16 = vsel %vm1143_vm0, %v491_v4, %v992_v14  ;;  %v1940_v44 = vpop.f32.mrf.mxu0  ;;  %v1261_v24 = vsel %vm1143_vm0, %v492_v13, %v994_v12  ;;  %vm3674_vm12 = vcmp.eq.s32.totalorder %v3544_v58, 0 }
 0x173   : > { %v1389_v22 = vsel %vm1272_vm1, %v1260_v16, 0.0  ;;  %v1941_v23 = vadd.f32 %v7838_v35, %v1940_v44  ;;  %4008 = vperm.xlu1 %6664, %v3787_v9   ;;  %4011 = vperm.xlu0 %6663, %v3788_v11   ;;  %v2516_v34 = vmax.f32 %v1946_v15, 0.0  ;;  %v1390_v40 = vsel %vm1272_vm1, %v1261_v24, 0.0  ;;  %v3539_v16 = vld [vmem:[%s6926_s16 + $0x1c0] sm:$0xff]  ;;  %v3540_v44 = vld [vmem:[%s6926_s16 + $0x1c8] sm:$0xff] }
 0x174   : > { %6426 = vmatprep.mubr.f32.mxu1 %v2513_v10  ;;  %v6210_v27 = vpop.f32.mrf.mxu0  ;;  %6353 = vmatmul.mubr.msk.f32.gmra.mxu0 %vm1409_vm2, %v1388_v20  ;;  %v498_v10 = vld [vmem:[%s6916_s10 + $0x3d8] sm:$0xff]  ;;  %v3795_v24 = vsel %vm3667_vm5, 1, %v10836_v32  ;;  %vm3669_vm7 = vcmp.eq.s32.totalorder %v3539_v16, 0  ;;  %vm3670_vm8 = vcmp.eq.s32.totalorder %v3540_v44, 0  ;;  %v3802_v44 = vsel %vm3674_vm12, 1, %v10836_v32 }
 0x175   : > { %v2515_v26 = vmax.f32 %v1941_v23, 0.0  ;;  %6427 = vmatmul.mubr.f32.gmra.mxu1 %v2514_v19  ;;  %v998_v30 = vpop.permute.xlu1 %997  ;;  %v996_v33 = vpop.permute.xlu0 %995  ;;  %6355 = vmatprep.mubr.msk.f32.mxu0 %vm1409_vm2, %v1389_v22  ;;  %v1956_v41 = vadd.f32 %v6210_v27, %v7838_v35  ;;  %v499_v22 = vld [vmem:[%s6916_s10 + $0x3e0] sm:$0xff]  ;;  %v3796_v27 = vsel %vm3668_vm6, 1, %v10836_v32 }
 0x176   : > { %v1262_v36 = vsel %vm1143_vm0, %v493_v8, %v996_v33  ;;  %v1950_v37 = vpop.f32.mrf.mxu0  ;;  %v1263_v46 = vsel %vm1143_vm0, %v494_v31, %v998_v30 }
 0x177   : > { %v1391_v42 = vsel %vm1272_vm1, %v1262_v36, 0.0  ;;  %v1951_v43 = vadd.f32 %v7838_v35, %v1950_v37  ;;  %4014 = vperm.xlu1 %6664, %v3789_v28   ;;  %4017 = vperm.xlu0 %6663, %v3790_v29   ;;  %v2518_v61 = vmax.f32 %v1956_v41, 0.0  ;;  %v1392_v3 = vsel %vm1272_vm1, %v1263_v46, 0.0  ;;  %v3541_v36 = vld [vmem:[%s6926_s16 + $0x1d0] sm:$0xff]  ;;  %v3542_v37 = vld [vmem:[%s6926_s16 + $0x1d8] sm:$0xff] }
 0x178   : > { %6429 = vmatprep.mubr.f32.mxu1 %v2515_v26  ;;  %v6213_v48 = vpop.f32.mrf.mxu0  ;;  %6356 = vmatmul.mubr.msk.f32.gmra.mxu0 %vm1409_vm2, %v1390_v40  ;;  %v500_v26 = vld [vmem:[%s6916_s10 + $0x3e8] sm:$0xff]  ;;  %v3797_v46 = vsel %vm3669_vm7, 1, %v10836_v32  ;;  %vm3671_vm9 = vcmp.eq.s32.totalorder %v3541_v36, 0  ;;  %vm3672_vm10 = vcmp.eq.s32.totalorder %v3542_v37, 0  ;;  %v3549_v37 = vld [vmem:[%s6926_s16 + $0x210] sm:$0xff] }
 0x179   : > { %v2517_v62 = vmax.f32 %v1951_v43, 0.0  ;;  %6430 = vmatmul.mubr.f32.gmra.mxu1 %v2516_v34  ;;  %v1002_v51 = vpop.permute.xlu1 %1001  ;;  %v1000_v54 = vpop.permute.xlu0 %999  ;;  %6358 = vmatprep.mubr.msk.f32.mxu0 %vm1409_vm2, %v1391_v42  ;;  %v1966_v55 = vadd.f32 %v6213_v48, %v7838_v35  ;;  %v501_v42 = vld [vmem:[%s6916_s10 + $0x3f0] sm:$0xff]  ;;  %v3798_v48 = vsel %vm3670_vm8, 1, %v10836_v32  ;;  %vm3679_vm14 = vcmp.eq.s32.totalorder %v3549_v37, 0 }
 0x17a   : > { %v1264_v56 = vsel %vm1143_vm0, %v495_v45, %v1000_v54  ;;  %v1960_v57 = vpop.f32.mrf.mxu0  ;;  %v1265_v2 = vsel %vm1143_vm0, %v496_v47, %v1002_v51  ;;  %v1861_v47 = vadd.f32 %v7838_v35, %v7790_v63  ;;  %v3807_v58 = vsel %vm3679_vm14, 1, %v10836_v32 }
 0x17b   : > { %v1393_v0 = vsel %vm1272_vm1, %v1264_v56, 0.0  ;;  %v1961_v53 = vadd.f32 %v7838_v35, %v1960_v57  ;;  %4020 = vperm.xlu1 %6664, %v3791_v49   ;;  %4023 = vperm.xlu0 %6663, %v3792_v50   ;;  %v2520_v13 = vmax.f32 %v1966_v55, 0.0  ;;  %v1394_v17 = vsel %vm1272_vm1, %v1265_v2, 0.0  ;;  %v3543_v57 = vld [vmem:[%s6926_s16 + $0x1e0] sm:$0xff] }
 0x17c   : > { %6432 = vmatprep.mubr.f32.mxu1 %v2517_v62  ;;  %v6216_v4 = vpop.f32.mrf.mxu0  ;;  %6359 = vmatmul.mubr.msk.f32.gmra.mxu0 %vm1409_vm2, %v1392_v3  ;;  %v502_v62 = vld [vmem:[%s6916_s10 + $0x3f8] sm:$0xff]  ;;  %v3800_v2 = vsel %vm3672_vm10, 1, %v10836_v32  ;;  %vm3673_vm11 = vcmp.eq.s32.totalorder %v3543_v57, 0 }
 0x17d   : > { %v2519_v9 = vmax.f32 %v1961_v53, 0.0  ;;  %6433 = vmatmul.mubr.f32.gmra.mxu1 %v2518_v61  ;;  %v1006_v11 = vpop.permute.xlu1 %1005  ;;  %v1004_v12 = vpop.permute.xlu0 %1003  ;;  %6361 = vmatprep.mubr.msk.f32.mxu0 %vm1409_vm2, %v1393_v0  ;;  %v1976_v18 = vadd.f32 %v6216_v4, %v7838_v35 }
 0x17e   : > { %v1266_v14 = vsel %vm1143_vm0, %v497_v1, %v1004_v12  ;;  %v1970_v15 = vpop.f32.mrf.mxu0  ;;  %v1267_v23 = vsel %vm1143_vm0, %v498_v10, %v1006_v11  ;;  %v3799_v1 = vsel %vm3671_vm9, 1, %v10836_v32  ;;  %v3545_v10 = vld [vmem:[%s6926_s16 + $0x1f0] sm:$0xff]  ;;  %v3546_v12 = vld [vmem:[%s6926_s16 + $0x1f8] sm:$0xff] }
 0x17f   : > { %v1395_v19 = vsel %vm1272_vm1, %v1266_v14, 0.0  ;;  %v1971_v20 = vadd.f32 %v7838_v35, %v1970_v15  ;;  %4026 = vperm.xlu1 %6664, %v3793_v5   ;;  %4029 = vperm.xlu0 %6663, %v3794_v7   ;;  %v2522_v38 = vmax.f32 %v1976_v18, 0.0  ;;  %v1396_v52 = vsel %vm1272_vm1, %v1267_v23, 0.0  ;;  %v3547_v23 = vld [vmem:[%s6926_s16 + $0x200] sm:$0xff] }
 0x180   : > { %6435 = vmatprep.mubr.f32.mxu1 %v2519_v9  ;;  %v6219_v8 = vpop.f32.mrf.mxu0  ;;  %6362 = vmatmul.mubr.msk.f32.gmra.mxu0 %vm1409_vm2, %v1394_v17  ;;  %v1866_v5 = vadd.f32 %v7782_v39, %v7838_v35  ;;  %v2499_v7 = vmax.f32 %v1861_v47, 0.0  ;;  %v1871_v9 = vadd.f32 %v7838_v35, %v7806_v60  ;;  %v3801_v60 = vsel %vm3673_vm11, 1, %v10836_v32  ;;  %v3552_v47 = vld [vmem:[%s6926_s16 + $0x228] sm:$0xff] }
 0x181   : > { %v2521_v28 = vmax.f32 %v1971_v20, 0.0  ;;  %6436 = vmatmul.mubr.f32.gmra.mxu1 %v2520_v13  ;;  %v1010_v29 = vpop.permute.xlu1 %1009  ;;  %v1008_v30 = vpop.permute.xlu0 %1007  ;;  %6364 = vmatprep.mubr.msk.f32.mxu0 %vm1409_vm2, %v1395_v19  ;;  %v1986_v31 = vadd.f32 %v6219_v8, %v7838_v35  ;;  %v1876_v19 = vadd.f32 %v7798_v6, %v7838_v35  ;;  %v3548_v8 = vld [vmem:[%s6926_s16 + $0x208] sm:$0xff]  ;;  %vm3682_vm4 = vcmp.eq.s32.totalorder %v3552_v47, 0 }
 0x182   : > { %v1268_v33 = vsel %vm1143_vm0, %v499_v22, %v1008_v30  ;;  %v1980_v34 = vpop.f32.mrf.mxu0  ;;  %v1269_v43 = vsel %vm1143_vm0, %v500_v26, %v1010_v29  ;;  %v2500_v18 = vmax.f32 %v1866_v5, 0.0  ;;  %v2501_v20 = vmax.f32 %v1871_v9, 0.0 }
 0x183   : > { %v1397_v40 = vsel %vm1272_vm1, %v1268_v33, 0.0  ;;  %v1981_v41 = vadd.f32 %v7838_v35, %v1980_v34  ;;  %4032 = vperm.xlu1 %6664, %v3795_v24   ;;  %4035 = vperm.xlu0 %6663, %v3796_v27   ;;  %v2524_v54 = vmax.f32 %v1986_v31, 0.0  ;;  %v1398_v59 = vsel %vm1272_vm1, %v1269_v43, 0.0 }
 0x184   : > { %6438 = vmatprep.mubr.f32.mxu1 %v2521_v28  ;;  %v6222_v45 = vpop.f32.mrf.mxu0  ;;  %6365 = vmatmul.mubr.msk.f32.gmra.mxu0 %vm1409_vm2, %v1396_v52  ;;  %v1881_v24 = vadd.f32 %v7838_v35, %v7822_v25  ;;  %vm3678_vm13 = vcmp.eq.s32.totalorder %v3548_v8, 0  ;;  %v2502_v25 = vmax.f32 %v1876_v19, 0.0  ;;  %v1886_v33 = vadd.f32 %v7814_v21, %v7838_v35 }
 0x185   : > { %v2523_v49 = vmax.f32 %v1981_v41, 0.0  ;;  %6439 = vmatmul.mubr.f32.gmra.mxu1 %v2522_v38  ;;  %v1014_v50 = vpop.permute.xlu1 %1013  ;;  %v1012_v51 = vpop.permute.xlu0 %1011  ;;  %6367 = vmatprep.mubr.msk.f32.mxu0 %vm1409_vm2, %v1397_v40  ;;  %v1996_v61 = vadd.f32 %v6222_v45, %v7838_v35  ;;  %v3550_v38 = vld [vmem:[%s6926_s16 + $0x218] sm:$0xff]  ;;  %v3806_v45 = vsel %vm3678_vm13, 1, %v10836_v32 }
 0x186   : > { %v1270_v55 = vsel %vm1143_vm0, %v501_v42, %v1012_v51  ;;  %v1990_v56 = vpop.f32.mrf.mxu0  ;;  %v1271_v53 = vsel %vm1143_vm0, %v502_v62, %v1014_v50  ;;  %vm3675_vm0 = vcmp.eq.s32.totalorder %v3545_v10, 0  ;;  %v2503_v52 = vmax.f32 %v1881_v24, 0.0  ;;  %v3551_v51 = vld [vmem:[%s6926_s16 + $0x220] sm:$0xff]  ;;  %v3557_v24 = vld [vmem:[%s6926_s16 + $0x250] sm:$0xff] }
 0x187   : > { %v1399_v3 = vsel %vm1272_vm1, %v1270_v55, 0.0  ;;  %v1991_v0 = vadd.f32 %v7838_v35, %v1990_v56  ;;  %4038 = vperm.xlu1 %6664, %v3797_v46   ;;  %4041 = vperm.xlu0 %6663, %v3798_v48   ;;  %v2526_v13 = vmax.f32 %v1996_v61, 0.0  ;;  %v1400_v14 = vsel %vm1272_vm1, %v1271_v53, 0.0 }
 0x188   : > { %6441 = vmatprep.mubr.f32.mxu1 %v2523_v49  ;;  %v6225_v63 = vpop.f32.mrf.mxu0  ;;  %6368 = vmatmul.mubr.msk.f32.gmra.mxu0 %vm1409_vm2, %v1398_v59  ;;  %vm3676_vm1 = vcmp.eq.s32.totalorder %v3546_v12, 0  ;;  %v3803_v6 = vsel %vm3675_vm0, 1, %v10836_v32  ;;  %vm3680_vm15 = vcmp.eq.s32.totalorder %v3550_v38, 0  ;;  %v2504_v48 = vmax.f32 %v1886_v33, 0.0 }
 0x189   : > { %v2525_v4 = vmax.f32 %v1991_v0, 0.0  ;;  %6442 = vmatmul.mubr.f32.gmra.mxu1 %v2524_v54  ;;  %6370 = vmatprep.mubr.msk.f32.mxu0 %vm1409_vm2, %v1399_v3  ;;  %v2006_v15 = vadd.f32 %v6225_v63, %v7838_v35  ;;  %v3804_v30 = vsel %vm3676_vm1, 1, %v10836_v32  ;;  %v3808_v59 = vsel %vm3680_vm15, 1, %v10836_v32  ;;  %v3553_v63 = vld [vmem:[%s6926_s16 + $0x230] sm:$0xff] }
 0x18a   : > { %v2000_v11 = vpop.f32.mrf.mxu0  ;;  %vm3681_vm3 = vcmp.eq.s32.totalorder %v3551_v51, 0  ;;  %vm3683_vm5 = vcmp.eq.s32.totalorder %v3553_v63, 0  ;;  %vm3687_vm9 = vcmp.eq.s32.totalorder %v3557_v24, 0 }
 0x18b   : > { %v2001_v16 = vadd.f32 %v7838_v35, %v2000_v11  ;;  %4044 = vperm.xlu1 %6664, %v3799_v1   ;;  %4047 = vperm.xlu0 %6663, %v3800_v2   ;;  %v2528_v27 = vmax.f32 %v2006_v15, 0.0  ;;  %v3554_v1 = vld [vmem:[%s6926_s16 + $0x238] sm:$0xff]  ;;  %v3809_v9 = vsel %vm3681_vm3, 1, %v10836_v32  ;;  %v3810_v11 = vsel %vm3682_vm4, 1, %v10836_v32  ;;  %v3555_v15 = vld [vmem:[%s6926_s16 + $0x240] sm:$0xff] }
 0x18c   : > { %6444 = vmatprep.mubr.f32.mxu1 %v2525_v4  ;;  %v6228_v39 = vpop.f32.mrf.mxu0  ;;  %6371 = vmatmul.mubr.msk.f32.gmra.mxu0 %vm1409_vm2, %v1400_v14  ;;  %vm3677_vm2 = vcmp.eq.s32.totalorder %v3547_v23, 0  ;;  %vm3684_vm6 = vcmp.eq.s32.totalorder %v3554_v1, 0  ;;  %vm3685_vm7 = vcmp.eq.s32.totalorder %v3555_v15, 0 }
 0x18d   : > { %v2527_v17 = vmax.f32 %v2001_v16, 0.0  ;;  %6445 = vmatmul.mubr.f32.gmra.mxu1 %v2526_v13  ;;  %6405 = vmatprep.mubr.f32.mxu0 %v2499_v7  ;;  %v2016_v28 = vadd.f32 %v6228_v39, %v7838_v35  ;;  %v3805_v21 = vsel %vm3677_vm2, 1, %v10836_v32  ;;  %v3556_v16 = vld [vmem:[%s6926_s16 + $0x248] sm:$0xff]  ;;  %v3812_v19 = vsel %vm3684_vm6, 1, %v10836_v32 }
 0x18e   : > { %v2010_v22 = vpop.f32.mrf.mxu0  ;;  %vm3686_vm8 = vcmp.eq.s32.totalorder %v3556_v16, 0 }
 0x18f   : > { %v2011_v29 = vadd.f32 %v7838_v35, %v2010_v22  ;;  %4050 = vperm.xlu1 %6664, %v3801_v60   ;;  %4053 = vperm.xlu0 %6663, %v3802_v44   ;;  %v2530_v40 = vmax.f32 %v2016_v28, 0.0 }
 0x190   : > { %6447 = vmatprep.mubr.f32.mxu1 %v2527_v17  ;;  %v6231_v26 = vpop.f32.mrf.mxu0  ;;  %6406 = vmatmul.mubr.f32.vlgmr.msra.gmra.mxu0 %v2500_v18  ;;  %v3811_v18 = vsel %vm3683_vm5, 1, %v10836_v32 }
 0x191   : > { %v2529_v31 = vmax.f32 %v2011_v29, 0.0  ;;  %6448 = vmatmul.mubr.f32.gmra.mxu1 %v2528_v27  ;;  %6408 = vmatprep.mubr.f32.mxu0 %v2501_v20  ;;  %v2026_v41 = vadd.f32 %v6231_v26, %v7838_v35  ;;  %v3558_v27 = vld [vmem:[%s6926_s16 + $0x258] sm:$0xff] }
 0x192   : > { %v8044_v34 = vpop.permute.xlu1 %3873  ;;  %v8046_v36 = vpop.permute.xlu0 %3870  ;;  %vm3688_vm10 = vcmp.eq.s32.totalorder %v3558_v27, 0 }
 0x193   : > { %v2020_v42 = vpop.f32.mrf.mxu0  ;;  %4056 = vperm.xlu1 %6664, %v3803_v6   ;;  %4059 = vperm.xlu0 %6663, %v3804_v30   ;;  %v2532_v54 = vmax.f32 %v2026_v41, 0.0  ;;  %v3813_v30 = vsel %vm3685_vm7, 1, %v10836_v32 }
 0x194   : > { %v2021_v43 = vadd.f32 %v7838_v35, %v2020_v42  ;;  %6450 = vmatprep.mubr.f32.mxu1 %v2529_v31  ;;  %6409 = vmatmul.mubr.f32.gmra.mxu0 %v2502_v25  ;;  %v3814_v31 = vsel %vm3686_vm8, 1, %v10836_v32 }
 0x195   : > { %v6234_v46 = vpop.f32.mrf.mxu0  ;;  %6451 = vmatmul.mubr.f32.gmra.mxu1 %v2530_v40  ;;  %6411 = vmatprep.mubr.f32.mxu0 %v2503_v52  ;;  %v3559_v52 = vld [vmem:[%s6926_s16 + $0x260] sm:$0xff]  ;;  %v3560_v40 = vld [vmem:[%s6926_s16 + $0x268] sm:$0xff] }
 0x196   : > { %v2531_v49 = vmax.f32 %v2021_v43, 0.0  ;;  %v8056_v50 = vpop.permute.xlu1 %3876  ;;  %v8058_v62 = vpop.permute.xlu0 %3879  ;;  %v2036_v55 = vadd.f32 %v6234_v46, %v7838_v35  ;;  %v3816_v46 = vsel %vm3688_vm10, 1, %v10836_v32  ;;  %vm3689_vm11 = vcmp.eq.s32.totalorder %v3559_v52, 0 }
 0x197   : > { %v2030_v56 = vpop.f32.mrf.mxu0  ;;  %4062 = vperm.xlu1 %6664, %v3805_v21   ;;  %4065 = vperm.xlu0 %6663, %v3806_v45   ;;  %v3815_v45 = vsel %vm3687_vm9, 1, %v10836_v32  ;;  %vm3690_vm12 = vcmp.eq.s32.totalorder %v3560_v40, 0 }
 0x198   : > { %v2031_v57 = vadd.f32 %v7838_v35, %v2030_v56  ;;  %6453 = vmatprep.mubr.f32.mxu1 %v2531_v49  ;;  %6412 = vmatmul.mubr.f32.gmra.mxu0 %v2504_v48  ;;  %v2534_v2 = vmax.f32 %v2036_v55, 0.0  ;;  %v3562_v55 = vld [vmem:[%s6926_s16 + $0x278] sm:$0xff] }
 0x199   : > { %v6237_v61 = vpop.f32.mrf.mxu0  ;;  %6454 = vmatmul.mubr.f32.gmra.mxu1 %v2532_v54  ;;  %v3561_v54 = vld [vmem:[%s6926_s16 + $0x270] sm:$0xff]  ;;  %vm3692_vm1 = vcmp.eq.s32.totalorder %v3562_v55, 0  ;;  %v3570_v55 = vld [vmem:[%s6926_s16 + $0x2b8] sm:$0xff] }
 0x19a   : > { %v2533_v3 = vmax.f32 %v2031_v57, 0.0  ;;  %v8068_v0 = vpop.permute.xlu1 %3882  ;;  %v8070_v53 = vpop.permute.xlu0 %3885  ;;  %v2046_v4 = vadd.f32 %v6237_v61, %v7838_v35  ;;  %v3817_v61 = vsel %vm3689_vm11, 1, %v10836_v32  ;;  %vm3691_vm0 = vcmp.eq.s32.totalorder %v3561_v54, 0  ;;  %v3569_v54 = vld [vmem:[%s6926_s16 + $0x2b0] sm:$0xff] }
 0x19b   : > { %v2040_v5 = vpop.f32.mrf.mxu0  ;;  %4068 = vperm.xlu1 %6664, %v3807_v58   ;;  %4071 = vperm.xlu0 %6663, %v3808_v59   ;;  %v3819_v15 = vsel %vm3691_vm0, 1, %v10836_v32  ;;  %v3820_v16 = vsel %vm3692_vm1, 1, %v10836_v32  ;;  %vm3699_vm5 = vcmp.eq.s32.totalorder %v3569_v54, 0  ;;  %vm3700_vm6 = vcmp.eq.s32.totalorder %v3570_v55, 0 }
 0x19c   : > { %v2041_v7 = vadd.f32 %v7838_v35, %v2040_v5  ;;  %6456 = vmatprep.mubr.f32.mxu1 %v2533_v3  ;;  %v2536_v39 = vmax.f32 %v2046_v4, 0.0  ;;  %v3818_v3 = vsel %vm3690_vm12, 1, %v10836_v32  ;;  %v3563_v5 = vld [vmem:[%s6926_s16 + $0x280] sm:$0xff] }
 0x19d   : > { %v6240_v10 = vpop.f32.mrf.mxu0  ;;  %6457 = vmatmul.mubr.f32.gmra.mxu1 %v2534_v2  ;;  %vm3693_vm2 = vcmp.eq.s32.totalorder %v3563_v5, 0 }
 0x19e   : > { %v2535_v12 = vmax.f32 %v2041_v7, 0.0  ;;  %v8078_v13 = vpop.permute.xlu1 %3888  ;;  %v8080_v14 = vpop.permute.xlu0 %3891  ;;  %v2056_v60 = vadd.f32 %v6240_v10, %v7838_v35  ;;  %v3564_v7 = vld [vmem:[%s6926_s16 + $0x288] sm:$0xff] }
 0x19f   : > { %v2050_v44 = vpop.f32.mrf.mxu0  ;;  %4074 = vperm.xlu1 %6664, %v3809_v9   ;;  %4077 = vperm.xlu0 %6663, %v3810_v11   ;;  %vm3694_vm13 = vcmp.eq.s32.totalorder %v3564_v7, 0 }
 0x1a0   : > { %v2051_v17 = vadd.f32 %v7838_v35, %v2050_v44  ;;  %6459 = vmatprep.mubr.f32.mxu1 %v2535_v12  ;;  %v2538_v28 = vmax.f32 %v2056_v60, 0.0 }
 0x1a1   : > { %v6243_v20 = vpop.f32.mrf.mxu0  ;;  %6460 = vmatmul.mubr.f32.gmra.mxu1 %v2536_v39 }
 0x1a2   : > { %v2537_v22 = vmax.f32 %v2051_v17, 0.0  ;;  %v8088_v23 = vpop.permute.xlu1 %3894  ;;  %v8090_v8 = vpop.permute.xlu0 %3897  ;;  %v2066_v29 = vadd.f32 %v6243_v20, %v7838_v35 }
 0x1a3   : > { %v2060_v26 = vpop.f32.mrf.mxu0  ;;  %4080 = vperm.xlu1 %6664, %v3811_v18   ;;  %4083 = vperm.xlu0 %6663, %v3812_v19   ;;  %v3565_v18 = vld [vmem:[%s6926_s16 + $0x290] sm:$0xff]  ;;  %v3566_v19 = vld [vmem:[%s6926_s16 + $0x298] sm:$0xff] }
 0x1a4   : > { %v2061_v6 = vadd.f32 %v7838_v35, %v2060_v26  ;;  %6462 = vmatprep.mubr.f32.mxu1 %v2537_v22  ;;  %v2540_v41 = vmax.f32 %v2066_v29, 0.0  ;;  %v3822_v29 = vsel %vm3694_vm13, 1, %v10836_v32  ;;  %vm3695_vm14 = vcmp.eq.s32.totalorder %v3565_v18, 0 }
 0x1a5   : > { %v6246_v25 = vpop.f32.mrf.mxu0  ;;  %6463 = vmatmul.mubr.f32.gmra.mxu1 %v2538_v28  ;;  %v3821_v28 = vsel %vm3693_vm2, 1, %v10836_v32  ;;  %vm3696_vm15 = vcmp.eq.s32.totalorder %v3566_v19, 0 }
 0x1a6   : > { %v2539_v33 = vmax.f32 %v2061_v6, 0.0  ;;  %v8098_v37 = vpop.permute.xlu1 %3900  ;;  %v8100_v38 = vpop.permute.xlu0 %3903  ;;  %v2076_v42 = vadd.f32 %v6246_v25, %v7838_v35  ;;  %v3567_v25 = vld [vmem:[%s6926_s16 + $0x2a0] sm:$0xff] }
 0x1a7   : > { %v2070_v43 = vpop.f32.mrf.mxu0  ;;  %4086 = vperm.xlu1 %6664, %v3813_v30   ;;  %4089 = vperm.xlu0 %6663, %v3814_v31   ;;  %vm3697_vm3 = vcmp.eq.s32.totalorder %v3567_v25, 0 }
 0x1a8   : > { %v2071_v21 = vadd.f32 %v7838_v35, %v2070_v43  ;;  %6465 = vmatprep.mubr.f32.mxu1 %v2539_v33  ;;  %v2542_v56 = vmax.f32 %v2076_v42, 0.0  ;;  %v3568_v33 = vld [vmem:[%s6926_s16 + $0x2a8] sm:$0xff]  ;;  %v3823_v43 = vsel %vm3695_vm14, 1, %v10836_v32 }
 0x1a9   : > { %v6249_v48 = vpop.f32.mrf.mxu0  ;;  %6466 = vmatmul.mubr.f32.gmra.mxu1 %v2540_v41  ;;  %vm3698_vm4 = vcmp.eq.s32.totalorder %v3568_v33, 0 }
 0x1aa   : > { %v2541_v49 = vmax.f32 %v2071_v21, 0.0  ;;  %v8108_v51 = vpop.permute.xlu1 %3906  ;;  %v8110_v47 = vpop.permute.xlu0 %3909  ;;  %v2086_v57 = vadd.f32 %v6249_v48, %v7838_v35  ;;  %v3824_v21 = vsel %vm3696_vm15, 1, %v10836_v32 }
 0x1ab   : > { %v2080_v58 = vpop.f32.mrf.mxu0  ;;  %4092 = vperm.xlu1 %6664, %v3815_v45   ;;  %4095 = vperm.xlu0 %6663, %v3816_v46  }
 0x1ac   : > { %v2081_v59 = vadd.f32 %v7838_v35, %v2080_v58  ;;  %6468 = vmatprep.mubr.f32.mxu1 %v2541_v49  ;;  %v2544_v9 = vmax.f32 %v2086_v57, 0.0 }
 0x1ad   : > { %v6252_v63 = vpop.f32.mrf.mxu0  ;;  %6469 = vmatmul.mubr.f32.gmra.mxu1 %v2542_v56 }
 0x1ae   : > { %v2543_v1 = vmax.f32 %v2081_v59, 0.0  ;;  %v8118_v2 = vpop.permute.xlu1 %3912  ;;  %v8120_v4 = vpop.permute.xlu0 %3915  ;;  %v2096_v11 = vadd.f32 %v6252_v63, %v7838_v35 }
 0x1af   : > { %v2090_v10 = vpop.f32.mrf.mxu0  ;;  %4098 = vperm.xlu1 %6664, %v3817_v61   ;;  %4101 = vperm.xlu0 %6663, %v3818_v3   ;;  %v3825_v61 = vsel %vm3697_vm3, 1, %v10836_v32  ;;  %v3826_v3 = vsel %vm3698_vm4, 1, %v10836_v32 }
 0x1b0   : > { %v2091_v12 = vadd.f32 %v7838_v35, %v2090_v10  ;;  %6471 = vmatprep.mubr.f32.mxu1 %v2543_v1  ;;  %v2546_v20 = vmax.f32 %v2096_v11, 0.0  ;;  %v3572_v11 = vld [vmem:[%s6926_s16 + $0x2c8] sm:$0xff] }
 0x1b1   : > { %v6255_v39 = vpop.f32.mrf.mxu0  ;;  %6472 = vmatmul.mubr.f32.gmra.mxu1 %v2544_v9  ;;  %v3571_v9 = vld [vmem:[%s6926_s16 + $0x2c0] sm:$0xff]  ;;  %vm3702_vm8 = vcmp.eq.s32.totalorder %v3572_v11, 0 }
 0x1b2   : > { %v2545_v60 = vmax.f32 %v2091_v12, 0.0  ;;  %v8128_v44 = vpop.permute.xlu1 %3918  ;;  %v8130_v17 = vpop.permute.xlu0 %3921  ;;  %v2106_v22 = vadd.f32 %v6255_v39, %v7838_v35  ;;  %v3827_v39 = vsel %vm3699_vm5, 1, %v10836_v32  ;;  %vm3701_vm7 = vcmp.eq.s32.totalorder %v3571_v9, 0 }
 0x1b3   : > { %v2100_v24 = vpop.f32.mrf.mxu0  ;;  %4104 = vperm.xlu1 %6664, %v3819_v15   ;;  %4107 = vperm.xlu0 %6663, %v3820_v16   ;;  %v3829_v25 = vsel %vm3701_vm7, 1, %v10836_v32  ;;  %v3830_v33 = vsel %vm3702_vm8, 1, %v10836_v32 }
 0x1b4   : > { %v2101_v27 = vadd.f32 %v7838_v35, %v2100_v24  ;;  %6474 = vmatprep.mubr.f32.mxu1 %v2545_v60  ;;  %v2548_v52 = vmax.f32 %v2106_v22, 0.0  ;;  %v3828_v60 = vsel %vm3700_vm6, 1, %v10836_v32  ;;  %v3573_v24 = vld [vmem:[%s6926_s16 + $0x2d0] sm:$0xff] }
 0x1b5   : > { %v6258_v26 = vpop.f32.mrf.mxu0  ;;  %6475 = vmatmul.mubr.f32.gmra.mxu1 %v2546_v20  ;;  %vm3703_vm9 = vcmp.eq.s32.totalorder %v3573_v24, 0  ;;  %v3579_v24 = vld [vmem:[%s6926_s16 + $0x300] sm:$0xff] }
 0x1b6   : > { %v2547_v6 = vmax.f32 %v2101_v27, 0.0  ;;  %v8138_v30 = vpop.permute.xlu1 %3924  ;;  %v8140_v31 = vpop.permute.xlu0 %3927  ;;  %v2116_v40 = vadd.f32 %v6258_v26, %v7838_v35  ;;  %v3574_v27 = vld [vmem:[%s6926_s16 + $0x2d8] sm:$0xff]  ;;  %vm3709_vm2 = vcmp.eq.s32.totalorder %v3579_v24, 0 }
 0x1b7   : > { %v2110_v41 = vpop.f32.mrf.mxu0  ;;  %4110 = vperm.xlu1 %6664, %v3821_v28   ;;  %4113 = vperm.xlu0 %6663, %v3822_v29   ;;  %vm3704_vm10 = vcmp.eq.s32.totalorder %v3574_v27, 0  ;;  %v3580_v27 = vld [vmem:[%s6926_s16 + $0x308] sm:$0xff] }
 0x1b8   : > { %v2111_v42 = vadd.f32 %v7838_v35, %v2110_v41  ;;  %6477 = vmatprep.mubr.f32.mxu1 %v2547_v6  ;;  %v2550_v56 = vmax.f32 %v2116_v40, 0.0  ;;  %v8157_v35 = vld [vmem:[%s10816_s4] ss:$0 sm:$0xff]  ;;  %vm3710_vm13 = vcmp.eq.s32.totalorder %v3580_v27, 0 }
 0x1b9   : > { %v6261_v45 = vpop.f32.mrf.mxu0  ;;  %6478 = vmatmul.mubr.f32.gmra.mxu1 %v2548_v52 }
 0x1ba   : > { %v2549_v46 = vmax.f32 %v2111_v42, 0.0  ;;  %v8148_v48 = vpop.permute.xlu1 %3930  ;;  %v8150_v49 = vpop.permute.xlu0 %3933  ;;  %v2126_v57 = vadd.f32 %v8157_v35, %v6261_v45 }
 0x1bb   : > { %v2120_v58 = vpop.f32.mrf.mxu0  ;;  %4116 = vperm.xlu1 %6664, %v3823_v43   ;;  %4119 = vperm.xlu0 %6663, %v3824_v21   ;;  %v3575_v43 = vld [vmem:[%s6926_s16 + $0x2e0] sm:$0xff]  ;;  %v3576_v21 = vld [vmem:[%s6926_s16 + $0x2e8] sm:$0xff] }
 0x1bc   : > { %v2121_v59 = vadd.f32 %v8157_v35, %v2120_v58  ;;  %6480 = vmatprep.mubr.f32.mxu1 %v2549_v46  ;;  %v2552_v10 = vmax.f32 %v2126_v57, 0.0  ;;  %v3832_v57 = vsel %vm3704_vm10, 1, %v10836_v32  ;;  %vm3705_vm11 = vcmp.eq.s32.totalorder %v3575_v43, 0 }
 0x1bd   : > { %v6264_v63 = vpop.f32.mrf.mxu0  ;;  %6481 = vmatmul.mubr.f32.gmra.mxu1 %v2550_v56  ;;  %v3831_v56 = vsel %vm3703_vm9, 1, %v10836_v32  ;;  %vm3706_vm12 = vcmp.eq.s32.totalorder %v3576_v21, 0 }
 0x1be   : > { %v2551_v1 = vmax.f32 %v2121_v59, 0.0  ;;  %v8163_v5 = vpop.permute.xlu1 %3936  ;;  %v8165_v7 = vpop.permute.xlu0 %3939  ;;  %v2136_v12 = vadd.f32 %v8157_v35, %v6264_v63  ;;  %v3577_v63 = vld [vmem:[%s6926_s16 + $0x2f0] sm:$0xff] }
 0x1bf   : > { %v2130_v15 = vpop.f32.mrf.mxu0  ;;  %4122 = vperm.xlu1 %6664, %v3825_v61   ;;  %4125 = vperm.xlu0 %6663, %v3826_v3   ;;  %vm3707_vm0 = vcmp.eq.s32.totalorder %v3577_v63, 0 }
 0x1c0   : > { %v2131_v16 = vadd.f32 %v8157_v35, %v2130_v15  ;;  %6483 = vmatprep.mubr.f32.mxu1 %v2551_v1  ;;  %v2554_v28 = vmax.f32 %v2136_v12, 0.0  ;;  %v3578_v1 = vld [vmem:[%s6926_s16 + $0x2f8] sm:$0xff]  ;;  %v3833_v15 = vsel %vm3705_vm11, 1, %v10836_v32 }
 0x1c1   : > { %v6267_v18 = vpop.f32.mrf.mxu0  ;;  %6484 = vmatmul.mubr.f32.gmra.mxu1 %v2552_v10  ;;  %vm3708_vm1 = vcmp.eq.s32.totalorder %v3578_v1, 0 }
 0x1c2   : > { %v2553_v19 = vmax.f32 %v2131_v16, 0.0  ;;  %v8173_v20 = vpop.permute.xlu1 %3942  ;;  %v8175_v22 = vpop.permute.xlu0 %3945  ;;  %v2146_v29 = vadd.f32 %v8157_v35, %v6267_v18  ;;  %v3834_v16 = vsel %vm3706_vm12, 1, %v10836_v32 }
 0x1c3   : > { %v2140_v26 = vpop.f32.mrf.mxu0  ;;  %4128 = vperm.xlu1 %6664, %v3827_v39   ;;  %4131 = vperm.xlu0 %6663, %v3828_v60  }
 0x1c4   : > { %v2141_v6 = vadd.f32 %v8157_v35, %v2140_v26  ;;  %6486 = vmatprep.mubr.f32.mxu1 %v2553_v19  ;;  %v2556_v45 = vmax.f32 %v2146_v29, 0.0 }
 0x1c5   : > { %v6270_v52 = vpop.f32.mrf.mxu0  ;;  %6487 = vmatmul.mubr.f32.gmra.mxu1 %v2554_v28 }
 0x1c6   : > { %v2555_v40 = vmax.f32 %v2141_v6, 0.0  ;;  %v8183_v41 = vpop.permute.xlu1 %3948  ;;  %v8185_v42 = vpop.permute.xlu0 %3951  ;;  %v2156_v46 = vadd.f32 %v8157_v35, %v6270_v52 }
 0x1c7   : > { %v2150_v54 = vpop.f32.mrf.mxu0  ;;  %4134 = vperm.xlu1 %6664, %v3829_v25   ;;  %4137 = vperm.xlu0 %6663, %v3830_v33   ;;  %v3835_v25 = vsel %vm3707_vm0, 1, %v10836_v32  ;;  %v3836_v33 = vsel %vm3708_vm1, 1, %v10836_v32 }
 0x1c8   : > { %v2151_v55 = vadd.f32 %v8157_v35, %v2150_v54  ;;  %6489 = vmatprep.mubr.f32.mxu1 %v2555_v40  ;;  %v2558_v9 = vmax.f32 %v2156_v46, 0.0  ;;  %v3582_v46 = vld [vmem:[%s6926_s16 + $0x318] sm:$0xff] }
 0x1c9   : > { %v6273_v58 = vpop.f32.mrf.mxu0  ;;  %6490 = vmatmul.mubr.f32.gmra.mxu1 %v2556_v45  ;;  %v3581_v45 = vld [vmem:[%s6926_s16 + $0x310] sm:$0xff]  ;;  %vm3712_vm15 = vcmp.eq.s32.totalorder %v3582_v46, 0 }
 0x1ca   : > { %v2557_v59 = vmax.f32 %v2151_v55, 0.0  ;;  %v8193_v61 = vpop.permute.xlu1 %3954  ;;  %v8195_v3 = vpop.permute.xlu0 %3957  ;;  %v2166_v11 = vadd.f32 %v8157_v35, %v6273_v58  ;;  %v3837_v58 = vsel %vm3709_vm2, 1, %v10836_v32  ;;  %vm3711_vm14 = vcmp.eq.s32.totalorder %v3581_v45, 0 }
 0x1cb   : > { %v2160_v10 = vpop.f32.mrf.mxu0  ;;  %4140 = vperm.xlu1 %6664, %v3831_v56   ;;  %4143 = vperm.xlu0 %6663, %v3832_v57   ;;  %v3839_v24 = vsel %vm3711_vm14, 1, %v10836_v32  ;;  %v3840_v27 = vsel %vm3712_vm15, 1, %v10836_v32 }
 0x1cc   : > { %v2161_v12 = vadd.f32 %v8157_v35, %v2160_v10  ;;  %6492 = vmatprep.mubr.f32.mxu1 %v2557_v59  ;;  %v2560_v28 = vmax.f32 %v2166_v11, 0.0  ;;  %v3838_v59 = vsel %vm3710_vm13, 1, %v10836_v32  ;;  %v3583_v10 = vld [vmem:[%s6926_s16 + $0x320] sm:$0xff] }
 0x1cd   : > { %v6276_v39 = vpop.f32.mrf.mxu0  ;;  %6493 = vmatmul.mubr.f32.gmra.mxu1 %v2558_v9  ;;  %vm3713_vm3 = vcmp.eq.s32.totalorder %v3583_v10, 0 }
 0x1ce   : > { %v2559_v60 = vmax.f32 %v2161_v12, 0.0  ;;  %v8203_v18 = vpop.permute.xlu1 %3960  ;;  %v8205_v19 = vpop.permute.xlu0 %3963  ;;  %v2176_v29 = vadd.f32 %v8157_v35, %v6276_v39  ;;  %v3584_v12 = vld [vmem:[%s6926_s16 + $0x328] sm:$0xff] }
 0x1cf   : > { %v2170_v26 = vpop.f32.mrf.mxu0  ;;  %4146 = vperm.xlu1 %6664, %v3833_v15   ;;  %4149 = vperm.xlu0 %6663, %v3834_v16   ;;  %vm3714_vm4 = vcmp.eq.s32.totalorder %v3584_v12, 0 }
 0x1d0   : > { %v2171_v6 = vadd.f32 %v8157_v35, %v2170_v26  ;;  %6495 = vmatprep.mubr.f32.mxu1 %v2559_v60  ;;  %v2562_v54 = vmax.f32 %v2176_v29, 0.0 }
 0x1d1   : > { %v6279_v52 = vpop.f32.mrf.mxu0  ;;  %6496 = vmatmul.mubr.f32.gmra.mxu1 %v2560_v28 }
 0x1d2   : > { %v2561_v40 = vmax.f32 %v2171_v6, 0.0  ;;  %v8213_v43 = vpop.permute.xlu1 %3966  ;;  %v8215_v21 = vpop.permute.xlu0 %3969  ;;  %v2186_v55 = vadd.f32 %v8157_v35, %v6279_v52 }
 0x1d3   : > { %v2180_v56 = vpop.f32.mrf.mxu0  ;;  %4152 = vperm.xlu1 %6664, %v3835_v25   ;;  %4155 = vperm.xlu0 %6663, %v3836_v33   ;;  %v3585_v25 = vld [vmem:[%s6926_s16 + $0x330] sm:$0xff]  ;;  %v3586_v33 = vld [vmem:[%s6926_s16 + $0x338] sm:$0xff] }
 0x1d4   : > { %v2181_v57 = vadd.f32 %v8157_v35, %v2180_v56  ;;  %6498 = vmatprep.mubr.f32.mxu1 %v2561_v40  ;;  %v2564_v15 = vmax.f32 %v2186_v55, 0.0  ;;  %v3842_v55 = vsel %vm3714_vm4, 1, %v10836_v32  ;;  %vm3715_vm5 = vcmp.eq.s32.totalorder %v3585_v25, 0  ;;  %v3589_v25 = vld [vmem:[%s6926_s16 + $0x350] sm:$0xff] }
 0x1d5   : > { %v6282_v63 = vpop.f32.mrf.mxu0  ;;  %6499 = vmatmul.mubr.f32.gmra.mxu1 %v2562_v54  ;;  %v3841_v54 = vsel %vm3713_vm3, 1, %v10836_v32  ;;  %vm3716_vm6 = vcmp.eq.s32.totalorder %v3586_v33, 0  ;;  %v3590_v33 = vld [vmem:[%s6926_s16 + $0x358] sm:$0xff]  ;;  %vm3719_vm9 = vcmp.eq.s32.totalorder %v3589_v25, 0 }
 0x1d6   : > { %v2563_v1 = vmax.f32 %v2181_v57, 0.0  ;;  %v8223_v9 = vpop.permute.xlu1 %3972  ;;  %v8225_v11 = vpop.permute.xlu0 %3975  ;;  %v2196_v16 = vadd.f32 %v8157_v35, %v6282_v63  ;;  %v3587_v63 = vld [vmem:[%s6926_s16 + $0x340] sm:$0xff]  ;;  %vm3720_vm10 = vcmp.eq.s32.totalorder %v3590_v33, 0 }
 0x1d7   : > { %v2190_v39 = vpop.f32.mrf.mxu0  ;;  %4158 = vperm.xlu1 %6664, %v3837_v58   ;;  %4161 = vperm.xlu0 %6663, %v3838_v59   ;;  %vm3717_vm7 = vcmp.eq.s32.totalorder %v3587_v63, 0 }
 0x1d8   : > { %v2191_v60 = vadd.f32 %v8157_v35, %v2190_v39  ;;  %6501 = vmatprep.mubr.f32.mxu1 %v2563_v1  ;;  %v2566_v52 = vmax.f32 %v2196_v16, 0.0  ;;  %v3588_v1 = vld [vmem:[%s6926_s16 + $0x348] sm:$0xff]  ;;  %v3843_v39 = vsel %vm3715_vm5, 1, %v10836_v32 }
 0x1d9   : > { %v6285_v28 = vpop.f32.mrf.mxu0  ;;  %6502 = vmatmul.mubr.f32.gmra.mxu1 %v2564_v15  ;;  %vm3718_vm8 = vcmp.eq.s32.totalorder %v3588_v1, 0 }
 0x1da   : > { %v2565_v29 = vmax.f32 %v2191_v60, 0.0  ;;  %v8233_v26 = vpop.permute.xlu1 %3978  ;;  %v8235_v6 = vpop.permute.xlu0 %3981  ;;  %v2206_v40 = vadd.f32 %v8157_v35, %v6285_v28  ;;  %v3844_v60 = vsel %vm3716_vm6, 1, %v10836_v32 }
 0x1db   : > { %v2200_v45 = vpop.f32.mrf.mxu0  ;;  %4164 = vperm.xlu1 %6664, %v3839_v24   ;;  %4167 = vperm.xlu0 %6663, %v3840_v27  }
 0x1dc   : > { %v2201_v46 = vadd.f32 %v8157_v35, %v2200_v45  ;;  %6504 = vmatprep.mubr.f32.mxu1 %v2565_v29  ;;  %v2568_v10 = vmax.f32 %v2206_v40, 0.0 }
 0x1dd   : > { %v6288_v56 = vpop.f32.mrf.mxu0  ;;  %6505 = vmatmul.mubr.f32.gmra.mxu1 %v2566_v52 }
 0x1de   : > { %v2567_v57 = vmax.f32 %v2201_v46, 0.0  ;;  %v8243_v58 = vpop.permute.xlu1 %3984  ;;  %v8245_v59 = vpop.permute.xlu0 %3987  ;;  %v2216_v12 = vadd.f32 %v8157_v35, %v6288_v56 }
 0x1df   : > { %v2210_v15 = vpop.f32.mrf.mxu0  ;;  %4170 = vperm.xlu1 %6664, %v3841_v54   ;;  %4173 = vperm.xlu0 %6663, %v3842_v55   ;;  %v3845_v54 = vsel %vm3717_vm7, 1, %v10836_v32  ;;  %v3846_v55 = vsel %vm3718_vm8, 1, %v10836_v32 }
 0x1e0   : > { %v2211_v16 = vadd.f32 %v8157_v35, %v2210_v15  ;;  %6507 = vmatprep.mubr.f32.mxu1 %v2567_v57  ;;  %v2570_v52 = vmax.f32 %v2216_v12, 0.0  ;;  %v3592_v12 = vld [vmem:[%s6926_s16 + $0x368] sm:$0xff] }
 0x1e1   : > { %v6291_v24 = vpop.f32.mrf.mxu0  ;;  %6508 = vmatmul.mubr.f32.gmra.mxu1 %v2568_v10  ;;  %v3591_v10 = vld [vmem:[%s6926_s16 + $0x360] sm:$0xff]  ;;  %vm3722_vm12 = vcmp.eq.s32.totalorder %v3592_v12, 0 }
 0x1e2   : > { %v2569_v27 = vmax.f32 %v2211_v16, 0.0  ;;  %v8253_v28 = vpop.permute.xlu1 %3990  ;;  %v8255_v29 = vpop.permute.xlu0 %3993  ;;  %v2226_v40 = vadd.f32 %v8157_v35, %v6291_v24  ;;  %v3847_v24 = vsel %vm3719_vm9, 1, %v10836_v32  ;;  %vm3721_vm11 = vcmp.eq.s32.totalorder %v3591_v10, 0 }
 0x1e3   : > { %11033 = vst [vmem:[#allocation5_spill] sm:$0xff] %v8253_v28  ;;  %11034 = vst [vmem:[#allocation6_spill] sm:$0xff] %v8255_v29  ;;  %v2220_v45 = vpop.f32.mrf.mxu0  ;;  %4176 = vperm.xlu1 %6664, %v3843_v39   ;;  %4179 = vperm.xlu0 %6663, %v3844_v60   ;;  %v3849_v10 = vsel %vm3721_vm11, 1, %v10836_v32  ;;  %v3850_v12 = vsel %vm3722_vm12, 1, %v10836_v32 }
 0x1e4   : > { %v2221_v46 = vadd.f32 %v8157_v35, %v2220_v45  ;;  %6510 = vmatprep.mubr.f32.mxu1 %v2569_v27  ;;  %v2572_v15 = vmax.f32 %v2226_v40, 0.0  ;;  %v3848_v27 = vsel %vm3720_vm10, 1, %v10836_v32  ;;  %v3593_v45 = vld [vmem:[%s6926_s16 + $0x370] sm:$0xff] }
 0x1e5   : > { %v6294_v56 = vpop.f32.mrf.mxu0  ;;  %6511 = vmatmul.mubr.f32.gmra.mxu1 %v2570_v52  ;;  %vm3723_vm0 = vcmp.eq.s32.totalorder %v3593_v45, 0 }
 0x1e6   : > { %v2571_v57 = vmax.f32 %v2221_v46, 0.0  ;;  %v8263_v63 = vpop.permute.xlu1 %3996  ;;  %v8265_v1 = vpop.permute.xlu0 %3999  ;;  %v2236_v16 = vadd.f32 %v8157_v35, %v6294_v56  ;;  %v3594_v46 = vld [vmem:[%s6926_s16 + $0x378] sm:$0xff]  ;;  %v3851_v45 = vsel %vm3723_vm0, 1, %v10836_v32 }
 0x1e7   : > { %11035 = vst [vmem:[#allocation7_spill] sm:$0xff] %v8263_v63  ;;  %11036 = vst [vmem:[#allocation8_spill] sm:$0xff] %v8265_v1  ;;  %v2230_v39 = vpop.f32.mrf.mxu0  ;;  %4182 = vperm.xlu1 %6664, %v3845_v54   ;;  %4185 = vperm.xlu0 %6663, %v3846_v55   ;;  %vm3724_vm1 = vcmp.eq.s32.totalorder %v3594_v46, 0 }
 0x1e8   : > { %v2231_v60 = vadd.f32 %v8157_v35, %v2230_v39  ;;  %6513 = vmatprep.mubr.f32.mxu1 %v2571_v57  ;;  %v2574_v54 = vmax.f32 %v2236_v16, 0.0  ;;  %v3852_v46 = vsel %vm3724_vm1, 1, %v10836_v32 }
 0x1e9   : > { %v6297_v25 = vpop.f32.mrf.mxu0  ;;  %6514 = vmatmul.mubr.f32.gmra.mxu1 %v2572_v15 }
 0x1ea   : > { %v2573_v33 = vmax.f32 %v2231_v60, 0.0  ;;  %v8273_v52 = vpop.permute.xlu1 %4002  ;;  %v8275_v40 = vpop.permute.xlu0 %4005  ;;  %v2246_v55 = vadd.f32 %v8157_v35, %v6297_v25  ;;  %v3595_v25 = vld [vmem:[%s6926_s16 + $0x380] sm:$0xff] }
 0x1eb   : > { %11037 = vst [vmem:[#allocation9_spill] sm:$0xff] %v8273_v52  ;;  %11038 = vst [vmem:[#allocation10_spill] sm:$0xff] %v8275_v40  ;;  %v2240_v56 = vpop.f32.mrf.mxu0  ;;  %4188 = vperm.xlu1 %6664, %v3847_v24   ;;  %4191 = vperm.xlu0 %6663, %v3848_v27   ;;  %v3596_v52 = vld [vmem:[%s6926_s16 + $0x388] sm:$0xff]  ;;  %vm3725_vm2 = vcmp.eq.s32.totalorder %v3595_v25, 0 }
 0x1ec   : > { %v2241_v57 = vadd.f32 %v8157_v35, %v2240_v56  ;;  %6516 = vmatprep.mubr.f32.mxu1 %v2573_v33  ;;  %v2576_v24 = vmax.f32 %v2246_v55, 0.0  ;;  %vm3726_vm13 = vcmp.eq.s32.totalorder %v3596_v52, 0  ;;  %v3853_v52 = vsel %vm3725_vm2, 1, %v10836_v32 }
 0x1ed   : > { %v6300_v15 = vpop.f32.mrf.mxu0  ;;  %6517 = vmatmul.mubr.f32.gmra.mxu1 %v2574_v54  ;;  %v3854_v25 = vsel %vm3726_vm13, 1, %v10836_v32 }
 0x1ee   : > { %v2575_v39 = vmax.f32 %v2241_v57, 0.0  ;;  %v8283_v16 = vpop.permute.xlu1 %4008  ;;  %v8285_v60 = vpop.permute.xlu0 %4011  ;;  %v2256_v27 = vadd.f32 %v8157_v35, %v6300_v15  ;;  %v3597_v15 = vld [vmem:[%s6926_s16 + $0x390] sm:$0xff] }
 0x1ef   : > { %11039 = vst [vmem:[#allocation11_spill] sm:$0xff] %v8283_v16  ;;  %11040 = vst [vmem:[#allocation12_spill] sm:$0xff] %v8285_v60  ;;  %v2250_v33 = vpop.f32.mrf.mxu0  ;;  %4194 = vperm.xlu1 %6664, %v3849_v10   ;;  %4197 = vperm.xlu0 %6663, %v3850_v12   ;;  %v3598_v60 = vld [vmem:[%s6926_s16 + $0x398] sm:$0xff]  ;;  %vm3727_vm14 = vcmp.eq.s32.totalorder %v3597_v15, 0 }
 0x1f0   : > { %v2251_v56 = vadd.f32 %v8157_v35, %v2250_v33  ;;  %6519 = vmatprep.mubr.f32.mxu1 %v2575_v39  ;;  %v2578_v10 = vmax.f32 %v2256_v27, 0.0  ;;  %vm3728_vm15 = vcmp.eq.s32.totalorder %v3598_v60, 0  ;;  %v3855_v60 = vsel %vm3727_vm14, 1, %v10836_v32 }
 0x1f1   : > { %v6303_v54 = vpop.f32.mrf.mxu0  ;;  %6520 = vmatmul.mubr.f32.gmra.mxu1 %v2576_v24  ;;  %v3856_v15 = vsel %vm3728_vm15, 1, %v10836_v32 }
 0x1f2   : > { %v2577_v57 = vmax.f32 %v2251_v56, 0.0  ;;  %v8293_v55 = vpop.permute.xlu1 %4014  ;;  %v8295_v16 = vpop.permute.xlu0 %4017  ;;  %v2266_v12 = vadd.f32 %v8157_v35, %v6303_v54  ;;  %v3599_v54 = vld [vmem:[%s6926_s16 + $0x3a0] sm:$0xff] }
 0x1f3   : > { %11041 = vst [vmem:[#allocation13_spill] sm:$0xff] %v8293_v55  ;;  %11042 = vst [vmem:[#allocation14_spill] sm:$0xff] %v8295_v16  ;;  %v2260_v39 = vpop.f32.mrf.mxu0  ;;  %4200 = vperm.xlu1 %6664, %v3851_v45   ;;  %4203 = vperm.xlu0 %6663, %v3852_v46   ;;  %v3600_v16 = vld [vmem:[%s6926_s16 + $0x3a8] sm:$0xff]  ;;  %vm3729_vm3 = vcmp.eq.s32.totalorder %v3599_v54, 0 }
 0x1f4   : > { %v2261_v33 = vadd.f32 %v8157_v35, %v2260_v39  ;;  %6522 = vmatprep.mubr.f32.mxu1 %v2577_v57  ;;  %v2580_v45 = vmax.f32 %v2266_v12, 0.0  ;;  %vm3730_vm4 = vcmp.eq.s32.totalorder %v3600_v16, 0  ;;  %v3857_v16 = vsel %vm3729_vm3, 1, %v10836_v32 }
 0x1f5   : > { %v6306_v24 = vpop.f32.mrf.mxu0  ;;  %6523 = vmatmul.mubr.f32.gmra.mxu1 %v2578_v10  ;;  %v3858_v54 = vsel %vm3730_vm4, 1, %v10836_v32 }
 0x1f6   : > { %v2579_v56 = vmax.f32 %v2261_v33, 0.0  ;;  %v8303_v27 = vpop.permute.xlu1 %4020  ;;  %v8305_v55 = vpop.permute.xlu0 %4023  ;;  %v2276_v46 = vadd.f32 %v8157_v35, %v6306_v24  ;;  %v3601_v24 = vld [vmem:[%s6926_s16 + $0x3b0] sm:$0xff] }
 0x1f7   : > { %11043 = vst [vmem:[#allocation15_spill] sm:$0xff] %v8303_v27  ;;  %11044 = vst [vmem:[#allocation16_spill] sm:$0xff] %v8305_v55  ;;  %v2270_v57 = vpop.f32.mrf.mxu0  ;;  %4206 = vperm.xlu1 %6664, %v3853_v52   ;;  %4209 = vperm.xlu0 %6663, %v3854_v25   ;;  %v3602_v55 = vld [vmem:[%s6926_s16 + $0x3b8] sm:$0xff]  ;;  %vm3731_vm5 = vcmp.eq.s32.totalorder %v3601_v24, 0 }
 0x1f8   : > { %v2271_v39 = vadd.f32 %v8157_v35, %v2270_v57  ;;  %6525 = vmatprep.mubr.f32.mxu1 %v2579_v56  ;;  %v2582_v52 = vmax.f32 %v2276_v46, 0.0  ;;  %vm3732_vm6 = vcmp.eq.s32.totalorder %v3602_v55, 0  ;;  %v3859_v55 = vsel %vm3731_vm5, 1, %v10836_v32 }
 0x1f9   : > { %v6309_v10 = vpop.f32.mrf.mxu0  ;;  %6526 = vmatmul.mubr.f32.gmra.mxu1 %v2580_v45  ;;  %v3860_v24 = vsel %vm3732_vm6, 1, %v10836_v32 }
 0x1fa   : > { %v2581_v33 = vmax.f32 %v2271_v39, 0.0  ;;  %v8313_v12 = vpop.permute.xlu1 %4026  ;;  %v8315_v27 = vpop.permute.xlu0 %4029  ;;  %v2286_v25 = vadd.f32 %v8157_v35, %v6309_v10  ;;  %v3603_v10 = vld [vmem:[%s6926_s16 + $0x3c0] sm:$0xff] }
 0x1fb   : > { %11045 = vst [vmem:[#allocation17_spill] sm:$0xff] %v8313_v12  ;;  %11046 = vst [vmem:[#allocation18_spill] sm:$0xff] %v8315_v27  ;;  %v2280_v56 = vpop.f32.mrf.mxu0  ;;  %4212 = vperm.xlu1 %6664, %v3855_v60   ;;  %4215 = vperm.xlu0 %6663, %v3856_v15   ;;  %v3604_v27 = vld [vmem:[%s6926_s16 + $0x3c8] sm:$0xff]  ;;  %vm3733_vm7 = vcmp.eq.s32.totalorder %v3603_v10, 0 }
 0x1fc   : > { %v2281_v57 = vadd.f32 %v8157_v35, %v2280_v56  ;;  %6528 = vmatprep.mubr.f32.mxu1 %v2581_v33  ;;  %v2584_v60 = vmax.f32 %v2286_v25, 0.0  ;;  %vm3734_vm8 = vcmp.eq.s32.totalorder %v3604_v27, 0  ;;  %v3861_v27 = vsel %vm3733_vm7, 1, %v10836_v32 }
 0x1fd   : > { %v6312_v45 = vpop.f32.mrf.mxu0  ;;  %6529 = vmatmul.mubr.f32.gmra.mxu1 %v2582_v52  ;;  %v3862_v10 = vsel %vm3734_vm8, 1, %v10836_v32 }
 0x1fe   : > { %v2583_v39 = vmax.f32 %v2281_v57, 0.0  ;;  %v8323_v46 = vpop.permute.xlu1 %4032  ;;  %v8325_v12 = vpop.permute.xlu0 %4035  ;;  %v2296_v15 = vadd.f32 %v8157_v35, %v6312_v45  ;;  %v3605_v45 = vld [vmem:[%s6926_s16 + $0x3d0] sm:$0xff] }
 0x1ff   : > { %11047 = vst [vmem:[#allocation19_spill] sm:$0xff] %v8323_v46  ;;  %11048 = vst [vmem:[#allocation20_spill] sm:$0xff] %v8325_v12  ;;  %v2290_v33 = vpop.f32.mrf.mxu0  ;;  %4218 = vperm.xlu1 %6664, %v3857_v16   ;;  %4221 = vperm.xlu0 %6663, %v3858_v54   ;;  %v3606_v12 = vld [vmem:[%s6926_s16 + $0x3d8] sm:$0xff]  ;;  %vm3735_vm9 = vcmp.eq.s32.totalorder %v3605_v45, 0 }
 0x200   : > { %v2291_v56 = vadd.f32 %v8157_v35, %v2290_v33  ;;  %6531 = vmatprep.mubr.f32.mxu1 %v2583_v39  ;;  %v2586_v16 = vmax.f32 %v2296_v15, 0.0  ;;  %vm3736_vm10 = vcmp.eq.s32.totalorder %v3606_v12, 0  ;;  %v3863_v12 = vsel %vm3735_vm9, 1, %v10836_v32 }
 0x201   : > { %v6315_v52 = vpop.f32.mrf.mxu0  ;;  %6532 = vmatmul.mubr.f32.gmra.mxu1 %v2584_v60  ;;  %v3864_v45 = vsel %vm3736_vm10, 1, %v10836_v32  ;;  %vm4259_vm10 = vcmp.eq.s32.totalorder %v8078_v13, 1 }
 0x202   : > { %v2585_v57 = vmax.f32 %v2291_v56, 0.0  ;;  %v8333_v25 = vpop.permute.xlu1 %4038  ;;  %v8335_v46 = vpop.permute.xlu0 %4041  ;;  %v2306_v54 = vadd.f32 %v8157_v35, %v6315_v52  ;;  %v3607_v52 = vld [vmem:[%s6926_s16 + $0x3e0] sm:$0xff] }
 0x203   : > { %11049 = vst [vmem:[#allocation21_spill] sm:$0xff] %v8333_v25  ;;  %11050 = vst [vmem:[#allocation22_spill] sm:$0xff] %v8335_v46  ;;  %v2300_v39 = vpop.f32.mrf.mxu0  ;;  %4224 = vperm.xlu1 %6664, %v3859_v55   ;;  %4227 = vperm.xlu0 %6663, %v3860_v24   ;;  %v3608_v25 = vld [vmem:[%s6926_s16 + $0x3e8] sm:$0xff]  ;;  %vm3737_vm11 = vcmp.eq.s32.totalorder %v3607_v52, 0 }
 0x204   : > { %v2301_v33 = vadd.f32 %v8157_v35, %v2300_v39  ;;  %6534 = vmatprep.mubr.f32.mxu1 %v2585_v57  ;;  %v2588_v55 = vmax.f32 %v2306_v54, 0.0  ;;  %vm3738_vm12 = vcmp.eq.s32.totalorder %v3608_v25, 0 }
 0x205   : > { %v6318_v60 = vpop.f32.mrf.mxu0  ;;  %6535 = vmatmul.mubr.f32.gmra.mxu1 %v2586_v16  ;;  %v3866_v25 = vsel %vm3738_vm12, 1, %v10836_v32  ;;  %vm4260_vm12 = vcmp.eq.s32.totalorder %v8080_v14, 1 }
 0x206   : > { %v2587_v56 = vmax.f32 %v2301_v33, 0.0  ;;  %v8343_v15 = vpop.permute.xlu1 %4044  ;;  %v8345_v46 = vpop.permute.xlu0 %4047  ;;  %v2316_v24 = vadd.f32 %v8157_v35, %v6318_v60  ;;  %v3609_v60 = vld [vmem:[%s6926_s16 + $0x3f0] sm:$0xff] }
 0x207   : > { %11051 = vst [vmem:[#allocation23_spill] sm:$0xff] %v8343_v15  ;;  %11052 = vst [vmem:[#allocation24_spill] sm:$0xff] %v8345_v46  ;;  %v2310_v57 = vpop.f32.mrf.mxu0  ;;  %4230 = vperm.xlu1 %6664, %v3861_v27   ;;  %4233 = vperm.xlu0 %6663, %v3862_v10   ;;  %v3610_v46 = vld [vmem:[%s6926_s16 + $0x3f8] sm:$0xff]  ;;  %vm3739_vm0 = vcmp.eq.s32.totalorder %v3609_v60, 0 }
 0x208   : > { %v2311_v39 = vadd.f32 %v8157_v35, %v2310_v57  ;;  %6537 = vmatprep.mubr.f32.mxu1 %v2587_v56  ;;  %v2590_v27 = vmax.f32 %v2316_v24, 0.0  ;;  %vm3740_vm1 = vcmp.eq.s32.totalorder %v3610_v46, 0 }
 0x209   : > { %v6321_v16 = vpop.f32.mrf.mxu0  ;;  %6538 = vmatmul.mubr.f32.gmra.mxu1 %v2588_v55  ;;  %v3865_v55 = vsel %vm3737_vm11, 1, %v10836_v32  ;;  %v3868_v60 = vsel %vm3740_vm1, 1, %v10836_v32 }
 0x20a   : > { %v2589_v33 = vmax.f32 %v2311_v39, 0.0  ;;  %v8353_v54 = vpop.permute.xlu1 %4050  ;;  %v8355_v15 = vpop.permute.xlu0 %4053  ;;  %v2326_v10 = vadd.f32 %v8157_v35, %v6321_v16 }
 0x20b   : > { %11053 = vst [vmem:[#allocation25_spill] sm:$0xff] %v8353_v54  ;;  %11054 = vst [vmem:[#allocation26_spill] sm:$0xff] %v8355_v15  ;;  %v2320_v57 = vpop.f32.mrf.mxu0  ;;  %4236 = vperm.xlu1 %6664, %v3863_v12   ;;  %4239 = vperm.xlu0 %6663, %v3864_v45  }
 0x20c   : > { %v2321_v56 = vadd.f32 %v8157_v35, %v2320_v57  ;;  %6540 = vmatprep.mubr.f32.mxu1 %v2589_v33  ;;  %v2592_v12 = vmax.f32 %v2326_v10, 0.0 }
 0x20d   : > { %v6324_v52 = vpop.f32.mrf.mxu0  ;;  %6541 = vmatmul.mubr.f32.gmra.mxu1 %v2590_v27  ;;  %v3867_v27 = vsel %vm3739_vm0, 1, %v10836_v32 }
 0x20e   : > { %v2591_v39 = vmax.f32 %v2321_v56, 0.0  ;;  %v8363_v24 = vpop.permute.xlu1 %4056  ;;  %v8365_v16 = vpop.permute.xlu0 %4059  ;;  %v2336_v45 = vadd.f32 %v8157_v35, %v6324_v52  ;;  %v6666_v56 = vld [vmem:[%s6926_s16] sm:$0xff] }
 0x20f   : > { %11055 = vst [vmem:[#allocation27_spill] sm:$0xff] %v8363_v24  ;;  %11056 = vst [vmem:[#allocation28_spill] sm:$0xff] %v8365_v16  ;;  %v2330_v57 = vpop.f32.mrf.mxu0  ;;  %4242 = vperm.xlu1 %6664, %v3865_v55   ;;  %4245 = vperm.xlu0 %6663, %v3866_v25   ;;  %vm4644_vm2 = vcmp.eq.s32.totalorder %v6666_v56, 1  ;;  %v6667_v24 = vld [vmem:[%s6926_s16 + $0x8] sm:$0xff] }
 0x210   : > { %v2331_v33 = vadd.f32 %v8157_v35, %v2330_v57  ;;  %6543 = vmatprep.mubr.f32.mxu1 %v2591_v39  ;;  %vm4645_vm13 = vcmp.eq.s32.totalorder %v6667_v24, 1  ;;  %v2594_v25 = vmax.f32 %v2336_v45, 0.0 }
 0x211   : > { %v6327_v46 = vpop.f32.mrf.mxu0  ;;  %6544 = vmatmul.mubr.f32.gmra.mxu1 %v2592_v12  ;;  %v11059_v12 = vmov 0  }
 0x212   : > { %v2593_v10 = vmax.f32 %v2331_v33, 0.0  ;;  %v8373_v52 = vpop.permute.xlu1 %4062  ;;  %v8375_v55 = vpop.permute.xlu0 %4065  ;;  %v2346_v39 = vadd.f32 %v8157_v35, %v6327_v46  ;;  %v4772_v56 = vsel %vm4644_vm2, 1, %v11059_v12  ;;  %v4773_v16 = vsel %vm4645_vm13, 1, %v11059_v12  ;;  %v6668_v33 = vld [vmem:[%s6926_s16 + $0x10] sm:$0xff] }
 0x213   : > { %11057 = vst [vmem:[#allocation29_spill] sm:$0xff] %v8373_v52  ;;  %11058 = vst [vmem:[#allocation30_spill] sm:$0xff] %v8375_v55  ;;  %v2340_v57 = vpop.f32.mrf.mxu0  ;;  %4248 = vperm.xlu1 %6664, %v3867_v27   ;;  %4251 = vperm.xlu0 %6663, %v3868_v60   ;;  %vm4646_vm14 = vcmp.eq.s32.totalorder %v6668_v33, 1  ;;  %v6669_v52 = vld [vmem:[%s6926_s16 + $0x18] sm:$0xff]  ;;  %vm4261_vm2 = vcmp.eq.s32.totalorder %v8088_v23, 1  ;;  %vm4262_vm13 = vcmp.eq.s32.totalorder %v8090_v8, 1 }
 0x214   : > { %v2341_v32 = vadd.f32 %v8157_v35, %v2340_v57  ;;  %6546 = vmatprep.mubr.f32.mxu1 %v2593_v10  ;;  %vm4647_vm15 = vcmp.eq.s32.totalorder %v6669_v52, 1  ;;  %v2596_v60 = vmax.f32 %v2346_v39, 0.0 }
 0x215   : > { %v6330_v24 = vpop.f32.mrf.mxu0  ;;  %6547 = vmatmul.mubr.f32.gmra.mxu1 %v2594_v25  ;;  %v4774_v25 = vsel %vm4646_vm14, 1, %v11059_v12  ;;  %v4775_v33 = vsel %vm4647_vm15, 1, %v11059_v12  ;;  %vm4264_vm14 = vcmp.eq.s32.totalorder %v8100_v38, 1 }
 0x216   : > { %v2595_v45 = vmax.f32 %v2341_v32, 0.0  ;;  %v8383_v46 = vpop.permute.xlu1 %4068  ;;  %v8385_v27 = vpop.permute.xlu0 %4071  ;;  %v2356_v10 = vadd.f32 %v8157_v35, %v6330_v24  ;;  %v6670_v32 = vld [vmem:[%s6926_s16 + $0x20] sm:$0xff] }
 0x217   : > { %11060 = vst [vmem:[#allocation31_spill] sm:$0xff] %v8383_v46  ;;  %11061 = vst [vmem:[#allocation32_spill] sm:$0xff] %v8385_v27  ;;  %v2350_v57 = vpop.f32.mrf.mxu0  ;;  %4901 = vperm.xlu1 %6664, %v4772_v56   ;;  %4904 = vperm.xlu0 %6663, %v4773_v16   ;;  %vm4648_vm3 = vcmp.eq.s32.totalorder %v6670_v32, 1  ;;  %v6671_v46 = vld [vmem:[%s6926_s16 + $0x28] sm:$0xff] }
 0x218   : > { %v2351_v55 = vadd.f32 %v8157_v35, %v2350_v57  ;;  %6549 = vmatprep.mubr.f32.mxu1 %v2595_v45  ;;  %vm4649_vm4 = vcmp.eq.s32.totalorder %v6671_v46, 1  ;;  %v2598_v16 = vmax.f32 %v2356_v10, 0.0 }
 0x219   : > { %v6333_v52 = vpop.f32.mrf.mxu0  ;;  %6550 = vmatmul.mubr.f32.gmra.mxu1 %v2596_v60  ;;  %v4776_v60 = vsel %vm4648_vm3, 1, %v11059_v12  ;;  %v4777_v32 = vsel %vm4649_vm4, 1, %v11059_v12  ;;  %vm4263_vm4 = vcmp.eq.s32.totalorder %v8098_v37, 1 }
 0x21a   : > { %v2597_v39 = vmax.f32 %v2351_v55, 0.0  ;;  %v8393_v24 = vpop.permute.xlu1 %4074  ;;  %v8395_v56 = vpop.permute.xlu0 %4077  ;;  %v2366_v45 = vadd.f32 %v8157_v35, %v6333_v52  ;;  %v6672_v55 = vld [vmem:[%s6926_s16 + $0x30] sm:$0xff] }
 0x21b   : > { %11062 = vst [vmem:[#allocation33_spill] sm:$0xff] %v8393_v24  ;;  %11063 = vst [vmem:[#allocation34_spill] sm:$0xff] %v8395_v56  ;;  %v2360_v57 = vpop.f32.mrf.mxu0  ;;  %4907 = vperm.xlu1 %6664, %v4774_v25   ;;  %4910 = vperm.xlu0 %6663, %v4775_v33   ;;  %vm4650_vm5 = vcmp.eq.s32.totalorder %v6672_v55, 1  ;;  %v6673_v24 = vld [vmem:[%s6926_s16 + $0x38] sm:$0xff] }
 0x21c   : > { %v2361_v27 = vadd.f32 %v8157_v35, %v2360_v57  ;;  %6552 = vmatprep.mubr.f32.mxu1 %v2597_v39  ;;  %vm4651_vm6 = vcmp.eq.s32.totalorder %v6673_v24, 1  ;;  %v2600_v33 = vmax.f32 %v2366_v45, 0.0 }
 0x21d   : > { %v6336_v46 = vpop.f32.mrf.mxu0  ;;  %6553 = vmatmul.mubr.f32.gmra.mxu1 %v2598_v16  ;;  %v4778_v16 = vsel %vm4650_vm5, 1, %v11059_v12  ;;  %v4779_v55 = vsel %vm4651_vm6, 1, %v11059_v12  ;;  %vm4266_vm5 = vcmp.eq.s32.totalorder %v8110_v47, 1  ;;  %v6688_v47 = vld [vmem:[%s6926_s16 + $0xa8] sm:$0xff] }
 0x21e   : > { %v2599_v10 = vmax.f32 %v2361_v27, 0.0  ;;  %v8403_v52 = vpop.permute.xlu1 %4080  ;;  %v8405_v25 = vpop.permute.xlu0 %4083  ;;  %v2376_v39 = vadd.f32 %v8157_v35, %v6336_v46  ;;  %v6674_v27 = vld [vmem:[%s6926_s16 + $0x40] sm:$0xff] }
 0x21f   : > { %11064 = vst [vmem:[#allocation35_spill] sm:$0xff] %v8403_v52  ;;  %11065 = vst [vmem:[#allocation36_spill] sm:$0xff] %v8405_v25  ;;  %v2370_v57 = vpop.f32.mrf.mxu0  ;;  %4913 = vperm.xlu1 %6664, %v4776_v60   ;;  %4916 = vperm.xlu0 %6663, %v4777_v32   ;;  %vm4652_vm7 = vcmp.eq.s32.totalorder %v6674_v27, 1  ;;  %v6675_v52 = vld [vmem:[%s6926_s16 + $0x48] sm:$0xff] }
 0x220   : > { %v2371_v56 = vadd.f32 %v8157_v35, %v2370_v57  ;;  %6555 = vmatprep.mubr.f32.mxu1 %v2599_v10  ;;  %vm4653_vm8 = vcmp.eq.s32.totalorder %v6675_v52, 1  ;;  %v2602_v60 = vmax.f32 %v2376_v39, 0.0  ;;  %v6676_v39 = vld [vmem:[%s6926_s16 + $0x50] sm:$0xff] }
 0x221   : > { %v6339_v24 = vpop.f32.mrf.mxu0  ;;  %6556 = vmatmul.mubr.f32.gmra.mxu1 %v2600_v33  ;;  %v8421_v33 = vld [vmem:[%s10818_s6] ss:$0 sm:$0xff]  ;;  %v4781_v52 = vsel %vm4653_vm8, 1, %v11059_v12  ;;  %vm4654_vm9 = vcmp.eq.s32.totalorder %v6676_v39, 1 }
 0x222   : > { %v2601_v45 = vmax.f32 %v2371_v56, 0.0  ;;  %v8413_v25 = vpop.permute.xlu1 %4086  ;;  %v8415_v46 = vpop.permute.xlu0 %4089  ;;  %v2386_v32 = vadd.f32 %v8157_v35, %v6339_v24  ;;  %v4780_v56 = vsel %vm4652_vm7, 1, %v11059_v12  ;;  %v4782_v63 = vsel %vm4654_vm9, 1, %v11059_v12 }
 0x223   : > { %11066 = vst [vmem:[#allocation37_spill] sm:$0xff] %v8413_v25  ;;  %11067 = vst [vmem:[#allocation38_spill] sm:$0xff] %v8415_v46  ;;  %v2380_v10 = vpop.f32.mrf.mxu0  ;;  %4919 = vperm.xlu1 %6664, %v4778_v16   ;;  %4922 = vperm.xlu0 %6663, %v4779_v55   ;;  %v6677_v55 = vld [vmem:[%s6926_s16 + $0x58] sm:$0xff]  ;;  %v6678_v46 = vld [vmem:[%s6926_s16 + $0x60] sm:$0xff]  ;;  %vm4265_vm7 = vcmp.eq.s32.totalorder %v8108_v51, 1 }
 0x224   : > { %v2381_v57 = vadd.f32 %v8157_v35, %v2380_v10  ;;  %6558 = vmatprep.mubr.f32.mxu1 %v2601_v45  ;;  %vm4655_vm11 = vcmp.eq.s32.totalorder %v6677_v55, 1  ;;  %vm4656_vm0 = vcmp.eq.s32.totalorder %v6678_v46, 1  ;;  %v2604_v54 = vmax.f32 %v2386_v32, 0.0  ;;  %v6690_v51 = vld [vmem:[%s6926_s16 + $0xb8] sm:$0xff] }
 0x225   : > { %v6342_v24 = vpop.f32.mrf.mxu0  ;;  %v6416_v16 = vpop.f32.mrf.mxu1  ;;  %6559 = vmatmul.mubr.f32.gmra.mxu1 %v2602_v60  ;;  %v4783_v32 = vsel %vm4655_vm11, 1, %v11059_v12 }
 0x226   : > { %v2603_v27 = vmax.f32 %v2381_v57, 0.0  ;;  %v8431_v45 = vadd.f32 %v6416_v16, %v8421_v33  ;;  %v8433_v10 = vpop.permute.xlu1 %4092  ;;  %v8435_v25 = vpop.permute.xlu0 %4095  ;;  %v2396_v15 = vadd.f32 %v8157_v35, %v6342_v24  ;;  %v6679_v57 = vld [vmem:[%s6926_s16 + $0x68] sm:$0xff]  ;;  %v6680_v16 = vld [vmem:[%s6926_s16 + $0x70] sm:$0xff] }
 0x227   : > { %11068 = vst [vmem:[#allocation39_spill] sm:$0xff] %v8433_v10  ;;  %11069 = vst [vmem:[#allocation40_spill] sm:$0xff] %v8435_v25  ;;  %v2390_v40 = vpop.f32.mrf.mxu0  ;;  %v2746_v60 = vpop.f32.mrf.mxu1  ;;  %4925 = vperm.xlu1 %6664, %v4780_v56   ;;  %4928 = vperm.xlu0 %6663, %v4781_v52   ;;  %vm4657_vm1 = vcmp.eq.s32.totalorder %v6679_v57, 1  ;;  %vm4658_vm15 = vcmp.eq.s32.totalorder %v6680_v16, 1 }
 0x228   : > { %v2391_v10 = vadd.f32 %v8157_v35, %v2390_v40  ;;  %v8445_v25 = vadd.f32 %v8421_v33, %v2746_v60  ;;  %6561 = vmatprep.mubr.f32.mxu1 %v2603_v27  ;;  %v4784_v40 = vsel %vm4656_vm0, 1, %v11059_v12  ;;  %v4785_v60 = vsel %vm4657_vm1, 1, %v11059_v12 }
 0x229   : > { %v6345_v56 = vpop.f32.mrf.mxu0  ;;  %v6419_v52 = vpop.f32.mrf.mxu1  ;;  %6562 = vmatmul.mubr.f32.gmra.mxu1 %v2604_v54  ;;  %v2606_v1 = vmax.f32 %v2396_v15, 0.0  ;;  %v11073_v24 = vmax.f32 %v8431_v45, 0.0  ;;  %vm4270_vm0 = vcmp.eq.s32.totalorder %v8130_v17, 1 }
 0x22a   : > { %v2605_v39 = vmax.f32 %v2391_v10, 0.0  ;;  %v8455_v27 = vpop.permute.xlu1 %4098  ;;  %v8457_v55 = vpop.permute.xlu0 %4101  ;;  %v2406_v28 = vadd.f32 %v8157_v35, %v6345_v56  ;;  %v8464_v54 = vadd.f32 %v6419_v52, %v8421_v33  ;;  %v6681_v10 = vld [vmem:[%s6926_s16 + $0x78] sm:$0xff]  ;;  %v11074_v15 = vmax.f32 %v8445_v25, 0.0  ;;  %v8479_v56 = vld [vmem:[%s10816_s4] ss:$0 sm:$0xff] }
 0x22b   : > { %11070 = vst [vmem:[#allocation41_spill] sm:$0xff] %v8455_v27  ;;  %11071 = vst [vmem:[#allocation42_spill] sm:$0xff] %v8457_v55  ;;  %v2400_v46 = vpop.f32.mrf.mxu0  ;;  %v2756_v29 = vpop.f32.mrf.mxu1  ;;  %4931 = vperm.xlu1 %6664, %v4782_v63   ;;  %4934 = vperm.xlu0 %6663, %v4783_v32   ;;  %vm4659_vm3 = vcmp.eq.s32.totalorder %v6681_v10, 1  ;;  %v4388_v57 = vsel %vm4260_vm12, %v11073_v24, -1e+30  ;;  %vm4267_vm12 = vcmp.eq.s32.totalorder %v8118_v2, 1 }
 0x22c   : > { %11072 = vst [vmem:[#allocation43_spill] sm:$0xff] %v8464_v54  ;;  %v4387_v35 = vsel %vm4259_vm10, %v11074_v15, -1e+30  ;;  %v2401_v63 = vadd.f32 %v8479_v56, %v2400_v46  ;;  %v8483_v32 = vadd.f32 %v8421_v33, %v2756_v29  ;;  %6564 = vmatprep.mubr.f32.mxu1 %v2605_v39  ;;  %v10862_v52 = vmax.f32 %v8464_v54, 0.0 }
 0x22d   : > { %v4512_v14 = vmax.f32 %v4387_v35, %v4388_v57  ;;  %v6348_v24 = vpop.f32.mrf.mxu0  ;;  %v6422_v13 = vpop.f32.mrf.mxu1  ;;  %6565 = vmatmul.mubr.f32.gmra.mxu1 %v2606_v1  ;;  %v4786_v15 = vsel %vm4658_vm15, 1, %v11059_v12  ;;  %v6683_v57 = vld [vmem:[%s6926_s16 + $0x80] sm:$0xff]  ;;  %v2608_v35 = vmax.f32 %v2406_v28, 0.0  ;;  %vm4268_vm10 = vcmp.eq.s32.totalorder %v8120_v4, 1 }
 0x22e   : > { %v2607_v27 = vmax.f32 %v2401_v63, 0.0  ;;  %v8491_v46 = vadd.f32 %v6422_v13, %v8421_v33  ;;  %v8493_v29 = vpop.permute.xlu1 %4104  ;;  %v8495_v39 = vpop.permute.xlu0 %4107  ;;  %vm4660_vm6 = vcmp.eq.s32.totalorder %v6683_v57, 1  ;;  %v4390_v1 = vsel %vm4262_vm13, %v10862_v52, -1e+30 }
 0x22f   : > { %11076 = vst [vmem:[#allocation45_spill] sm:$0xff] %v8493_v29  ;;  %11077 = vst [vmem:[#allocation46_spill] sm:$0xff] %v8495_v39  ;;  %v2416_v16 = vadd.f32 %v8479_v56, %v6348_v24  ;;  %v2410_v63 = vpop.f32.mrf.mxu0  ;;  %v2766_v55 = vpop.f32.mrf.mxu1  ;;  %4937 = vperm.xlu1 %6664, %v4784_v40   ;;  %4940 = vperm.xlu0 %6663, %v4785_v60   ;;  %v4787_v13 = vsel %vm4659_vm3, 1, %v11059_v12  ;;  %v4516_v29 = vmax.f32 %v4512_v14, %v4390_v1  ;;  %v6684_v24 = vld [vmem:[%s6926_s16 + $0x88] sm:$0xff]  ;;  %v6685_v1 = vld [vmem:[%s6926_s16 + $0x90] sm:$0xff] }
 0x230   : > { %11075 = vst [vmem:[#allocation44_spill] sm:$0xff] %v8491_v46  ;;  %v11078_v28 = vmax.f32 %v8483_v32, 0.0  ;;  %v10865_v8 = vmax.f32 %v8491_v46, 0.0  ;;  %6567 = vmatprep.mubr.f32.mxu1 %v2607_v27  ;;  %vm4661_vm8 = vcmp.eq.s32.totalorder %v6684_v24, 1  ;;  %v2411_v40 = vadd.f32 %v8479_v56, %v2410_v63 }
 0x231   : > { %v8514_v60 = vadd.f32 %v8421_v33, %v2766_v55  ;;  %v6351_v10 = vpop.f32.mrf.mxu0  ;;  %v6425_v52 = vpop.f32.mrf.mxu1  ;;  %6568 = vmatmul.mubr.f32.gmra.mxu1 %v2608_v35  ;;  %v4788_v14 = vsel %vm4660_vm6, 1, %v11059_v12  ;;  %vm4662_vm9 = vcmp.eq.s32.totalorder %v6685_v1, 1  ;;  %v6686_v35 = vld [vmem:[%s6926_s16 + $0x98] sm:$0xff]  ;;  %v2610_v57 = vmax.f32 %v2416_v16, 0.0  ;;  %v6687_v1 = vld [vmem:[%s6926_s16 + $0xa0] sm:$0xff] }
 0x232   : > { %v4389_v39 = vsel %vm4261_vm2, %v11078_v28, -1e+30  ;;  %v4392_v27 = vsel %vm4264_vm14, %v10865_v8, -1e+30  ;;  %v8525_v63 = vadd.f32 %v6425_v52, %v8421_v33  ;;  %v8527_v55 = vpop.permute.xlu1 %4110  ;;  %v8529_v28 = vpop.permute.xlu0 %4113  ;;  %vm4663_vm11 = vcmp.eq.s32.totalorder %v6686_v35, 1 }
 0x233   : > { %v4520_v23 = vmax.f32 %v4516_v29, %v4389_v39  ;;  %11080 = vst [vmem:[#allocation48_spill] sm:$0xff] %v8527_v55  ;;  %11081 = vst [vmem:[#allocation49_spill] sm:$0xff] %v8529_v28  ;;  %v2609_v54 = vmax.f32 %v2411_v40, 0.0  ;;  %v10868_v29 = vmax.f32 %v8514_v60, 0.0  ;;  %v2420_v39 = vpop.f32.mrf.mxu0  ;;  %v2776_v46 = vpop.f32.mrf.mxu1  ;;  %4943 = vperm.xlu1 %6664, %v4786_v15   ;;  %4946 = vperm.xlu0 %6663, %v4787_v13   ;;  %v4789_v38 = vsel %vm4661_vm8, 1, %v11059_v12 }
 0x234   : > { %11079 = vst [vmem:[#allocation47_spill] sm:$0xff] %v8525_v63  ;;  %v2426_v8 = vadd.f32 %v8479_v56, %v6351_v10  ;;  %v10869_v55 = vmax.f32 %v8525_v63, 0.0  ;;  %v2421_v28 = vadd.f32 %v8479_v56, %v2420_v39  ;;  %v8544_v40 = vadd.f32 %v8421_v33, %v2776_v46 }
 0x235   : > { %v4524_v52 = vmax.f32 %v4520_v23, %v4392_v27  ;;  %v4391_v16 = vsel %vm4263_vm4, %v10868_v29, -1e+30  ;;  %6570 = vmatprep.mubr.f32.mxu1 %v2609_v54  ;;  %v6354_v15 = vpop.f32.mrf.mxu0  ;;  %v6428_v13 = vpop.f32.mrf.mxu1  ;;  %v4790_v24 = vsel %vm4662_vm9, 1, %v11059_v12  ;;  %v4791_v10 = vsel %vm4663_vm11, 1, %v11059_v12 }
 0x236   : > { %v4394_v37 = vsel %vm4266_vm5, %v10869_v55, -1e+30  ;;  %v2611_v46 = vmax.f32 %v2421_v28, 0.0  ;;  %6571 = vmatmul.mubr.f32.gmra.mxu1 %v2610_v57  ;;  %v8555_v54 = vpop.permute.xlu1 %4116  ;;  %v8557_v27 = vpop.permute.xlu0 %4119  ;;  %vm4664_vm1 = vcmp.eq.s32.totalorder %v6687_v1, 1  ;;  %v2436_v39 = vadd.f32 %v8479_v56, %v6354_v15 }
 0x237   : > { %v4528_v23 = vmax.f32 %v4524_v52, %v4391_v16  ;;  %11082 = vst [vmem:[#allocation50_spill] sm:$0xff] %v8555_v54  ;;  %11083 = vst [vmem:[#allocation51_spill] sm:$0xff] %v8557_v27  ;;  %v8563_v29 = vadd.f32 %v6428_v13, %v8421_v33  ;;  %v2430_v52 = vpop.f32.mrf.mxu0  ;;  %v2786_v16 = vpop.f32.mrf.mxu1  ;;  %4949 = vperm.xlu1 %6664, %v4788_v14   ;;  %4952 = vperm.xlu0 %6663, %v4789_v38   ;;  %vm4665_vm2 = vcmp.eq.s32.totalorder %v6688_v47, 1 }
 0x238   : > { %vm4269_vm13 = vcmp.eq.s32.totalorder %v8128_v44, 1  ;;  %v2612_v28 = vmax.f32 %v2426_v8, 0.0  ;;  %v2431_v55 = vadd.f32 %v8479_v56, %v2430_v52  ;;  %v8569_v35 = vadd.f32 %v8421_v33, %v2786_v16  ;;  %6573 = vmatprep.mubr.f32.mxu1 %v2611_v46 }
 0x239   : > { %v4532_v57 = vmax.f32 %v4528_v23, %v4394_v37  ;;  %vm4272_vm14 = vcmp.eq.s32.totalorder %v8140_v31, 1  ;;  %v11084_v15 = vmax.f32 %v8544_v40, 0.0  ;;  %v10873_v38 = vmax.f32 %v8563_v29, 0.0  ;;  %v6357_v13 = vpop.f32.mrf.mxu0  ;;  %v6431_v54 = vpop.f32.mrf.mxu1  ;;  %v6689_v23 = vld [vmem:[%s6926_s16 + $0xb0] sm:$0xff] }
 0x23a   : > { %v4792_v8 = vsel %vm4664_vm1, 1, %v11059_v12  ;;  %vm4666_vm15 = vcmp.eq.s32.totalorder %v6689_v23, 1  ;;  %v2613_v52 = vmax.f32 %v2431_v55, 0.0  ;;  %v10874_v46 = vmax.f32 %v8569_v35, 0.0  ;;  %6574 = vmatmul.mubr.f32.gmra.mxu1 %v2612_v28  ;;  %v8581_v16 = vpop.permute.xlu1 %4122  ;;  %v8583_v27 = vpop.permute.xlu0 %4125 }
 0x23b   : > { %v4393_v14 = vsel %vm4265_vm7, %v11084_v15, -1e+30  ;;  %11085 = vst [vmem:[#allocation52_spill] sm:$0xff] %v8581_v16  ;;  %11086 = vst [vmem:[#allocation53_spill] sm:$0xff] %v8583_v27  ;;  %vm4667_vm3 = vcmp.eq.s32.totalorder %v6690_v51, 1  ;;  %v2614_v15 = vmax.f32 %v2436_v39, 0.0  ;;  %v8591_v63 = vadd.f32 %v6431_v54, %v8421_v33  ;;  %v2796_v55 = vpop.f32.mrf.mxu1  ;;  %4955 = vperm.xlu1 %6664, %v4790_v24   ;;  %4958 = vperm.xlu0 %6663, %v4791_v10  }
 0x23c   : > { %v4536_v37 = vmax.f32 %v4532_v57, %v4393_v14  ;;  %v4396_v1 = vsel %vm4268_vm10, %v10873_v38, -1e+30  ;;  %v2440_v57 = vpop.f32.mrf.mxu0  ;;  %v4793_v28 = vsel %vm4665_vm2, 1, %v11059_v12  ;;  %vm4271_vm4 = vcmp.eq.s32.totalorder %v8138_v30, 1  ;;  %6576 = vmatprep.mubr.f32.mxu1 %v2613_v52 }
 0x23d   : > { %11087 = vst [vmem:[#allocation54_spill] sm:$0xff] %v8591_v63  ;;  %v4395_v39 = vsel %vm4267_vm12, %v10874_v46, -1e+30  ;;  %v2446_v4 = vadd.f32 %v8479_v56, %v6357_v13  ;;  %v2441_v54 = vadd.f32 %v8479_v56, %v2440_v57  ;;  %v10878_v24 = vmax.f32 %v8591_v63, 0.0  ;;  %v6434_v38 = vpop.f32.mrf.mxu1  ;;  %v6691_v46 = vld [vmem:[%s6926_s16 + $0xc0] sm:$0xff] }
 0x23e   : > { %v4511_v14 = vmax.f32 %v4396_v1, %v4536_v37  ;;  %v8604_v10 = vadd.f32 %v8421_v33, %v2796_v55  ;;  %v6360_v47 = vpop.f32.mrf.mxu0  ;;  %v4794_v37 = vsel %vm4666_vm15, 1, %v11059_v12  ;;  %v4795_v2 = vsel %vm4667_vm3, 1, %v11059_v12  ;;  %6577 = vmatmul.mubr.f32.gmra.mxu1 %v2614_v15  ;;  %v8614_v57 = vpop.permute.xlu1 %4128 }
 0x23f   : > { %vm4274_vm5 = vcmp.eq.s32.totalorder %v8150_v49, 1  ;;  %v2615_v1 = vmax.f32 %v2441_v54, 0.0  ;;  %v8612_v52 = vadd.f32 %v6434_v38, %v8421_v33  ;;  %11090 = vst [vmem:[#allocation57_spill] sm:$0xff] %v8614_v57  ;;  %v8616_v55 = vpop.permute.xlu0 %4131  ;;  %vm4668_vm6 = vcmp.eq.s32.totalorder %v6691_v46, 1  ;;  %v2806_v15 = vpop.f32.mrf.mxu1  ;;  %4961 = vperm.xlu1 %6664, %v4792_v8   ;;  %4964 = vperm.xlu0 %6663, %v4793_v28  }
 0x240   : > { %11088 = vst [vmem:[#allocation55_spill] sm:$0xff] %v8604_v10  ;;  %v4515_v13 = vmax.f32 %v4511_v14, %v4395_v39  ;;  %11091 = vst [vmem:[#allocation58_spill] sm:$0xff] %v8616_v55  ;;  %vm4273_vm7 = vcmp.eq.s32.totalorder %v8148_v48, 1  ;;  %v4398_v23 = vsel %vm4270_vm0, %v10878_v24, -1e+30  ;;  %v10879_v51 = vmax.f32 %v8604_v10, 0.0  ;;  %v2450_v38 = vpop.f32.mrf.mxu0 }
 0x241   : > { %11089 = vst [vmem:[#allocation56_spill] sm:$0xff] %v8612_v52  ;;  %v2456_v14 = vadd.f32 %v8479_v56, %v6360_v47  ;;  %v6692_v39 = vld [vmem:[%s6926_s16 + $0xc8] sm:$0xff]  ;;  %v2616_v54 = vmax.f32 %v2446_v4, 0.0  ;;  %v10881_v55 = vmax.f32 %v8612_v52, 0.0  ;;  %v2451_v16 = vadd.f32 %v8479_v56, %v2450_v38  ;;  %6579 = vmatprep.mubr.f32.mxu1 %v2615_v1  ;;  %v6437_v28 = vpop.f32.mrf.mxu1  ;;  %v6694_v24 = vld [vmem:[%s6926_s16 + $0xd8] sm:$0xff] }
 0x242   : > { %vm4669_vm8 = vcmp.eq.s32.totalorder %v6692_v39, 1  ;;  %v4519_v57 = vmax.f32 %v4515_v13, %v4398_v23  ;;  %v4397_v17 = vsel %vm4269_vm13, %v10879_v51, -1e+30  ;;  %v8634_v47 = vadd.f32 %v8421_v33, %v2806_v15  ;;  %v6363_v8 = vpop.f32.mrf.mxu0  ;;  %v6693_v13 = vld [vmem:[%s6926_s16 + $0xd0] sm:$0xff]  ;;  %v8644_v38 = vpop.permute.xlu1 %4134 }
 0x243   : > { %v4796_v4 = vsel %vm4668_vm6, 1, %v11059_v12  ;;  %vm4670_vm9 = vcmp.eq.s32.totalorder %v6693_v13, 1  ;;  %vm4276_vm10 = vcmp.eq.s32.totalorder %v8165_v7, 1  ;;  %v4400_v1 = vsel %vm4272_vm14, %v10881_v55, -1e+30  ;;  %6580 = vmatmul.mubr.f32.gmra.mxu1 %v2616_v54  ;;  %11093 = vst [vmem:[#allocation60_spill] sm:$0xff] %v8644_v38  ;;  %v8646_v15 = vpop.permute.xlu0 %4137  ;;  %4967 = vperm.xlu1 %6664, %v4794_v37  }
 0x244   : > { %11092 = vst [vmem:[#allocation59_spill] sm:$0xff] %v8634_v47  ;;  %v4523_v23 = vmax.f32 %v4519_v57, %v4397_v17  ;;  %v2617_v44 = vmax.f32 %v2451_v16, 0.0  ;;  %11094 = vst [vmem:[#allocation61_spill] sm:$0xff] %v8646_v15  ;;  %vm4671_vm11 = vcmp.eq.s32.totalorder %v6694_v24, 1  ;;  %v2618_v46 = vmax.f32 %v2456_v14, 0.0  ;;  %v2460_v57 = vpop.f32.mrf.mxu0  ;;  %v2816_v17 = vpop.f32.mrf.mxu1  ;;  %4970 = vperm.xlu0 %6663, %v4795_v2  }
 0x245   : > { %v10882_v51 = vmax.f32 %v8634_v47, 0.0  ;;  %v8651_v27 = vadd.f32 %v6437_v28, %v8421_v33  ;;  %v4797_v31 = vsel %vm4669_vm8, 1, %v11059_v12  ;;  %vm4275_vm12 = vcmp.eq.s32.totalorder %v8163_v5, 1 }
 0x246   : > { %v4527_v16 = vmax.f32 %v4523_v23, %v4400_v1  ;;  %v2466_v54 = vadd.f32 %v8479_v56, %v6363_v8  ;;  %v2461_v55 = vadd.f32 %v8479_v56, %v2460_v57  ;;  %v8659_v14 = vadd.f32 %v8421_v33, %v2816_v17  ;;  %6582 = vmatprep.mubr.f32.mxu1 %v2617_v44  ;;  %v6366_v39 = vpop.f32.mrf.mxu0  ;;  %v6440_v28 = vpop.f32.mrf.mxu1 }
 0x247   : > { %11095 = vst [vmem:[#allocation62_spill] sm:$0xff] %v8651_v27  ;;  %vm4278_vm0 = vcmp.eq.s32.totalorder %v8175_v22, 1  ;;  %v4399_v37 = vsel %vm4271_vm4, %v10882_v51, -1e+30  ;;  %v10885_v2 = vmax.f32 %v8651_v27, 0.0  ;;  %v4798_v8 = vsel %vm4670_vm9, 1, %v11059_v12  ;;  %6583 = vmatmul.mubr.f32.gmra.mxu1 %v2618_v46  ;;  %v8672_v17 = vpop.permute.xlu1 %4140  ;;  %v8674_v30 = vpop.permute.xlu0 %4143  ;;  %4973 = vperm.xlu1 %6664, %v4796_v4  }
 0x248   : > { %11096 = vst [vmem:[#allocation63_spill] sm:$0xff] %v8659_v14  ;;  %v4799_v23 = vsel %vm4671_vm11, 1, %v11059_v12  ;;  %v4531_v1 = vmax.f32 %v4527_v16, %v4399_v37  ;;  %v2619_v44 = vmax.f32 %v2461_v55, 0.0  ;;  %11097 = vst [vmem:[#allocation64_spill] sm:$0xff] %v8672_v17  ;;  %v6695_v51 = vld [vmem:[%s6926_s16 + $0xe0] sm:$0xff]  ;;  %v2476_v24 = vadd.f32 %v8479_v56, %v6366_v39  ;;  %v2470_v55 = vpop.f32.mrf.mxu0  ;;  %v2826_v16 = vpop.f32.mrf.mxu1  ;;  %4976 = vperm.xlu0 %6663, %v4797_v31   ;;  %v6696_v46 = vld [vmem:[%s6926_s16 + $0xe8] sm:$0xff] }
 0x249   : > { %11098 = vst [vmem:[#allocation65_spill] sm:$0xff] %v8674_v30  ;;  %vm4672_vm1 = vcmp.eq.s32.totalorder %v6695_v51, 1  ;;  %v4402_v13 = vsel %vm4274_vm5, %v10885_v2, -1e+30  ;;  %v8683_v38 = vadd.f32 %v6440_v28, %v8421_v33  ;;  %vm4673_vm2 = vcmp.eq.s32.totalorder %v6696_v46, 1  ;;  %v6700_v22 = vld [vmem:[%s6926_s16 + $0x108] sm:$0xff] }
 0x24a   : > { %vm4277_vm13 = vcmp.eq.s32.totalorder %v8173_v20, 1  ;;  %v2620_v37 = vmax.f32 %v2466_v54, 0.0  ;;  %v4535_v57 = vmax.f32 %v4531_v1, %v4402_v13  ;;  %v11100_v17 = vmax.f32 %v8659_v14, 0.0  ;;  %6585 = vmatprep.mubr.f32.mxu1 %v2619_v44  ;;  %v6369_v31 = vpop.f32.mrf.mxu0  ;;  %v6443_v2 = vpop.f32.mrf.mxu1  ;;  %v6697_v1 = vld [vmem:[%s6926_s16 + $0xf0] sm:$0xff] }
 0x24b   : > { %11099 = vst [vmem:[#allocation66_spill] sm:$0xff] %v8683_v38  ;;  %v2471_v39 = vadd.f32 %v8479_v56, %v2470_v55  ;;  %v10888_v28 = vmax.f32 %v8683_v38, 0.0  ;;  %v8694_v4 = vadd.f32 %v8421_v33, %v2826_v16  ;;  %v4800_v54 = vsel %vm4672_vm1, 1, %v11059_v12  ;;  %v8704_v44 = vpop.permute.xlu0 %4149  ;;  %v6698_v55 = vld [vmem:[%s6926_s16 + $0xf8] sm:$0xff]  ;;  %4979 = vperm.xlu1 %6664, %v4798_v8   ;;  %v11212_v38 = vld [vmem:[#allocation21_spill] sm:$0xff] }
 0x24c   : > { %v4401_v49 = vsel %vm4273_vm7, %v11100_v17, -1e+30  ;;  %vm4674_vm14 = vcmp.eq.s32.totalorder %v6697_v1, 1  ;;  %v8700_v48 = vadd.f32 %v6443_v2, %v8421_v33  ;;  %6586 = vmatmul.mubr.f32.gmra.mxu1 %v2620_v37  ;;  %v8702_v17 = vpop.permute.xlu1 %4146  ;;  %11104 = vst [vmem:[#allocation70_spill] sm:$0xff] %v8704_v44  ;;  %vm4675_vm15 = vcmp.eq.s32.totalorder %v6698_v55, 1  ;;  %v2836_v2 = vpop.f32.mrf.mxu1  ;;  %4982 = vperm.xlu0 %6663, %v4799_v23  }
 0x24d   : > { %11101 = vst [vmem:[#allocation67_spill] sm:$0xff] %v8694_v4  ;;  %v4510_v13 = vmax.f32 %v4401_v49, %v4535_v57  ;;  %v2621_v30 = vmax.f32 %v2471_v39, 0.0  ;;  %11103 = vst [vmem:[#allocation69_spill] sm:$0xff] %v8702_v17  ;;  %vm4279_vm3 = vcmp.eq.s32.totalorder %v8183_v41, 1  ;;  %v2622_v16 = vmax.f32 %v2476_v24, 0.0  ;;  %v2480_v49 = vpop.f32.mrf.mxu0 }
 0x24e   : > { %11102 = vst [vmem:[#allocation68_spill] sm:$0xff] %v8700_v48  ;;  %v4404_v51 = vsel %vm4276_vm10, %v10888_v28, -1e+30  ;;  %v10889_v57 = vmax.f32 %v8694_v4, 0.0  ;;  %v4801_v37 = vsel %vm4673_vm2, 1, %v11059_v12  ;;  %v2486_v44 = vadd.f32 %v8479_v56, %v6369_v31  ;;  %v6446_v46 = vpop.f32.mrf.mxu1  ;;  %v6699_v28 = vld [vmem:[%s6926_s16 + $0x100] sm:$0xff] }
 0x24f   : > { %v4514_v39 = vmax.f32 %v4510_v13, %v4404_v51  ;;  %v10890_v17 = vmax.f32 %v8700_v48, 0.0  ;;  %v2481_v24 = vadd.f32 %v8479_v56, %v2480_v49  ;;  %6588 = vmatprep.mubr.f32.mxu1 %v2621_v30  ;;  %vm4254_vm4 = vcmp.eq.s32.totalorder %v8044_v34, 1  ;;  %v6372_v23 = vpop.f32.mrf.mxu0  ;;  %4985 = vperm.xlu1 %6664, %v4800_v54   ;;  %v6750_v4 = vld [vmem:[%s6926_s16 + $0x290] sm:$0xff] }
 0x250   : > { %v4403_v7 = vsel %vm4275_vm12, %v10889_v57, -1e+30  ;;  %v8724_v8 = vadd.f32 %v8421_v33, %v2836_v2  ;;  %v4802_v31 = vsel %vm4674_vm14, 1, %v11059_v12  ;;  %v4803_v13 = vsel %vm4675_vm15, 1, %v11059_v12  ;;  %6589 = vmatmul.mubr.f32.gmra.mxu1 %v2622_v16  ;;  %v8734_v49 = vpop.permute.xlu1 %4152  ;;  %v8736_v2 = vpop.permute.xlu0 %4155  ;;  %4988 = vperm.xlu0 %6663, %v4801_v37  }
 0x251   : > { %v4518_v30 = vmax.f32 %v4514_v39, %v4403_v7  ;;  %v4406_v51 = vsel %vm4278_vm0, %v10890_v17, -1e+30  ;;  %v2623_v5 = vmax.f32 %v2481_v24, 0.0  ;;  %11106 = vst [vmem:[#allocation72_spill] sm:$0xff] %v8734_v49  ;;  %11107 = vst [vmem:[#allocation73_spill] sm:$0xff] %v8736_v2  ;;  %vm4676_vm5 = vcmp.eq.s32.totalorder %v6699_v28, 1  ;;  %v2490_v39 = vpop.f32.mrf.mxu0  ;;  %v2846_v7 = vpop.f32.mrf.mxu1 }
 0x252   : > { %11105 = vst [vmem:[#allocation71_spill] sm:$0xff] %v8724_v8  ;;  %v10893_v1 = vmax.f32 %v8724_v8, 0.0  ;;  %v2496_v55 = vadd.f32 %v8479_v56, %v6372_v23  ;;  %v8742_v57 = vadd.f32 %v6446_v46, %v8421_v33  ;;  %vm4677_vm6 = vcmp.eq.s32.totalorder %v6700_v22, 1 }
 0x253   : > { %v2624_v16 = vmax.f32 %v2486_v44, 0.0  ;;  %v4522_v24 = vmax.f32 %v4518_v30, %v4406_v51  ;;  %v2491_v17 = vadd.f32 %v8479_v56, %v2490_v39  ;;  %v8747_v49 = vadd.f32 %v8421_v33, %v2846_v7  ;;  %6591 = vmatprep.mubr.f32.mxu1 %v2623_v5  ;;  %v6407_v37 = vpop.f32.mrf.mxu0  ;;  %v6449_v46 = vpop.f32.mrf.mxu1  ;;  %4991 = vperm.xlu1 %6664, %v4802_v31  }
 0x254   : > { %11108 = vst [vmem:[#allocation74_spill] sm:$0xff] %v8742_v57  ;;  %vm4280_vm7 = vcmp.eq.s32.totalorder %v8185_v42, 1  ;;  %v4405_v23 = vsel %vm4277_vm13, %v10893_v1, -1e+30  ;;  %v10892_v54 = vmax.f32 %v8742_v57, 0.0  ;;  %v4804_v44 = vsel %vm4676_vm5, 1, %v11059_v12  ;;  %v8761_v42 = vpop.permute.xlu1 %4158  ;;  %v8763_v39 = vpop.permute.xlu0 %4161  ;;  %4994 = vperm.xlu0 %6663, %v4803_v13  }
 0x255   : > { %11109 = vst [vmem:[#allocation75_spill] sm:$0xff] %v8747_v49  ;;  %v4526_v30 = vmax.f32 %v4522_v24, %v4405_v23  ;;  %v2625_v56 = vmax.f32 %v2491_v17, 0.0  ;;  %v10894_v51 = vmax.f32 %v8747_v49, 0.0  ;;  %v8759_v5 = vadd.f32 %v6407_v37, %v8421_v33  ;;  %6592 = vmatmul.mubr.f32.gmra.mxu1 %v2624_v16  ;;  %11110 = vst [vmem:[#allocation76_spill] sm:$0xff] %v8761_v42  ;;  %v2716_v24 = vpop.f32.mrf.mxu0  ;;  %v2856_v17 = vpop.f32.mrf.mxu1  ;;  %v6701_v1 = vld [vmem:[%s6926_s16 + $0x110] sm:$0xff] }
 0x256   : > { %11111 = vst [vmem:[#allocation77_spill] sm:$0xff] %v8763_v39  ;;  %v2626_v20 = vmax.f32 %v2496_v55, 0.0  ;;  %v4408_v7 = vsel %vm4280_vm7, %v10892_v54, -1e+30  ;;  %v8768_v28 = vadd.f32 %v6449_v46, %v8421_v33  ;;  %v4805_v16 = vsel %vm4677_vm6, 1, %v11059_v12 }
 0x257   : > { %v4530_v23 = vmax.f32 %v4526_v30, %v4408_v7  ;;  %v4407_v55 = vsel %vm4279_vm3, %v10894_v51, -1e+30  ;;  %v10895_v37 = vmax.f32 %v8759_v5, 0.0  ;;  %v8778_v54 = vadd.f32 %v8421_v33, %v2716_v24  ;;  %6594 = vmatprep.mubr.f32.mxu1 %v2625_v56  ;;  %v6410_v13 = vpop.f32.mrf.mxu0  ;;  %v6452_v22 = vpop.f32.mrf.mxu1  ;;  %v6702_v30 = vld [vmem:[%s6926_s16 + $0x118] sm:$0xff]  ;;  %4997 = vperm.xlu1 %6664, %v4804_v44   ;;  %v6704_v44 = vld [vmem:[%s6926_s16 + $0x128] sm:$0xff] }
 0x258   : > { %11112 = vst [vmem:[#allocation78_spill] sm:$0xff] %v8768_v28  ;;  %v10897_v46 = vmax.f32 %v8768_v28, 0.0  ;;  %v8782_v31 = vadd.f32 %v8421_v33, %v2856_v17  ;;  %vm4678_vm8 = vcmp.eq.s32.totalorder %v6701_v1, 1  ;;  %vm4679_vm9 = vcmp.eq.s32.totalorder %v6702_v30, 1  ;;  %v8790_v56 = vpop.permute.xlu1 %4164  ;;  %v8792_v24 = vpop.permute.xlu0 %4167  ;;  %5000 = vperm.xlu0 %6663, %v4805_v16  }
 0x259   : > { %v4534_v41 = vmax.f32 %v4530_v23, %v4407_v55  ;;  %v4382_v7 = vsel %vm4254_vm4, %v10895_v37, -1e+30  ;;  %6595 = vmatmul.mubr.f32.gmra.mxu1 %v2626_v20  ;;  %11114 = vst [vmem:[#allocation80_spill] sm:$0xff] %v8790_v56  ;;  %11115 = vst [vmem:[#allocation81_spill] sm:$0xff] %v8792_v24  ;;  %vm4282_vm10 = vcmp.eq.s32.totalorder %v8195_v3, 1  ;;  %v8797_v51 = vadd.f32 %v6410_v13, %v8421_v33  ;;  %v2866_v30 = vpop.f32.mrf.mxu1  ;;  %v2726_v55 = vpop.f32.mrf.mxu0  ;;  %v6703_v37 = vld [vmem:[%s6926_s16 + $0x120] sm:$0xff] }
 0x25a   : > { %11113 = vst [vmem:[#allocation79_spill] sm:$0xff] %v8782_v31  ;;  %v4806_v34 = vsel %vm4678_vm8, 1, %v11059_v12  ;;  %v4807_v20 = vsel %vm4679_vm9, 1, %v11059_v12  ;;  %vm4680_vm11 = vcmp.eq.s32.totalorder %v6703_v37, 1  ;;  %v4410_v3 = vsel %vm4282_vm10, %v10897_v46, -1e+30 }
 0x25b   : > { %v4538_v23 = vmax.f32 %v4534_v41, %v4382_v7  ;;  %v8807_v13 = vadd.f32 %v6452_v22, %v8421_v33  ;;  %v6455_v56 = vpop.f32.mrf.mxu1  ;;  %vm4681_vm12 = vcmp.eq.s32.totalorder %v6704_v44, 1  ;;  %vm4253_vm0 = vcmp.eq.s32.totalorder %v8046_v36, 1  ;;  %5003 = vperm.xlu1 %6664, %v4806_v34   ;;  %v6706_v34 = vld [vmem:[%s6926_s16 + $0x138] sm:$0xff] }
 0x25c   : > { %v8811_v16 = vpop.permute.xlu1 %4170  ;;  %v8813_v41 = vpop.permute.xlu0 %4173  ;;  %vm4281_vm1 = vcmp.eq.s32.totalorder %v8193_v61, 1  ;;  %v11119_v7 = vmax.f32 %v8778_v54, 0.0  ;;  %v8820_v17 = vadd.f32 %v8421_v33, %v2726_v55  ;;  %5006 = vperm.xlu0 %6663, %v4807_v20   ;;  %v6705_v61 = vld [vmem:[%s6926_s16 + $0x130] sm:$0xff]  ;;  %v8830_v55 = vadd.f32 %v8421_v33, %v2866_v30 }
 0x25d   : > { %11116 = vst [vmem:[#allocation82_spill] sm:$0xff] %v8807_v13  ;;  %v4509_v1 = vmax.f32 %v4410_v3, %v4538_v23  ;;  %11117 = vst [vmem:[#allocation83_spill] sm:$0xff] %v8811_v16  ;;  %v2876_v44 = vpop.f32.mrf.mxu1  ;;  %v6413_v23 = vpop.f32.mrf.mxu0  ;;  %v4808_v3 = vsel %vm4680_vm11, 1, %v11059_v12  ;;  %v4809_v16 = vsel %vm4681_vm12, 1, %v11059_v12  ;;  %vm4682_vm2 = vcmp.eq.s32.totalorder %v6705_v61, 1 }
 0x25e   : > { %11118 = vst [vmem:[#allocation84_spill] sm:$0xff] %v8813_v41  ;;  %v4381_v46 = vsel %vm4253_vm0, %v11119_v7, -1e+30  ;;  %v11120_v7 = vmax.f32 %v8782_v31, 0.0  ;;  %11121 = vst [vmem:[#allocation85_spill] sm:$0xff] %v8830_v55  ;;  %vm4683_vm13 = vcmp.eq.s32.totalorder %v6706_v34, 1  ;;  %v8843_v22 = vadd.f32 %v6413_v23, %v8421_v33 }
 0x25f   : > { %v4513_v36 = vmax.f32 %v4509_v1, %v4381_v46  ;;  %v6458_v24 = vpop.f32.mrf.mxu1  ;;  %vm4256_vm14 = vcmp.eq.s32.totalorder %v8058_v62, 1  ;;  %vm4284_vm15 = vcmp.eq.s32.totalorder %v8205_v19, 1  ;;  %v11124_v1 = vmax.f32 %v8797_v51, 0.0  ;;  %5009 = vperm.xlu1 %6664, %v4808_v3   ;;  %v6707_v19 = vld [vmem:[%s6926_s16 + $0x140] sm:$0xff]  ;;  %v6708_v3 = vld [vmem:[%s6926_s16 + $0x148] sm:$0xff] }
 0x260   : > { %v4409_v41 = vsel %vm4281_vm1, %v11120_v7, -1e+30  ;;  %v8834_v46 = vpop.permute.xlu1 %4176  ;;  %v8836_v20 = vpop.permute.xlu0 %4179  ;;  %5012 = vperm.xlu0 %6663, %v4809_v16   ;;  %vm4684_vm3 = vcmp.eq.s32.totalorder %v6707_v19, 1  ;;  %v8853_v23 = vadd.f32 %v6455_v56, %v8421_v33  ;;  %vm4685_vm4 = vcmp.eq.s32.totalorder %v6708_v3, 1  ;;  %v6709_v3 = vld [vmem:[%s6926_s16 + $0x150] sm:$0xff] }
 0x261   : > { %v4517_v37 = vmax.f32 %v4513_v36, %v4409_v41  ;;  %11122 = vst [vmem:[#allocation86_spill] sm:$0xff] %v8834_v46  ;;  %11123 = vst [vmem:[#allocation87_spill] sm:$0xff] %v8836_v20  ;;  %v4384_v7 = vsel %vm4256_vm14, %v11124_v1, -1e+30  ;;  %v2886_v34 = vpop.f32.mrf.mxu1  ;;  %v2736_v41 = vpop.f32.mrf.mxu0  ;;  %v4810_v36 = vsel %vm4682_vm2, 1, %v11059_v12  ;;  %v4811_v46 = vsel %vm4683_vm13, 1, %v11059_v12 }
 0x262   : > { %v11125_v1 = vmax.f32 %v8807_v13, 0.0  ;;  %11126 = vst [vmem:[#allocation88_spill] sm:$0xff] %v8853_v23  ;;  %vm4255_vm5 = vcmp.eq.s32.totalorder %v8056_v50, 1  ;;  %vm4283_vm6 = vcmp.eq.s32.totalorder %v8203_v18, 1  ;;  %v8866_v30 = vadd.f32 %v8421_v33, %v2736_v41 }
 0x263   : > { %v4521_v62 = vmax.f32 %v4517_v37, %v4384_v7  ;;  %v6461_v42 = vpop.f32.mrf.mxu1  ;;  %v11129_v7 = vmax.f32 %v8820_v17, 0.0  ;;  %5015 = vperm.xlu1 %6664, %v4810_v36   ;;  %vm4686_vm7 = vcmp.eq.s32.totalorder %v6709_v3, 1  ;;  %v11130_v18 = vmax.f32 %v8830_v55, 0.0 }
 0x264   : > { %v4412_v20 = vsel %vm4284_vm15, %v11125_v1, -1e+30  ;;  %v8857_v61 = vpop.permute.xlu1 %4182  ;;  %v8859_v37 = vpop.permute.xlu0 %4185  ;;  %5018 = vperm.xlu0 %6663, %v4811_v46   ;;  %v8876_v56 = vadd.f32 %v8421_v33, %v2876_v44  ;;  %vm4258_vm9 = vcmp.eq.s32.totalorder %v8070_v53, 1  ;;  %vm4286_vm10 = vcmp.eq.s32.totalorder %v8215_v21, 1 }
 0x265   : > { %v4525_v16 = vmax.f32 %v4521_v62, %v4412_v20  ;;  %11127 = vst [vmem:[#allocation89_spill] sm:$0xff] %v8857_v61  ;;  %11128 = vst [vmem:[#allocation90_spill] sm:$0xff] %v8859_v37  ;;  %v4383_v1 = vsel %vm4255_vm5, %v11129_v7, -1e+30  ;;  %v2896_v39 = vpop.f32.mrf.mxu1  ;;  %v4812_v20 = vsel %vm4684_vm3, 1, %v11059_v12  ;;  %v4813_v62 = vsel %vm4685_vm4, 1, %v11059_v12 }
 0x266   : > { %v4411_v61 = vsel %vm4283_vm6, %v11130_v18, -1e+30  ;;  %11131 = vst [vmem:[#allocation91_spill] sm:$0xff] %v8876_v56  ;;  %v6710_v37 = vld [vmem:[%s6926_s16 + $0x158] sm:$0xff]  ;;  %v8889_v18 = vadd.f32 %v6458_v24, %v8421_v33  ;;  %v11136_v21 = vmax.f32 %v8853_v23, 0.0  ;;  %v8899_v44 = vadd.f32 %v8421_v33, %v2886_v34 }
 0x267   : > { %v4529_v50 = vmax.f32 %v4525_v16, %v4383_v1  ;;  %v6464_v41 = vpop.f32.mrf.mxu1  ;;  %vm4687_vm8 = vcmp.eq.s32.totalorder %v6710_v37, 1  ;;  %v11134_v16 = vmax.f32 %v8843_v22, 0.0  ;;  %5021 = vperm.xlu1 %6664, %v4812_v20   ;;  %v6712_v20 = vld [vmem:[%s6926_s16 + $0x168] sm:$0xff]  ;;  %vm4257_vm0 = vcmp.eq.s32.totalorder %v8068_v0, 1 }
 0x268   : > { %v8880_v36 = vpop.permute.xlu1 %4188  ;;  %v8882_v19 = vpop.permute.xlu0 %4191  ;;  %11135 = vst [vmem:[#allocation94_spill] sm:$0xff] %v8889_v18  ;;  %5024 = vperm.xlu0 %6663, %v4813_v62   ;;  %v4815_v37 = vsel %vm4687_vm8, 1, %v11059_v12  ;;  %11137 = vst [vmem:[#allocation95_spill] sm:$0xff] %v8899_v44  ;;  %vm4689_vm12 = vcmp.eq.s32.totalorder %v6712_v20, 1  ;;  %vm4285_vm1 = vcmp.eq.s32.totalorder %v8213_v43, 1  ;;  %vm4287_vm2 = vcmp.eq.s32.totalorder %v8223_v9, 1 }
 0x269   : > { %v4533_v46 = vmax.f32 %v4529_v50, %v4411_v61  ;;  %11132 = vst [vmem:[#allocation92_spill] sm:$0xff] %v8880_v36  ;;  %11133 = vst [vmem:[#allocation93_spill] sm:$0xff] %v8882_v19  ;;  %v4386_v1 = vsel %vm4258_vm9, %v11134_v16, -1e+30  ;;  %v2906_v7 = vpop.f32.mrf.mxu1  ;;  %v4814_v61 = vsel %vm4686_vm7, 1, %v11059_v12  ;;  %v6711_v50 = vld [vmem:[%s6926_s16 + $0x160] sm:$0xff]  ;;  %v8916_v0 = vadd.f32 %v6461_v42, %v8421_v33 }
 0x26a   : > { %vm4688_vm11 = vcmp.eq.s32.totalorder %v6711_v50, 1  ;;  %v4414_v36 = vsel %vm4286_vm10, %v11136_v21, -1e+30  ;;  %vm4288_vm13 = vcmp.eq.s32.totalorder %v8225_v11, 1  ;;  %v11140_v34 = vmax.f32 %v8866_v30, 0.0  ;;  %v6719_v9 = vld [vmem:[%s6926_s16 + $0x1a0] sm:$0xff] }
 0x26b   : > { %v4537_v53 = vmax.f32 %v4533_v46, %v4386_v1  ;;  %v8901_v24 = vpop.f32.mrf.mxu1  ;;  %11141 = vst [vmem:[#allocation98_spill] sm:$0xff] %v8916_v0  ;;  %5027 = vperm.xlu1 %6664, %v4814_v61   ;;  %v8931_v19 = vadd.f32 %v8421_v33, %v2896_v39  ;;  %vm4289_vm3 = vcmp.eq.s32.totalorder %v8233_v26, 1  ;;  %vm4290_vm4 = vcmp.eq.s32.totalorder %v8235_v6, 1 }
 0x26c   : > { %v8907_v3 = vpop.permute.xlu1 %4194  ;;  %v8909_v46 = vpop.permute.xlu0 %4197  ;;  %v4385_v1 = vsel %vm4257_vm0, %v11140_v34, -1e+30  ;;  %5030 = vperm.xlu0 %6663, %v4815_v37   ;;  %v11142_v34 = vmax.f32 %v8876_v56, 0.0  ;;  %v6714_v37 = vld [vmem:[%s6926_s16 + $0x178] sm:$0xff]  ;;  %vm4292_vm5 = vcmp.eq.s32.totalorder %v8245_v59, 1  ;;  %v11146_v39 = vmax.f32 %v8889_v18, 0.0 }
 0x26d   : > { %v4540_v62 = vmax.f32 %v4414_v36, %v4537_v53  ;;  %11138 = vst [vmem:[#allocation96_spill] sm:$0xff] %v8907_v3  ;;  %11139 = vst [vmem:[#allocation97_spill] sm:$0xff] %v8909_v46  ;;  %v8918_v16 = vpop.f32.mrf.mxu1  ;;  %v4816_v53 = vsel %vm4688_vm11, 1, %v11059_v12  ;;  %v4817_v3 = vsel %vm4689_vm12, 1, %v11059_v12  ;;  %v6713_v46 = vld [vmem:[%s6926_s16 + $0x170] sm:$0xff]  ;;  %vm4691_vm15 = vcmp.eq.s32.totalorder %v6714_v37, 1 }
 0x26e   : > { %vm4690_vm14 = vcmp.eq.s32.totalorder %v6713_v46, 1  ;;  %v4413_v21 = vsel %vm4285_vm1, %v11142_v34, -1e+30  ;;  %11143 = vst [vmem:[#allocation99_spill] sm:$0xff] %v8931_v19  ;;  %v8949_v34 = vadd.f32 %v6464_v41, %v8421_v33  ;;  %vm4291_vm6 = vcmp.eq.s32.totalorder %v8243_v58, 1  ;;  %v6716_v41 = vld [vmem:[%s6926_s16 + $0x188] sm:$0xff] }
 0x26f   : > { %v4539_v36 = vmax.f32 %v4385_v1, %v4540_v62  ;;  %v8933_v61 = vpop.f32.mrf.mxu1  ;;  %v4416_v62 = vsel %vm4288_vm13, %v11146_v39, -1e+30  ;;  %5033 = vperm.xlu1 %6664, %v4816_v53   ;;  %v4819_v11 = vsel %vm4691_vm15, 1, %v11059_v12  ;;  %v6715_v39 = vld [vmem:[%s6926_s16 + $0x180] sm:$0xff]  ;;  %vm4693_vm8 = vcmp.eq.s32.totalorder %v6716_v41, 1  ;;  %v6717_v37 = vld [vmem:[%s6926_s16 + $0x190] sm:$0xff] }
 0x270   : > { %v8939_v43 = vpop.permute.xlu1 %4200  ;;  %v8941_v20 = vpop.permute.xlu0 %4203  ;;  %11147 = vst [vmem:[#allocation102_spill] sm:$0xff] %v8949_v34  ;;  %5036 = vperm.xlu0 %6663, %v4817_v3   ;;  %vm4692_vm7 = vcmp.eq.s32.totalorder %v6715_v39, 1  ;;  %v11148_v1 = vmax.f32 %v8899_v44, 0.0  ;;  %v8966_v53 = vadd.f32 %v8421_v33, %v2906_v7  ;;  %vm4694_vm9 = vcmp.eq.s32.totalorder %v6717_v37, 1  ;;  %v6718_v18 = vld [vmem:[%s6926_s16 + $0x198] sm:$0xff]  ;;  %v6721_v39 = vld [vmem:[%s6926_s16 + $0x1b0] sm:$0xff] }
 0x271   : > { %v4542_v50 = vmax.f32 %v4413_v21, %v4539_v36  ;;  %11144 = vst [vmem:[#allocation100_spill] sm:$0xff] %v8939_v43  ;;  %11145 = vst [vmem:[#allocation101_spill] sm:$0xff] %v8941_v20  ;;  %v8951_v42 = vpop.f32.mrf.mxu1  ;;  %v4818_v21 = vsel %vm4690_vm14, 1, %v11059_v12  ;;  %vm4695_vm11 = vcmp.eq.s32.totalorder %v6718_v18, 1  ;;  %vm4696_vm12 = vcmp.eq.s32.totalorder %v6719_v9, 1  ;;  %v11158_v41 = vld [vmem:[#allocation8_spill] sm:$0xff] }
 0x272   : > { %v4415_v3 = vsel %vm4287_vm2, %v11148_v1, -1e+30  ;;  %11149 = vst [vmem:[#allocation103_spill] sm:$0xff] %v8966_v53  ;;  %v11153_v1 = vmax.f32 %v8916_v0, 0.0  ;;  %v8985_v44 = vadd.f32 %v8901_v24, %v8421_v33  ;;  %v4820_v6 = vsel %vm4692_vm7, 1, %v11059_v12  ;;  %v11163_v59 = vld [vmem:[#allocation7_spill] sm:$0xff] }
 0x273   : > { %v4541_v36 = vmax.f32 %v4416_v62, %v4542_v50  ;;  %v8968_v50 = vpop.f32.mrf.mxu1  ;;  %v11150_v62 = vld [vmem:[#allocation6_spill] sm:$0xff]  ;;  %5039 = vperm.xlu1 %6664, %v4818_v21   ;;  %v4822_v46 = vsel %vm4694_vm9, 1, %v11059_v12  ;;  %v11156_v24 = vmax.f32 %v8931_v19, 0.0  ;;  %v9004_v0 = vadd.f32 %v8421_v33, %v8918_v16  ;;  %v9028_v18 = vld [vmem:[%s10818_s6] ss:$0 sm:$0xff] }
 0x274   : > { %vm4294_vm10 = vcmp.eq.s32.totalorder %v11150_v62, 1  ;;  %v8972_v20 = vpop.permute.xlu1 %4206  ;;  %v8974_v2 = vpop.permute.xlu0 %4209  ;;  %v4418_v7 = vsel %vm4290_vm4, %v11153_v1, -1e+30  ;;  %11154 = vst [vmem:[#allocation105_spill] sm:$0xff] %v8985_v44  ;;  %5042 = vperm.xlu0 %6663, %v4819_v11   ;;  %v4821_v1 = vsel %vm4693_vm8, 1, %v11059_v12  ;;  %vm4698_vm2 = vcmp.eq.s32.totalorder %v6721_v39, 1 }
 0x275   : > { %v4544_v43 = vmax.f32 %v4415_v3, %v4541_v36  ;;  %11151 = vst [vmem:[#allocation6_spill] sm:$0xff] %v8972_v20  ;;  %11152 = vst [vmem:[#allocation104_spill] sm:$0xff] %v8974_v2  ;;  %v8987_v36 = vpop.f32.mrf.mxu1  ;;  %v6720_v3 = vld [vmem:[%s6926_s16 + $0x1a8] sm:$0xff]  ;;  %v4417_v21 = vsel %vm4289_vm3, %v11156_v24, -1e+30  ;;  %vm4296_vm13 = vcmp.eq.s32.totalorder %v11158_v41, 1  ;;  %v9032_v9 = vadd.f32 %v9028_v18, %v8933_v61 }
 0x276   : > { %vm4697_vm0 = vcmp.eq.s32.totalorder %v6720_v3, 1  ;;  %v11155_v20 = vld [vmem:[#allocation5_spill] sm:$0xff]  ;;  %v4823_v26 = vsel %vm4695_vm11, 1, %v11059_v12  ;;  %v4824_v33 = vsel %vm4696_vm12, 1, %v11059_v12  ;;  %v11161_v24 = vmax.f32 %v8949_v34, 0.0  ;;  %v6723_v3 = vld [vmem:[%s6926_s16 + $0x1b8] sm:$0xff] }
 0x277   : > { %vm4293_vm1 = vcmp.eq.s32.totalorder %v11155_v20, 1  ;;  %v4543_v2 = vmax.f32 %v4418_v7, %v4544_v43  ;;  %11157 = vst [vmem:[#allocation5_spill] sm:$0xff] %v9004_v0  ;;  %v9006_v43 = vpop.f32.mrf.mxu1  ;;  %v4825_v16 = vsel %vm4697_vm0, 1, %v11059_v12  ;;  %11162 = vst [vmem:[#allocation107_spill] sm:$0xff] %v9032_v9  ;;  %5045 = vperm.xlu1 %6664, %v4820_v6   ;;  %vm4699_vm14 = vcmp.eq.s32.totalorder %v6723_v3, 1  ;;  %v6725_v61 = vld [vmem:[%s6926_s16 + $0x1c8] sm:$0xff] }
 0x278   : > { %v9010_v7 = vpop.permute.xlu1 %4212  ;;  %v9012_v19 = vpop.permute.xlu0 %4215  ;;  %5048 = vperm.xlu0 %6663, %v4821_v1   ;;  %vm4295_vm15 = vcmp.eq.s32.totalorder %v11163_v59, 1  ;;  %vm4701_vm4 = vcmp.eq.s32.totalorder %v6725_v61, 1  ;;  %v11166_v34 = vld [vmem:[#allocation10_spill] sm:$0xff]  ;;  %v9063_v58 = vsel %vm4699_vm14, 1, %v11059_v12  ;;  %v11169_v1 = vmax.f32 %v8985_v44, 0.0  ;;  %v6729_v3 = vld [vmem:[%s6926_s16 + $0x1e8] sm:$0xff] }
 0x279   : > { %v4546_v37 = vmax.f32 %v4417_v21, %v4543_v2  ;;  %11159 = vst [vmem:[#allocation8_spill] sm:$0xff] %v9010_v7  ;;  %11160 = vst [vmem:[#allocation106_spill] sm:$0xff] %v9012_v19  ;;  %v4420_v2 = vsel %vm4292_vm5, %v11161_v24, -1e+30  ;;  %v9034_v11 = vpop.f32.mrf.mxu1  ;;  %v9040_v21 = vsel %vm4698_vm2, 1, %v11059_v12  ;;  %v6724_v7 = vld [vmem:[%s6926_s16 + $0x1c0] sm:$0xff] }
 0x27a   : > { %vm4700_vm3 = vcmp.eq.s32.totalorder %v6724_v7, 1  ;;  %v11164_v19 = vmax.f32 %v8966_v53, 0.0  ;;  %vm4298_vm7 = vcmp.eq.s32.totalorder %v11166_v34, 1  ;;  %v4422_v15 = vsel %vm4294_vm10, %v11169_v1, -1e+30  ;;  %v6730_v7 = vld [vmem:[%s6926_s16 + $0x1f0] sm:$0xff] }
 0x27b   : > { %v4545_v24 = vmax.f32 %v4420_v2, %v4546_v37  ;;  %v9051_v37 = vadd.f32 %v9028_v18, %v8951_v42  ;;  %v9053_v39 = vpop.f32.mrf.mxu1  ;;  %v6726_v2 = vld [vmem:[%s6926_s16 + $0x1d0] sm:$0xff]  ;;  %v6728_v42 = vld [vmem:[%s6926_s16 + $0x1e0] sm:$0xff]  ;;  %5051 = vperm.xlu1 %6664, %v4822_v46   ;;  %vm4705_vm9 = vcmp.eq.s32.totalorder %v6729_v3, 1  ;;  %v9082_v62 = vsel %vm4700_vm3, 1, %v11059_v12  ;;  %v11179_v3 = vld [vmem:[#allocation11_spill] sm:$0xff] }
 0x27c   : > { %v4419_v6 = vsel %vm4291_vm6, %v11164_v19, -1e+30  ;;  %vm4702_vm5 = vcmp.eq.s32.totalorder %v6726_v2, 1  ;;  %v9057_v56 = vpop.permute.xlu1 %4218  ;;  %v9059_v53 = vpop.permute.xlu0 %4221  ;;  %v6727_v19 = vld [vmem:[%s6926_s16 + $0x1d8] sm:$0xff]  ;;  %vm4704_vm8 = vcmp.eq.s32.totalorder %v6728_v42, 1  ;;  %5054 = vperm.xlu0 %6663, %v4823_v26   ;;  %v9086_v1 = vsel %vm4701_vm4, 1, %v11059_v12 }
 0x27d   : > { %11165 = vst [vmem:[#allocation7_spill] sm:$0xff] %v9051_v37  ;;  %v4548_v23 = vmax.f32 %v4419_v6, %v4545_v24  ;;  %11167 = vst [vmem:[#allocation10_spill] sm:$0xff] %v9057_v56  ;;  %vm4703_vm6 = vcmp.eq.s32.totalorder %v6727_v19, 1  ;;  %v9074_v24 = vadd.f32 %v9028_v18, %v8968_v50  ;;  %v9076_v6 = vpop.f32.mrf.mxu1  ;;  %v11171_v56 = vld [vmem:[#allocation9_spill] sm:$0xff]  ;;  %v9090_v50 = vsel %vm4702_vm5, 1, %v11059_v12  ;;  %v11174_v61 = vld [vmem:[#allocation12_spill] sm:$0xff] }
 0x27e   : > { %11168 = vst [vmem:[#allocation108_spill] sm:$0xff] %v9059_v53  ;;  %vm4297_vm11 = vcmp.eq.s32.totalorder %v11171_v56, 1  ;;  %v11172_v46 = vmax.f32 %v9004_v0, 0.0  ;;  %vm4706_vm10 = vcmp.eq.s32.totalorder %v6730_v7, 1  ;;  %vm4300_vm12 = vcmp.eq.s32.totalorder %v11174_v61, 1  ;;  %v6731_v42 = vld [vmem:[%s6926_s16 + $0x1f8] sm:$0xff] }
 0x27f   : > { %11170 = vst [vmem:[#allocation109_spill] sm:$0xff] %v9074_v24  ;;  %v4547_v53 = vmax.f32 %v4422_v15, %v4548_v23  ;;  %v9099_v15 = vadd.f32 %v9028_v18, %v8987_v36  ;;  %v9101_v23 = vpop.f32.mrf.mxu1  ;;  %v9111_v20 = vsel %vm4703_vm6, 1, %v11059_v12  ;;  %v9115_v36 = vsel %vm4704_vm8, 1, %v11059_v12  ;;  %5057 = vperm.xlu1 %6664, %v4824_v33   ;;  %v6735_v59 = vld [vmem:[%s6926_s16 + $0x218] sm:$0xff] }
 0x280   : > { %v4421_v26 = vsel %vm4293_vm1, %v11172_v46, -1e+30  ;;  %v9105_v44 = vpop.permute.xlu1 %4224  ;;  %v9107_v0 = vpop.permute.xlu0 %4227  ;;  %v9119_v46 = vsel %vm4705_vm9, 1, %v11059_v12  ;;  %v9128_v19 = vadd.f32 %v9028_v18, %v9006_v43  ;;  %5060 = vperm.xlu0 %6663, %v4825_v16   ;;  %vm4707_vm0 = vcmp.eq.s32.totalorder %v6731_v42, 1  ;;  %v6733_v43 = vld [vmem:[%s6926_s16 + $0x208] sm:$0xff] }
 0x281   : > { %11173 = vst [vmem:[#allocation9_spill] sm:$0xff] %v9099_v15  ;;  %v4550_v2 = vmax.f32 %v4421_v26, %v4547_v53  ;;  %11175 = vst [vmem:[#allocation12_spill] sm:$0xff] %v9105_v44  ;;  %v11177_v53 = vmax.f32 %v9032_v9, 0.0  ;;  %v9130_v44 = vpop.f32.mrf.mxu1  ;;  %vm4299_vm1 = vcmp.eq.s32.totalorder %v11179_v3, 1  ;;  %v9136_v41 = vsel %vm4706_vm10, 1, %v11059_v12  ;;  %v11182_v9 = vld [vmem:[#allocation14_spill] sm:$0xff] }
 0x282   : > { %11176 = vst [vmem:[#allocation110_spill] sm:$0xff] %v9107_v0  ;;  %11178 = vst [vmem:[#allocation111_spill] sm:$0xff] %v9128_v19  ;;  %v11180_v13 = vmax.f32 %v9051_v37, 0.0  ;;  %vm4302_vm3 = vcmp.eq.s32.totalorder %v11182_v9, 1  ;;  %v11185_v16 = vmax.f32 %v9074_v24, 0.0  ;;  %v6737_v42 = vld [vmem:[%s6926_s16 + $0x228] sm:$0xff] }
 0x283   : > { %v4424_v26 = vsel %vm4296_vm13, %v11177_v53, -1e+30  ;;  %v6732_v53 = vld [vmem:[%s6926_s16 + $0x200] sm:$0xff]  ;;  %vm4709_vm13 = vcmp.eq.s32.totalorder %v6733_v43, 1  ;;  %v9149_v7 = vpop.f32.mrf.mxu1  ;;  %5063 = vperm.xlu1 %6664, %v9040_v21   ;;  %vm4713_vm5 = vcmp.eq.s32.totalorder %v6737_v42, 1  ;;  %v11188_v21 = vmax.f32 %v9099_v15, 0.0 }
 0x284   : > { %v4549_v0 = vmax.f32 %v4424_v26, %v4550_v2  ;;  %vm4708_vm2 = vcmp.eq.s32.totalorder %v6732_v53, 1  ;;  %v4423_v33 = vsel %vm4295_vm15, %v11180_v13, -1e+30  ;;  %v9147_v2 = vadd.f32 %v9028_v18, %v9034_v11  ;;  %v6734_v26 = vld [vmem:[%s6926_s16 + $0x210] sm:$0xff]  ;;  %v9153_v28 = vpop.permute.xlu1 %4230  ;;  %v9155_v37 = vpop.permute.xlu0 %4233  ;;  %v6736_v11 = vld [vmem:[%s6926_s16 + $0x220] sm:$0xff]  ;;  %5066 = vperm.xlu0 %6663, %v9063_v58   ;;  %v11195_v42 = vld [vmem:[#allocation15_spill] sm:$0xff] }
 0x285   : > { %vm4710_vm14 = vcmp.eq.s32.totalorder %v6734_v26, 1  ;;  %11183 = vst [vmem:[#allocation14_spill] sm:$0xff] %v9153_v28  ;;  %11184 = vst [vmem:[#allocation112_spill] sm:$0xff] %v9155_v37  ;;  %v9159_v13 = vsel %vm4707_vm0, 1, %v11059_v12  ;;  %vm4711_vm15 = vcmp.eq.s32.totalorder %v6735_v59, 1  ;;  %vm4712_vm4 = vcmp.eq.s32.totalorder %v6736_v11, 1 }
 0x286   : > { %11181 = vst [vmem:[#allocation11_spill] sm:$0xff] %v9147_v2  ;;  %v4552_v55 = vmax.f32 %v4423_v33, %v4549_v0  ;;  %v4426_v31 = vsel %vm4298_vm7, %v11185_v16, -1e+30  ;;  %v9170_v0 = vadd.f32 %v9028_v18, %v9053_v39  ;;  %v9172_v33 = vpop.f32.mrf.mxu1  ;;  %v11187_v28 = vld [vmem:[#allocation13_spill] sm:$0xff]  ;;  %v9180_v34 = vsel %vm4708_vm2, 1, %v11059_v12  ;;  %v6738_v53 = vld [vmem:[%s6926_s16 + $0x230] sm:$0xff] }
 0x287   : > { %vm4301_vm6 = vcmp.eq.s32.totalorder %v11187_v28, 1  ;;  %v9184_v16 = vsel %vm4709_vm13, 1, %v11059_v12  ;;  %v9188_v39 = vsel %vm4710_vm14, 1, %v11059_v12  ;;  %v4425_v58 = vsel %vm4297_vm11, %v11188_v21, -1e+30  ;;  %v11190_v43 = vld [vmem:[#allocation16_spill] sm:$0xff]  ;;  %5069 = vperm.xlu1 %6664, %v9082_v62  }
 0x288   : > { %11186 = vst [vmem:[#allocation113_spill] sm:$0xff] %v9170_v0  ;;  %v4551_v37 = vmax.f32 %v4426_v31, %v4552_v55  ;;  %v9197_v31 = vadd.f32 %v9028_v18, %v9076_v6  ;;  %v9199_v55 = vpop.f32.mrf.mxu1  ;;  %vm4714_vm7 = vcmp.eq.s32.totalorder %v6738_v53, 1  ;;  %vm4304_vm8 = vcmp.eq.s32.totalorder %v11190_v43, 1  ;;  %v9203_v24 = vpop.permute.xlu1 %4236  ;;  %5072 = vperm.xlu0 %6663, %v9086_v1   ;;  %v6739_v11 = vld [vmem:[%s6926_s16 + $0x238] sm:$0xff]  ;;  %v6744_v1 = vld [vmem:[%s6926_s16 + $0x260] sm:$0xff] }
 0x289   : > { %11191 = vst [vmem:[#allocation16_spill] sm:$0xff] %v9203_v24  ;;  %v9205_v15 = vpop.permute.xlu0 %4239  ;;  %v9209_v56 = vsel %vm4711_vm15, 1, %v11059_v12  ;;  %v9213_v6 = vsel %vm4712_vm4, 1, %v11059_v12  ;;  %v9217_v21 = vsel %vm4713_vm5, 1, %v11059_v12  ;;  %v9226_v59 = vadd.f32 %v9028_v18, %v9101_v23  ;;  %v6741_v23 = vld [vmem:[%s6926_s16 + $0x248] sm:$0xff]  ;;  %v6743_v3 = vld [vmem:[%s6926_s16 + $0x258] sm:$0xff] }
 0x28a   : > { %11189 = vst [vmem:[#allocation13_spill] sm:$0xff] %v9197_v31  ;;  %v4554_v26 = vmax.f32 %v4425_v58, %v4551_v37  ;;  %11192 = vst [vmem:[#allocation114_spill] sm:$0xff] %v9205_v15  ;;  %v11193_v37 = vmax.f32 %v9128_v19, 0.0  ;;  %v9228_v24 = vpop.f32.mrf.mxu1  ;;  %vm4715_vm9 = vcmp.eq.s32.totalorder %v6739_v11, 1  ;;  %vm4303_vm11 = vcmp.eq.s32.totalorder %v11195_v42, 1  ;;  %v11198_v19 = vld [vmem:[#allocation18_spill] sm:$0xff] }
 0x28b   : > { %11194 = vst [vmem:[#allocation115_spill] sm:$0xff] %v9226_v59  ;;  %v9236_v61 = vsel %vm4714_vm7, 1, %v11059_v12  ;;  %v11196_v48 = vmax.f32 %v9147_v2, 0.0  ;;  %vm4306_vm2 = vcmp.eq.s32.totalorder %v11198_v19, 1  ;;  %vm4720_vm13 = vcmp.eq.s32.totalorder %v6744_v1, 1  ;;  %5075 = vperm.xlu1 %6664, %v9090_v50   ;;  %v6745_v11 = vld [vmem:[%s6926_s16 + $0x268] sm:$0xff] }
 0x28c   : > { %v4428_v58 = vsel %vm4300_vm12, %v11193_v37, -1e+30  ;;  %v6740_v37 = vld [vmem:[%s6926_s16 + $0x240] sm:$0xff]  ;;  %vm4717_vm12 = vcmp.eq.s32.totalorder %v6741_v23, 1  ;;  %v6491_v53 = vpop.f32.mrf.mxu1  ;;  %v9251_v49 = vpop.permute.xlu1 %4242  ;;  %5078 = vperm.xlu0 %6663, %v9111_v20   ;;  %vm4721_vm14 = vcmp.eq.s32.totalorder %v6745_v11, 1  ;;  %v11204_v50 = vmax.f32 %v9197_v31, 0.0 }
 0x28d   : > { %v4553_v15 = vmax.f32 %v4428_v58, %v4554_v26  ;;  %vm4716_vm10 = vcmp.eq.s32.totalorder %v6740_v37, 1  ;;  %v4427_v62 = vsel %vm4299_vm1, %v11196_v48, -1e+30  ;;  %v9247_v26 = vadd.f32 %v9028_v18, %v9130_v44  ;;  %v6742_v58 = vld [vmem:[%s6926_s16 + $0x250] sm:$0xff]  ;;  %11199 = vst [vmem:[#allocation18_spill] sm:$0xff] %v9251_v49  ;;  %v9253_v8 = vpop.permute.xlu0 %4245  ;;  %v11203_v49 = vld [vmem:[#allocation17_spill] sm:$0xff] }
 0x28e   : > { %vm4718_vm0 = vcmp.eq.s32.totalorder %v6742_v58, 1  ;;  %11200 = vst [vmem:[#allocation116_spill] sm:$0xff] %v9253_v8  ;;  %v9257_v48 = vsel %vm4715_vm9, 1, %v11059_v12  ;;  %vm4719_vm1 = vcmp.eq.s32.totalorder %v6743_v3, 1  ;;  %v11201_v44 = vmax.f32 %v9170_v0, 0.0  ;;  %v6746_v37 = vld [vmem:[%s6926_s16 + $0x270] sm:$0xff] }
 0x28f   : > { %11197 = vst [vmem:[#allocation15_spill] sm:$0xff] %v9247_v26  ;;  %v4556_v57 = vmax.f32 %v4427_v62, %v4553_v15  ;;  %v9268_v15 = vadd.f32 %v9028_v18, %v9149_v7  ;;  %v2996_v62 = vpop.f32.mrf.mxu1  ;;  %vm4305_vm15 = vcmp.eq.s32.totalorder %v11203_v49, 1  ;;  %v9276_v9 = vsel %vm4716_vm10, 1, %v11059_v12  ;;  %v11206_v23 = vld [vmem:[#allocation20_spill] sm:$0xff]  ;;  %5081 = vperm.xlu1 %6664, %v9115_v36   ;;  %v6747_v1 = vld [vmem:[%s6926_s16 + $0x278] sm:$0xff]  ;;  %v11213_v36 = vld [vmem:[#allocation22_spill] sm:$0xff] }
 0x290   : > { %v4430_v2 = vsel %vm4302_vm3, %v11201_v44, -1e+30  ;;  %v9280_v44 = vsel %vm4717_vm12, 1, %v11059_v12  ;;  %v9284_v7 = vsel %vm4718_vm0, 1, %v11059_v12  ;;  %v4429_v20 = vsel %vm4301_vm6, %v11204_v50, -1e+30  ;;  %v9297_v0 = vpop.permute.xlu1 %4248  ;;  %5084 = vperm.xlu0 %6663, %v9119_v46  }
 0x291   : > { %11202 = vst [vmem:[#allocation117_spill] sm:$0xff] %v9268_v15  ;;  %v4555_v8 = vmax.f32 %v4430_v2, %v4556_v57  ;;  %v9293_v57 = vadd.f32 %v9028_v18, %v9172_v33  ;;  %v6494_v2 = vpop.f32.mrf.mxu1  ;;  %vm4722_vm3 = vcmp.eq.s32.totalorder %v6746_v37, 1  ;;  %vm4308_vm4 = vcmp.eq.s32.totalorder %v11206_v23, 1  ;;  %11207 = vst [vmem:[#allocation20_spill] sm:$0xff] %v9297_v0  ;;  %v9299_v31 = vpop.permute.xlu0 %4251  ;;  %v11211_v11 = vld [vmem:[#allocation19_spill] sm:$0xff] }
 0x292   : > { %11208 = vst [vmem:[#allocation118_spill] sm:$0xff] %v9299_v31  ;;  %v9303_v28 = vsel %vm4719_vm1, 1, %v11059_v12  ;;  %v9307_v33 = vsel %vm4720_vm13, 1, %v11059_v12  ;;  %v9311_v50 = vsel %vm4721_vm14, 1, %v11059_v12  ;;  %v9320_v3 = vadd.f32 %v9028_v18, %v9199_v55  ;;  %v6749_v55 = vld [vmem:[%s6926_s16 + $0x288] sm:$0xff]  ;;  %v11227_v49 = vld [vmem:[#allocation23_spill] sm:$0xff] }
 0x293   : > { %11205 = vst [vmem:[#allocation17_spill] sm:$0xff] %v9293_v57  ;;  %v4558_v58 = vmax.f32 %v4429_v20, %v4555_v8  ;;  %v11209_v8 = vmax.f32 %v9226_v59, 0.0  ;;  %v9322_v0 = vpop.f32.mrf.mxu1  ;;  %vm4723_vm5 = vcmp.eq.s32.totalorder %v6747_v1, 1  ;;  %vm4307_vm6 = vcmp.eq.s32.totalorder %v11211_v11, 1  ;;  %5087 = vperm.xlu1 %6664, %v9136_v41  }
 0x294   : > { %11210 = vst [vmem:[#allocation119_spill] sm:$0xff] %v9320_v3  ;;  %v9330_v43 = vsel %vm4722_vm3, 1, %v11059_v12  ;;  %vm4309_vm9 = vcmp.eq.s32.totalorder %v11212_v38, 1  ;;  %vm4310_vm10 = vcmp.eq.s32.totalorder %v11213_v36, 1  ;;  %v11214_v46 = vmax.f32 %v9247_v26, 0.0  ;;  %v4902_v42 = vpop.permute.xlu1 %4901  ;;  %5090 = vperm.xlu0 %6663, %v9159_v13   ;;  %v11235_v38 = vld [vmem:[#allocation25_spill] sm:$0xff] }
 0x295   : > { %v4432_v20 = vsel %vm4304_vm8, %v11209_v8, -1e+30  ;;  %v6748_v8 = vld [vmem:[%s6926_s16 + $0x280] sm:$0xff]  ;;  %vm4725_vm8 = vcmp.eq.s32.totalorder %v6749_v55, 1  ;;  %v9343_v37 = vadd.f32 %v9028_v18, %v9228_v24  ;;  %vm4726_vm12 = vcmp.eq.s32.totalorder %v6750_v4, 1 }
 0x296   : > { %v4557_v31 = vmax.f32 %v4432_v20, %v4558_v58  ;;  %vm4724_vm7 = vcmp.eq.s32.totalorder %v6748_v8, 1  ;;  %v4431_v59 = vsel %vm4303_vm11, %v11214_v46, -1e+30  ;;  %v9345_v20 = vpop.f32.mrf.mxu1  ;;  %v9349_v14 = vadd.f32 %v9028_v18, %v6491_v53  ;;  %v9354_v46 = vpop.permute.xlu0 %4904  ;;  %v6751_v58 = vld [vmem:[%s6926_s16 + $0x298] sm:$0xff]  ;;  %v11222_v8 = vld [vmem:[#allocation24_spill] sm:$0xff] }
 0x297   : > { %11215 = vst [vmem:[#allocation19_spill] sm:$0xff] %v9343_v37  ;;  %v9352_v26 = vadd.f32 %v9028_v18, %v2996_v62  ;;  %vm4727_vm11 = vcmp.eq.s32.totalorder %v6751_v58, 1  ;;  %v11218_v24 = vmax.f32 %v9268_v15, 0.0  ;;  %v9368_v53 = vsel %vm4723_vm5, 1, %v11059_v12  ;;  %5093 = vperm.xlu1 %6664, %v9180_v34   ;;  %v6756_v34 = vld [vmem:[%s6926_s16 + $0x2c0] sm:$0xff] }
 0x298   : > { %v4560_v27 = vmax.f32 %v4431_v59, %v4557_v31  ;;  %11216 = vst [vmem:[#allocation21_spill] sm:$0xff] %v9349_v14  ;;  %v9362_v59 = vpop.f32.mrf.mxu1  ;;  %v9372_v62 = vsel %vm4724_vm7, 1, %v11059_v12  ;;  %v9376_v19 = vsel %vm4725_vm8, 1, %v11059_v12  ;;  %v6753_v31 = vld [vmem:[%s6926_s16 + $0x2a8] sm:$0xff]  ;;  %v11219_v41 = vmax.f32 %v9293_v57, 0.0  ;;  %v9401_v4 = vpop.permute.xlu1 %4907  ;;  %5096 = vperm.xlu0 %6663, %v9184_v16  }
 0x299   : > { %11217 = vst [vmem:[#allocation22_spill] sm:$0xff] %v9352_v26  ;;  %v4434_v52 = vsel %vm4306_vm2, %v11218_v24, -1e+30  ;;  %v6752_v24 = vld [vmem:[%s6926_s16 + $0x2a0] sm:$0xff]  ;;  %vm4729_vm2 = vcmp.eq.s32.totalorder %v6753_v31, 1  ;;  %vm4312_vm1 = vcmp.eq.s32.totalorder %v11222_v8, 1  ;;  %v9431_v31 = vadd.f32 %v9028_v18, %v9322_v0 }
 0x29a   : > { %v4559_v15 = vmax.f32 %v4434_v52, %v4560_v27  ;;  %vm4728_vm0 = vcmp.eq.s32.totalorder %v6752_v24, 1  ;;  %v4433_v13 = vsel %vm4305_vm15, %v11219_v41, -1e+30  ;;  %v9385_v47 = vpop.f32.mrf.mxu1  ;;  %v9389_v27 = vsel %vm4726_vm12, 1, %v11059_v12  ;;  %v9403_v1 = vpop.permute.xlu0 %4910 }
 0x29b   : > { %11220 = vst [vmem:[#allocation120_spill] sm:$0xff] %v9389_v27  ;;  %v9393_v52 = vsel %vm4727_vm11, 1, %v11059_v12  ;;  %v9399_v41 = vadd.f32 %v9028_v18, %v6494_v2  ;;  %v11224_v58 = vmax.f32 %v9320_v3, 0.0  ;;  %v9419_v2 = vsel %vm4729_vm2, 1, %v11059_v12  ;;  %11229 = vst [vmem:[#allocation23_spill] sm:$0xff] %v9431_v31  ;;  %v6757_v3 = vld [vmem:[%s6926_s16 + $0x2c8] sm:$0xff]  ;;  %5099 = vperm.xlu1 %6664, %v9188_v39  }
 0x29c   : > { %11221 = vst [vmem:[#allocation121_spill] sm:$0xff] %v9393_v52  ;;  %v4562_v55 = vmax.f32 %v4433_v13, %v4559_v15  ;;  %v9409_v10 = vpop.f32.mrf.mxu1  ;;  %v9415_v15 = vsel %vm4728_vm0, 1, %v11059_v12  ;;  %11226 = vst [vmem:[#allocation123_spill] sm:$0xff] %v9419_v2  ;;  %v6754_v13 = vld [vmem:[%s6926_s16 + $0x2b0] sm:$0xff]  ;;  %vm4311_vm14 = vcmp.eq.s32.totalorder %v11227_v49, 1  ;;  %vm5284_vm15 = vcmp.eq.s32.totalorder %v4902_v42, 1  ;;  %5102 = vperm.xlu0 %6663, %v9209_v56  }
 0x29d   : > { %11223 = vst [vmem:[#allocation24_spill] sm:$0xff] %v9399_v41  ;;  %v4436_v63 = vsel %vm4308_vm4, %v11224_v58, -1e+30  ;;  %11225 = vst [vmem:[#allocation122_spill] sm:$0xff] %v9415_v15  ;;  %vm4730_vm13 = vcmp.eq.s32.totalorder %v6754_v13, 1  ;;  %v6755_v58 = vld [vmem:[%s6926_s16 + $0x2b8] sm:$0xff]  ;;  %v4914_v15 = vpop.permute.xlu1 %4913  ;;  %v9449_v27 = vadd.f32 %v9028_v18, %v9345_v20  ;;  %v9478_v56 = vadd.f32 %v9028_v18, %v9362_v59 }
 0x29e   : > { %v4561_v23 = vmax.f32 %v4436_v63, %v4562_v55  ;;  %vm4731_vm3 = vcmp.eq.s32.totalorder %v6755_v58, 1  ;;  %vm4732_vm4 = vcmp.eq.s32.totalorder %v6756_v34, 1  ;;  %v11228_v16 = vmax.f32 %v9343_v37, 0.0  ;;  %v9434_v57 = vpop.f32.mrf.mxu1  ;;  %v11230_v63 = vld [vmem:[#allocation26_spill] sm:$0xff]  ;;  %v4917_v52 = vpop.permute.xlu0 %4916  ;;  %v6759_v58 = vld [vmem:[%s6926_s16 + $0x2d8] sm:$0xff] }
 0x29f   : > { %vm5285_vm5 = vcmp.eq.s32.totalorder %v9354_v46, 1  ;;  %vm4733_vm7 = vcmp.eq.s32.totalorder %v6757_v3, 1  ;;  %vm4314_vm8 = vcmp.eq.s32.totalorder %v11230_v63, 1  ;;  %v11231_v2 = vmax.f32 %v9349_v14, 0.0  ;;  %11233 = vst [vmem:[#allocation26_spill] sm:$0xff] %v9449_v27  ;;  %11239 = vst [vmem:[#allocation25_spill] sm:$0xff] %v9478_v56  ;;  %5105 = vperm.xlu1 %6664, %v9213_v6  }
 0x2a0   : > { %v4435_v24 = vsel %vm4307_vm6, %v11228_v16, -1e+30  ;;  %v11232_v11 = vmax.f32 %v9352_v26, 0.0  ;;  %v10947_v16 = vmax.f32 %v9399_v41, 0.0  ;;  %vm5288_vm6 = vcmp.eq.s32.totalorder %v4914_v15, 1  ;;  %v9456_v36 = vpop.f32.mrf.mxu1  ;;  %v11240_v46 = vld [vmem:[#allocation28_spill] sm:$0xff]  ;;  %5108 = vperm.xlu0 %6663, %v9217_v21  }
 0x2a1   : > { %v4564_v55 = vmax.f32 %v4435_v24, %v4561_v23  ;;  %v4438_v37 = vsel %vm4310_vm10, %v11231_v2, -1e+30  ;;  %v11234_v23 = vmax.f32 %v8778_v54, 0.0  ;;  %vm5289_vm10 = vcmp.eq.s32.totalorder %v4917_v52, 1  ;;  %v11244_v3 = vld [vmem:[#allocation30_spill] sm:$0xff]  ;;  %v11247_v26 = vld [vmem:[#allocation29_spill] sm:$0xff] }
 0x2a2   : > { %v4437_v0 = vsel %vm4309_vm9, %v11232_v11, -1e+30  ;;  %vm4313_vm9 = vcmp.eq.s32.totalorder %v11235_v38, 1  ;;  %v11236_v20 = vmax.f32 %v8759_v5, 0.0  ;;  %v11237_v42 = vmax.f32 %v8866_v30, 0.0  ;;  %v6506_v30 = vpop.f32.mrf.mxu1 }
 0x2a3   : > { %v9454_v24 = vsel %vm5284_vm15, %v11234_v23, -1e+30  ;;  %v4563_v2 = vmax.f32 %v4438_v37, %v4564_v55  ;;  %v11238_v52 = vmax.f32 %v8843_v22, 0.0  ;;  %v10950_v39 = vmax.f32 %v9431_v31, 0.0  ;;  %v9485_v22 = vpop.permute.xlu1 %4919  ;;  %v9487_v23 = vpop.permute.xlu0 %4922  ;;  %v11242_v37 = vld [vmem:[#allocation27_spill] sm:$0xff]  ;;  %5111 = vperm.xlu1 %6664, %v9236_v61  }
 0x2a4   : > { %v9465_v54 = vsel %vm5285_vm5, %v11236_v20, -1e+30  ;;  %v9469_v15 = vsel %vm5288_vm6, %v11237_v42, -1e+30  ;;  %vm4316_vm12 = vcmp.eq.s32.totalorder %v11240_v46, 1  ;;  %v9491_v20 = vsel %vm4730_vm13, 1, %v11059_v12  ;;  %v9507_v13 = vpop.f32.mrf.mxu1  ;;  %5114 = vperm.xlu0 %6663, %v9257_v48  }
 0x2a5   : > { %v9473_v11 = vsel %vm5289_vm10, %v11238_v52, -1e+30  ;;  %v4566_v55 = vmax.f32 %v4437_v0, %v4563_v2  ;;  %v9495_v59 = vsel %vm4731_vm3, 1, %v11059_v12  ;;  %v6758_v42 = vld [vmem:[%s6926_s16 + $0x2d0] sm:$0xff]  ;;  %v4440_v0 = vsel %vm4312_vm1, %v10947_v16, -1e+30 }
 0x2a6   : > { %vm4734_vm11 = vcmp.eq.s32.totalorder %v6758_v42, 1  ;;  %v9505_v52 = vadd.f32 %v9028_v18, %v9385_v47  ;;  %vm4735_vm0 = vcmp.eq.s32.totalorder %v6759_v58, 1  ;;  %vm4315_vm2 = vcmp.eq.s32.totalorder %v11242_v37, 1  ;;  %v6760_v16 = vld [vmem:[%s6926_s16 + $0x2e0] sm:$0xff]  ;;  %v9531_v34 = vpop.f32.mrf.mxu1  ;;  %v6763_v58 = vld [vmem:[%s6926_s16 + $0x2f8] sm:$0xff] }
 0x2a7   : > { %v4565_v5 = vmax.f32 %v4440_v0, %v4566_v55  ;;  %v9515_v8 = vsel %vm4732_vm4, 1, %v11059_v12  ;;  %v9519_v47 = vsel %vm4733_vm7, 1, %v11059_v12  ;;  %vm4736_vm1 = vcmp.eq.s32.totalorder %v6760_v16, 1  ;;  %v6761_v0 = vld [vmem:[%s6926_s16 + $0x2e8] sm:$0xff]  ;;  %v9535_v41 = vpop.permute.xlu1 %4925  ;;  %v9537_v31 = vpop.permute.xlu0 %4928  ;;  %5117 = vperm.xlu1 %6664, %v9276_v9   ;;  %v6767_v46 = vld [vmem:[%s6926_s16 + $0x318] sm:$0xff] }
 0x2a8   : > { %11241 = vst [vmem:[#allocation28_spill] sm:$0xff] %v9505_v52  ;;  %v4439_v6 = vsel %vm4311_vm14, %v10950_v39, -1e+30  ;;  %v9529_v55 = vadd.f32 %v9028_v18, %v9409_v10  ;;  %vm4737_vm13 = vcmp.eq.s32.totalorder %v6761_v0, 1  ;;  %vm4318_vm15 = vcmp.eq.s32.totalorder %v11244_v3, 1  ;;  %v6762_v39 = vld [vmem:[%s6926_s16 + $0x2f0] sm:$0xff]  ;;  %v9557_v42 = vpop.f32.mrf.mxu1  ;;  %5120 = vperm.xlu0 %6663, %v9280_v44  }
 0x2a9   : > { %v4568_v2 = vmax.f32 %v4439_v6, %v4565_v5  ;;  %v9541_v49 = vsel %vm4734_vm11, 1, %v11059_v12  ;;  %v9545_v10 = vsel %vm4735_vm0, 1, %v11059_v12  ;;  %vm4738_vm14 = vcmp.eq.s32.totalorder %v6762_v39, 1  ;;  %v11250_v6 = vld [vmem:[#allocation32_spill] sm:$0xff] }
 0x2aa   : > { %11243 = vst [vmem:[#allocation27_spill] sm:$0xff] %v9529_v55  ;;  %v11245_v21 = vmax.f32 %v9449_v27, 0.0  ;;  %v9555_v14 = vadd.f32 %v9028_v18, %v9434_v57  ;;  %vm4739_vm3 = vcmp.eq.s32.totalorder %v6763_v58, 1  ;;  %vm4317_vm4 = vcmp.eq.s32.totalorder %v11247_v26, 1 }
 0x2ab   : > { %v9565_v63 = vsel %vm4736_vm1, 1, %v11059_v12  ;;  %v9569_v57 = vsel %vm4737_vm13, 1, %v11059_v12  ;;  %vm4320_vm7 = vcmp.eq.s32.totalorder %v11250_v6, 1  ;;  %v11251_v61 = vmax.f32 %v9478_v56, 0.0  ;;  %v9589_v56 = vpop.permute.xlu1 %4931  ;;  %v9591_v38 = vpop.permute.xlu0 %4934  ;;  %5123 = vperm.xlu1 %6664, %v9284_v7  }
 0x2ac   : > { %v4442_v5 = vsel %vm4314_vm8, %v11245_v21, -1e+30  ;;  %11246 = vst [vmem:[#allocation30_spill] sm:$0xff] %v9555_v14  ;;  %11248 = vst [vmem:[#allocation29_spill] sm:$0xff] %v9565_v63  ;;  %v6764_v21 = vld [vmem:[%s6926_s16 + $0x300] sm:$0xff]  ;;  %v9580_v16 = vadd.f32 %v9028_v18, %v9456_v36  ;;  %v9584_v0 = vsel %vm4738_vm14, 1, %v11059_v12  ;;  %v9587_v63 = vadd.f32 %v9028_v18, %v6506_v30  ;;  %5126 = vperm.xlu0 %6663, %v9303_v28  }
 0x2ad   : > { %v4567_v27 = vmax.f32 %v4442_v5, %v4568_v2  ;;  %11249 = vst [vmem:[#allocation124_spill] sm:$0xff] %v9569_v57  ;;  %vm4740_vm5 = vcmp.eq.s32.totalorder %v6764_v21, 1  ;;  %v4441_v48 = vsel %vm4313_vm9, %v11251_v61, -1e+30  ;;  %v6512_v5 = vpop.f32.mrf.mxu1  ;;  %11252 = vst [vmem:[#allocation32_spill] sm:$0xff] %v9584_v0  ;;  %v9595_v61 = vsel %vm4739_vm3, 1, %v11059_v12 }
 0x2ae   : > { %11253 = vst [vmem:[#allocation125_spill] sm:$0xff] %v9595_v61  ;;  %v6765_v36 = vld [vmem:[%s6926_s16 + $0x308] sm:$0xff]  ;;  %v11254_v2 = vmax.f32 %v9505_v52, 0.0  ;;  %v9607_v58 = vsel %vm4740_vm5, 1, %v11059_v12  ;;  %v11256_v61 = vld [vmem:[#allocation31_spill] sm:$0xff]  ;;  %vm5286_vm9 = vcmp.eq.s32.totalorder %v9401_v4, 1  ;;  %v9622_v21 = vadd.f32 %v9028_v18, %v9507_v13 }
 0x2af   : > { %v4570_v57 = vmax.f32 %v4441_v48, %v4567_v27  ;;  %vm4741_vm8 = vcmp.eq.s32.totalorder %v6765_v36, 1  ;;  %v3066_v30 = vpop.f32.mrf.mxu1  ;;  %11255 = vst [vmem:[#allocation126_spill] sm:$0xff] %v9607_v58  ;;  %v6766_v48 = vld [vmem:[%s6926_s16 + $0x310] sm:$0xff]  ;;  %vm4319_vm10 = vcmp.eq.s32.totalorder %v11256_v61, 1  ;;  %vm4743_vm11 = vcmp.eq.s32.totalorder %v6767_v46, 1  ;;  %v9626_v58 = vpop.permute.xlu1 %4937  ;;  %v11266_v4 = vld [vmem:[#allocation36_spill] sm:$0xff]  ;;  %5129 = vperm.xlu1 %6664, %v9307_v33  }
 0x2b0   : > { %v4444_v39 = vsel %vm4316_vm12, %v11254_v2, -1e+30  ;;  %vm4742_vm6 = vcmp.eq.s32.totalorder %v6766_v48, 1  ;;  %vm5287_vm12 = vcmp.eq.s32.totalorder %v9403_v1, 1  ;;  %v11257_v2 = vmax.f32 %v9529_v55, 0.0  ;;  %v9628_v55 = vpop.permute.xlu0 %4940  ;;  %v11261_v48 = vld [vmem:[#allocation33_spill] sm:$0xff]  ;;  %5132 = vperm.xlu0 %6663, %v9311_v50  }
 0x2b1   : > { %v4569_v0 = vmax.f32 %v4444_v39, %v4570_v57  ;;  %vm5290_vm0 = vcmp.eq.s32.totalorder %v9485_v22, 1  ;;  %v6515_v57 = vpop.f32.mrf.mxu1  ;;  %v11258_v39 = vld [vmem:[#allocation34_spill] sm:$0xff]  ;;  %v9632_v37 = vsel %vm4741_vm8, 1, %v11059_v12  ;;  %v11259_v13 = vmax.f32 %v9555_v14, 0.0 }
 0x2b2   : > { %v4443_v9 = vsel %vm4315_vm2, %v11257_v2, -1e+30  ;;  %vm4322_vm1 = vcmp.eq.s32.totalorder %v11258_v39, 1  ;;  %v9636_v2 = vsel %vm4742_vm6, 1, %v11059_v12  ;;  %vm5291_vm2 = vcmp.eq.s32.totalorder %v9487_v23, 1 }
 0x2b3   : > { %v4572_v27 = vmax.f32 %v4443_v9, %v4569_v0  ;;  %v4446_v44 = vsel %vm4318_vm15, %v11259_v13, -1e+30  ;;  %v9645_v0 = vadd.f32 %v9028_v18, %v9531_v34  ;;  %v3076_v9 = vpop.f32.mrf.mxu1  ;;  %v9651_v36 = vsel %vm4743_vm11, 1, %v11059_v12  ;;  %5135 = vperm.xlu1 %6664, %v9330_v43  }
 0x2b4   : > { %11260 = vst [vmem:[#allocation31_spill] sm:$0xff] %v9651_v36  ;;  %vm4321_vm13 = vcmp.eq.s32.totalorder %v11261_v48, 1  ;;  %v11262_v3 = vmax.f32 %v8820_v17, 0.0  ;;  %v11263_v52 = vmax.f32 %v8797_v51, 0.0  ;;  %v11264_v7 = vmax.f32 %v8445_v25, 0.0  ;;  %5138 = vperm.xlu0 %6663, %v9368_v53  }
 0x2b5   : > { %v4571_v14 = vmax.f32 %v4446_v44, %v4572_v27  ;;  %v11265_v46 = vmax.f32 %v9580_v16, 0.0  ;;  %v10990_v17 = vmax.f32 %v9622_v21, 0.0  ;;  %vm5292_vm15 = vcmp.eq.s32.totalorder %v9535_v41, 1  ;;  %v6518_v1 = vpop.f32.mrf.mxu1  ;;  %v9686_v44 = vpop.permute.xlu1 %4943 }
 0x2b6   : > { %v5414_v13 = vsel %vm5286_vm9, %v11262_v3, -1e+30  ;;  %v5415_v34 = vsel %vm5287_vm12, %v11263_v52, -1e+30  ;;  %v5418_v28 = vsel %vm5290_vm0, %v11264_v7, -1e+30  ;;  %v9674_v51 = vadd.f32 %v9028_v18, %v9557_v42  ;;  %v9688_v42 = vpop.permute.xlu0 %4946 }
 0x2b7   : > { %v4445_v36 = vsel %vm4317_vm4, %v11265_v46, -1e+30  ;;  %vm4324_vm14 = vcmp.eq.s32.totalorder %v11266_v4, 1  ;;  %v11267_v22 = vmax.f32 %v9587_v63, 0.0  ;;  %v11268_v26 = vmax.f32 %v8431_v45, 0.0  ;;  %v11269_v3 = vld [vmem:[#allocation35_spill] sm:$0xff]  ;;  %v3086_v45 = vpop.f32.mrf.mxu1  ;;  %5141 = vperm.xlu1 %6664, %v9372_v62  }
 0x2b8   : > { %v4574_v25 = vmax.f32 %v4445_v36, %v4571_v14  ;;  %vm5293_vm3 = vcmp.eq.s32.totalorder %v9537_v31, 1  ;;  %vm4323_vm4 = vcmp.eq.s32.totalorder %v11269_v3, 1  ;;  %v9693_v36 = vadd.f32 %v9028_v18, %v6512_v5  ;;  %v11271_v5 = vld [vmem:[#allocation38_spill] sm:$0xff]  ;;  %v11272_v14 = vld [vmem:[#allocation43_spill] sm:$0xff]  ;;  %5144 = vperm.xlu0 %6663, %v9376_v19  }
 0x2b9   : > { %v4448_v52 = vsel %vm4320_vm7, %v11267_v22, -1e+30  ;;  %v5419_v27 = vsel %vm5291_vm2, %v11268_v26, -1e+30  ;;  %vm5294_vm5 = vcmp.eq.s32.totalorder %v9589_v56, 1  ;;  %vm5295_vm7 = vcmp.eq.s32.totalorder %v9591_v38, 1  ;;  %v6521_v41 = vpop.f32.mrf.mxu1 }
 0x2ba   : > { %v4573_v23 = vmax.f32 %v4448_v52, %v4574_v25  ;;  %v5542_v6 = vmax.f32 %v5414_v13, %v5418_v28  ;;  %v11270_v7 = vmax.f32 %v8483_v32, 0.0  ;;  %v9704_v22 = vadd.f32 %v9028_v18, %v3066_v30  ;;  %v9729_v31 = vpop.permute.xlu0 %4952 }
 0x2bb   : > { %vm4326_vm8 = vcmp.eq.s32.totalorder %v11271_v5, 1  ;;  %v5543_v26 = vmax.f32 %v5415_v34, %v5419_v27  ;;  %v4447_v33 = vsel %vm4319_vm10, %v10990_v17, -1e+30  ;;  %v11273_v50 = vmax.f32 %v11272_v14, 0.0  ;;  %v11275_v34 = vld [vmem:[#allocation44_spill] sm:$0xff]  ;;  %v9727_v14 = vpop.permute.xlu1 %4949 }
 0x2bc   : > { %v5420_v46 = vsel %vm5292_vm15, %v11270_v7, -1e+30  ;;  %v10965_v32 = vmax.f32 %v9674_v51, 0.0  ;;  %v4576_v28 = vmax.f32 %v4447_v33, %v4573_v23  ;;  %v11274_v30 = vmax.f32 %v8514_v60, 0.0  ;;  %v11277_v7 = vld [vmem:[#allocation37_spill] sm:$0xff]  ;;  %v11290_v5 = vld [vmem:[#allocation120_spill] sm:$0xff] }
 0x2bd   : > { %v5421_v13 = vsel %vm5293_vm3, %v11273_v50, -1e+30  ;;  %v11276_v52 = vmax.f32 %v11275_v34, 0.0  ;;  %v9725_v27 = vadd.f32 %v9028_v18, %v6515_v57  ;;  %vm4325_vm6 = vcmp.eq.s32.totalorder %v11277_v7, 1  ;;  %v3096_v57 = vpop.f32.mrf.mxu1  ;;  %v11281_v34 = vld [vmem:[#allocation39_spill] sm:$0xff]  ;;  %5147 = vperm.xlu1 %6664, %v11290_v5  }
 0x2be   : > { %v5422_v25 = vsel %vm5294_vm5, %v11274_v30, -1e+30  ;;  %v11278_v23 = vmax.f32 %v9645_v0, 0.0  ;;  %v11279_v56 = vmax.f32 %v9454_v24, %v9469_v15  ;;  %v10961_v38 = vmax.f32 %v9693_v36, 0.0 }
 0x2bf   : > { %v5423_v61 = vsel %vm5295_vm7, %v11276_v52, -1e+30  ;;  %vm5296_vm10 = vcmp.eq.s32.totalorder %v9626_v58, 1  ;;  %v10964_v30 = vmax.f32 %v9704_v22, 0.0  ;;  %vm5297_vm9 = vcmp.eq.s32.totalorder %v9628_v55, 1  ;;  %v11282_v52 = vld [vmem:[#allocation40_spill] sm:$0xff]  ;;  %v4956_v48 = vpop.permute.xlu1 %4955 }
 0x2c0   : > { %v4450_v60 = vsel %vm4322_vm1, %v11278_v23, -1e+30  ;;  %v9739_v33 = vmax.f32 %v11279_v56, %v5420_v46  ;;  %v9748_v39 = vadd.f32 %v9028_v18, %v3076_v9  ;;  %v11280_v24 = vmax.f32 %v9465_v54, %v9473_v11  ;;  %v11286_v56 = vld [vmem:[#allocation42_spill] sm:$0xff] }
 0x2c1   : > { %v4575_v50 = vmax.f32 %v4450_v60, %v4576_v28  ;;  %v4449_v43 = vsel %vm4321_vm13, %v10965_v32, -1e+30  ;;  %v9759_v46 = vmax.f32 %v5542_v6, %v5422_v25  ;;  %v9761_v53 = vmax.f32 %v5543_v26, %v5423_v61  ;;  %v6524_v28 = vpop.f32.mrf.mxu1  ;;  %v9771_v6 = vpop.permute.xlu0 %4958 }
 0x2c2   : > { %v9753_v15 = vmax.f32 %v11280_v24, %v5421_v13  ;;  %vm4327_vm12 = vcmp.eq.s32.totalorder %v11281_v34, 1  ;;  %vm4328_vm11 = vcmp.eq.s32.totalorder %v11282_v52, 1  ;;  %v10958_v23 = vmax.f32 %v9725_v27, 0.0  ;;  %v11284_v13 = vld [vmem:[#allocation47_spill] sm:$0xff]  ;;  %v11303_v34 = vld [vmem:[#allocation48_spill] sm:$0xff] }
 0x2c3   : > { %v4578_v9 = vmax.f32 %v4449_v43, %v4575_v50  ;;  %v11283_v54 = vmax.f32 %v8544_v40, 0.0  ;;  %vm5298_vm0 = vcmp.eq.s32.totalorder %v9686_v44, 1  ;;  %v4452_v26 = vsel %vm4324_vm14, %v10961_v38, -1e+30  ;;  %v3106_v60 = vpop.f32.mrf.mxu1  ;;  %v11288_v43 = vld [vmem:[#allocation41_spill] sm:$0xff]  ;;  %v11301_v52 = vld [vmem:[#allocation59_spill] sm:$0xff] }
 0x2c4   : > { %v11285_v25 = vmax.f32 %v11284_v13, 0.0  ;;  %v9782_v40 = vadd.f32 %v9028_v18, %v6518_v1  ;;  %v9785_v58 = vadd.f32 %v9028_v18, %v3086_v45  ;;  %vm4330_vm1 = vcmp.eq.s32.totalorder %v11286_v56, 1 }
 0x2c5   : > { %v5424_v11 = vsel %vm5296_vm10, %v11283_v54, -1e+30  ;;  %v4577_v4 = vmax.f32 %v4452_v26, %v4578_v9  ;;  %v4451_v55 = vsel %vm4323_vm4, %v10964_v30, -1e+30  ;;  %v10959_v50 = vmax.f32 %v9748_v39, 0.0  ;;  %v6527_v24 = vpop.f32.mrf.mxu1  ;;  %v9812_v44 = vpop.permute.xlu0 %4964 }
 0x2c6   : > { %v5425_v61 = vsel %vm5297_vm9, %v11285_v25, -1e+30  ;;  %vm5299_vm2 = vcmp.eq.s32.totalorder %v9688_v42, 1  ;;  %v5548_v1 = vmax.f32 %v9739_v33, %v5424_v11  ;;  %v11287_v45 = vmax.f32 %v8569_v35, 0.0  ;;  %v4962_v35 = vpop.permute.xlu1 %4961  ;;  %v11291_v25 = vld [vmem:[#allocation121_spill] sm:$0xff] }
 0x2c7   : > { %v9802_v19 = vadd.f32 %v9028_v18, %v6521_v41  ;;  %vm5300_vm13 = vcmp.eq.s32.totalorder %v9727_v14, 1  ;;  %vm4329_vm15 = vcmp.eq.s32.totalorder %v11288_v43, 1  ;;  %v4580_v3 = vmax.f32 %v4451_v55, %v4577_v4  ;;  %v3116_v13 = vpop.f32.mrf.mxu1  ;;  %5150 = vperm.xlu0 %6663, %v11291_v25   ;;  %v11293_v55 = vld [vmem:[#allocation55_spill] sm:$0xff]  ;;  %v11296_v25 = vld [vmem:[#allocation54_spill] sm:$0xff] }
 0x2c8   : > { %v5426_v62 = vsel %vm5298_vm0, %v11287_v45, -1e+30  ;;  %v4454_v42 = vsel %vm4326_vm8, %v10958_v23, -1e+30  ;;  %v5549_v33 = vmax.f32 %v9753_v15, %v5425_v61  ;;  %vm5301_vm14 = vcmp.eq.s32.totalorder %v9729_v31, 1  ;;  %v11292_v15 = vld [vmem:[#allocation46_spill] sm:$0xff] }
 0x2c9   : > { %v10960_v41 = vmax.f32 %v9782_v40, 0.0  ;;  %v11289_v9 = vmax.f32 %v8563_v29, 0.0  ;;  %v10963_v11 = vmax.f32 %v9785_v58, 0.0  ;;  %v9819_v26 = vadd.f32 %v9028_v18, %v3096_v57  ;;  %v6530_v7 = vpop.f32.mrf.mxu1 }
 0x2ca   : > { %vm4332_vm3 = vcmp.eq.s32.totalorder %v11292_v15, 1  ;;  %v4579_v61 = vmax.f32 %v4454_v42, %v4580_v3  ;;  %v4453_v4 = vsel %vm4325_vm6, %v10959_v50, -1e+30  ;;  %v5550_v29 = vmax.f32 %v9759_v46, %v5426_v62 }
 0x2cb   : > { %v5427_v54 = vsel %vm5299_vm2, %v11289_v9, -1e+30  ;;  %v11294_v45 = vmax.f32 %v11293_v55, 0.0  ;;  %v11295_v9 = vld [vmem:[#allocation45_spill] sm:$0xff]  ;;  %v10962_v5 = vmax.f32 %v9802_v19, 0.0  ;;  %v11297_v23 = vmax.f32 %v11296_v25, 0.0  ;;  %v4968_v55 = vpop.permute.xlu1 %4967 }
 0x2cc   : > { %vm4331_vm4 = vcmp.eq.s32.totalorder %v11295_v9, 1  ;;  %v9840_v42 = vadd.f32 %v9028_v18, %v6524_v28  ;;  %vm5302_vm5 = vcmp.eq.s32.totalorder %v4956_v48, 1  ;;  %v4582_v46 = vmax.f32 %v4453_v4, %v4579_v61  ;;  %v11298_v61 = vld [vmem:[#allocation122_spill] sm:$0xff]  ;;  %v11300_v4 = vld [vmem:[#allocation49_spill] sm:$0xff] }
 0x2cd   : > { %v5428_v57 = vsel %vm5300_vm13, %v11294_v45, -1e+30  ;;  %v5429_v3 = vsel %vm5301_vm14, %v11297_v23, -1e+30  ;;  %v5551_v62 = vmax.f32 %v9761_v53, %v5427_v54  ;;  %vm5303_vm7 = vcmp.eq.s32.totalorder %v9771_v6, 1  ;;  %v4971_v45 = vpop.permute.xlu0 %4970  ;;  %v3126_v54 = vpop.f32.mrf.mxu1  ;;  %5153 = vperm.xlu1 %6664, %v11298_v61   ;;  %v11304_v61 = vld [vmem:[#allocation56_spill] sm:$0xff] }
 0x2ce   : > { %v9845_v14 = vadd.f32 %v9028_v18, %v3106_v60  ;;  %v4456_v31 = vsel %vm4328_vm11, %v10960_v41, -1e+30  ;;  %v4455_v28 = vsel %vm4327_vm12, %v10963_v11, -1e+30  ;;  %v9855_v23 = vmax.f32 %v5548_v1, %v5428_v57  ;;  %v11299_v60 = vld [vmem:[#allocation123_spill] sm:$0xff] }
 0x2cf   : > { %v10988_v53 = vmax.f32 %v9819_v26, 0.0  ;;  %5156 = vperm.xlu0 %6663, %v11299_v60   ;;  %vm4334_vm8 = vcmp.eq.s32.totalorder %v11300_v4, 1  ;;  %v4581_v25 = vmax.f32 %v4456_v31, %v4582_v46  ;;  %v9861_v50 = vmax.f32 %v5549_v33, %v5429_v3  ;;  %v6533_v48 = vpop.f32.mrf.mxu1 }
 0x2d0   : > { %v11302_v41 = vmax.f32 %v11301_v52, 0.0  ;;  %vm5304_vm6 = vcmp.eq.s32.totalorder %v4962_v35, 1  ;;  %vm4333_vm10 = vcmp.eq.s32.totalorder %v11303_v34, 1  ;;  %v4458_v1 = vsel %vm4330_vm1, %v10962_v5, -1e+30  ;;  %v4974_v52 = vpop.permute.xlu1 %4973  ;;  %v11310_v35 = vld [vmem:[#allocation62_spill] sm:$0xff] }
 0x2d1   : > { %v10970_v57 = vmax.f32 %v9840_v42, 0.0  ;;  %v11305_v60 = vmax.f32 %v11304_v61, 0.0  ;;  %v9877_v3 = vadd.f32 %v9028_v18, %v6527_v24  ;;  %v4584_v46 = vmax.f32 %v4455_v28, %v4581_v25  ;;  %v4977_v5 = vpop.permute.xlu0 %4976  ;;  %v11307_v61 = vld [vmem:[#allocation63_spill] sm:$0xff]  ;;  %v3136_v11 = vpop.f32.mrf.mxu1  ;;  %5159 = vperm.xlu1 %6664, %v9491_v20   ;;  %v11321_v34 = vld [vmem:[#allocation74_spill] sm:$0xff] }
 0x2d2   : > { %v5430_v38 = vsel %vm5302_vm5, %v11302_v41, -1e+30  ;;  %v11306_v41 = vld [vmem:[#allocation51_spill] sm:$0xff]  ;;  %v10971_v31 = vmax.f32 %v9845_v14, 0.0  ;;  %vm5305_vm12 = vcmp.eq.s32.totalorder %v9812_v44, 1  ;;  %v9883_v56 = vadd.f32 %v9028_v18, %v3116_v13  ;;  %v11309_v13 = vld [vmem:[#allocation50_spill] sm:$0xff] }
 0x2d3   : > { %v5431_v33 = vsel %vm5303_vm7, %v11305_v60, -1e+30  ;;  %vm4336_vm9 = vcmp.eq.s32.totalorder %v11306_v41, 1  ;;  %v4457_v6 = vsel %vm4329_vm15, %v10988_v53, -1e+30  ;;  %v9889_v24 = vmax.f32 %v5550_v29, %v5430_v38  ;;  %5162 = vperm.xlu0 %6663, %v9495_v59   ;;  %v11323_v41 = vld [vmem:[#allocation52_spill] sm:$0xff] }
 0x2d4   : > { %v11308_v60 = vmax.f32 %v11307_v61, 0.0  ;;  %v9895_v25 = vadd.f32 %v9028_v18, %v6530_v7  ;;  %vm4335_vm11 = vcmp.eq.s32.totalorder %v11309_v13, 1  ;;  %v4583_v30 = vmax.f32 %v4458_v1, %v4584_v46  ;;  %v6536_v7 = vpop.f32.mrf.mxu1  ;;  %v4980_v1 = vpop.permute.xlu1 %4979  ;;  %v11312_v46 = vld [vmem:[#allocation67_spill] sm:$0xff] }
 0x2d5   : > { %v5555_v32 = vmax.f32 %v5551_v62, %v5431_v33  ;;  %vm5306_vm0 = vcmp.eq.s32.totalorder %v4968_v55, 1  ;;  %vm5307_vm1 = vcmp.eq.s32.totalorder %v4971_v45, 1  ;;  %v4460_v38 = vsel %vm4332_vm3, %v10970_v57, -1e+30  ;;  %v4983_v33 = vpop.permute.xlu0 %4982  ;;  %5165 = vperm.xlu1 %6664, %v9515_v8  }
 0x2d6   : > { %v5432_v28 = vsel %vm5304_vm6, %v11308_v60, -1e+30  ;;  %v10966_v43 = vmax.f32 %v9877_v3, 0.0  ;;  %v11311_v29 = vmax.f32 %v11310_v35, 0.0  ;;  %v9912_v59 = vadd.f32 %v9028_v18, %v3126_v54  ;;  %v11314_v54 = vld [vmem:[#allocation66_spill] sm:$0xff] }
 0x2d7   : > { %v4586_v62 = vmax.f32 %v4457_v6, %v4583_v30  ;;  %v4459_v55 = vsel %vm4331_vm4, %v10971_v31, -1e+30  ;;  %v5556_v15 = vmax.f32 %v9855_v23, %v5432_v28  ;;  %v10967_v45 = vmax.f32 %v9883_v56, 0.0  ;;  %v3146_v30 = vpop.f32.mrf.mxu1  ;;  %5168 = vperm.xlu0 %6663, %v9519_v47   ;;  %v11316_v6 = vld [vmem:[#allocation53_spill] sm:$0xff] }
 0x2d8   : > { %v9909_v20 = vsel %vm5305_vm12, %v11311_v29, -1e+30  ;;  %v10968_v44 = vmax.f32 %v9895_v25, 0.0  ;;  %v11313_v61 = vmax.f32 %v11312_v46, 0.0  ;;  %v11315_v35 = vmax.f32 %v11314_v54, 0.0  ;;  %v4986_v54 = vpop.permute.xlu1 %4985 }
 0x2d9   : > { %vm5308_vm2 = vcmp.eq.s32.totalorder %v4974_v52, 1  ;;  %v4585_v9 = vmax.f32 %v4460_v38, %v4586_v62  ;;  %v9928_v23 = vadd.f32 %v9028_v18, %v6533_v48  ;;  %vm5310_vm13 = vcmp.eq.s32.totalorder %v4980_v1, 1  ;;  %v6539_v47 = vpop.f32.mrf.mxu1  ;;  %v11317_v62 = vld [vmem:[#allocation71_spill] sm:$0xff]  ;;  %5171 = vperm.xlu1 %6664, %v9541_v49   ;;  %v9959_v52 = vld [vmem:[%s6926_s16 + $0x320] sm:$0xff] }
 0x2da   : > { %v5434_v60 = vsel %vm5306_vm0, %v11313_v61, -1e+30  ;;  %v5435_v29 = vsel %vm5307_vm1, %v11315_v35, -1e+30  ;;  %vm5311_vm15 = vcmp.eq.s32.totalorder %v4983_v33, 1  ;;  %vm4338_vm14 = vcmp.eq.s32.totalorder %v11316_v6, 1  ;;  %v4989_v35 = vpop.permute.xlu0 %4988 }
 0x2db   : > { %v4462_v28 = vsel %vm4334_vm8, %v10966_v43, -1e+30  ;;  %v5557_v46 = vmax.f32 %v9861_v50, %v9909_v20  ;;  %v10969_v8 = vmax.f32 %v9912_v59, 0.0  ;;  %vm5309_vm3 = vcmp.eq.s32.totalorder %v4977_v5, 1  ;;  %5174 = vperm.xlu0 %6663, %v9545_v10   ;;  %v11324_v1 = vld [vmem:[#allocation68_spill] sm:$0xff] }
 0x2dc   : > { %v4588_v38 = vmax.f32 %v4459_v55, %v4585_v9  ;;  %v4461_v18 = vsel %vm4333_vm10, %v10967_v45, -1e+30  ;;  %v5558_v48 = vmax.f32 %v9889_v24, %v5434_v60  ;;  %v11318_v61 = vmax.f32 %v11317_v62, 0.0  ;;  %v11319_v55 = vld [vmem:[#allocation75_spill] sm:$0xff]  ;;  %v3156_v60 = vpop.f32.mrf.mxu1 }
 0x2dd   : > { %v4464_v50 = vsel %vm4336_vm9, %v10968_v44, -1e+30  ;;  %v5559_v20 = vmax.f32 %v5555_v32, %v5435_v29  ;;  %v11320_v9 = vmax.f32 %v11319_v55, 0.0  ;;  %v11322_v45 = vmax.f32 %v11321_v34, 0.0  ;;  %v11327_v55 = vld [vmem:[#allocation57_spill] sm:$0xff] }
 0x2de   : > { %v5436_v4 = vsel %vm5308_vm2, %v11318_v61, -1e+30  ;;  %vm4744_vm4 = vcmp.eq.s32.totalorder %v9959_v52, 1  ;;  %vm4337_vm5 = vcmp.eq.s32.totalorder %v11323_v41, 1  ;;  %v4587_v32 = vmax.f32 %v4462_v28, %v4588_v38  ;;  %v11326_v28 = vld [vmem:[#allocation58_spill] sm:$0xff]  ;;  %v6770_v41 = vld [vmem:[%s6926_s16 + $0x328] sm:$0xff] }
 0x2df   : > { %v5438_v43 = vsel %vm5310_vm13, %v11320_v9, -1e+30  ;;  %v5439_v24 = vsel %vm5311_vm15, %v11322_v45, -1e+30  ;;  %v10983_v29 = vmax.f32 %v9928_v23, 0.0  ;;  %v11325_v62 = vmax.f32 %v11324_v1, 0.0 }
 0x2e0   : > { %vm5312_vm7 = vcmp.eq.s32.totalorder %v4986_v54, 1  ;;  %v4463_v49 = vsel %vm4335_vm11, %v10969_v8, -1e+30  ;;  %v5560_v10 = vmax.f32 %v5556_v15, %v5436_v4  ;;  %v9974_v45 = vld [vmem:[%s10818_s6] ss:$0 sm:$0xff]  ;;  %vm5313_vm8 = vcmp.eq.s32.totalorder %v4989_v35, 1  ;;  %v4992_v15 = vpop.permute.xlu1 %4991  ;;  %v4995_v4 = vpop.permute.xlu0 %4994 }
 0x2e1   : > { %v5437_v61 = vsel %vm5309_vm3, %v11325_v62, -1e+30  ;;  %v9977_v33 = vadd.f32 %v9974_v45, %v3136_v11  ;;  %vm4340_vm6 = vcmp.eq.s32.totalorder %v11326_v28, 1  ;;  %v4590_v5 = vmax.f32 %v4461_v18, %v4587_v32  ;;  %v11328_v11 = vld [vmem:[#allocation79_spill] sm:$0xff]  ;;  %v6542_v62 = vpop.f32.mrf.mxu1  ;;  %v11330_v18 = vld [vmem:[#allocation29_spill] sm:$0xff]  ;;  %v11348_v52 = vld [vmem:[#allocation64_spill] sm:$0xff] }
 0x2e2   : > { %v9981_v38 = vadd.f32 %v9974_v45, %v6536_v7  ;;  %v9983_v54 = vmax.f32 %v5558_v48, %v5438_v43  ;;  %v9985_v13 = vmax.f32 %v5559_v20, %v5439_v24  ;;  %vm4339_vm10 = vcmp.eq.s32.totalorder %v11327_v55, 1  ;;  %5177 = vperm.xlu1 %6664, %v11330_v18   ;;  %v11331_v7 = vld [vmem:[#allocation124_spill] sm:$0xff]  ;;  %v11332_v48 = vld [vmem:[#allocation78_spill] sm:$0xff]  ;;  %v11334_v32 = vld [vmem:[#allocation85_spill] sm:$0xff] }
 0x2e3   : > { %v9989_v9 = vadd.f32 %v9974_v45, %v3146_v30  ;;  %v11329_v34 = vmax.f32 %v11328_v11, 0.0  ;;  %vm5314_vm9 = vcmp.eq.s32.totalorder %v4992_v15, 1  ;;  %vm5315_vm12 = vcmp.eq.s32.totalorder %v4995_v4, 1  ;;  %5180 = vperm.xlu0 %6663, %v11331_v7   ;;  %v11336_v30 = vld [vmem:[#allocation82_spill] sm:$0xff]  ;;  %v11338_v11 = vld [vmem:[#allocation61_spill] sm:$0xff] }
 0x2e4   : > { %v4589_v43 = vmax.f32 %v4464_v50, %v4590_v5  ;;  %v11333_v20 = vmax.f32 %v11332_v48, 0.0  ;;  %v11335_v44 = vmax.f32 %v11334_v32, 0.0  ;;  %v11337_v57 = vmax.f32 %v11336_v30, 0.0  ;;  %v5001_v7 = vpop.permute.xlu0 %5000  ;;  %v3166_v48 = vpop.f32.mrf.mxu1 }
 0x2e5   : > { %v5440_v1 = vsel %vm5312_vm7, %v11329_v34, -1e+30  ;;  %vm4342_vm11 = vcmp.eq.s32.totalorder %v11338_v11, 1  ;;  %v5561_v34 = vmax.f32 %v5557_v46, %v5437_v61  ;;  %v10986_v15 = vmax.f32 %v9977_v33, 0.0 }
 0x2e6   : > { %v5441_v24 = vsel %vm5313_vm8, %v11333_v20, -1e+30  ;;  %v5442_v8 = vsel %vm5314_vm9, %v11335_v44, -1e+30  ;;  %v5443_v31 = vsel %vm5315_vm12, %v11337_v57, -1e+30  ;;  %v4592_v50 = vmax.f32 %v4463_v49, %v4589_v43  ;;  %v4998_v57 = vpop.permute.xlu1 %4997 }
 0x2e7   : > { %v5566_v4 = vmax.f32 %v9983_v54, %v5442_v8  ;;  %v5567_v18 = vmax.f32 %v9985_v13, %v5443_v31  ;;  %v4466_v35 = vsel %vm4338_vm14, %v10983_v29, -1e+30  ;;  %v10973_v44 = vmax.f32 %v9981_v38, 0.0  ;;  %v11339_v8 = vld [vmem:[#allocation32_spill] sm:$0xff]  ;;  %v11340_v31 = vld [vmem:[#allocation125_spill] sm:$0xff]  ;;  %v11342_v13 = vld [vmem:[#allocation91_spill] sm:$0xff] }
 0x2e8   : > { %v10012_v5 = vadd.f32 %v9974_v45, %v6539_v47  ;;  %v5564_v46 = vmax.f32 %v5560_v10, %v5440_v1  ;;  %v5565_v61 = vmax.f32 %v5561_v34, %v5441_v24  ;;  %vm5316_vm0 = vcmp.eq.s32.totalorder %v4998_v57, 1  ;;  %5183 = vperm.xlu1 %6664, %v11339_v8   ;;  %5186 = vperm.xlu0 %6663, %v11340_v31   ;;  %v11341_v49 = vld [vmem:[#allocation60_spill] sm:$0xff]  ;;  %v5007_v8 = vpop.permute.xlu0 %5006 }
 0x2e9   : > { %vm5317_vm1 = vcmp.eq.s32.totalorder %v5001_v7, 1  ;;  %vm4341_vm2 = vcmp.eq.s32.totalorder %v11341_v49, 1  ;;  %v4591_v6 = vmax.f32 %v4466_v35, %v4592_v50  ;;  %v10974_v54 = vmax.f32 %v9989_v9, 0.0  ;;  %v11344_v20 = vld [vmem:[#allocation88_spill] sm:$0xff]  ;;  %v11346_v50 = vld [vmem:[#allocation65_spill] sm:$0xff] }
 0x2ea   : > { %v11343_v47 = vmax.f32 %v11342_v13, 0.0  ;;  %v11345_v32 = vmax.f32 %v11344_v20, 0.0  ;;  %v4465_v1 = vsel %vm4337_vm5, %v10986_v15, -1e+30  ;;  %v10027_v24 = vadd.f32 %v9974_v45, %v3156_v60  ;;  %v5004_v7 = vpop.permute.xlu1 %5003  ;;  %v11351_v20 = vld [vmem:[#allocation94_spill] sm:$0xff] }
 0x2eb   : > { %vm4344_vm13 = vcmp.eq.s32.totalorder %v11346_v50, 1  ;;  %v4594_v35 = vmax.f32 %v4465_v1, %v4591_v6  ;;  %v10972_v57 = vmax.f32 %v10012_v5, 0.0  ;;  %v4872_v31 = vsel %vm4744_vm4, 1, %v11059_v12  ;;  %v11347_v6 = vld [vmem:[#allocation126_spill] sm:$0xff] }
 0x2ec   : > { %v5444_v43 = vsel %vm5316_vm0, %v11343_v47, -1e+30  ;;  %v5445_v10 = vsel %vm5317_vm1, %v11345_v32, -1e+30  ;;  %vm4745_vm15 = vcmp.eq.s32.totalorder %v6770_v41, 1  ;;  %vm5318_vm14 = vcmp.eq.s32.totalorder %v5004_v7, 1  ;;  %5189 = vperm.xlu1 %6664, %v11347_v6   ;;  %5192 = vperm.xlu0 %6663, %v9632_v37   ;;  %v5013_v6 = vpop.permute.xlu0 %5012 }
 0x2ed   : > { %v10029_v30 = vmax.f32 %v5564_v46, %v5444_v43  ;;  %v10031_v34 = vmax.f32 %v5565_v61, %v5445_v10  ;;  %v4468_v60 = vsel %vm4340_vm6, %v10973_v44, -1e+30  ;;  %v10044_v46 = vadd.f32 %v9974_v45, %v6542_v62  ;;  %v6545_v61 = vpop.f32.mrf.mxu1  ;;  %v11349_v47 = vld [vmem:[#allocation95_spill] sm:$0xff] }
 0x2ee   : > { %vm5319_vm3 = vcmp.eq.s32.totalorder %v5007_v8, 1  ;;  %vm4343_vm4 = vcmp.eq.s32.totalorder %v11348_v52, 1  ;;  %v4593_v13 = vmax.f32 %v4468_v60, %v4594_v35  ;;  %v4467_v28 = vsel %vm4339_vm10, %v10974_v54, -1e+30  ;;  %v5010_v60 = vpop.permute.xlu1 %5009  ;;  %v11358_v54 = vld [vmem:[#allocation69_spill] sm:$0xff] }
 0x2ef   : > { %v11350_v62 = vmax.f32 %v11349_v47, 0.0  ;;  %v11352_v32 = vmax.f32 %v11351_v20, 0.0  ;;  %v10981_v1 = vmax.f32 %v10027_v24, 0.0  ;;  %v10059_v7 = vadd.f32 %v9974_v45, %v3166_v48  ;;  %v6771_v47 = vld [vmem:[%s6926_s16 + $0x330] sm:$0xff] }
 0x2f0   : > { %v4596_v35 = vmax.f32 %v4467_v28, %v4593_v13  ;;  %v4470_v55 = vsel %vm4342_vm11, %v10972_v57, -1e+30  ;;  %vm4746_vm5 = vcmp.eq.s32.totalorder %v6771_v47, 1  ;;  %v10975_v20 = vmax.f32 %v10044_v46, 0.0  ;;  %5195 = vperm.xlu1 %6664, %v9636_v2   ;;  %v11354_v13 = vld [vmem:[#allocation99_spill] sm:$0xff] }
 0x2f1   : > { %v5446_v43 = vsel %vm5318_vm14, %v11350_v62, -1e+30  ;;  %v5447_v10 = vsel %vm5319_vm3, %v11352_v32, -1e+30  ;;  %v6772_v62 = vld [vmem:[%s6926_s16 + $0x338] sm:$0xff]  ;;  %v10073_v48 = vadd.f32 %v9974_v45, %v6545_v61  ;;  %vm5320_vm8 = vcmp.eq.s32.totalorder %v5010_v60, 1 }
 0x2f2   : > { %v10061_v37 = vmax.f32 %v5566_v4, %v5446_v43  ;;  %v10063_v8 = vmax.f32 %v5567_v18, %v5447_v10  ;;  %vm4747_vm7 = vcmp.eq.s32.totalorder %v6772_v62, 1  ;;  %v3176_v4 = vpop.f32.mrf.mxu1  ;;  %vm5321_vm6 = vcmp.eq.s32.totalorder %v5013_v6, 1  ;;  %v11353_v18 = vld [vmem:[#allocation31_spill] sm:$0xff]  ;;  %v11356_v32 = vld [vmem:[#allocation98_spill] sm:$0xff]  ;;  %v5016_v41 = vpop.permute.xlu1 %5015 }
 0x2f3   : > { %5198 = vperm.xlu0 %6663, %v11353_v18   ;;  %v4595_v11 = vmax.f32 %v4470_v55, %v4596_v35  ;;  %v11355_v28 = vmax.f32 %v11354_v13, 0.0  ;;  %v11357_v10 = vmax.f32 %v11356_v32, 0.0  ;;  %v4873_v44 = vsel %vm4745_vm15, 1, %v11059_v12  ;;  %v5019_v18 = vpop.permute.xlu0 %5018 }
 0x2f4   : > { %vm4345_vm10 = vcmp.eq.s32.totalorder %v11358_v54, 1  ;;  %v4469_v61 = vsel %vm4341_vm2, %v10981_v1, -1e+30  ;;  %v10979_v2 = vmax.f32 %v10059_v7, 0.0  ;;  %v10092_v6 = vadd.f32 %v9974_v45, %v3176_v4  ;;  %5201 = vperm.xlu1 %6664, %v4872_v31   ;;  %v6774_v31 = vld [vmem:[%s6926_s16 + $0x348] sm:$0xff] }
 0x2f5   : > { %v5448_v43 = vsel %vm5320_vm8, %v11355_v28, -1e+30  ;;  %v5449_v57 = vsel %vm5321_vm6, %v11357_v10, -1e+30  ;;  %v4598_v60 = vmax.f32 %v4469_v61, %v4595_v11  ;;  %v4874_v13 = vsel %vm4746_vm5, 1, %v11059_v12  ;;  %v11359_v11 = vld [vmem:[#allocation103_spill] sm:$0xff] }
 0x2f6   : > { %v5572_v35 = vmax.f32 %v10029_v30, %v5448_v43  ;;  %v5573_v55 = vmax.f32 %v10031_v34, %v5449_v57  ;;  %v4875_v49 = vsel %vm4747_vm7, 1, %v11059_v12  ;;  %v4472_v30 = vsel %vm4344_vm13, %v10975_v20, -1e+30  ;;  %v6548_v57 = vpop.f32.mrf.mxu1  ;;  %v11361_v43 = vld [vmem:[#allocation102_spill] sm:$0xff]  ;;  %v6773_v10 = vld [vmem:[%s6926_s16 + $0x340] sm:$0xff] }
 0x2f7   : > { %v10976_v34 = vmax.f32 %v10073_v48, 0.0  ;;  %vm5322_vm9 = vcmp.eq.s32.totalorder %v5016_v41, 1  ;;  %vm5323_vm12 = vcmp.eq.s32.totalorder %v5019_v18, 1  ;;  %5204 = vperm.xlu0 %6663, %v4873_v44   ;;  %v4597_v4 = vmax.f32 %v4472_v30, %v4598_v60  ;;  %v11363_v44 = vld [vmem:[#allocation70_spill] sm:$0xff] }
 0x2f8   : > { %v11360_v47 = vmax.f32 %v11359_v11, 0.0  ;;  %v11362_v62 = vmax.f32 %v11361_v43, 0.0  ;;  %vm4748_vm11 = vcmp.eq.s32.totalorder %v6773_v10, 1  ;;  %v4471_v50 = vsel %vm4343_vm4, %v10979_v2, -1e+30  ;;  %v5022_v11 = vpop.permute.xlu1 %5021  ;;  %5207 = vperm.xlu1 %6664, %v4874_v13   ;;  %v6776_v13 = vld [vmem:[%s6926_s16 + $0x358] sm:$0xff] }
 0x2f9   : > { %vm4749_vm0 = vcmp.eq.s32.totalorder %v6774_v31, 1  ;;  %vm4346_vm1 = vcmp.eq.s32.totalorder %v11363_v44, 1  ;;  %v4600_v60 = vmax.f32 %v4471_v50, %v4597_v4  ;;  %v10977_v18 = vmax.f32 %v10092_v6, 0.0 }
 0x2fa   : > { %v5450_v28 = vsel %vm5322_vm9, %v11360_v47, -1e+30  ;;  %v5451_v32 = vsel %vm5323_vm12, %v11362_v62, -1e+30  ;;  %v10118_v30 = vadd.f32 %v9974_v45, %v6548_v57  ;;  %v5025_v47 = vpop.permute.xlu0 %5024  ;;  %v4474_v52 = vsel %vm4346_vm1, %v10976_v34, -1e+30 }
 0x2fb   : > { %v5574_v61 = vmax.f32 %v10061_v37, %v5450_v28  ;;  %v5575_v41 = vmax.f32 %v10063_v8, %v5451_v32  ;;  %v3186_v37 = vpop.f32.mrf.mxu1  ;;  %vm5324_vm2 = vcmp.eq.s32.totalorder %v5022_v11, 1  ;;  %vm5325_vm13 = vcmp.eq.s32.totalorder %v5025_v47, 1  ;;  %5210 = vperm.xlu0 %6663, %v4875_v49   ;;  %v11364_v28 = vld [vmem:[#allocation5_spill] sm:$0xff]  ;;  %v6775_v11 = vld [vmem:[%s6926_s16 + $0x350] sm:$0xff] }
 0x2fc   : > { %v4876_v8 = vsel %vm4748_vm11, 1, %v11059_v12  ;;  %v4599_v4 = vmax.f32 %v4474_v52, %v4600_v60  ;;  %v11365_v43 = vmax.f32 %v11364_v28, 0.0  ;;  %v11366_v62 = vld [vmem:[#allocation105_spill] sm:$0xff]  ;;  %v4877_v44 = vsel %vm4749_vm0, 1, %v11059_v12  ;;  %v5028_v31 = vpop.permute.xlu1 %5027  ;;  %v11369_v28 = vld [vmem:[#allocation7_spill] sm:$0xff] }
 0x2fd   : > { %v11367_v32 = vmax.f32 %v11366_v62, 0.0  ;;  %vm4750_vm15 = vcmp.eq.s32.totalorder %v6775_v11, 1  ;;  %vm4751_vm14 = vcmp.eq.s32.totalorder %v6776_v13, 1  ;;  %v4473_v49 = vsel %vm4345_vm10, %v10977_v18, -1e+30  ;;  %v11368_v47 = vld [vmem:[#allocation73_spill] sm:$0xff]  ;;  %v6551_v52 = vpop.f32.mrf.mxu1  ;;  %5213 = vperm.xlu1 %6664, %v4876_v8  }
 0x2fe   : > { %v5452_v57 = vsel %vm5324_vm2, %v11365_v43, -1e+30  ;;  %v10978_v10 = vmax.f32 %v10118_v30, 0.0  ;;  %v10142_v60 = vadd.f32 %v9974_v45, %v3186_v37  ;;  %vm4348_vm3 = vcmp.eq.s32.totalorder %v11368_v47, 1  ;;  %v6778_v8 = vld [vmem:[%s6926_s16 + $0x368] sm:$0xff] }
 0x2ff   : > { %v5453_v50 = vsel %vm5325_vm13, %v11367_v32, -1e+30  ;;  %v10130_v20 = vmax.f32 %v5572_v35, %v5452_v57  ;;  %v5031_v35 = vpop.permute.xlu0 %5030  ;;  %vm5326_vm4 = vcmp.eq.s32.totalorder %v5028_v31, 1  ;;  %5216 = vperm.xlu0 %6663, %v4877_v44   ;;  %v11370_v54 = vmax.f32 %v11369_v28, 0.0  ;;  %v11371_v57 = vld [vmem:[#allocation107_spill] sm:$0xff]  ;;  %v3196_v28 = vpop.f32.mrf.mxu1 }
 0x300   : > { %v10132_v34 = vmax.f32 %v5573_v55, %v5453_v50  ;;  %v4602_v55 = vmax.f32 %v4473_v49, %v4599_v4  ;;  %vm5327_vm5 = vcmp.eq.s32.totalorder %v5031_v35, 1  ;;  %v11372_v62 = vmax.f32 %v11371_v57, 0.0  ;;  %v6777_v49 = vld [vmem:[%s6926_s16 + $0x360] sm:$0xff]  ;;  %v5034_v13 = vpop.permute.xlu1 %5033  ;;  %v11376_v57 = vld [vmem:[#allocation109_spill] sm:$0xff] }
 0x301   : > { %v5454_v43 = vsel %vm5326_vm4, %v11370_v54, -1e+30  ;;  %v4878_v37 = vsel %vm4750_vm15, 1, %v11059_v12  ;;  %v4879_v50 = vsel %vm4751_vm14, 1, %v11059_v12  ;;  %vm4752_vm7 = vcmp.eq.s32.totalorder %v6777_v49, 1  ;;  %v11373_v35 = vld [vmem:[#allocation72_spill] sm:$0xff] }
 0x302   : > { %v5455_v32 = vsel %vm5327_vm5, %v11372_v62, -1e+30  ;;  %v10153_v18 = vmax.f32 %v5574_v61, %v5454_v43  ;;  %vm4753_vm8 = vcmp.eq.s32.totalorder %v6778_v8, 1  ;;  %v4476_v44 = vsel %vm4348_vm3, %v10978_v10, -1e+30  ;;  %5219 = vperm.xlu1 %6664, %v4878_v37   ;;  %v11374_v54 = vld [vmem:[#allocation9_spill] sm:$0xff] }
 0x303   : > { %v10155_v4 = vmax.f32 %v5575_v41, %v5455_v32  ;;  %v10980_v31 = vmax.f32 %v10142_v60, 0.0  ;;  %v10165_v11 = vadd.f32 %v9974_v45, %v6551_v52  ;;  %v5037_v61 = vpop.permute.xlu0 %5036  ;;  %vm4347_vm6 = vcmp.eq.s32.totalorder %v11373_v35, 1  ;;  %5222 = vperm.xlu0 %6663, %v4879_v50   ;;  %v6780_v37 = vld [vmem:[%s6926_s16 + $0x378] sm:$0xff] }
 0x304   : > { %v4601_v41 = vmax.f32 %v4476_v44, %v4602_v55  ;;  %vm5328_vm10 = vcmp.eq.s32.totalorder %v5034_v13, 1  ;;  %vm5329_vm9 = vcmp.eq.s32.totalorder %v5037_v61, 1  ;;  %v11375_v47 = vmax.f32 %v11374_v54, 0.0  ;;  %v6779_v44 = vld [vmem:[%s6926_s16 + $0x370] sm:$0xff]  ;;  %v5040_v8 = vpop.permute.xlu1 %5039  ;;  %v6554_v54 = vpop.f32.mrf.mxu1 }
 0x305   : > { %v11377_v62 = vmax.f32 %v11376_v57, 0.0  ;;  %v4880_v52 = vsel %vm4752_vm7, 1, %v11059_v12  ;;  %v4881_v10 = vsel %vm4753_vm8, 1, %v11059_v12  ;;  %vm4754_vm12 = vcmp.eq.s32.totalorder %v6779_v44, 1  ;;  %v11381_v57 = vld [vmem:[#allocation111_spill] sm:$0xff] }
 0x306   : > { %v5456_v43 = vsel %vm5328_vm10, %v11375_v47, -1e+30  ;;  %vm4755_vm11 = vcmp.eq.s32.totalorder %v6780_v37, 1  ;;  %v4475_v50 = vsel %vm4347_vm6, %v10980_v31, -1e+30  ;;  %v10982_v13 = vmax.f32 %v10165_v11, 0.0  ;;  %5225 = vperm.xlu1 %6664, %v4880_v52  }
 0x307   : > { %v5457_v32 = vsel %vm5329_vm9, %v11377_v62, -1e+30  ;;  %v5580_v2 = vmax.f32 %v10130_v20, %v5456_v43  ;;  %v10186_v49 = vadd.f32 %v9974_v45, %v3196_v28  ;;  %v5043_v61 = vpop.permute.xlu0 %5042  ;;  %v11378_v20 = vld [vmem:[#allocation77_spill] sm:$0xff]  ;;  %vm5330_vm1 = vcmp.eq.s32.totalorder %v5040_v8, 1  ;;  %5228 = vperm.xlu0 %6663, %v4881_v10   ;;  %v11379_v47 = vld [vmem:[#allocation11_spill] sm:$0xff] }
 0x308   : > { %v5581_v55 = vmax.f32 %v10132_v34, %v5457_v32  ;;  %vm4350_vm0 = vcmp.eq.s32.totalorder %v11378_v20, 1  ;;  %v4604_v34 = vmax.f32 %v4475_v50, %v4601_v41  ;;  %vm5331_vm2 = vcmp.eq.s32.totalorder %v5043_v61, 1  ;;  %v6781_v50 = vld [vmem:[%s6926_s16 + $0x380] sm:$0xff]  ;;  %v6782_v52 = vld [vmem:[%s6926_s16 + $0x388] sm:$0xff]  ;;  %v5046_v37 = vpop.permute.xlu1 %5045 }
 0x309   : > { %v11380_v35 = vmax.f32 %v11379_v47, 0.0  ;;  %v11382_v62 = vmax.f32 %v11381_v57, 0.0  ;;  %v4882_v28 = vsel %vm4754_vm12, 1, %v11059_v12  ;;  %v4883_v31 = vsel %vm4755_vm11, 1, %v11059_v12  ;;  %v3206_v47 = vpop.f32.mrf.mxu1  ;;  %v11386_v57 = vld [vmem:[#allocation113_spill] sm:$0xff] }
 0x30a   : > { %vm4756_vm13 = vcmp.eq.s32.totalorder %v6781_v50, 1  ;;  %vm4757_vm15 = vcmp.eq.s32.totalorder %v6782_v52, 1  ;;  %v4478_v10 = vsel %vm4350_vm0, %v10982_v13, -1e+30  ;;  %v10984_v8 = vmax.f32 %v10186_v49, 0.0  ;;  %5231 = vperm.xlu1 %6664, %v4882_v28   ;;  %v6784_v28 = vld [vmem:[%s6926_s16 + $0x398] sm:$0xff] }
 0x30b   : > { %v5458_v43 = vsel %vm5330_vm1, %v11380_v35, -1e+30  ;;  %v5459_v32 = vsel %vm5331_vm2, %v11382_v62, -1e+30  ;;  %v10207_v44 = vadd.f32 %v9974_v45, %v6554_v54  ;;  %v5049_v61 = vpop.permute.xlu0 %5048  ;;  %vm5332_vm3 = vcmp.eq.s32.totalorder %v5046_v37, 1  ;;  %5234 = vperm.xlu0 %6663, %v4883_v31   ;;  %v11384_v35 = vld [vmem:[#allocation13_spill] sm:$0xff] }
 0x30c   : > { %v5582_v1 = vmax.f32 %v10153_v18, %v5458_v43  ;;  %v5583_v41 = vmax.f32 %v10155_v4, %v5459_v32  ;;  %v11383_v18 = vld [vmem:[#allocation76_spill] sm:$0xff]  ;;  %v4603_v4 = vmax.f32 %v4478_v10, %v4604_v34  ;;  %vm5333_vm4 = vcmp.eq.s32.totalorder %v5049_v61, 1  ;;  %v6783_v10 = vld [vmem:[%s6926_s16 + $0x390] sm:$0xff]  ;;  %v5052_v52 = vpop.permute.xlu1 %5051  ;;  %v6557_v61 = vpop.f32.mrf.mxu1 }
 0x30d   : > { %vm4349_vm14 = vcmp.eq.s32.totalorder %v11383_v18, 1  ;;  %v11385_v20 = vmax.f32 %v11384_v35, 0.0  ;;  %v11387_v62 = vmax.f32 %v11386_v57, 0.0  ;;  %v4884_v54 = vsel %vm4756_vm13, 1, %v11059_v12 }
 0x30e   : > { %v4885_v13 = vsel %vm4757_vm15, 1, %v11059_v12  ;;  %vm4758_vm5 = vcmp.eq.s32.totalorder %v6783_v10, 1  ;;  %vm4759_vm7 = vcmp.eq.s32.totalorder %v6784_v28, 1  ;;  %v4477_v31 = vsel %vm4349_vm14, %v10984_v8, -1e+30  ;;  %5237 = vperm.xlu1 %6664, %v4884_v54  }
 0x30f   : > { %v5460_v43 = vsel %vm5332_vm3, %v11385_v20, -1e+30  ;;  %v5461_v32 = vsel %vm5333_vm4, %v11387_v62, -1e+30  ;;  %v10985_v37 = vmax.f32 %v10207_v44, 0.0  ;;  %v10230_v50 = vadd.f32 %v9974_v45, %v3206_v47  ;;  %v5055_v35 = vpop.permute.xlu0 %5054  ;;  %5240 = vperm.xlu0 %6663, %v4885_v13   ;;  %v11389_v20 = vld [vmem:[#allocation15_spill] sm:$0xff] }
 0x310   : > { %v10218_v29 = vmax.f32 %v5580_v2, %v5460_v43  ;;  %v10220_v34 = vmax.f32 %v5581_v55, %v5461_v32  ;;  %v11388_v2 = vld [vmem:[#allocation81_spill] sm:$0xff]  ;;  %v4606_v55 = vmax.f32 %v4477_v31, %v4603_v4  ;;  %vm5334_vm6 = vcmp.eq.s32.totalorder %v5052_v52, 1  ;;  %v11391_v32 = vld [vmem:[#allocation115_spill] sm:$0xff]  ;;  %v6785_v4 = vld [vmem:[%s6926_s16 + $0x3a0] sm:$0xff]  ;;  %v5058_v52 = vpop.permute.xlu1 %5057 }
 0x311   : > { %vm4352_vm8 = vcmp.eq.s32.totalorder %v11388_v2, 1  ;;  %v11390_v43 = vmax.f32 %v11389_v20, 0.0  ;;  %vm5335_vm10 = vcmp.eq.s32.totalorder %v5055_v35, 1  ;;  %v4886_v57 = vsel %vm4758_vm5, 1, %v11059_v12  ;;  %v6786_v31 = vld [vmem:[%s6926_s16 + $0x3a8] sm:$0xff]  ;;  %v11393_v35 = vld [vmem:[#allocation80_spill] sm:$0xff] }
 0x312   : > { %v4887_v47 = vsel %vm4759_vm7, 1, %v11059_v12  ;;  %v11392_v28 = vmax.f32 %v11391_v32, 0.0  ;;  %vm4760_vm9 = vcmp.eq.s32.totalorder %v6785_v4, 1  ;;  %vm4761_vm12 = vcmp.eq.s32.totalorder %v6786_v31, 1  ;;  %5243 = vperm.xlu1 %6664, %v4886_v57   ;;  %v11394_v2 = vld [vmem:[#allocation17_spill] sm:$0xff] }
 0x313   : > { %v5462_v18 = vsel %vm5334_vm6, %v11390_v43, -1e+30  ;;  %v4480_v13 = vsel %vm4352_vm8, %v10985_v37, -1e+30  ;;  %v10987_v54 = vmax.f32 %v10230_v50, 0.0  ;;  %v10250_v10 = vadd.f32 %v9974_v45, %v6557_v61  ;;  %v3216_v43 = vpop.f32.mrf.mxu1  ;;  %5246 = vperm.xlu0 %6663, %v4887_v47   ;;  %v11396_v37 = vld [vmem:[#allocation117_spill] sm:$0xff] }
 0x314   : > { %v10238_v62 = vmax.f32 %v5582_v1, %v5462_v18  ;;  %v5463_v8 = vsel %vm5335_vm10, %v11392_v28, -1e+30  ;;  %vm4351_vm11 = vcmp.eq.s32.totalorder %v11393_v35, 1  ;;  %v4605_v20 = vmax.f32 %v4480_v13, %v4606_v55  ;;  %v5061_v18 = vpop.permute.xlu0 %5060  ;;  %v6787_v13 = vld [vmem:[%s6926_s16 + $0x3b0] sm:$0xff]  ;;  %v5064_v31 = vpop.permute.xlu1 %5063  ;;  %v11399_v35 = vld [vmem:[#allocation19_spill] sm:$0xff] }
 0x315   : > { %v10252_v1 = vmax.f32 %v5583_v41, %v5463_v8  ;;  %vm5336_vm0 = vcmp.eq.s32.totalorder %v5058_v52, 1  ;;  %v11395_v32 = vmax.f32 %v11394_v2, 0.0  ;;  %vm5337_vm1 = vcmp.eq.s32.totalorder %v5061_v18, 1  ;;  %v6788_v52 = vld [vmem:[%s6926_s16 + $0x3b8] sm:$0xff]  ;;  %v6560_v18 = vpop.f32.mrf.mxu1 }
 0x316   : > { %v4888_v61 = vsel %vm4760_vm9, 1, %v11059_v12  ;;  %v4889_v41 = vsel %vm4761_vm12, 1, %v11059_v12  ;;  %v11397_v15 = vmax.f32 %v11396_v37, 0.0  ;;  %vm4762_vm2 = vcmp.eq.s32.totalorder %v6787_v13, 1  ;;  %v11398_v37 = vld [vmem:[#allocation84_spill] sm:$0xff] }
 0x317   : > { %v5464_v28 = vsel %vm5336_vm0, %v11395_v32, -1e+30  ;;  %vm4763_vm13 = vcmp.eq.s32.totalorder %v6788_v52, 1  ;;  %v4479_v57 = vsel %vm4351_vm11, %v10987_v54, -1e+30  ;;  %v10989_v47 = vmax.f32 %v10250_v10, 0.0  ;;  %5249 = vperm.xlu1 %6664, %v4888_v61   ;;  %5252 = vperm.xlu0 %6663, %v4889_v41  }
 0x318   : > { %v5588_v8 = vmax.f32 %v10218_v29, %v5464_v28  ;;  %v5465_v55 = vsel %vm5337_vm1, %v11397_v15, -1e+30  ;;  %v10272_v4 = vadd.f32 %v9974_v45, %v3216_v43  ;;  %vm4354_vm15 = vcmp.eq.s32.totalorder %v11398_v37, 1  ;;  %v5067_v2 = vpop.permute.xlu0 %5066  ;;  %v11401_v54 = vld [vmem:[#allocation119_spill] sm:$0xff]  ;;  %v5070_v52 = vpop.permute.xlu1 %5069  ;;  %v11405_v37 = vld [vmem:[#allocation22_spill] sm:$0xff] }
 0x319   : > { %v5589_v29 = vmax.f32 %v10220_v34, %v5465_v55  ;;  %v4608_v15 = vmax.f32 %v4479_v57, %v4605_v20  ;;  %vm5338_vm14 = vcmp.eq.s32.totalorder %v5064_v31, 1  ;;  %v11400_v32 = vmax.f32 %v11399_v35, 0.0  ;;  %v6789_v57 = vld [vmem:[%s6926_s16 + $0x3c0] sm:$0xff]  ;;  %v6790_v31 = vld [vmem:[%s6926_s16 + $0x3c8] sm:$0xff] }
 0x31a   : > { %vm5339_vm3 = vcmp.eq.s32.totalorder %v5067_v2, 1  ;;  %v4890_v43 = vsel %vm4762_vm2, 1, %v11059_v12  ;;  %v4891_v34 = vsel %vm4763_vm13, 1, %v11059_v12  ;;  %v11402_v53 = vmax.f32 %v11401_v54, 0.0  ;;  %v11404_v54 = vld [vmem:[#allocation83_spill] sm:$0xff]  ;;  %v3226_v2 = vpop.f32.mrf.mxu1 }
 0x31b   : > { %v5466_v28 = vsel %vm5338_vm14, %v11400_v32, -1e+30  ;;  %vm4764_vm4 = vcmp.eq.s32.totalorder %v6789_v57, 1  ;;  %vm4765_vm5 = vcmp.eq.s32.totalorder %v6790_v31, 1  ;;  %v4482_v61 = vsel %vm4354_vm15, %v10989_v47, -1e+30  ;;  %5255 = vperm.xlu1 %6664, %v4890_v43   ;;  %5258 = vperm.xlu0 %6663, %v4891_v34  }
 0x31c   : > { %v5590_v55 = vmax.f32 %v10238_v62, %v5466_v28  ;;  %v5467_v20 = vsel %vm5339_vm3, %v11402_v53, -1e+30  ;;  %v10991_v41 = vmax.f32 %v10272_v4, 0.0  ;;  %v10293_v13 = vadd.f32 %v9974_v45, %v6560_v18  ;;  %v5073_v35 = vpop.permute.xlu0 %5072  ;;  %v11407_v47 = vld [vmem:[#allocation21_spill] sm:$0xff]  ;;  %v5076_v31 = vpop.permute.xlu1 %5075 }
 0x31d   : > { %v5591_v62 = vmax.f32 %v10252_v1, %v5467_v20  ;;  %vm4353_vm7 = vcmp.eq.s32.totalorder %v11404_v54, 1  ;;  %v4607_v53 = vmax.f32 %v4482_v61, %v4608_v15  ;;  %vm5340_vm8 = vcmp.eq.s32.totalorder %v5070_v52, 1  ;;  %v6791_v61 = vld [vmem:[%s6926_s16 + $0x3d0] sm:$0xff]  ;;  %v6792_v52 = vld [vmem:[%s6926_s16 + $0x3d8] sm:$0xff] }
 0x31e   : > { %11403 = vst [vmem:[#allocation34_spill] sm:$0xff] %v10293_v13  ;;  %v11406_v32 = vmax.f32 %v11405_v37, 0.0  ;;  %vm5341_vm6 = vcmp.eq.s32.totalorder %v5073_v35, 1  ;;  %v4892_v18 = vsel %vm4764_vm4, 1, %v11059_v12  ;;  %v4893_v1 = vsel %vm4765_vm5, 1, %v11059_v12  ;;  %v6563_v35 = vpop.f32.mrf.mxu1  ;;  %v11410_v54 = vld [vmem:[#allocation23_spill] sm:$0xff] }
 0x31f   : > { %v11408_v17 = vmax.f32 %v11407_v47, 0.0  ;;  %vm4766_vm10 = vcmp.eq.s32.totalorder %v6791_v61, 1  ;;  %vm4767_vm9 = vcmp.eq.s32.totalorder %v6792_v52, 1  ;;  %v4481_v43 = vsel %vm4353_vm7, %v10991_v41, -1e+30  ;;  %v11409_v47 = vld [vmem:[#allocation87_spill] sm:$0xff]  ;;  %5261 = vperm.xlu1 %6664, %v4892_v18   ;;  %5264 = vperm.xlu0 %6663, %v4893_v1  }
 0x320   : > { %v5468_v28 = vsel %vm5340_vm8, %v11406_v32, -1e+30  ;;  %v10315_v57 = vadd.f32 %v9974_v45, %v3226_v2  ;;  %vm4356_vm12 = vcmp.eq.s32.totalorder %v11409_v47, 1  ;;  %vm5342_vm11 = vcmp.eq.s32.totalorder %v5076_v31, 1  ;;  %v5079_v37 = vpop.permute.xlu0 %5078  ;;  %v11412_v41 = vld [vmem:[#allocation24_spill] sm:$0xff]  ;;  %v6794_v31 = vld [vmem:[%s6926_s16 + $0x3e8] sm:$0xff]  ;;  %v5082_v52 = vpop.permute.xlu1 %5081 }
 0x321   : > { %v10303_v20 = vmax.f32 %v5588_v8, %v5468_v28  ;;  %v5469_v15 = vsel %vm5341_vm6, %v11408_v17, -1e+30  ;;  %v4610_v17 = vmax.f32 %v4481_v43, %v4607_v53  ;;  %v11411_v32 = vmax.f32 %v11410_v54, 0.0  ;;  %v6793_v43 = vld [vmem:[%s6926_s16 + $0x3e0] sm:$0xff]  ;;  %v3236_v54 = vpop.f32.mrf.mxu1  ;;  %v11416_v47 = vld [vmem:[#allocation25_spill] sm:$0xff]  ;;  %v11418_v61 = vld [vmem:[#allocation26_spill] sm:$0xff] }
 0x322   : > { %v10317_v8 = vmax.f32 %v5589_v29, %v5469_v15  ;;  %vm5343_vm0 = vcmp.eq.s32.totalorder %v5079_v37, 1  ;;  %v4894_v2 = vsel %vm4766_vm10, 1, %v11059_v12  ;;  %v4895_v29 = vsel %vm4767_vm9, 1, %v11059_v12 }
 0x323   : > { %v5470_v28 = vsel %vm5342_vm11, %v11411_v32, -1e+30  ;;  %v11413_v34 = vmax.f32 %v11412_v41, 0.0  ;;  %vm4768_vm1 = vcmp.eq.s32.totalorder %v6793_v43, 1  ;;  %vm4769_vm2 = vcmp.eq.s32.totalorder %v6794_v31, 1  ;;  %v11415_v41 = vld [vmem:[#allocation86_spill] sm:$0xff]  ;;  %5267 = vperm.xlu1 %6664, %v4894_v2   ;;  %5270 = vperm.xlu0 %6663, %v4895_v29  }
 0x324   : > { %v10326_v15 = vmax.f32 %v5590_v55, %v5470_v28  ;;  %v11414_v18 = vmax.f32 %v10293_v13, 0.0  ;;  %v10338_v37 = vadd.f32 %v9974_v45, %v6563_v35  ;;  %vm4355_vm13 = vcmp.eq.s32.totalorder %v11415_v41, 1  ;;  %v5085_v32 = vpop.permute.xlu0 %5084 }
 0x325   : > { %v5471_v53 = vsel %vm5343_vm0, %v11413_v34, -1e+30  ;;  %vm5344_vm15 = vcmp.eq.s32.totalorder %v5082_v52, 1  ;;  %v11417_v28 = vmax.f32 %v11416_v47, 0.0  ;;  %vm5345_vm14 = vcmp.eq.s32.totalorder %v5085_v32, 1  ;;  %v6796_v52 = vld [vmem:[%s6926_s16 + $0x3f8] sm:$0xff] }
 0x326   : > { %v4484_v1 = vsel %vm4356_vm12, %v11414_v18, -1e+30  ;;  %v10340_v55 = vmax.f32 %v5591_v62, %v5471_v53  ;;  %v4896_v35 = vsel %vm4768_vm1, 1, %v11059_v12  ;;  %v4897_v62 = vsel %vm4769_vm2, 1, %v11059_v12 }
 0x327   : > { %v4609_v34 = vmax.f32 %v4484_v1, %v4610_v17  ;;  %v5472_v18 = vsel %vm5344_vm15, %v11417_v28, -1e+30  ;;  %v11419_v13 = vmax.f32 %v11418_v61, 0.0  ;;  %v6795_v1 = vld [vmem:[%s6926_s16 + $0x3f0] sm:$0xff]  ;;  %vm4771_vm4 = vcmp.eq.s32.totalorder %v6796_v52, 1  ;;  %v6566_v61 = vpop.f32.mrf.mxu1  ;;  %5273 = vperm.xlu1 %6664, %v4896_v35   ;;  %5276 = vperm.xlu0 %6663, %v4897_v62   ;;  %v11421_v28 = vld [vmem:[#allocation27_spill] sm:$0xff] }
 0x328   : > { %v5596_v53 = vmax.f32 %v10303_v20, %v5472_v18  ;;  %vm4770_vm3 = vcmp.eq.s32.totalorder %v6795_v1, 1  ;;  %v11420_v2 = vmax.f32 %v10315_v57, 0.0  ;;  %v10993_v43 = vmax.f32 %v10338_v37, 0.0  ;;  %v5088_v20 = vpop.permute.xlu1 %5087 }
 0x329   : > { %v5473_v17 = vsel %vm5345_vm14, %v11419_v13, -1e+30  ;;  %v10360_v32 = vadd.f32 %v9974_v45, %v3236_v54  ;;  %vm5346_vm5 = vcmp.eq.s32.totalorder %v5088_v20, 1  ;;  %v5091_v13 = vpop.permute.xlu0 %5090  ;;  %v11422_v18 = vmax.f32 %v11421_v28, 0.0  ;;  %v11423_v54 = vld [vmem:[#allocation90_spill] sm:$0xff] }
 0x32a   : > { %v4483_v29 = vsel %vm4355_vm13, %v11420_v2, -1e+30  ;;  %v5597_v31 = vmax.f32 %v10317_v8, %v5473_v17  ;;  %vm5347_vm7 = vcmp.eq.s32.totalorder %v5091_v13, 1  ;;  %v4898_v41 = vsel %vm4770_vm3, 1, %v11059_v12  ;;  %v11424_v17 = vld [vmem:[#allocation28_spill] sm:$0xff] }
 0x32b   : > { %v4612_v47 = vmax.f32 %v4483_v29, %v4609_v34  ;;  %v5474_v52 = vsel %vm5346_vm5, %v11422_v18, -1e+30  ;;  %v4899_v2 = vsel %vm4771_vm4, 1, %v11059_v12  ;;  %vm4358_vm8 = vcmp.eq.s32.totalorder %v11423_v54, 1  ;;  %v3246_v12 = vpop.f32.mrf.mxu1  ;;  %5279 = vperm.xlu1 %6664, %v4898_v41   ;;  %v11427_v54 = vld [vmem:[#allocation89_spill] sm:$0xff] }
 0x32c   : > { %v5598_v8 = vmax.f32 %v10326_v15, %v5474_v52  ;;  %v11425_v34 = vmax.f32 %v11424_v17, 0.0  ;;  %v4486_v35 = vsel %vm4358_vm8, %v10993_v43, -1e+30  ;;  %v11007_v62 = vmax.f32 %v10360_v32, 0.0  ;;  %v5094_v13 = vpop.permute.xlu1 %5093  ;;  %5282 = vperm.xlu0 %6663, %v4899_v2  }
 0x32d   : > { %v10376_v20 = vadd.f32 %v9974_v45, %v6566_v61  ;;  %v4611_v28 = vmax.f32 %v4486_v35, %v4612_v47  ;;  %vm5348_vm6 = vcmp.eq.s32.totalorder %v5094_v13, 1  ;;  %v5097_v18 = vpop.permute.xlu0 %5096  ;;  %v11426_v15 = vmax.f32 %v9580_v16, 0.0  ;;  %v6569_v16 = vpop.f32.mrf.mxu1 }
 0x32e   : > { %v5475_v29 = vsel %vm5347_vm7, %v11425_v34, -1e+30  ;;  %vm5349_vm10 = vcmp.eq.s32.totalorder %v5097_v18, 1  ;;  %vm4357_vm9 = vcmp.eq.s32.totalorder %v11427_v54, 1  ;;  %v11428_v34 = vld [vmem:[#allocation30_spill] sm:$0xff]  ;;  %v11430_v18 = vmax.f32 %v9622_v21, 0.0 }
 0x32f   : > { %v5599_v1 = vmax.f32 %v10340_v55, %v5475_v29  ;;  %v5476_v52 = vsel %vm5348_vm6, %v11426_v15, -1e+30  ;;  %v11429_v43 = vmax.f32 %v11428_v34, 0.0  ;;  %v4485_v55 = vsel %vm4357_vm9, %v11007_v62, -1e+30  ;;  %v11431_v15 = vld [vmem:[#allocation93_spill] sm:$0xff]  ;;  %v3256_v21 = vpop.f32.mrf.mxu1 }
 0x330   : > { %v5600_v17 = vmax.f32 %v5596_v53, %v5476_v52  ;;  %v11005_v47 = vmax.f32 %v10376_v20, 0.0  ;;  %v10388_v29 = vadd.f32 %v9974_v45, %v3246_v12  ;;  %v5100_v2 = vpop.permute.xlu1 %5099  ;;  %v4614_v35 = vmax.f32 %v4485_v55, %v4611_v28 }
 0x331   : > { %v5477_v61 = vsel %vm5349_vm10, %v11429_v43, -1e+30  ;;  %vm5350_vm12 = vcmp.eq.s32.totalorder %v5100_v2, 1  ;;  %v5103_v13 = vpop.permute.xlu0 %5102  ;;  %vm4360_vm0 = vcmp.eq.s32.totalorder %v11431_v15, 1  ;;  %v11432_v52 = vmax.f32 %v9587_v63, 0.0  ;;  %v11435_v63 = vld [vmem:[#allocation92_spill] sm:$0xff] }
 0x332   : > { %v5601_v41 = vmax.f32 %v5597_v31, %v5477_v61  ;;  %v5478_v53 = vsel %vm5350_vm12, %v11430_v18, -1e+30  ;;  %vm5351_vm11 = vcmp.eq.s32.totalorder %v5103_v13, 1  ;;  %v4488_v12 = vsel %vm4360_vm0, %v11005_v47, -1e+30 }
 0x333   : > { %v5602_v43 = vmax.f32 %v5598_v8, %v5478_v53  ;;  %v5479_v54 = vsel %vm5351_vm11, %v11432_v52, -1e+30  ;;  %v11006_v31 = vmax.f32 %v10388_v29, 0.0  ;;  %v10399_v28 = vadd.f32 %v9974_v45, %v6569_v16 }
 0x334   : > { %v5603_v34 = vmax.f32 %v5599_v1, %v5479_v54  ;;  %v5106_v61 = vpop.permute.xlu1 %5105  ;;  %v4613_v55 = vmax.f32 %v4488_v12, %v4614_v35  ;;  %v11434_v13 = vmax.f32 %v9674_v51, 0.0  ;;  %vm4359_vm13 = vcmp.eq.s32.totalorder %v11435_v63, 1  ;;  %v6572_v51 = vpop.f32.mrf.mxu1 }
 0x335   : > { %11433 = vst [vmem:[#allocation33_spill] sm:$0xff] %v10399_v28  ;;  %vm5352_vm1 = vcmp.eq.s32.totalorder %v5106_v61, 1  ;;  %v5109_v2 = vpop.permute.xlu0 %5108  ;;  %v11436_v53 = vmax.f32 %v9645_v0, 0.0  ;;  %v4487_v16 = vsel %vm4359_vm13, %v11006_v31, -1e+30  ;;  %v11002_v1 = vmax.f32 %v10399_v28, 0.0 }
 0x336   : > { %v5480_v8 = vsel %vm5352_vm1, %v11434_v13, -1e+30  ;;  %vm5353_vm2 = vcmp.eq.s32.totalorder %v5109_v2, 1  ;;  %v10410_v35 = vadd.f32 %v9974_v45, %v3256_v21  ;;  %v4616_v12 = vmax.f32 %v4487_v16, %v4613_v55  ;;  %v11439_v0 = vld [vmem:[#allocation97_spill] sm:$0xff]  ;;  %v11488_v28 = vld [vmem:[#allocation118_spill] sm:$0xff] }
 0x337   : > { %v5604_v18 = vmax.f32 %v5600_v17, %v5480_v8  ;;  %v5481_v15 = vsel %vm5353_vm2, %v11436_v53, -1e+30  ;;  %v11438_v2 = vmax.f32 %v9704_v22, 0.0  ;;  %vm4362_vm3 = vcmp.eq.s32.totalorder %v11439_v0, 1  ;;  %v3266_v22 = vpop.f32.mrf.mxu1 }
 0x338   : > { %11437 = vst [vmem:[#allocation36_spill] sm:$0xff] %v10410_v35  ;;  %v5605_v52 = vmax.f32 %v5601_v41, %v5481_v15  ;;  %v5112_v54 = vpop.permute.xlu1 %5111  ;;  %v11440_v8 = vmax.f32 %v9693_v36, 0.0  ;;  %v4490_v21 = vsel %vm4362_vm3, %v11002_v1, -1e+30  ;;  %v11003_v41 = vmax.f32 %v10410_v35, 0.0  ;;  %v11443_v36 = vld [vmem:[#allocation96_spill] sm:$0xff] }
 0x339   : > { %vm5354_vm15 = vcmp.eq.s32.totalorder %v5112_v54, 1  ;;  %v5115_v61 = vpop.permute.xlu0 %5114  ;;  %v10421_v55 = vadd.f32 %v9974_v45, %v6572_v51  ;;  %v4615_v16 = vmax.f32 %v4490_v21, %v4616_v12  ;;  %vm4361_vm7 = vcmp.eq.s32.totalorder %v11443_v36, 1  ;;  %v11489_v35 = vld [vmem:[#allocation20_spill] sm:$0xff] }
 0x33a   : > { %v5482_v17 = vsel %vm5354_vm15, %v11438_v2, -1e+30  ;;  %vm5355_vm14 = vcmp.eq.s32.totalorder %v5115_v61, 1  ;;  %v11442_v61 = vmax.f32 %v9748_v39, 0.0  ;;  %v4489_v51 = vsel %vm4361_vm7, %v11003_v41, -1e+30  ;;  %v6575_v39 = vpop.f32.mrf.mxu1 }
 0x33b   : > { %v5606_v13 = vmax.f32 %v5602_v43, %v5482_v17  ;;  %v5483_v63 = vsel %vm5355_vm14, %v11440_v8, -1e+30  ;;  %11441 = vst [vmem:[#allocation35_spill] sm:$0xff] %v10421_v55  ;;  %v11444_v17 = vmax.f32 %v9725_v27, 0.0  ;;  %v10432_v12 = vadd.f32 %v9974_v45, %v3266_v22  ;;  %v11447_v27 = vld [vmem:[#allocation101_spill] sm:$0xff] }
 0x33c   : > { %v5607_v53 = vmax.f32 %v5603_v34, %v5483_v63  ;;  %v5118_v15 = vpop.permute.xlu1 %5117  ;;  %v10997_v34 = vmax.f32 %v10421_v55, 0.0  ;;  %v4618_v21 = vmax.f32 %v4489_v51, %v4615_v16  ;;  %vm4364_vm10 = vcmp.eq.s32.totalorder %v11447_v27, 1 }
 0x33d   : > { %vm5356_vm4 = vcmp.eq.s32.totalorder %v5118_v15, 1  ;;  %v5121_v54 = vpop.permute.xlu0 %5120  ;;  %11445 = vst [vmem:[#allocation38_spill] sm:$0xff] %v10432_v12  ;;  %v10443_v16 = vadd.f32 %v9974_v45, %v6575_v39 }
 0x33e   : > { %v5484_v43 = vsel %vm5356_vm4, %v11442_v61, -1e+30  ;;  %vm5357_vm5 = vcmp.eq.s32.totalorder %v5121_v54, 1  ;;  %v11446_v54 = vmax.f32 %v9785_v58, 0.0  ;;  %v4492_v22 = vsel %vm4364_vm10, %v10997_v34, -1e+30  ;;  %v3276_v58 = vpop.f32.mrf.mxu1 }
 0x33f   : > { %v5608_v2 = vmax.f32 %v5604_v18, %v5484_v43  ;;  %v5485_v0 = vsel %vm5357_vm5, %v11444_v17, -1e+30  ;;  %v11448_v43 = vmax.f32 %v9782_v40, 0.0  ;;  %11449 = vst [vmem:[#allocation43_spill] sm:$0xff] %v10443_v16  ;;  %v4617_v51 = vmax.f32 %v4492_v22, %v4618_v21  ;;  %v11451_v40 = vld [vmem:[#allocation100_spill] sm:$0xff] }
 0x340   : > { %v5609_v8 = vmax.f32 %v5605_v52, %v5485_v0  ;;  %v5124_v63 = vpop.permute.xlu1 %5123  ;;  %v11001_v52 = vmax.f32 %v10432_v12, 0.0  ;;  %vm4363_vm11 = vcmp.eq.s32.totalorder %v11451_v40, 1  ;;  %v10454_v21 = vadd.f32 %v9974_v45, %v3276_v58 }
 0x341   : > { %vm5358_vm8 = vcmp.eq.s32.totalorder %v5124_v63, 1  ;;  %v5127_v15 = vpop.permute.xlu0 %5126 }
 0x342   : > { %v5486_v18 = vsel %vm5358_vm8, %v11446_v54, -1e+30  ;;  %vm5359_vm6 = vcmp.eq.s32.totalorder %v5127_v15, 1  ;;  %v11450_v15 = vmax.f32 %v9819_v26, 0.0  ;;  %v4491_v39 = vsel %vm4363_vm11, %v11001_v52, -1e+30  ;;  %v6578_v26 = vpop.f32.mrf.mxu1 }
 0x343   : > { %v5610_v61 = vmax.f32 %v5606_v13, %v5486_v18  ;;  %v5487_v36 = vsel %vm5359_vm6, %v11448_v43, -1e+30  ;;  %v11452_v18 = vmax.f32 %v9802_v19, 0.0  ;;  %11453 = vst [vmem:[#allocation44_spill] sm:$0xff] %v10454_v21  ;;  %v4620_v22 = vmax.f32 %v4491_v39, %v4617_v51  ;;  %v11455_v19 = vld [vmem:[#allocation104_spill] sm:$0xff] }
 0x344   : > { %v5611_v17 = vmax.f32 %v5607_v53, %v5487_v36  ;;  %v5130_v0 = vpop.permute.xlu1 %5129  ;;  %v10998_v53 = vmax.f32 %v10443_v16, 0.0  ;;  %vm4366_vm2 = vcmp.eq.s32.totalorder %v11455_v19, 1  ;;  %v10465_v51 = vadd.f32 %v9974_v45, %v6578_v26 }
 0x345   : > { %vm5360_vm9 = vcmp.eq.s32.totalorder %v5130_v0, 1  ;;  %v5133_v63 = vpop.permute.xlu0 %5132 }
 0x346   : > { %v5488_v13 = vsel %vm5360_vm9, %v11450_v15, -1e+30  ;;  %vm5361_vm12 = vcmp.eq.s32.totalorder %v5133_v63, 1  ;;  %v11454_v63 = vmax.f32 %v9845_v14, 0.0  ;;  %v4494_v58 = vsel %vm4366_vm2, %v10998_v53, -1e+30  ;;  %v3286_v14 = vpop.f32.mrf.mxu1 }
 0x347   : > { %v5612_v54 = vmax.f32 %v5608_v2, %v5488_v13  ;;  %v5489_v27 = vsel %vm5361_vm12, %v11452_v18, -1e+30  ;;  %v11456_v13 = vmax.f32 %v9840_v42, 0.0  ;;  %11457 = vst [vmem:[#allocation37_spill] sm:$0xff] %v10465_v51  ;;  %v4619_v39 = vmax.f32 %v4494_v58, %v4620_v22  ;;  %v11459_v42 = vld [vmem:[#allocation6_spill] sm:$0xff] }
 0x348   : > { %v5613_v43 = vmax.f32 %v5609_v8, %v5489_v27  ;;  %v5136_v36 = vpop.permute.xlu1 %5135  ;;  %v10999_v8 = vmax.f32 %v10454_v21, 0.0  ;;  %vm4365_vm14 = vcmp.eq.s32.totalorder %v11459_v42, 1  ;;  %v10478_v22 = vadd.f32 %v9974_v45, %v3286_v14  ;;  %v6581_v58 = vpop.f32.mrf.mxu1 }
 0x349   : > { %vm5362_vm0 = vcmp.eq.s32.totalorder %v5136_v36, 1  ;;  %v5139_v0 = vpop.permute.xlu0 %5138 }
 0x34a   : > { %v5490_v2 = vsel %vm5362_vm0, %v11454_v63, -1e+30  ;;  %vm5363_vm1 = vcmp.eq.s32.totalorder %v5139_v0, 1  ;;  %v11458_v0 = vmax.f32 %v9883_v56, 0.0  ;;  %v4493_v26 = vsel %vm4365_vm14, %v10999_v8, -1e+30 }
 0x34b   : > { %v5614_v15 = vmax.f32 %v5610_v61, %v5490_v2  ;;  %v5491_v40 = vsel %vm5363_vm1, %v11456_v13, -1e+30  ;;  %v11460_v2 = vmax.f32 %v9877_v3, 0.0  ;;  %11461 = vst [vmem:[#allocation39_spill] sm:$0xff] %v10478_v22  ;;  %v11463_v3 = vld [vmem:[#allocation106_spill] sm:$0xff]  ;;  %v10996_v14 = vmax.f32 %v10478_v22, 0.0 }
 0x34c   : > { %v5615_v18 = vmax.f32 %v5611_v17, %v5491_v40  ;;  %v5142_v27 = vpop.permute.xlu1 %5141  ;;  %v10994_v17 = vmax.f32 %v10465_v51, 0.0  ;;  %v4622_v40 = vmax.f32 %v4493_v26, %v4619_v39  ;;  %vm4368_vm5 = vcmp.eq.s32.totalorder %v11463_v3, 1  ;;  %v3296_v26 = vpop.f32.mrf.mxu1 }
 0x34d   : > { %vm5364_vm13 = vcmp.eq.s32.totalorder %v5142_v27, 1  ;;  %v5145_v36 = vpop.permute.xlu0 %5144  ;;  %v10493_v39 = vadd.f32 %v9974_v45, %v6581_v58  ;;  %v11468_v58 = vmax.f32 %v9928_v23, 0.0  ;;  %v10512_v3 = vadd.f32 %v9974_v45, %v3296_v26  ;;  %v11470_v23 = vld [vmem:[#allocation108_spill] sm:$0xff] }
 0x34e   : > { %v5492_v61 = vsel %vm5364_vm13, %v11458_v0, -1e+30  ;;  %vm5365_vm15 = vcmp.eq.s32.totalorder %v5145_v36, 1  ;;  %vm4370_vm10 = vcmp.eq.s32.totalorder %v11470_v23, 1  ;;  %v10527_v45 = vld [vmem:[%s10818_s6] ss:$0 sm:$0xff] }
 0x34f   : > { %v10470_v63 = vmax.f32 %v5612_v54, %v5492_v61  ;;  %v5493_v19 = vsel %vm5365_vm15, %v11460_v2, -1e+30  ;;  %v11462_v54 = vmax.f32 %v9912_v59, 0.0  ;;  %v11464_v61 = vmax.f32 %v9895_v25, 0.0  ;;  %11465 = vst [vmem:[#allocation40_spill] sm:$0xff] %v10493_v39  ;;  %v11467_v25 = vld [vmem:[#allocation8_spill] sm:$0xff] }
 0x350   : > { %v10480_v13 = vmax.f32 %v5613_v43, %v5493_v19  ;;  %v5148_v56 = vpop.permute.xlu1 %5147  ;;  %v4496_v43 = vsel %vm4368_vm5, %v10994_v17, -1e+30  ;;  %vm4367_vm6 = vcmp.eq.s32.totalorder %v11467_v25, 1  ;;  %11469 = vst [vmem:[#allocation47_spill] sm:$0xff] %v10512_v3  ;;  %v11472_v23 = vld [vmem:[#allocation10_spill] sm:$0xff] }
 0x351   : > { %vm5366_vm3 = vcmp.eq.s32.totalorder %v5148_v56, 1  ;;  %v5151_v27 = vpop.permute.xlu0 %5150  ;;  %v4621_v19 = vmax.f32 %v4496_v43, %v4622_v40  ;;  %v10995_v40 = vmax.f32 %v10493_v39, 0.0  ;;  %v6584_v43 = vpop.f32.mrf.mxu1  ;;  %vm4369_vm9 = vcmp.eq.s32.totalorder %v11472_v23, 1 }
 0x352   : > { %v5494_v36 = vsel %vm5366_vm3, %v11462_v54, -1e+30  ;;  %vm5367_vm4 = vcmp.eq.s32.totalorder %v5151_v27, 1  ;;  %v10530_v26 = vadd.f32 %v10527_v45, %v6584_v43  ;;  %vm4380_vm3 = vcmp.eq.s32.totalorder %v11488_v28, 1 }
 0x353   : > { %v10485_v0 = vmax.f32 %v5614_v15, %v5494_v36  ;;  %v5495_v42 = vsel %vm5367_vm4, %v11464_v61, -1e+30  ;;  %v11466_v15 = vmax.f32 %v9977_v33, 0.0  ;;  %vm4379_vm4 = vcmp.eq.s32.totalorder %v11489_v35, 1 }
 0x354   : > { %v10495_v2 = vmax.f32 %v5615_v18, %v5495_v42  ;;  %v5154_v59 = vpop.permute.xlu1 %5153  ;;  %v4495_v18 = vsel %vm4367_vm6, %v10996_v14, -1e+30  ;;  %11471 = vst [vmem:[#allocation42_spill] sm:$0xff] %v10530_v26  ;;  %v11491_v35 = vmax.f32 %v9981_v38, 0.0 }
 0x355   : > { %vm5368_vm7 = vcmp.eq.s32.totalorder %v5154_v59, 1  ;;  %v5157_v56 = vpop.permute.xlu0 %5156  ;;  %v4624_v42 = vmax.f32 %v4495_v18, %v4621_v19 }
 0x356   : > { %v10499_v27 = vsel %vm5368_vm7, %v11466_v15, -1e+30  ;;  %vm5369_vm8 = vcmp.eq.s32.totalorder %v5157_v56, 1  ;;  %v4498_v56 = vsel %vm4370_vm10, %v10995_v40, -1e+30  ;;  %v11000_v15 = vmax.f32 %v10512_v3, 0.0 }
 0x357   : > { %v10506_v36 = vsel %vm5369_vm8, %v11468_v58, -1e+30  ;;  %v4623_v19 = vmax.f32 %v4498_v56, %v4624_v42  ;;  %v3306_v58 = vpop.f32.mrf.mxu1  ;;  %v11004_v40 = vmax.f32 %v10530_v26, 0.0  ;;  %v11474_v42 = vld [vmem:[#allocation110_spill] sm:$0xff] }
 0x358   : > { %v10516_v61 = vpop.permute.xlu1 %5159  ;;  %v4497_v17 = vsel %vm4369_vm9, %v11000_v15, -1e+30  ;;  %v10541_v14 = vadd.f32 %v10527_v45, %v3306_v58  ;;  %vm4372_vm12 = vcmp.eq.s32.totalorder %v11474_v42, 1 }
 0x359   : > { %v10518_v59 = vpop.permute.xlu0 %5162  ;;  %v4626_v43 = vmax.f32 %v4497_v17, %v4623_v19  ;;  %v6587_v53 = vpop.f32.mrf.mxu1  ;;  %v4500_v56 = vsel %vm4372_vm12, %v11004_v40, -1e+30  ;;  %v11476_v17 = vld [vmem:[#allocation12_spill] sm:$0xff]  ;;  %vm5370_vm5 = vcmp.eq.s32.totalorder %v10516_v61, 1 }
 0x35a   : > { %11473 = vst [vmem:[#allocation41_spill] sm:$0xff] %v10541_v14  ;;  %v11008_v23 = vmax.f32 %v10541_v14, 0.0  ;;  %v10552_v15 = vadd.f32 %v10527_v45, %v6587_v53  ;;  %vm4371_vm11 = vcmp.eq.s32.totalorder %v11476_v17, 1  ;;  %vm5371_vm7 = vcmp.eq.s32.totalorder %v10518_v59, 1 }
 0x35b   : > { %v4625_v58 = vmax.f32 %v4500_v56, %v4626_v43  ;;  %v3316_v1 = vpop.f32.mrf.mxu1  ;;  %v11478_v43 = vld [vmem:[#allocation112_spill] sm:$0xff]  ;;  %v5499_v61 = vsel %vm5371_vm7, %v11491_v35, -1e+30  ;;  %v11499_v35 = vmax.f32 %v10142_v60, 0.0  ;;  %v11502_v60 = vmax.f32 %v10186_v49, 0.0 }
 0x35c   : > { %v10532_v25 = vpop.permute.xlu1 %5165  ;;  %11475 = vst [vmem:[#allocation120_spill] sm:$0xff] %v10552_v15  ;;  %v4499_v19 = vsel %vm4371_vm11, %v11008_v23, -1e+30  ;;  %v11010_v42 = vmax.f32 %v10552_v15, 0.0  ;;  %v10563_v40 = vadd.f32 %v10527_v45, %v3316_v1  ;;  %vm4374_vm0 = vcmp.eq.s32.totalorder %v11478_v43, 1 }
 0x35d   : > { %v10534_v18 = vpop.permute.xlu0 %5168  ;;  %v4628_v53 = vmax.f32 %v4499_v19, %v4625_v58  ;;  %v6590_v31 = vpop.f32.mrf.mxu1  ;;  %v11480_v58 = vld [vmem:[#allocation14_spill] sm:$0xff]  ;;  %vm5372_vm8 = vcmp.eq.s32.totalorder %v10532_v25, 1  ;;  %v11492_v25 = vmax.f32 %v10027_v24, 0.0  ;;  %v11495_v24 = vmax.f32 %v10044_v46, 0.0 }
 0x35e   : > { %11477 = vst [vmem:[#allocation121_spill] sm:$0xff] %v10563_v40  ;;  %v4502_v56 = vsel %vm4374_vm0, %v11010_v42, -1e+30  ;;  %v11014_v17 = vmax.f32 %v10563_v40, 0.0  ;;  %v10574_v23 = vadd.f32 %v10527_v45, %v6590_v31  ;;  %vm4373_vm1 = vcmp.eq.s32.totalorder %v11480_v58, 1 }
 0x35f   : > { %v4627_v1 = vmax.f32 %v4502_v56, %v4628_v53  ;;  %v3326_v54 = vpop.f32.mrf.mxu1  ;;  %v11482_v53 = vld [vmem:[#allocation114_spill] sm:$0xff]  ;;  %vm5373_vm6 = vcmp.eq.s32.totalorder %v10534_v18, 1  ;;  %v11500_v46 = vmax.f32 %v10480_v13, %v10506_v36  ;;  %v11503_v13 = vmax.f32 %v10165_v11, 0.0 }
 0x360   : > { %v10543_v34 = vpop.permute.xlu1 %5171  ;;  %11479 = vst [vmem:[#allocation46_spill] sm:$0xff] %v10574_v23  ;;  %v4501_v19 = vsel %vm4373_vm1, %v11014_v17, -1e+30  ;;  %v11018_v43 = vmax.f32 %v10574_v23, 0.0  ;;  %v10585_v42 = vadd.f32 %v10527_v45, %v3326_v54  ;;  %vm4376_vm2 = vcmp.eq.s32.totalorder %v11482_v53, 1 }
 0x361   : > { %v10545_v8 = vpop.permute.xlu0 %5174  ;;  %v4630_v31 = vmax.f32 %v4501_v19, %v4627_v1  ;;  %v6593_v15 = vpop.f32.mrf.mxu1  ;;  %v11484_v1 = vld [vmem:[#allocation16_spill] sm:$0xff]  ;;  %vm5374_vm10 = vcmp.eq.s32.totalorder %v10543_v34, 1  ;;  %v11493_v34 = vmax.f32 %v10012_v5, 0.0 }
 0x362   : > { %11481 = vst [vmem:[#allocation55_spill] sm:$0xff] %v10585_v42  ;;  %v4504_v56 = vsel %vm4376_vm2, %v11018_v43, -1e+30  ;;  %v11022_v58 = vmax.f32 %v10585_v42, 0.0  ;;  %v10596_v17 = vadd.f32 %v10527_v45, %v6593_v15  ;;  %vm4375_vm13 = vcmp.eq.s32.totalorder %v11484_v1, 1 }
 0x363   : > { %v4629_v54 = vmax.f32 %v4504_v56, %v4630_v31  ;;  %v3336_v39 = vpop.f32.mrf.mxu1  ;;  %v11486_v31 = vld [vmem:[#allocation116_spill] sm:$0xff]  ;;  %vm5375_vm9 = vcmp.eq.s32.totalorder %v10545_v8, 1  ;;  %v5501_v8 = vsel %vm5373_vm6, %v11493_v34, -1e+30 }
 0x364   : > { %v10554_v52 = vpop.permute.xlu1 %5177  ;;  %11483 = vst [vmem:[#allocation45_spill] sm:$0xff] %v10596_v17  ;;  %v4503_v19 = vsel %vm4375_vm13, %v11022_v58, -1e+30  ;;  %v11026_v53 = vmax.f32 %v10596_v17, 0.0  ;;  %v10607_v43 = vadd.f32 %v10527_v45, %v3336_v39  ;;  %vm4378_vm15 = vcmp.eq.s32.totalorder %v11486_v31, 1 }
 0x365   : > { %v10556_v41 = vpop.permute.xlu0 %5180  ;;  %v4633_v15 = vmax.f32 %v4629_v54, %v4503_v19  ;;  %v6596_v3 = vpop.f32.mrf.mxu1  ;;  %v11487_v54 = vld [vmem:[#allocation18_spill] sm:$0xff]  ;;  %vm5376_vm12 = vcmp.eq.s32.totalorder %v10554_v52, 1  ;;  %v11494_v52 = vmax.f32 %v10059_v7, 0.0 }
 0x366   : > { %11485 = vst [vmem:[#allocation54_spill] sm:$0xff] %v10607_v43  ;;  %v4506_v56 = vsel %vm4378_vm15, %v11026_v53, -1e+30  ;;  %v11030_v1 = vmax.f32 %v10607_v43, 0.0  ;;  %v10618_v58 = vadd.f32 %v10527_v45, %v6596_v3  ;;  %vm4377_vm14 = vcmp.eq.s32.totalorder %v11487_v54, 1 }
 0x367   : > { %v4632_v39 = vmax.f32 %v4506_v56, %v4633_v15  ;;  %v3346_v16 = vpop.f32.mrf.mxu1  ;;  %vm5377_vm11 = vcmp.eq.s32.totalorder %v10556_v41, 1  ;;  %v5502_v18 = vsel %vm5374_vm10, %v11494_v52, -1e+30  ;;  %v11496_v41 = vmax.f32 %v10092_v6, 0.0 }
 0x368   : > { %v10565_v47 = vpop.permute.xlu1 %5183  ;;  %v4505_v19 = vsel %vm4377_vm14, %v11030_v1, -1e+30  ;;  %v3482_v31 = vmax.f32 %v10618_v58, 0.0  ;;  %v10629_v53 = vadd.f32 %v10527_v45, %v3346_v16  ;;  %v5625_v6 = vmax.f32 %v11500_v46, %v5501_v8  ;;  %v11515_v46 = vld [vmem:[#allocation36_spill] sm:$0xff] }
 0x369   : > { %v10567_v62 = vpop.permute.xlu0 %5186  ;;  %v4631_v3 = vmax.f32 %v4505_v19, %v4632_v39  ;;  %v11490_v19 = vmax.f32 %v9989_v9, 0.0  ;;  %vm5378_vm0 = vcmp.eq.s32.totalorder %v10565_v47, 1  ;;  %v5504_v47 = vsel %vm5376_vm12, %v11496_v41, -1e+30  ;;  %v5675_v58 = vld [vmem:[#allocation2] sm:$0xff] }
 0x36a   : > { %v4508_v15 = vsel %vm4380_vm3, %v3482_v31, -1e+30  ;;  %v3481_v56 = vmax.f32 %v10629_v53, 0.0  ;;  %vm5379_vm1 = vcmp.eq.s32.totalorder %v10567_v62, 1  ;;  %v5506_v62 = vsel %vm5378_vm0, %v11499_v35, -1e+30 }
 0x36b   : > { %v4634_v1 = vmax.f32 %v4631_v3, %v4508_v15  ;;  %v5498_v3 = vsel %vm5370_vm5, %v11490_v19, -1e+30  ;;  %v5500_v15 = vsel %vm5372_vm8, %v11492_v25, -1e+30  ;;  %v5503_v19 = vsel %vm5375_vm9, %v11495_v24, -1e+30 }
 0x36c   : > { %v10576_v33 = vpop.permute.xlu1 %5189  ;;  %v4507_v16 = vsel %vm4379_vm4, %v3481_v56, -1e+30  ;;  %v5622_v38 = vmax.f32 %v10485_v0, %v5498_v3  ;;  %v11497_v0 = vmax.f32 %v10470_v63, %v10499_v27  ;;  %v11498_v3 = vmax.f32 %v10073_v48, 0.0 }
 0x36d   : > { %v10578_v26 = vpop.permute.xlu0 %5192  ;;  %v10649_v28 = vmax.f32 %v4507_v16, %v4634_v1  ;;  %v5623_v16 = vmax.f32 %v10495_v2, %v5499_v61  ;;  %vm5380_vm2 = vcmp.eq.s32.totalorder %v10576_v33, 1  ;;  %v11501_v33 = vmax.f32 %v10118_v30, 0.0 }
 0x36e   : > { %v5624_v5 = vmax.f32 %v11497_v0, %v5500_v15  ;;  %v5505_v7 = vsel %vm5377_vm11, %v11498_v3, -1e+30  ;;  %vm5381_vm13 = vcmp.eq.s32.totalorder %v10578_v26, 1  ;;  %v5626_v61 = vmax.f32 %v5622_v38, %v5502_v18 }
 0x36f   : > { %v4636_v59 = vrot.slane %v10649_v28, 4  ;;  %v5507_v25 = vsel %vm5379_vm1, %v11501_v33, -1e+30  ;;  %v5627_v48 = vmax.f32 %v5623_v16, %v5503_v19  ;;  %v5508_v15 = vsel %vm5380_vm2, %v11502_v60, -1e+30  ;;  %v11517_v33 = vld [vmem:[#allocation33_spill] sm:$0xff] }
 0x370   : > { %v10587_v14 = vpop.permute.xlu1 %5195  ;;  %v5628_v27 = vmax.f32 %v5624_v5, %v5504_v47  ;;  %v5629_v26 = vmax.f32 %v5625_v6, %v5505_v7  ;;  %v5630_v34 = vmax.f32 %v5626_v61, %v5506_v62  ;;  %v5509_v36 = vsel %vm5381_vm13, %v11503_v13, -1e+30 }
 0x371   : > { %v10589_v51 = vpop.permute.xlu0 %5198  ;;  %vm5382_vm15 = vcmp.eq.s32.totalorder %v10587_v14, 1  ;;  %v5631_v30 = vmax.f32 %v5627_v48, %v5507_v25  ;;  %v11504_v38 = vmax.f32 %v10230_v50, 0.0  ;;  %v11505_v52 = vmax.f32 %v10207_v44, 0.0 }
 0x372   : > { %vm5383_vm14 = vcmp.eq.s32.totalorder %v10589_v51, 1  ;;  %v5632_v49 = vmax.f32 %v5628_v27, %v5508_v15  ;;  %v5633_v18 = vmax.f32 %v5629_v26, %v5509_v36  ;;  %v11508_v44 = vmax.f32 %v10315_v57, 0.0 }
 0x373   : > { %v5510_v14 = vsel %vm5382_vm15, %v11504_v38, -1e+30  ;;  %v5511_v51 = vsel %vm5383_vm14, %v11505_v52, -1e+30  ;;  %v11512_v0 = vmax.f32 %v10338_v37, 0.0  ;;  %v11513_v5 = vmax.f32 %v10388_v29, 0.0 }
 0x374   : > { %v10598_v40 = vpop.permute.xlu1 %5201  ;;  %v5634_v50 = vmax.f32 %v5630_v34, %v5510_v14  ;;  %v11514_v35 = vmax.f32 %v10376_v20, 0.0  ;;  %v11516_v6 = vmax.f32 %v11515_v46, 0.0  ;;  %v11518_v25 = vmax.f32 %v11517_v33, 0.0  ;;  %v11519_v20 = vld [vmem:[#allocation38_spill] sm:$0xff]  ;;  %v11521_v34 = vld [vmem:[#allocation44_spill] sm:$0xff]  ;;  %v11543_v33 = vld [vmem:[#allocation55_spill] sm:$0xff] }
 0x375   : > { %v10600_v22 = vpop.permute.xlu0 %5204  ;;  %vm5384_vm3 = vcmp.eq.s32.totalorder %v10598_v40, 1  ;;  %v11506_v40 = vmax.f32 %v10272_v4, 0.0  ;;  %v11511_v4 = vmax.f32 %v10360_v32, 0.0  ;;  %v11520_v60 = vmax.f32 %v11519_v20, 0.0  ;;  %v11541_v46 = vld [vmem:[#allocation42_spill] sm:$0xff] }
 0x376   : > { %vm5385_vm4 = vcmp.eq.s32.totalorder %v10600_v22, 1  ;;  %v11507_v22 = vmax.f32 %v10250_v10, 0.0  ;;  %v11522_v13 = vmax.f32 %v11521_v34, 0.0 }
 0x377   : > { %v5512_v16 = vsel %vm5384_vm3, %v11506_v40, -1e+30 }
 0x378   : > { %v10609_v23 = vpop.permute.xlu1 %5207 }
 0x379   : > { %v10611_v55 = vpop.permute.xlu0 %5210  ;;  %vm5386_vm5 = vcmp.eq.s32.totalorder %v10609_v23, 1  ;;  %v5513_v23 = vsel %vm5385_vm4, %v11507_v22, -1e+30  ;;  %v11531_v22 = vld [vmem:[#allocation40_spill] sm:$0xff] }
 0x37a   : > { %vm5387_vm7 = vcmp.eq.s32.totalorder %v10611_v55, 1  ;;  %v5514_v24 = vsel %vm5386_vm5, %v11508_v44, -1e+30  ;;  %v5635_v55 = vmax.f32 %v5631_v30, %v5511_v51  ;;  %v5637_v3 = vmax.f32 %v5633_v18, %v5513_v23  ;;  %v11523_v30 = vld [vmem:[#allocation43_spill] sm:$0xff] }
 0x37b   : > { %v5638_v7 = vmax.f32 %v5634_v50, %v5514_v24  ;;  %v11524_v38 = vmax.f32 %v11523_v30, 0.0  ;;  %v11529_v50 = vld [vmem:[#allocation39_spill] sm:$0xff]  ;;  %v11532_v23 = vmax.f32 %v11531_v22, 0.0 }
 0x37c   : > { %v10620_v42 = vpop.permute.xlu1 %5213 }
 0x37d   : > { %v10622_v21 = vpop.permute.xlu0 %5216  ;;  %vm5388_vm8 = vcmp.eq.s32.totalorder %v10620_v42, 1  ;;  %v11509_v42 = vld [vmem:[#allocation34_spill] sm:$0xff] }
 0x37e   : > { %vm5389_vm6 = vcmp.eq.s32.totalorder %v10622_v21, 1  ;;  %v11510_v19 = vmax.f32 %v11509_v42, 0.0  ;;  %v5516_v47 = vsel %vm5388_vm8, %v11511_v4, -1e+30 }
 0x37f   : > { %v5517_v10 = vsel %vm5389_vm6, %v11512_v0, -1e+30 }
 0x380   : > { %v10631_v17 = vpop.permute.xlu1 %5219  ;;  %v5515_v41 = vsel %vm5387_vm7, %v11510_v19, -1e+30  ;;  %v5641_v37 = vmax.f32 %v5637_v3, %v5517_v10  ;;  %v11537_v10 = vld [vmem:[#allocation120_spill] sm:$0xff] }
 0x381   : > { %v10633_v12 = vpop.permute.xlu0 %5222  ;;  %vm5390_vm10 = vcmp.eq.s32.totalorder %v10631_v17, 1  ;;  %v5636_v17 = vmax.f32 %v5632_v49, %v5512_v16  ;;  %v5639_v32 = vmax.f32 %v5635_v55, %v5515_v41  ;;  %v11525_v49 = vld [vmem:[#allocation35_spill] sm:$0xff]  ;;  %v11533_v55 = vld [vmem:[#allocation37_spill] sm:$0xff] }
 0x382   : > { %vm5391_vm9 = vcmp.eq.s32.totalorder %v10633_v12, 1  ;;  %v5518_v57 = vsel %vm5390_vm10, %v11513_v5, -1e+30  ;;  %v11526_v52 = vmax.f32 %v11525_v49, 0.0  ;;  %v11534_v42 = vmax.f32 %v11533_v55, 0.0  ;;  %v11535_v41 = vld [vmem:[#allocation121_spill] sm:$0xff] }
 0x383   : > { %v5519_v62 = vsel %vm5391_vm9, %v11514_v35, -1e+30  ;;  %v5642_v29 = vmax.f32 %v5638_v7, %v5518_v57  ;;  %v11536_v4 = vmax.f32 %v11535_v41, 0.0  ;;  %v11538_v5 = vmax.f32 %v11537_v10, 0.0  ;;  %v11539_v35 = vld [vmem:[#allocation41_spill] sm:$0xff] }
 0x384   : > { %v10639_v54 = vpop.permute.xlu1 %5225  ;;  %v5643_v27 = vmax.f32 %v5639_v32, %v5519_v62  ;;  %v11540_v62 = vmax.f32 %v11539_v35, 0.0 }
 0x385   : > { %v10641_v43 = vpop.permute.xlu0 %5228  ;;  %vm5392_vm12 = vcmp.eq.s32.totalorder %v10639_v54, 1  ;;  %v5640_v54 = vmax.f32 %v5636_v17, %v5516_v47 }
 0x386   : > { %vm5393_vm11 = vcmp.eq.s32.totalorder %v10641_v43, 1  ;;  %v5520_v61 = vsel %vm5392_vm12, %v11516_v6, -1e+30  ;;  %v11542_v6 = vmax.f32 %v11541_v46, 0.0 }
 0x387   : > { %v5521_v43 = vsel %vm5393_vm11, %v11518_v25, -1e+30  ;;  %v5644_v26 = vmax.f32 %v5640_v54, %v5520_v61  ;;  %v11544_v25 = vmax.f32 %v11543_v33, 0.0 }
 0x388   : > { %v10647_v45 = vpop.permute.xlu1 %5231  ;;  %v5645_v36 = vmax.f32 %v5641_v37, %v5521_v43 }
 0x389   : > { %v10652_v39 = vpop.permute.xlu0 %5234  ;;  %vm5394_vm0 = vcmp.eq.s32.totalorder %v10647_v45, 1 }
 0x38a   : > { %v5522_v15 = vsel %vm5394_vm0, %v11520_v60, -1e+30  ;;  %vm5395_vm13 = vcmp.eq.s32.totalorder %v10652_v39, 1 }
 0x38b   : > { %v5646_v14 = vmax.f32 %v5642_v29, %v5522_v15  ;;  %v5523_v39 = vsel %vm5395_vm13, %v11526_v52, -1e+30  ;;  %v11547_v15 = vld [vmem:[#allocation46_spill] sm:$0xff] }
 0x38c   : > { %v10663_v1 = vpop.permute.xlu1 %5237  ;;  %v5647_v17 = vmax.f32 %v5643_v27, %v5523_v39 }
 0x38d   : > { %v10670_v9 = vpop.permute.xlu0 %5240  ;;  %vm5396_vm1 = vcmp.eq.s32.totalorder %v10663_v1, 1 }
 0x38e   : > { %vm5397_vm2 = vcmp.eq.s32.totalorder %v10670_v9, 1  ;;  %v5524_v1 = vsel %vm5396_vm1, %v11522_v13, -1e+30  ;;  %v11549_v13 = vld [vmem:[#allocation45_spill] sm:$0xff] }
 0x38f   : > { %v5525_v9 = vsel %vm5397_vm2, %v11524_v38, -1e+30  ;;  %v5648_v16 = vmax.f32 %v5644_v26, %v5524_v1  ;;  %v11550_v1 = vmax.f32 %v11549_v13, 0.0 }
 0x390   : > { %v10692_v2 = vpop.permute.xlu1 %5243 }
 0x391   : > { %v10700_v63 = vpop.permute.xlu0 %5246  ;;  %vm5398_vm14 = vcmp.eq.s32.totalorder %v10692_v2, 1  ;;  %v11530_v2 = vmax.f32 %v11529_v50, 0.0 }
 0x392   : > { %vm5399_vm4 = vcmp.eq.s32.totalorder %v10700_v63, 1  ;;  %v5649_v63 = vmax.f32 %v5645_v36, %v5525_v9 }
 0x393   : > { %v5527_v19 = vsel %vm5399_vm4, %v11534_v42, -1e+30 }
 0x394   : > { %v5250_v8 = vpop.permute.xlu1 %5249  ;;  %v5651_v54 = vmax.f32 %v5647_v17, %v5527_v19 }
 0x395   : > { %v5253_v11 = vpop.permute.xlu0 %5252  ;;  %vm5400_vm15 = vcmp.eq.s32.totalorder %v5250_v8, 1  ;;  %v11527_v8 = vld [vmem:[#allocation47_spill] sm:$0xff] }
 0x396   : > { %vm5401_vm3 = vcmp.eq.s32.totalorder %v5253_v11, 1  ;;  %v11528_v51 = vmax.f32 %v11527_v8, 0.0  ;;  %v5526_v11 = vsel %vm5398_vm14, %v11530_v2, -1e+30 }
 0x397   : > { %v5529_v44 = vsel %vm5401_vm3, %v11532_v23, -1e+30  ;;  %v5650_v3 = vmax.f32 %v5646_v14, %v5526_v11  ;;  %v4637_v14 = vmax.f32 %v10649_v28, %v4636_v59  ;;  %v3611_v28 = vlaneseq }
 0x398   : > { %v5256_v21 = vpop.permute.xlu1 %5255  ;;  %v5528_v18 = vsel %vm5400_vm15, %v11528_v51, -1e+30  ;;  %v5653_v7 = vmax.f32 %v5649_v63, %v5529_v44 }
 0x399   : > { %v5259_v12 = vpop.permute.xlu0 %5258  ;;  %vm5402_vm8 = vcmp.eq.s32.totalorder %v5256_v21, 1  ;;  %v5652_v0 = vmax.f32 %v5648_v16, %v5528_v18  ;;  %v4638_v50 = vrot.slane %v4637_v14, 2  ;;  %v3612_v63 = vshrl.u32 %v3611_v28, 7 }
 0x39a   : > { %vm5403_vm6 = vcmp.eq.s32.totalorder %v5259_v12, 1  ;;  %v5530_v21 = vsel %vm5402_vm8, %v11540_v62, -1e+30 }
 0x39b   : > { %v5531_v12 = vsel %vm5403_vm6, %v11542_v6, -1e+30  ;;  %v5654_v60 = vmax.f32 %v5650_v3, %v5530_v21  ;;  %v4639_v22 = vmax.f32 %v4637_v14, %v4638_v50  ;;  %vm4642_vm2 = vcmp.eq.s32.totalorder %v3612_v63, 0 }
 0x39c   : > { %v5262_v48 = vpop.permute.xlu1 %5261  ;;  %v5655_v30 = vmax.f32 %v5651_v54, %v5531_v12  ;;  %vm5673_vm13 = vcmp.eq.s32.totalorder %v3612_v63, 1 }
 0x39d   : > { %v5265_v45 = vpop.permute.xlu0 %5264  ;;  %vm5404_vm5 = vcmp.eq.s32.totalorder %v5262_v48, 1  ;;  %v11545_v48 = vld [vmem:[#allocation54_spill] sm:$0xff]  ;;  %v4640_v44 = vrot.slane %v4639_v22, 1 }
 0x39e   : > { %vm5405_vm7 = vcmp.eq.s32.totalorder %v5265_v45, 1  ;;  %v5532_v47 = vsel %vm5404_vm5, %v11536_v4, -1e+30  ;;  %v11546_v27 = vmax.f32 %v11545_v48, 0.0  ;;  %v11548_v45 = vmax.f32 %v11547_v15, 0.0 }
 0x39f   : > { %v5533_v57 = vsel %vm5405_vm7, %v11538_v5, -1e+30  ;;  %v5656_v61 = vmax.f32 %v5652_v0, %v5532_v47  ;;  %v4641_v53 = vmax.f32 %v4639_v22, %v4640_v44 }
 0x3a0   : > { %v5268_v40 = vpop.permute.xlu1 %5267  ;;  %v5657_v29 = vmax.f32 %v5653_v7, %v5533_v57 }
 0x3a1   : > { %v5271_v24 = vpop.permute.xlu0 %5270  ;;  %vm5406_vm10 = vcmp.eq.s32.totalorder %v5268_v40, 1 }
 0x3a2   : > { %vm5407_vm9 = vcmp.eq.s32.totalorder %v5271_v24, 1  ;;  %v5534_v43 = vsel %vm5406_vm10, %v11544_v25, -1e+30 }
 0x3a3   : > { %v5535_v26 = vsel %vm5407_vm9, %v11548_v45, -1e+30  ;;  %v5658_v49 = vmax.f32 %v5654_v60, %v5534_v43 }
 0x3a4   : > { %v5274_v32 = vpop.permute.xlu1 %5273  ;;  %v5659_v39 = vmax.f32 %v5655_v30, %v5535_v26 }
 0x3a5   : > { %vm5408_vm12 = vcmp.eq.s32.totalorder %v5274_v32, 1  ;;  %v5277_v37 = vpop.permute.xlu0 %5276 }
 0x3a6   : > { %v5536_v20 = vsel %vm5408_vm12, %v11546_v27, -1e+30  ;;  %vm5409_vm11 = vcmp.eq.s32.totalorder %v5277_v37, 1 }
 0x3a7   : > { %v5660_v34 = vmax.f32 %v5656_v61, %v5536_v20  ;;  %v5537_v36 = vsel %vm5409_vm11, %v11550_v1, -1e+30 }
 0x3a8   : > { %v5661_v38 = vmax.f32 %v5657_v29, %v5537_v36  ;;  %v5280_v9 = vpop.permute.xlu1 %5279 }
 0x3a9   : > { %vm5410_vm0 = vcmp.eq.s32.totalorder %v5280_v9, 1  ;;  %v5283_v52 = vpop.permute.xlu0 %5282 }
 0x3aa   : > { %v5664_v8 = vmax.f32 %v5660_v34, %v5661_v38  ;;  %v5538_v51 = vsel %vm5410_vm0, %v3481_v56, -1e+30  ;;  %vm5411_vm1 = vcmp.eq.s32.totalorder %v5283_v52, 1 }
 0x3ab   : > { %v5662_v18 = vmax.f32 %v5658_v49, %v5538_v51  ;;  %v5539_v40 = vsel %vm5411_vm1, %v3482_v31, -1e+30  ;;  %v4643_v31 = vsel %vm4642_vm2, %v4641_v53, -1e+30 }
 0x3ac   : > { %v5663_v16 = vmax.f32 %v5659_v39, %v5539_v40 }
 0x3ae   : > { %v5665_v2 = vmax.f32 %v5662_v18, %v5663_v16 }
 0x3b0   : > { %v5666_v11 = vmax.f32 %v5664_v8, %v5665_v2 }
 0x3b2   : > { %v5667_v23 = vrot.slane %v5666_v11, 4 }
 0x3b4   : > { %v5668_v59 = vmax.f32 %v5666_v11, %v5667_v23 }
 0x3b6   : > { %v5669_v24 = vrot.slane %v5668_v59, 2 }
 0x3b8   : > { %v5670_v55 = vmax.f32 %v5668_v59, %v5669_v24 }
 0x3ba   : > { %v5671_v56 = vrot.slane %v5670_v55, 1 }
 0x3bc   : > { %v5672_v42 = vmax.f32 %v5670_v55, %v5671_v56 }
 0x3be   : > { %v5674_v19 = vsel %vm5673_vm13, %v5672_v42, %v4643_v31 }
 0x3bf   : > { %v5676_v41 = vmax.f32 %v5675_v58, %v5674_v19 }
 0x3c1   : > { %5677 = vst [vmem:[#allocation2] sm:$0xff] %v5676_v41 }
 0x3c2   : > { %6811 = shalt.err (!%p6808_p13)
}
 0x3c3   : > { %6630 = dma.vmem_to_hbm [thread:$0]  (%p10788_p6), %s5688_s18, 128, %s10819_s7, [#allocation3]  }
 0x3c4   : > { %6835 = dma.done.wait (%p10788_p6), [#allocation3], 128  }
 0x3c5   : > { %6837 = vsyncadd (%p10788_p6), [#allocation3], 4294967168 }
 0x3c6 PF: > { %s18_s26 = sadd.s32 1, %s6848_s26   ;;  %s11552_s24 = smov %s6844_s25 }
 0x3c7   : > { %p15_p0 = scmp.ge.s32.totalorder %s18_s26, 4   ;;  %s11553_s25 = smov %s11555_s28 }
 0x3c9   :  { %17 = sbr.rel (!%p15_p0) target bundleno = 2 (0x2), region = 86 }
 0x3ce   :  { %5700 = vsyncpa [#allocation3], 1 }
 0x3cf   :  { %5702 = vsyncpa [#allocation3 + $0x1], 1 }

</bundles_post_ra>
